<compile_context>
chip_gen: v5e
topology: v5e:2x2
jax: 0.10.0
libtpu: 0.0.40
codegen_flags: <defaults>
</compile_context>

<pallas_src>
import jax
import jax.numpy as jnp
import numpy as np
from jax.experimental import pallas as pl
from jax.experimental.pallas import tpu as pltpu


def _v1_backbone_kernel(x_ref, w1_ref, b1_ref, w2_ref, b2_ref, w3_ref, b3_ref,
                        w4_ref, b4_ref, wfc_ref, bfc_ref, out_ref,
                        h1_pad, h2_pad, h3_s, fc_in):
    f32 = jnp.float32
    B = x_ref.shape[0]

    # ---- Conv2d(1, 50, (1,5), 'valid') + ReLU  (Cin=1 -> broadcast MAC) -------
    w1 = w1_ref[...]                                       # (5, 50)
    h1 = x_ref[:, 0:80, :] * w1[0:1, :]                    # (B,80,1)*(1,50)->(B,80,50)
    for k in range(1, 5):
        h1 = h1 + x_ref[:, k:k + 80, :] * w1[k:k + 1, :]
    h1 = jnp.maximum(h1 + b1_ref[...], 0.0)                # (B, 80, 50)

    # Stage h1 with one zero row on each side (for the 'same'-padding shifts).
    h1_pad[:, 0:1, :] = jnp.zeros((B, 1, 50), f32)
    h1_pad[:, 81:82, :] = jnp.zeros((B, 1, 50), f32)
    h1_pad[:, 1:81, :] = h1

    # ---- Conv2d(50, 50, (1,3), 'same') + ReLU : one im2col matmul -------------
    xc2 = jnp.concatenate(
        [h1_pad[:, 0:80, :],        # tap 0: h1[w-1] (row -1 is zero)
         h1,                        # tap 1: h1[w]
         h1_pad[:, 2:82, :]],       # tap 2: h1[w+1] (row 80 is zero)
        axis=2)                                            # (B, 80, 150)
    h2 = jnp.dot(xc2.reshape(B * 80, 150), w2_ref[...],
                 preferred_element_type=f32)
    h2 = jnp.maximum(h2 + b2_ref[...], 0.0)                # (B*80, 50)

    # Stage conv2 output with a zero tail so the padded conv3 reads stay in range.
    h2_pad[:, 0:80, :] = h2.reshape(B, 80, 50)
    h2_pad[:, 80:88, :] = jnp.zeros((B, 8, 50), f32)

    # ---- MaxPool2d(1,2) fused into Conv2d(50, 40, (1,5), 'valid') -------------
    # pooled[j] = h2[2j]; conv3 tap k at output t reads h2[2t + 2k]  (strided).
    # Computed at 40 output rows (rows 36..39 are padding garbage, never used).
    xc3 = jnp.concatenate(
        [h2_pad[:, pl.ds(2 * k, 40, stride=2), :] for k in range(5)],
        axis=2)                                            # (B, 40, 250)
    h3 = jnp.dot(xc3.reshape(B * 40, 250), w3_ref[...],
                 preferred_element_type=f32)
    h3 = jnp.maximum(h3 + b3_ref[...], 0.0)                # (B*40, 40)
    h3_s[...] = h3.reshape(B, 40, 40)

    # ---- MaxPool2d(1,2) fused into Conv2d(40, 20, (1,3), 'valid') -------------
    # conv4 tap k at output t reads conv3[2t + 2k] (<= 34, valid region only).
    xc4 = jnp.concatenate(
        [h3_s[:, pl.ds(2 * k, 16, stride=2), :] for k in range(3)],
        axis=2)                                            # (B, 16, 120)
    h4 = jnp.dot(xc4.reshape(B * 16, 120), w4_ref[...],
                 preferred_element_type=f32)
    h4 = jnp.maximum(h4 + b4_ref[...], 0.0)                # (B*16, 20)
    h4_3d = h4.reshape(B, 16, 20)                          # sublane-aligned split

    # ---- Flatten in PyTorch NCHW order (index = c*16 + w) + Linear(320, 200) --
    # fc_in[b, 20*w + c] = h4[b, w, c]; wfc was pre-permuted to match this order.
    # Relayout directly from the matmul result value (no extra VMEM round trip).
    for w in range(16):
        fc_in[:, 20 * w:20 * (w + 1)] = h4_3d[:, w, :]     # (B, 20) slab copies
    out_ref[...] = (jnp.dot(fc_in[...], wfc_ref[...],
                            preferred_element_type=f32) + bfc_ref[...])
    # (Dropout(0.2)/Dropout(0.4) are identity in eval mode.)


def v1_backbone_pallas(x_nchw, params, *, block_b=64):
    """x_nchw: (N, 1, 1, 84) float32, PyTorch NCHW convention. Returns (N, 200)."""
    N, Cin, H, W0 = x_nchw.shape
    assert Cin == 1 and H == 1 and W0 == 84, "V1_Backbone expects (N, 1, 1, 84)"

    def conv_w(w):  # (Cout, Cin, 1, K) -> fused im2col weight (K*Cin, Cout)
        t = jnp.transpose(w[:, :, 0, :], (2, 1, 0))        # (K, Cin, Cout)
        return t.reshape(t.shape[0] * t.shape[1], t.shape[2])

    w1 = conv_w(params["conv1_w"])                         # (5, 50)
    w2 = conv_w(params["conv2_w"])                         # (150, 50)
    w3 = conv_w(params["conv3_w"])                         # (250, 40)
    w4 = conv_w(params["conv4_w"])                         # (120, 20)
    b1 = params["conv1_b"][None, :]
    b2 = params["conv2_b"][None, :]
    b3 = params["conv3_b"][None, :]
    b4 = params["conv4_b"][None, :]
    # fc weight (200, 320); PyTorch flatten order is c*16 + w, kernel staging
    # buffer uses w*20 + c, so permute accordingly -> (320, 200).
    wfc = jnp.transpose(params["fc_w"].reshape(200, 20, 16),
                        (2, 1, 0)).reshape(320, 200)
    bfc = params["fc_b"][None, :]

    # Batch tile: multiple of 8, at most block_b; pad N up to a full tile.
    B = int(min(block_b, ((N + 7) // 8) * 8))
    B = max(8, (B // 8) * 8)
    Np = ((N + B - 1) // B) * B
    x_wc = x_nchw.reshape(N, W0, 1)                        # (N, 84, 1)
    if Np != N:
        x_wc = jnp.concatenate(
            [x_wc, jnp.zeros((Np - N, W0, 1), x_wc.dtype)], axis=0)

    out = pl.pallas_call(
        _v1_backbone_kernel,
        out_shape=jax.ShapeDtypeStruct((Np, 200), jnp.float32),
        grid=(Np // B,),
        in_specs=[
            pl.BlockSpec((B, W0, 1), lambda i: (i, 0, 0)),   # x (per batch block)
            pl.BlockSpec(w1.shape, lambda i: (0, 0)),        # weights stay resident
            pl.BlockSpec(b1.shape, lambda i: (0, 0)),
            pl.BlockSpec(w2.shape, lambda i: (0, 0)),
            pl.BlockSpec(b2.shape, lambda i: (0, 0)),
            pl.BlockSpec(w3.shape, lambda i: (0, 0)),
            pl.BlockSpec(b3.shape, lambda i: (0, 0)),
            pl.BlockSpec(w4.shape, lambda i: (0, 0)),
            pl.BlockSpec(b4.shape, lambda i: (0, 0)),
            pl.BlockSpec(wfc.shape, lambda i: (0, 0)),
            pl.BlockSpec(bfc.shape, lambda i: (0, 0)),
        ],
        out_specs=pl.BlockSpec((B, 200), lambda i: (i, 0)),
        scratch_shapes=[
            pltpu.VMEM((B, 82, 50), jnp.float32),            # h1 (+1 zero row each side)
            pltpu.VMEM((B, 88, 50), jnp.float32),            # h2 (+8 zero tail rows)
            pltpu.VMEM((B, 40, 40), jnp.float32),            # conv3 output (36 real rows)
            pltpu.VMEM((B, 320), jnp.float32),               # lane-dense FC input
        ],
        compiler_params=pltpu.CompilerParams(
            dimension_semantics=("parallel",),
            vmem_limit_bytes=32 * 1024 * 1024),
    )(x_wc, w1, b1, w2, b2, w3, b3, w4, b4, wfc, bfc)
    return out[:N]                                          # (N, 200)


def v1_backbone_reference(x, params):
    """Pure-JAX reference mirroring the PyTorch module (eval mode)."""
    P = jax.lax.Precision.HIGHEST

    def conv(h, w, b, padding):
        y = jax.lax.conv_general_dilated(
            h, w, window_strides=(1, 1), padding=padding,
            dimension_numbers=("NCHW", "OIHW", "NCHW"), precision=P)
        return y + b.reshape(1, -1, 1, 1)

    h = jax.nn.relu(conv(x, params["conv1_w"], params["conv1_b"], "VALID"))
    h = jax.nn.relu(conv(h, params["conv2_w"], params["conv2_b"], [(0, 0), (1, 1)]))
    h = h[:, :, ::2, ::2]                      # MaxPool2d(1, 2)
    h = jax.nn.relu(conv(h, params["conv3_w"], params["conv3_b"], "VALID"))
    h = h[:, :, ::2, ::2]                      # MaxPool2d(1, 2)
    h = jax.nn.relu(conv(h, params["conv4_w"], params["conv4_b"], "VALID"))
    h = h.reshape(h.shape[0], -1)              # (N, 320), NCHW flatten order
    return jnp.dot(h, params["fc_w"].T, precision=P) + params["fc_b"]


if __name__ == "__main__":
    key = jax.random.PRNGKey(0)
    ks = jax.random.split(key, 11)

    def u(k, shape, fan_in):
        bound = 1.0 / np.sqrt(fan_in)
        return jax.random.uniform(k, shape, jnp.float32, -bound, bound)

    params = {
        "conv1_w": u(ks[0], (50, 1, 1, 5), 5),    "conv1_b": u(ks[1], (50,), 5),
        "conv2_w": u(ks[2], (50, 50, 1, 3), 150), "conv2_b": u(ks[3], (50,), 150),
        "conv3_w": u(ks[4], (40, 50, 1, 5), 250), "conv3_b": u(ks[5], (40,), 250),
        "conv4_w": u(ks[6], (20, 40, 1, 3), 120), "conv4_b": u(ks[7], (20,), 120),
        "fc_w":    u(ks[8], (200, 320), 320),     "fc_b":    u(ks[9], (200,), 320),
    }

    # Smallest input consistent with Linear(320, 200): width 84 -> 20*16 = 320.
    x = jax.random.normal(ks[10], (2, 1, 1, 84), jnp.float32)      # NCHW

    y = jax.block_until_ready(v1_backbone_pallas(x, params))       # (2, 200)
    y_ref = v1_backbone_reference(x, params)
    np.testing.assert_allclose(np.asarray(y), np.asarray(y_ref),
                               rtol=2e-3, atol=2e-3)
    print("KERNEL_OK")
</pallas_src>

<mosaic_0001>
module attributes {stable_mosaic.version = 11 : i64} {
  func.func @_v1_backbone_kernel(%arg0: i32, %arg1: memref<8x84x1xf32, #tpu.memory_space<vmem>>, %arg2: memref<5x50xf32, #tpu.memory_space<vmem>>, %arg3: memref<1x50xf32, #tpu.memory_space<vmem>>, %arg4: memref<150x50xf32, #tpu.memory_space<vmem>>, %arg5: memref<1x50xf32, #tpu.memory_space<vmem>>, %arg6: memref<250x40xf32, #tpu.memory_space<vmem>>, %arg7: memref<1x40xf32, #tpu.memory_space<vmem>>, %arg8: memref<120x20xf32, #tpu.memory_space<vmem>>, %arg9: memref<1x20xf32, #tpu.memory_space<vmem>>, %arg10: memref<320x200xf32, #tpu.memory_space<vmem>>, %arg11: memref<1x200xf32, #tpu.memory_space<vmem>>, %arg12: memref<8x200xf32, #tpu.memory_space<vmem>>, %arg13: memref<8x82x50xf32, #tpu.memory_space<vmem>>, %arg14: memref<8x88x50xf32, #tpu.memory_space<vmem>>, %arg15: memref<8x40x40xf32, #tpu.memory_space<vmem>>, %arg16: memref<8x320xf32, #tpu.memory_space<vmem>>) attributes {dimension_semantics = [#tpu.dimension_semantics<parallel>], iteration_bounds = array<i64: 1>, scalar_prefetch = 0 : i64, scratch_operands = 4 : i64, tpu.core_type = #tpu.core_type<tc>, window_params = [{transform_indices = @transform_0, window_bounds = array<i64: 8, 84, 1>}, {pipeline_mode = #tpu.pipeline_mode<synchronous>, transform_indices = @transform_1, window_bounds = array<i64: 5, 50>}, {pipeline_mode = #tpu.pipeline_mode<synchronous>, transform_indices = @transform_2, window_bounds = array<i64: 1, 50>}, {pipeline_mode = #tpu.pipeline_mode<synchronous>, transform_indices = @transform_3, window_bounds = array<i64: 150, 50>}, {pipeline_mode = #tpu.pipeline_mode<synchronous>, transform_indices = @transform_4, window_bounds = array<i64: 1, 50>}, {pipeline_mode = #tpu.pipeline_mode<synchronous>, transform_indices = @transform_5, window_bounds = array<i64: 250, 40>}, {pipeline_mode = #tpu.pipeline_mode<synchronous>, transform_indices = @transform_6, window_bounds = array<i64: 1, 40>}, {pipeline_mode = #tpu.pipeline_mode<synchronous>, transform_indices = @transform_7, window_bounds = array<i64: 120, 20>}, {pipeline_mode = #tpu.pipeline_mode<synchronous>, transform_indices = @transform_8, window_bounds = array<i64: 1, 20>}, {pipeline_mode = #tpu.pipeline_mode<synchronous>, transform_indices = @transform_9, window_bounds = array<i64: 320, 200>}, {pipeline_mode = #tpu.pipeline_mode<synchronous>, transform_indices = @transform_10, window_bounds = array<i64: 1, 200>}, {transform_indices = @transform_11, window_bounds = array<i64: 8, 200>}]} {
    %c0 = arith.constant 0 : index
    %c0_0 = arith.constant 0 : index
    %0 = vector.load %arg2[%c0, %c0_0] : memref<5x50xf32, #tpu.memory_space<vmem>>, vector<5x50xf32>
    %c0_1 = arith.constant 0 : index
    %c0_2 = arith.constant 0 : index
    %c0_3 = arith.constant 0 : index
    %1 = vector.load %arg1[%c0_1, %c0_2, %c0_3] : memref<8x84x1xf32, #tpu.memory_space<vmem>>, vector<8x80x1xf32>
    %2 = vector.extract_strided_slice %0 {offsets = [0, 0], sizes = [1, 50], strides = [1, 1]} : vector<5x50xf32> to vector<1x50xf32>
    %3 = vector.shape_cast %2 : vector<1x50xf32> to vector<1x1x50xf32>
    %4 = vector.broadcast %1 : vector<8x80x1xf32> to vector<8x80x50xf32>
    %5 = vector.broadcast %3 : vector<1x1x50xf32> to vector<8x80x50xf32>
    %6 = arith.mulf %4, %5 : vector<8x80x50xf32>
    %c0_4 = arith.constant 0 : index
    %c1 = arith.constant 1 : index
    %c0_5 = arith.constant 0 : index
    %7 = vector.load %arg1[%c0_4, %c1, %c0_5] : memref<8x84x1xf32, #tpu.memory_space<vmem>>, vector<8x80x1xf32>
    %8 = vector.extract_strided_slice %0 {offsets = [1, 0], sizes = [1, 50], strides = [1, 1]} : vector<5x50xf32> to vector<1x50xf32>
    %9 = vector.shape_cast %8 : vector<1x50xf32> to vector<1x1x50xf32>
    %10 = vector.broadcast %7 : vector<8x80x1xf32> to vector<8x80x50xf32>
    %11 = vector.broadcast %9 : vector<1x1x50xf32> to vector<8x80x50xf32>
    %12 = arith.mulf %10, %11 : vector<8x80x50xf32>
    %13 = arith.addf %6, %12 : vector<8x80x50xf32>
    %c0_6 = arith.constant 0 : index
    %c2 = arith.constant 2 : index
    %c0_7 = arith.constant 0 : index
    %14 = vector.load %arg1[%c0_6, %c2, %c0_7] : memref<8x84x1xf32, #tpu.memory_space<vmem>>, vector<8x80x1xf32>
    %15 = vector.extract_strided_slice %0 {offsets = [2, 0], sizes = [1, 50], strides = [1, 1]} : vector<5x50xf32> to vector<1x50xf32>
    %16 = vector.shape_cast %15 : vector<1x50xf32> to vector<1x1x50xf32>
    %17 = vector.broadcast %14 : vector<8x80x1xf32> to vector<8x80x50xf32>
    %18 = vector.broadcast %16 : vector<1x1x50xf32> to vector<8x80x50xf32>
    %19 = arith.mulf %17, %18 : vector<8x80x50xf32>
    %20 = arith.addf %13, %19 : vector<8x80x50xf32>
    %c0_8 = arith.constant 0 : index
    %c3 = arith.constant 3 : index
    %c0_9 = arith.constant 0 : index
    %21 = vector.load %arg1[%c0_8, %c3, %c0_9] : memref<8x84x1xf32, #tpu.memory_space<vmem>>, vector<8x80x1xf32>
    %22 = vector.extract_strided_slice %0 {offsets = [3, 0], sizes = [1, 50], strides = [1, 1]} : vector<5x50xf32> to vector<1x50xf32>
    %23 = vector.shape_cast %22 : vector<1x50xf32> to vector<1x1x50xf32>
    %24 = vector.broadcast %21 : vector<8x80x1xf32> to vector<8x80x50xf32>
    %25 = vector.broadcast %23 : vector<1x1x50xf32> to vector<8x80x50xf32>
    %26 = arith.mulf %24, %25 : vector<8x80x50xf32>
    %27 = arith.addf %20, %26 : vector<8x80x50xf32>
    %c0_10 = arith.constant 0 : index
    %c4 = arith.constant 4 : index
    %c0_11 = arith.constant 0 : index
    %28 = vector.load %arg1[%c0_10, %c4, %c0_11] : memref<8x84x1xf32, #tpu.memory_space<vmem>>, vector<8x80x1xf32>
    %29 = vector.extract_strided_slice %0 {offsets = [4, 0], sizes = [1, 50], strides = [1, 1]} : vector<5x50xf32> to vector<1x50xf32>
    %30 = vector.shape_cast %29 : vector<1x50xf32> to vector<1x1x50xf32>
    %31 = vector.broadcast %28 : vector<8x80x1xf32> to vector<8x80x50xf32>
    %32 = vector.broadcast %30 : vector<1x1x50xf32> to vector<8x80x50xf32>
    %33 = arith.mulf %31, %32 : vector<8x80x50xf32>
    %34 = arith.addf %27, %33 : vector<8x80x50xf32>
    %c0_12 = arith.constant 0 : index
    %c0_13 = arith.constant 0 : index
    %35 = vector.load %arg3[%c0_12, %c0_13] : memref<1x50xf32, #tpu.memory_space<vmem>>, vector<1x50xf32>
    %36 = vector.shape_cast %35 : vector<1x50xf32> to vector<1x1x50xf32>
    %37 = vector.broadcast %36 : vector<1x1x50xf32> to vector<8x80x50xf32>
    %38 = arith.addf %34, %37 : vector<8x80x50xf32>
    %cst = arith.constant 0.000000e+00 : f32
    %39 = vector.broadcast %cst : f32 to vector<8x80x50xf32>
    %40 = arith.maximumf %38, %39 : vector<8x80x50xf32>
    %cst_14 = arith.constant 0.000000e+00 : f32
    %41 = vector.broadcast %cst_14 : f32 to vector<8x1x50xf32>
    %c0_15 = arith.constant 0 : index
    %c0_16 = arith.constant 0 : index
    %c0_17 = arith.constant 0 : index
    %42 = vector.load %arg13[%c0_15, %c0_16, %c0_17] : memref<8x82x50xf32, #tpu.memory_space<vmem>>, vector<8x1x50xf32>
    tpu.vector_store %arg13[%c0_15, %c0_16, %c0_17], %41 {strides = array<i32>} : memref<8x82x50xf32, #tpu.memory_space<vmem>>, vector<8x1x50xf32>,
    %cst_18 = arith.constant 0.000000e+00 : f32
    %43 = vector.broadcast %cst_18 : f32 to vector<8x1x50xf32>
    %c0_19 = arith.constant 0 : index
    %c81 = arith.constant 81 : index
    %c0_20 = arith.constant 0 : index
    %44 = vector.load %arg13[%c0_19, %c81, %c0_20] : memref<8x82x50xf32, #tpu.memory_space<vmem>>, vector<8x1x50xf32>
    tpu.vector_store %arg13[%c0_19, %c81, %c0_20], %43 {strides = array<i32>} : memref<8x82x50xf32, #tpu.memory_space<vmem>>, vector<8x1x50xf32>,
    %c0_21 = arith.constant 0 : index
    %c1_22 = arith.constant 1 : index
    %c0_23 = arith.constant 0 : index
    %45 = vector.load %arg13[%c0_21, %c1_22, %c0_23] : memref<8x82x50xf32, #tpu.memory_space<vmem>>, vector<8x80x50xf32>
    tpu.vector_store %arg13[%c0_21, %c1_22, %c0_23], %40 {strides = array<i32>} : memref<8x82x50xf32, #tpu.memory_space<vmem>>, vector<8x80x50xf32>,
    %c0_24 = arith.constant 0 : index
    %c0_25 = arith.constant 0 : index
    %c0_26 = arith.constant 0 : index
    %46 = vector.load %arg13[%c0_24, %c0_25, %c0_26] : memref<8x82x50xf32, #tpu.memory_space<vmem>>, vector<8x80x50xf32>
    %c0_27 = arith.constant 0 : index
    %c2_28 = arith.constant 2 : index
    %c0_29 = arith.constant 0 : index
    %47 = vector.load %arg13[%c0_27, %c2_28, %c0_29] : memref<8x82x50xf32, #tpu.memory_space<vmem>>, vector<8x80x50xf32>
    %48 = tpu.concatenate %46, %40, %47 in 2 : vector<8x80x50xf32>, vector<8x80x50xf32>, vector<8x80x50xf32> -> vector<8x80x150xf32>
    %49 = vector.shape_cast %48 : vector<8x80x150xf32> to vector<640x150xf32>
    %c0_30 = arith.constant 0 : index
    %c0_31 = arith.constant 0 : index
    %50 = vector.load %arg4[%c0_30, %c0_31] : memref<150x50xf32, #tpu.memory_space<vmem>>, vector<150x50xf32>
    %cst_32 = arith.constant dense<0.000000e+00> : vector<640x50xf32>
    %51 = tpu.matmul %49, %50, %cst_32 {dimension_numbers = #tpu.dot_dimension_numbers<[1], [0], [0], [1], [0, 0, 1, 1], [], []>} : vector<640x150xf32>, vector<150x50xf32>, vector<640x50xf32> -> vector<640x50xf32>
    %c0_33 = arith.constant 0 : index
    %c0_34 = arith.constant 0 : index
    %52 = vector.load %arg5[%c0_33, %c0_34] : memref<1x50xf32, #tpu.memory_space<vmem>>, vector<1x50xf32>
    %53 = vector.broadcast %52 : vector<1x50xf32> to vector<640x50xf32>
    %54 = arith.addf %51, %53 : vector<640x50xf32>
    %cst_35 = arith.constant 0.000000e+00 : f32
    %55 = vector.broadcast %cst_35 : f32 to vector<640x50xf32>
    %56 = arith.maximumf %54, %55 : vector<640x50xf32>
    %57 = vector.shape_cast %56 : vector<640x50xf32> to vector<8x80x50xf32>
    %c0_36 = arith.constant 0 : index
    %c0_37 = arith.constant 0 : index
    %c0_38 = arith.constant 0 : index
    %58 = vector.load %arg14[%c0_36, %c0_37, %c0_38] : memref<8x88x50xf32, #tpu.memory_space<vmem>>, vector<8x80x50xf32>
    tpu.vector_store %arg14[%c0_36, %c0_37, %c0_38], %57 {strides = array<i32>} : memref<8x88x50xf32, #tpu.memory_space<vmem>>, vector<8x80x50xf32>,
    %cst_39 = arith.constant 0.000000e+00 : f32
    %59 = vector.broadcast %cst_39 : f32 to vector<8x8x50xf32>
    %c0_40 = arith.constant 0 : index
    %c80 = arith.constant 80 : index
    %c0_41 = arith.constant 0 : index
    %60 = vector.load %arg14[%c0_40, %c80, %c0_41] : memref<8x88x50xf32, #tpu.memory_space<vmem>>, vector<8x8x50xf32>
    tpu.vector_store %arg14[%c0_40, %c80, %c0_41], %59 {strides = array<i32>} : memref<8x88x50xf32, #tpu.memory_space<vmem>>, vector<8x8x50xf32>,
    %c0_42 = arith.constant 0 : index
    %c0_43 = arith.constant 0 : index
    %c0_44 = arith.constant 0 : index
    %61 = tpu.strided_load %arg14[%c0_42, %c0_43, %c0_44] {strides = array<i32: 1, 2, 1>} : memref<8x88x50xf32, #tpu.memory_space<vmem>>, vector<8x40x50xf32>
    %c0_45 = arith.constant 0 : index
    %c2_46 = arith.constant 2 : index
    %c0_47 = arith.constant 0 : index
    %62 = tpu.strided_load %arg14[%c0_45, %c2_46, %c0_47] {strides = array<i32: 1, 2, 1>} : memref<8x88x50xf32, #tpu.memory_space<vmem>>, vector<8x40x50xf32>
    %c0_48 = arith.constant 0 : index
    %c4_49 = arith.constant 4 : index
    %c0_50 = arith.constant 0 : index
    %63 = tpu.strided_load %arg14[%c0_48, %c4_49, %c0_50] {strides = array<i32: 1, 2, 1>} : memref<8x88x50xf32, #tpu.memory_space<vmem>>, vector<8x40x50xf32>
    %c0_51 = arith.constant 0 : index
    %c6 = arith.constant 6 : index
    %c0_52 = arith.constant 0 : index
    %64 = tpu.strided_load %arg14[%c0_51, %c6, %c0_52] {strides = array<i32: 1, 2, 1>} : memref<8x88x50xf32, #tpu.memory_space<vmem>>, vector<8x40x50xf32>
    %c0_53 = arith.constant 0 : index
    %c8 = arith.constant 8 : index
    %c0_54 = arith.constant 0 : index
    %65 = tpu.strided_load %arg14[%c0_53, %c8, %c0_54] {strides = array<i32: 1, 2, 1>} : memref<8x88x50xf32, #tpu.memory_space<vmem>>, vector<8x40x50xf32>
    %66 = tpu.concatenate %61, %62, %63, %64, %65 in 2 : vector<8x40x50xf32>, vector<8x40x50xf32>, vector<8x40x50xf32>, vector<8x40x50xf32>, vector<8x40x50xf32> -> vector<8x40x250xf32>
    %67 = vector.shape_cast %66 : vector<8x40x250xf32> to vector<320x250xf32>
    %c0_55 = arith.constant 0 : index
    %c0_56 = arith.constant 0 : index
    %68 = vector.load %arg6[%c0_55, %c0_56] : memref<250x40xf32, #tpu.memory_space<vmem>>, vector<250x40xf32>
    %cst_57 = arith.constant dense<0.000000e+00> : vector<320x40xf32>
    %69 = tpu.matmul %67, %68, %cst_57 {dimension_numbers = #tpu.dot_dimension_numbers<[1], [0], [0], [1], [0, 0, 1, 1], [], []>} : vector<320x250xf32>, vector<250x40xf32>, vector<320x40xf32> -> vector<320x40xf32>
    %c0_58 = arith.constant 0 : index
    %c0_59 = arith.constant 0 : index
    %70 = vector.load %arg7[%c0_58, %c0_59] : memref<1x40xf32, #tpu.memory_space<vmem>>, vector<1x40xf32>
    %71 = vector.broadcast %70 : vector<1x40xf32> to vector<320x40xf32>
    %72 = arith.addf %69, %71 : vector<320x40xf32>
    %cst_60 = arith.constant 0.000000e+00 : f32
    %73 = vector.broadcast %cst_60 : f32 to vector<320x40xf32>
    %74 = arith.maximumf %72, %73 : vector<320x40xf32>
    %75 = vector.shape_cast %74 : vector<320x40xf32> to vector<8x40x40xf32>
    %c0_61 = arith.constant 0 : index
    %c0_62 = arith.constant 0 : index
    %c0_63 = arith.constant 0 : index
    %76 = vector.load %arg15[%c0_61, %c0_62, %c0_63] : memref<8x40x40xf32, #tpu.memory_space<vmem>>, vector<8x40x40xf32>
    tpu.vector_store %arg15[%c0_61, %c0_62, %c0_63], %75 {strides = array<i32>} : memref<8x40x40xf32, #tpu.memory_space<vmem>>, vector<8x40x40xf32>,
    %c0_64 = arith.constant 0 : index
    %c0_65 = arith.constant 0 : index
    %c0_66 = arith.constant 0 : index
    %77 = tpu.strided_load %arg15[%c0_64, %c0_65, %c0_66] {strides = array<i32: 1, 2, 1>} : memref<8x40x40xf32, #tpu.memory_space<vmem>>, vector<8x16x40xf32>
    %c0_67 = arith.constant 0 : index
    %c2_68 = arith.constant 2 : index
    %c0_69 = arith.constant 0 : index
    %78 = tpu.strided_load %arg15[%c0_67, %c2_68, %c0_69] {strides = array<i32: 1, 2, 1>} : memref<8x40x40xf32, #tpu.memory_space<vmem>>, vector<8x16x40xf32>
    %c0_70 = arith.constant 0 : index
    %c4_71 = arith.constant 4 : index
    %c0_72 = arith.constant 0 : index
    %79 = tpu.strided_load %arg15[%c0_70, %c4_71, %c0_72] {strides = array<i32: 1, 2, 1>} : memref<8x40x40xf32, #tpu.memory_space<vmem>>, vector<8x16x40xf32>
    %80 = tpu.concatenate %77, %78, %79 in 2 : vector<8x16x40xf32>, vector<8x16x40xf32>, vector<8x16x40xf32> -> vector<8x16x120xf32>
    %81 = vector.shape_cast %80 : vector<8x16x120xf32> to vector<128x120xf32>
    %c0_73 = arith.constant 0 : index
    %c0_74 = arith.constant 0 : index
    %82 = vector.load %arg8[%c0_73, %c0_74] : memref<120x20xf32, #tpu.memory_space<vmem>>, vector<120x20xf32>
    %cst_75 = arith.constant dense<0.000000e+00> : vector<128x20xf32>
    %83 = tpu.matmul %81, %82, %cst_75 {dimension_numbers = #tpu.dot_dimension_numbers<[1], [0], [0], [1], [0, 0, 1, 1], [], []>} : vector<128x120xf32>, vector<120x20xf32>, vector<128x20xf32> -> vector<128x20xf32>
    %c0_76 = arith.constant 0 : index
    %c0_77 = arith.constant 0 : index
    %84 = vector.load %arg9[%c0_76, %c0_77] : memref<1x20xf32, #tpu.memory_space<vmem>>, vector<1x20xf32>
    %85 = vector.broadcast %84 : vector<1x20xf32> to vector<128x20xf32>
    %86 = arith.addf %83, %85 : vector<128x20xf32>
    %cst_78 = arith.constant 0.000000e+00 : f32
    %87 = vector.broadcast %cst_78 : f32 to vector<128x20xf32>
    %88 = arith.maximumf %86, %87 : vector<128x20xf32>
    %89 = vector.shape_cast %88 : vector<128x20xf32> to vector<8x16x20xf32>
    %90 = vector.extract_strided_slice %89 {offsets = [0, 0, 0], sizes = [8, 1, 20], strides = [1, 1, 1]} : vector<8x16x20xf32> to vector<8x1x20xf32>
    %91 = vector.shape_cast %90 : vector<8x1x20xf32> to vector<8x20xf32>
    %c0_79 = arith.constant 0 : index
    %c0_80 = arith.constant 0 : index
    %92 = vector.load %arg16[%c0_79, %c0_80] : memref<8x320xf32, #tpu.memory_space<vmem>>, vector<8x20xf32>
    tpu.vector_store %arg16[%c0_79, %c0_80], %91 {strides = array<i32>} : memref<8x320xf32, #tpu.memory_space<vmem>>, vector<8x20xf32>,
    %93 = vector.extract_strided_slice %89 {offsets = [0, 1, 0], sizes = [8, 1, 20], strides = [1, 1, 1]} : vector<8x16x20xf32> to vector<8x1x20xf32>
    %94 = vector.shape_cast %93 : vector<8x1x20xf32> to vector<8x20xf32>
    %c0_81 = arith.constant 0 : index
    %c20 = arith.constant 20 : index
    %95 = vector.load %arg16[%c0_81, %c20] : memref<8x320xf32, #tpu.memory_space<vmem>>, vector<8x20xf32>
    tpu.vector_store %arg16[%c0_81, %c20], %94 {strides = array<i32>} : memref<8x320xf32, #tpu.memory_space<vmem>>, vector<8x20xf32>,
    %96 = vector.extract_strided_slice %89 {offsets = [0, 2, 0], sizes = [8, 1, 20], strides = [1, 1, 1]} : vector<8x16x20xf32> to vector<8x1x20xf32>
    %97 = vector.shape_cast %96 : vector<8x1x20xf32> to vector<8x20xf32>
    %c0_82 = arith.constant 0 : index
    %c40 = arith.constant 40 : index
    %98 = vector.load %arg16[%c0_82, %c40] : memref<8x320xf32, #tpu.memory_space<vmem>>, vector<8x20xf32>
    tpu.vector_store %arg16[%c0_82, %c40], %97 {strides = array<i32>} : memref<8x320xf32, #tpu.memory_space<vmem>>, vector<8x20xf32>,
    %99 = vector.extract_strided_slice %89 {offsets = [0, 3, 0], sizes = [8, 1, 20], strides = [1, 1, 1]} : vector<8x16x20xf32> to vector<8x1x20xf32>
    %100 = vector.shape_cast %99 : vector<8x1x20xf32> to vector<8x20xf32>
    %c0_83 = arith.constant 0 : index
    %c60 = arith.constant 60 : index
    %101 = vector.load %arg16[%c0_83, %c60] : memref<8x320xf32, #tpu.memory_space<vmem>>, vector<8x20xf32>
    tpu.vector_store %arg16[%c0_83, %c60], %100 {strides = array<i32>} : memref<8x320xf32, #tpu.memory_space<vmem>>, vector<8x20xf32>,
    %102 = vector.extract_strided_slice %89 {offsets = [0, 4, 0], sizes = [8, 1, 20], strides = [1, 1, 1]} : vector<8x16x20xf32> to vector<8x1x20xf32>
    %103 = vector.shape_cast %102 : vector<8x1x20xf32> to vector<8x20xf32>
    %c0_84 = arith.constant 0 : index
    %c80_85 = arith.constant 80 : index
    %104 = vector.load %arg16[%c0_84, %c80_85] : memref<8x320xf32, #tpu.memory_space<vmem>>, vector<8x20xf32>
    tpu.vector_store %arg16[%c0_84, %c80_85], %103 {strides = array<i32>} : memref<8x320xf32, #tpu.memory_space<vmem>>, vector<8x20xf32>,
    %105 = vector.extract_strided_slice %89 {offsets = [0, 5, 0], sizes = [8, 1, 20], strides = [1, 1, 1]} : vector<8x16x20xf32> to vector<8x1x20xf32>
    %106 = vector.shape_cast %105 : vector<8x1x20xf32> to vector<8x20xf32>
    %c0_86 = arith.constant 0 : index
    %c100 = arith.constant 100 : index
    %107 = vector.load %arg16[%c0_86, %c100] : memref<8x320xf32, #tpu.memory_space<vmem>>, vector<8x20xf32>
    tpu.vector_store %arg16[%c0_86, %c100], %106 {strides = array<i32>} : memref<8x320xf32, #tpu.memory_space<vmem>>, vector<8x20xf32>,
    %108 = vector.extract_strided_slice %89 {offsets = [0, 6, 0], sizes = [8, 1, 20], strides = [1, 1, 1]} : vector<8x16x20xf32> to vector<8x1x20xf32>
    %109 = vector.shape_cast %108 : vector<8x1x20xf32> to vector<8x20xf32>
    %c0_87 = arith.constant 0 : index
    %c120 = arith.constant 120 : index
    %110 = vector.load %arg16[%c0_87, %c120] : memref<8x320xf32, #tpu.memory_space<vmem>>, vector<8x20xf32>
    tpu.vector_store %arg16[%c0_87, %c120], %109 {strides = array<i32>} : memref<8x320xf32, #tpu.memory_space<vmem>>, vector<8x20xf32>,
    %111 = vector.extract_strided_slice %89 {offsets = [0, 7, 0], sizes = [8, 1, 20], strides = [1, 1, 1]} : vector<8x16x20xf32> to vector<8x1x20xf32>
    %112 = vector.shape_cast %111 : vector<8x1x20xf32> to vector<8x20xf32>
    %c0_88 = arith.constant 0 : index
    %c140 = arith.constant 140 : index
    %113 = vector.load %arg16[%c0_88, %c140] : memref<8x320xf32, #tpu.memory_space<vmem>>, vector<8x20xf32>
    tpu.vector_store %arg16[%c0_88, %c140], %112 {strides = array<i32>} : memref<8x320xf32, #tpu.memory_space<vmem>>, vector<8x20xf32>,
    %114 = vector.extract_strided_slice %89 {offsets = [0, 8, 0], sizes = [8, 1, 20], strides = [1, 1, 1]} : vector<8x16x20xf32> to vector<8x1x20xf32>
    %115 = vector.shape_cast %114 : vector<8x1x20xf32> to vector<8x20xf32>
    %c0_89 = arith.constant 0 : index
    %c160 = arith.constant 160 : index
    %116 = vector.load %arg16[%c0_89, %c160] : memref<8x320xf32, #tpu.memory_space<vmem>>, vector<8x20xf32>
    tpu.vector_store %arg16[%c0_89, %c160], %115 {strides = array<i32>} : memref<8x320xf32, #tpu.memory_space<vmem>>, vector<8x20xf32>,
    %117 = vector.extract_strided_slice %89 {offsets = [0, 9, 0], sizes = [8, 1, 20], strides = [1, 1, 1]} : vector<8x16x20xf32> to vector<8x1x20xf32>
    %118 = vector.shape_cast %117 : vector<8x1x20xf32> to vector<8x20xf32>
    %c0_90 = arith.constant 0 : index
    %c180 = arith.constant 180 : index
    %119 = vector.load %arg16[%c0_90, %c180] : memref<8x320xf32, #tpu.memory_space<vmem>>, vector<8x20xf32>
    tpu.vector_store %arg16[%c0_90, %c180], %118 {strides = array<i32>} : memref<8x320xf32, #tpu.memory_space<vmem>>, vector<8x20xf32>,
    %120 = vector.extract_strided_slice %89 {offsets = [0, 10, 0], sizes = [8, 1, 20], strides = [1, 1, 1]} : vector<8x16x20xf32> to vector<8x1x20xf32>
    %121 = vector.shape_cast %120 : vector<8x1x20xf32> to vector<8x20xf32>
    %c0_91 = arith.constant 0 : index
    %c200 = arith.constant 200 : index
    %122 = vector.load %arg16[%c0_91, %c200] : memref<8x320xf32, #tpu.memory_space<vmem>>, vector<8x20xf32>
    tpu.vector_store %arg16[%c0_91, %c200], %121 {strides = array<i32>} : memref<8x320xf32, #tpu.memory_space<vmem>>, vector<8x20xf32>,
    %123 = vector.extract_strided_slice %89 {offsets = [0, 11, 0], sizes = [8, 1, 20], strides = [1, 1, 1]} : vector<8x16x20xf32> to vector<8x1x20xf32>
    %124 = vector.shape_cast %123 : vector<8x1x20xf32> to vector<8x20xf32>
    %c0_92 = arith.constant 0 : index
    %c220 = arith.constant 220 : index
    %125 = vector.load %arg16[%c0_92, %c220] : memref<8x320xf32, #tpu.memory_space<vmem>>, vector<8x20xf32>
    tpu.vector_store %arg16[%c0_92, %c220], %124 {strides = array<i32>} : memref<8x320xf32, #tpu.memory_space<vmem>>, vector<8x20xf32>,
    %126 = vector.extract_strided_slice %89 {offsets = [0, 12, 0], sizes = [8, 1, 20], strides = [1, 1, 1]} : vector<8x16x20xf32> to vector<8x1x20xf32>
    %127 = vector.shape_cast %126 : vector<8x1x20xf32> to vector<8x20xf32>
    %c0_93 = arith.constant 0 : index
    %c240 = arith.constant 240 : index
    %128 = vector.load %arg16[%c0_93, %c240] : memref<8x320xf32, #tpu.memory_space<vmem>>, vector<8x20xf32>
    tpu.vector_store %arg16[%c0_93, %c240], %127 {strides = array<i32>} : memref<8x320xf32, #tpu.memory_space<vmem>>, vector<8x20xf32>,
    %129 = vector.extract_strided_slice %89 {offsets = [0, 13, 0], sizes = [8, 1, 20], strides = [1, 1, 1]} : vector<8x16x20xf32> to vector<8x1x20xf32>
    %130 = vector.shape_cast %129 : vector<8x1x20xf32> to vector<8x20xf32>
    %c0_94 = arith.constant 0 : index
    %c260 = arith.constant 260 : index
    %131 = vector.load %arg16[%c0_94, %c260] : memref<8x320xf32, #tpu.memory_space<vmem>>, vector<8x20xf32>
    tpu.vector_store %arg16[%c0_94, %c260], %130 {strides = array<i32>} : memref<8x320xf32, #tpu.memory_space<vmem>>, vector<8x20xf32>,
    %132 = vector.extract_strided_slice %89 {offsets = [0, 14, 0], sizes = [8, 1, 20], strides = [1, 1, 1]} : vector<8x16x20xf32> to vector<8x1x20xf32>
    %133 = vector.shape_cast %132 : vector<8x1x20xf32> to vector<8x20xf32>
    %c0_95 = arith.constant 0 : index
    %c280 = arith.constant 280 : index
    %134 = vector.load %arg16[%c0_95, %c280] : memref<8x320xf32, #tpu.memory_space<vmem>>, vector<8x20xf32>
    tpu.vector_store %arg16[%c0_95, %c280], %133 {strides = array<i32>} : memref<8x320xf32, #tpu.memory_space<vmem>>, vector<8x20xf32>,
    %135 = vector.extract_strided_slice %89 {offsets = [0, 15, 0], sizes = [8, 1, 20], strides = [1, 1, 1]} : vector<8x16x20xf32> to vector<8x1x20xf32>
    %136 = vector.shape_cast %135 : vector<8x1x20xf32> to vector<8x20xf32>
    %c0_96 = arith.constant 0 : index
    %c300 = arith.constant 300 : index
    %137 = vector.load %arg16[%c0_96, %c300] : memref<8x320xf32, #tpu.memory_space<vmem>>, vector<8x20xf32>
    tpu.vector_store %arg16[%c0_96, %c300], %136 {strides = array<i32>} : memref<8x320xf32, #tpu.memory_space<vmem>>, vector<8x20xf32>,
    %c0_97 = arith.constant 0 : index
    %c0_98 = arith.constant 0 : index
    %138 = vector.load %arg16[%c0_97, %c0_98] : memref<8x320xf32, #tpu.memory_space<vmem>>, vector<8x320xf32>
    %c0_99 = arith.constant 0 : index
    %c0_100 = arith.constant 0 : index
    %139 = vector.load %arg10[%c0_99, %c0_100] : memref<320x200xf32, #tpu.memory_space<vmem>>, vector<320x200xf32>
    %cst_101 = arith.constant dense<0.000000e+00> : vector<8x200xf32>
    %140 = tpu.matmul %138, %139, %cst_101 {dimension_numbers = #tpu.dot_dimension_numbers<[1], [0], [0], [1], [0, 0, 1, 1], [], []>} : vector<8x320xf32>, vector<320x200xf32>, vector<8x200xf32> -> vector<8x200xf32>
    %c0_102 = arith.constant 0 : index
    %c0_103 = arith.constant 0 : index
    %141 = vector.load %arg11[%c0_102, %c0_103] : memref<1x200xf32, #tpu.memory_space<vmem>>, vector<1x200xf32>
    %142 = vector.broadcast %141 : vector<1x200xf32> to vector<8x200xf32>
    %143 = arith.addf %140, %142 : vector<8x200xf32>
    %c0_104 = arith.constant 0 : index
    %c0_105 = arith.constant 0 : index
    %144 = vector.load %arg12[%c0_104, %c0_105] : memref<8x200xf32, #tpu.memory_space<vmem>>, vector<8x200xf32>
    tpu.vector_store %arg12[%c0_104, %c0_105], %143 {strides = array<i32>} : memref<8x200xf32, #tpu.memory_space<vmem>>, vector<8x200xf32>,
    return
  }
  func.func @transform_0(%arg0: i32) -> (i32, i32, i32) {
    %c0_i32 = arith.constant 0 : i32
    %c0_i32_0 = arith.constant 0 : i32
    %c0_i32_1 = arith.constant 0 : i32
    return %arg0, %c0_i32, %c0_i32_0 : i32, i32, i32
  }
  func.func @transform_1(%arg0: i32) -> (i32, i32) {
    %c0_i32 = arith.constant 0 : i32
    %c0_i32_0 = arith.constant 0 : i32
    %c0_i32_1 = arith.constant 0 : i32
    return %c0_i32, %c0_i32_0 : i32, i32
  }
  func.func @transform_2(%arg0: i32) -> (i32, i32) {
    %c0_i32 = arith.constant 0 : i32
    %c0_i32_0 = arith.constant 0 : i32
    %c0_i32_1 = arith.constant 0 : i32
    return %c0_i32, %c0_i32_0 : i32, i32
  }
  func.func @transform_3(%arg0: i32) -> (i32, i32) {
    %c0_i32 = arith.constant 0 : i32
    %c0_i32_0 = arith.constant 0 : i32
    %c0_i32_1 = arith.constant 0 : i32
    return %c0_i32, %c0_i32_0 : i32, i32
  }
  func.func @transform_4(%arg0: i32) -> (i32, i32) {
    %c0_i32 = arith.constant 0 : i32
    %c0_i32_0 = arith.constant 0 : i32
    %c0_i32_1 = arith.constant 0 : i32
    return %c0_i32, %c0_i32_0 : i32, i32
  }
  func.func @transform_5(%arg0: i32) -> (i32, i32) {
    %c0_i32 = arith.constant 0 : i32
    %c0_i32_0 = arith.constant 0 : i32
    %c0_i32_1 = arith.constant 0 : i32
    return %c0_i32, %c0_i32_0 : i32, i32
  }
  func.func @transform_6(%arg0: i32) -> (i32, i32) {
    %c0_i32 = arith.constant 0 : i32
    %c0_i32_0 = arith.constant 0 : i32
    %c0_i32_1 = arith.constant 0 : i32
    return %c0_i32, %c0_i32_0 : i32, i32
  }
  func.func @transform_7(%arg0: i32) -> (i32, i32) {
    %c0_i32 = arith.constant 0 : i32
    %c0_i32_0 = arith.constant 0 : i32
    %c0_i32_1 = arith.constant 0 : i32
    return %c0_i32, %c0_i32_0 : i32, i32
  }
  func.func @transform_8(%arg0: i32) -> (i32, i32) {
    %c0_i32 = arith.constant 0 : i32
    %c0_i32_0 = arith.constant 0 : i32
    %c0_i32_1 = arith.constant 0 : i32
    return %c0_i32, %c0_i32_0 : i32, i32
  }
  func.func @transform_9(%arg0: i32) -> (i32, i32) {
    %c0_i32 = arith.constant 0 : i32
    %c0_i32_0 = arith.constant 0 : i32
    %c0_i32_1 = arith.constant 0 : i32
    return %c0_i32, %c0_i32_0 : i32, i32
  }
  func.func @transform_10(%arg0: i32) -> (i32, i32) {
    %c0_i32 = arith.constant 0 : i32
    %c0_i32_0 = arith.constant 0 : i32
    %c0_i32_1 = arith.constant 0 : i32
    return %c0_i32, %c0_i32_0 : i32, i32
  }
  func.func @transform_11(%arg0: i32) -> (i32, i32) {
    %c0_i32 = arith.constant 0 : i32
    %c0_i32_0 = arith.constant 0 : i32
    return %arg0, %c0_i32 : i32, i32
  }
}

</mosaic_0001>

<bundles_post_ra>
// kernel: tpu_custom_call.1
= control target key start
LH: loop header
LB: loop body
LE: loop exit
PB: predicated region body
PF: predicated region fallthrough
CT: control target
= control target key end

     0   :  { %v8460_v3 = vmov 0   ;;  %s14104_s0 = inlined_call_operand.vmem [shape: f32[8,84,1], index: 0, kind: input, shape index: {}]   ;;  %s14105_s1 = inlined_call_operand.vmem [shape: f32[5,50], index: 1, kind: input, shape index: {}]   ;;  %s14106_s2 = inlined_call_operand.vmem [shape: f32[1,50], index: 2, kind: input, shape index: {}]   ;;  %s14107_s3 = inlined_call_operand.vmem [shape: f32[150,50], index: 3, kind: input, shape index: {}]   ;;  %s14108_s4 = inlined_call_operand.vmem [shape: f32[1,50], index: 4, kind: input, shape index: {}]   ;;  %s14109_s5 = inlined_call_operand.vmem [shape: f32[250,40], index: 5, kind: input, shape index: {}]   ;;  %s14110_s6 = inlined_call_operand.vmem [shape: f32[1,40], index: 6, kind: input, shape index: {}]   ;;  %s14111_s7 = inlined_call_operand.vmem [shape: f32[120,20], index: 7, kind: input, shape index: {}]   ;;  %s14112_s8 = inlined_call_operand.vmem [shape: f32[1,20], index: 8, kind: input, shape index: {}]   ;;  %s14113_s9 = inlined_call_operand.vmem [shape: f32[320,200], index: 9, kind: input, shape index: {}]   ;;  %s14114_s10 = inlined_call_operand.vmem [shape: f32[1,200], index: 10, kind: input, shape index: {}]   ;;  %s14115_s11 = inlined_call_operand.hbm [shape: f32[8,200], index: 11, kind: output, shape index: {}]  }
   0x1   :  { %v44_v0 = vld [vmem:[%s14104_s0 + $0x20] sm:$0xff]  ;;  %v42_v1 = vld [vmem:[%s14104_s0 + $0x10] sm:$0xff]  ;;  %8120 = vset.pattern.permute.xlu2 %v8460_v3  ;;  %8119 = vset.pattern.permute.xlu1 %v8460_v3 }
   0x2   :  { %v40_v2 = vld [vmem:[%s14104_s0] sm:$0xff]  ;;  %8118 = vset.pattern.permute.xlu0 %v8460_v3  ;;  %142 = vperm.xlu2 %8120, %v44_v0  }
   0x3   :  { %132 = vperm.xlu1 %8119, %v42_v1   ;;  %122 = vperm.xlu0 %8118, %v40_v2  }
   0x4   :  { %16 = vsyncpa [#allocation7], 0  ;;  %v45_v4 = vld [vmem:[%s14104_s0 + $0x28] sm:$0xff]  ;;  %v43_v5 = vld [vmem:[%s14104_s0 + $0x18] sm:$0xff]  ;;  %vm3329_vm0 = vcmask 401408   ;;  %vm3346_vm1 = vcmask 408576  }
   0x5   :  { %v41_v6 = vld [vmem:[%s14104_s0 + $0x8] sm:$0xff]  ;;  %v48_v7 = vld [vmem:[%s14104_s0 + $0x40] sm:$0xff]  ;;  %v47_v8 = vld [vmem:[%s14104_s0 + $0x38] sm:$0xff]  ;;  %s8462_s12 = smov 50   ;;  %s8463_s15 = smov 100   ;;  %vm4572_vm2 = vcmask 1045504  }
   0x6   :  { %v46_v9 = vld [vmem:[%s14104_s0 + $0x30] sm:$0xff]  ;;  %v51_v10 = vld [vmem:[%s14104_s0 + $0x60] sm:$0xff]  ;;  %v50_v11 = vld [vmem:[%s14104_s0 + $0x58] sm:$0xff]  ;;  %vm4411_vm3 = vcmask 179200   ;;  %vm4307_vm4 = vcmask 818176   ;;  %s8464_s14 = smov 22  }
   0x7   :  { %v49_v12 = vld [vmem:[%s14104_s0 + $0x48] sm:$0xff]  ;;  %v54_v13 = vld [vmem:[%s14104_s0 + $0x78] sm:$0xff]  ;;  %v53_v14 = vld [vmem:[%s14104_s0 + $0x70] sm:$0xff]  ;;  %s8465_s16 = smov 72   ;;  %vm6615_vm5 = vcmask 1041408   ;;  %vm6417_vm6 = vcmask 588800  }
   0x8   :  { %v52_v15 = vld [vmem:[%s14104_s0 + $0x68] sm:$0xff]  ;;  %v57_v16 = vld [vmem:[%s14104_s0 + $0x90] sm:$0xff]  ;;  %v55_v18 = vld [vmem:[%s14104_s0 + $0x80] sm:$0xff]  ;;  %vm6494_vm7 = vcmask 998400   ;;  %vm6933_vm8 = vcmask 326656   ;;  %s8466_s25 = smov 80  }
   0x9   :  { %v56_v17 = vld [vmem:[%s14104_s0 + $0x88] sm:$0xff]  ;;  %v60_v19 = vld [vmem:[%s14104_s0 + $0xb0] sm:$0xff]  ;;  %v59_v20 = vld [vmem:[%s14104_s0 + $0xa0] sm:$0xff]  ;;  %s8467_s26 = smov 40   ;;  %vm7213_vm9 = vcmask 654336   ;;  %vm7249_vm10 = vcmask 982016  }
   0xa   :  { %147 = vperm.xlu2 %8120, %v45_v4   ;;  %v58_v21 = vld [vmem:[%s14104_s0 + $0x98] sm:$0xff]  ;;  %v63_v22 = vld [vmem:[%s14104_s0 + $0xc8] sm:$0xff]  ;;  %v62_v23 = vld [vmem:[%s14104_s0 + $0xc0] sm:$0xff]  ;;  %vm7388_vm11 = vcmask 1041409   ;;  %vm7391_vm12 = vcmask 1042434   ;;  %vm7394_vm13 = vcmask 1043459  }
   0xb   :  { %137 = vperm.xlu1 %8119, %v43_v5   ;;  %127 = vperm.xlu0 %8118, %v41_v6   ;;  %v61_v24 = vld [vmem:[%s14104_s0 + $0xb8] sm:$0xff]  ;;  %v66_v25 = vld [vmem:[%s14104_s0 + $0xe0] sm:$0xff]  ;;  %v64_v27 = vld [vmem:[%s14104_s0 + $0xd0] sm:$0xff]  ;;  %vm7397_vm14 = vcmask 1044484   ;;  %vm7400_vm15 = vcmask 1045509   ;;  %s8468_s23 = smov 60  }
   0xc   :  { %v65_v26 = vld [vmem:[%s14104_s0 + $0xd8] sm:$0xff]  ;;  %v68_v29 = vld [vmem:[%s14104_s0 + $0xf0] sm:$0xff]  ;;  %v67_v30 = vld [vmem:[%s14104_s0 + $0xe8] sm:$0xff]  ;;  %s8469_s24 = smov 20   ;;  %s8470_s30 = smov 120  }
   0xd   :  { %v69_v28 = vld [vmem:[%s14104_s0 + $0xf8] sm:$0xff]  ;;  %v71_v32 = vld [vmem:[%s14104_s0 + $0x110] sm:$0xff]  ;;  %v70_v33 = vld [vmem:[%s14104_s0 + $0x108] sm:$0xff]  ;;  %s8477_s13 = smov 44   ;;  %s8478_s17 = smov 24  }
   0xe   :  { %v72_v31 = vld [vmem:[%s14104_s0 + $0x118] sm:$0xff]  ;;  %v75_v34 = vld [vmem:[%s14104_s0 + $0x130] sm:$0xff]  ;;  %v74_v35 = vld [vmem:[%s14104_s0 + $0x128] sm:$0xff] }
   0xf   :  { %v73_v36 = vld [vmem:[%s14104_s0 + $0x120] sm:$0xff]  ;;  %v78_v38 = vld [vmem:[%s14104_s0 + $0x148] sm:$0xff]  ;;  %v76_v40 = vld [vmem:[%s14104_s0 + $0x138] sm:$0xff] }
  0x10   :  { %v77_v39 = vld [vmem:[%s14104_s0 + $0x140] sm:$0xff]  ;;  %v81_v42 = vld [vmem:[%s14104_s0 + $0x168] sm:$0xff]  ;;  %v79_v44 = vld [vmem:[%s14104_s0 + $0x150] sm:$0xff] }
  0x11   :  { %v80_v43 = vld [vmem:[%s14104_s0 + $0x160] sm:$0xff]  ;;  %v83_v47 = vld [vmem:[%s14104_s0 + $0x178] sm:$0xff]  ;;  %v82_v48 = vld [vmem:[%s14104_s0 + $0x170] sm:$0xff] }
  0x12   :  { %162 = vperm.xlu2 %8120, %v48_v7   ;;  %v84_v46 = vld [vmem:[%s14104_s0 + $0x180] sm:$0xff]  ;;  %v87_v52 = vld [vmem:[%s14104_s0 + $0x198] sm:$0xff]  ;;  %v86_v53 = vld [vmem:[%s14104_s0 + $0x190] sm:$0xff] }
  0x13   :  { %157 = vperm.xlu1 %8119, %v47_v8   ;;  %152 = vperm.xlu0 %8118, %v46_v9   ;;  %v85_v54 = vld [vmem:[%s14104_s0 + $0x188] sm:$0xff]  ;;  %v90_v58 = vld [vmem:[%s14104_s0 + $0x1b8] sm:$0xff]  ;;  %v88_v60 = vld [vmem:[%s14104_s0 + $0x1a0] sm:$0xff] }
  0x14   :  { %v89_v59 = vld [vmem:[%s14104_s0 + $0x1a8] sm:$0xff]  ;;  %v93_v0 = vld [vmem:[%s14104_s0 + $0x1d0] sm:$0xff]  ;;  %v91_v2 = vld [vmem:[%s14104_s0 + $0x1c0] sm:$0xff] }
  0x15   :  { %v92_v1 = vld [vmem:[%s14104_s0 + $0x1c8] sm:$0xff]  ;;  %v95_v7 = vld [vmem:[%s14104_s0 + $0x1e0] sm:$0xff]  ;;  %v94_v8 = vld [vmem:[%s14104_s0 + $0x1d8] sm:$0xff] }
  0x16   :  { %v96_v6 = vld [vmem:[%s14104_s0 + $0x1e8] sm:$0xff] }
  0x1a   :  { %177 = vperm.xlu2 %8120, %v51_v10  }
  0x1b   :  { %172 = vperm.xlu1 %8119, %v50_v11   ;;  %167 = vperm.xlu0 %8118, %v49_v12   ;;  %v99_v12 = vld [vmem:[%s14104_s0 + $0x200] sm:$0xff] }
  0x22   :  { %192 = vperm.xlu2 %8120, %v54_v13   ;;  %v98_v13 = vld [vmem:[%s14104_s0 + $0x1f8] sm:$0xff] }
  0x23   :  { %187 = vperm.xlu1 %8119, %v53_v14   ;;  %182 = vperm.xlu0 %8118, %v52_v15   ;;  %v97_v14 = vld [vmem:[%s14104_s0 + $0x1f0] sm:$0xff] }
  0x2a   :  { %207 = vperm.xlu2 %8120, %v57_v16  }
  0x2b   :  { %202 = vperm.xlu1 %8119, %v56_v17   ;;  %197 = vperm.xlu0 %8118, %v55_v18   ;;  %v102_v18 = vld [vmem:[%s14104_s0 + $0x220] sm:$0xff] }
  0x32   :  { %222 = vperm.xlu2 %8120, %v60_v19   ;;  %v101_v19 = vld [vmem:[%s14104_s0 + $0x218] sm:$0xff] }
  0x33   :  { %217 = vperm.xlu1 %8119, %v59_v20   ;;  %212 = vperm.xlu0 %8118, %v58_v21   ;;  %v100_v20 = vld [vmem:[%s14104_s0 + $0x210] sm:$0xff] }
  0x3a   :  { %237 = vperm.xlu2 %8120, %v63_v22  }
  0x3b   :  { %232 = vperm.xlu1 %8119, %v62_v23   ;;  %227 = vperm.xlu0 %8118, %v61_v24   ;;  %v105_v24 = vld [vmem:[%s14104_s0 + $0x238] sm:$0xff] }
  0x42   :  { %252 = vperm.xlu2 %8120, %v66_v25   ;;  %v104_v25 = vld [vmem:[%s14104_s0 + $0x230] sm:$0xff] }
  0x43   :  { %247 = vperm.xlu1 %8119, %v65_v26   ;;  %242 = vperm.xlu0 %8118, %v64_v27   ;;  %v103_v26 = vld [vmem:[%s14104_s0 + $0x228] sm:$0xff] }
  0x4a   :  { %267 = vperm.xlu2 %8120, %v69_v28  }
  0x4b   :  { %262 = vperm.xlu1 %8119, %v68_v29   ;;  %257 = vperm.xlu0 %8118, %v67_v30   ;;  %v108_v30 = vld [vmem:[%s14104_s0 + $0x250] sm:$0xff] }
  0x52   :  { %282 = vperm.xlu2 %8120, %v72_v31   ;;  %v107_v31 = vld [vmem:[%s14104_s0 + $0x248] sm:$0xff] }
  0x53   :  { %277 = vperm.xlu1 %8119, %v71_v32   ;;  %272 = vperm.xlu0 %8118, %v70_v33   ;;  %v106_v32 = vld [vmem:[%s14104_s0 + $0x240] sm:$0xff] }
  0x5a   :  { %297 = vperm.xlu2 %8120, %v75_v34  }
  0x5b   :  { %292 = vperm.xlu1 %8119, %v74_v35   ;;  %287 = vperm.xlu0 %8118, %v73_v36   ;;  %v111_v36 = vld [vmem:[%s14104_s0 + $0x270] sm:$0xff] }
  0x5c   :  { %v8648_v37 = vpop.permute.xlu2 %142 }
  0x62   :  { %312 = vperm.xlu2 %8120, %v78_v38   ;;  %v110_v38 = vld [vmem:[%s14104_s0 + $0x268] sm:$0xff] }
  0x63   :  { %307 = vperm.xlu1 %8119, %v77_v39   ;;  %302 = vperm.xlu0 %8118, %v76_v40   ;;  %v109_v39 = vld [vmem:[%s14104_s0 + $0x258] sm:$0xff] }
  0x64   :  { %v8659_v41 = vpop.permute.xlu2 %147 }
  0x6a   :  { %327 = vperm.xlu2 %8120, %v81_v42  }
  0x6b   :  { %322 = vperm.xlu1 %8119, %v80_v43   ;;  %317 = vperm.xlu0 %8118, %v79_v44   ;;  %v114_v44 = vld [vmem:[%s14104_s0 + $0x288] sm:$0xff] }
  0x6c   :  { %v8670_v45 = vpop.permute.xlu2 %162 }
  0x72   :  { %342 = vperm.xlu2 %8120, %v84_v46   ;;  %v113_v46 = vld [vmem:[%s14104_s0 + $0x280] sm:$0xff] }
  0x73   :  { %337 = vperm.xlu1 %8119, %v83_v47   ;;  %332 = vperm.xlu0 %8118, %v82_v48   ;;  %v112_v47 = vld [vmem:[%s14104_s0 + $0x278] sm:$0xff] }
  0x74   :  { %v8681_v49 = vpop.permute.xlu2 %177 }
  0x75   :  { %v8683_v50 = vpop.permute.xlu1 %132  ;;  %v8685_v51 = vpop.permute.xlu0 %122 }
  0x7a   :  { %357 = vperm.xlu2 %8120, %v87_v52  }
  0x7b   :  { %352 = vperm.xlu1 %8119, %v86_v53   ;;  %347 = vperm.xlu0 %8118, %v85_v54   ;;  %v117_v54 = vld [vmem:[%s14104_s0 + $0x2a0] sm:$0xff] }
  0x7c   :  { %v8696_v55 = vpop.permute.xlu2 %192 }
  0x7d   :  { %v8698_v56 = vpop.permute.xlu1 %137  ;;  %v8700_v57 = vpop.permute.xlu0 %127 }
  0x82   :  { %372 = vperm.xlu2 %8120, %v90_v58   ;;  %v116_v58 = vld [vmem:[%s14104_s0 + $0x298] sm:$0xff] }
  0x83   :  { %367 = vperm.xlu1 %8119, %v89_v59   ;;  %362 = vperm.xlu0 %8118, %v88_v60   ;;  %v115_v59 = vld [vmem:[%s14104_s0 + $0x290] sm:$0xff] }
  0x84   :  { %v8711_v61 = vpop.permute.xlu2 %207 }
  0x85   :  { %v8713_v62 = vpop.permute.xlu1 %157  ;;  %v8715_v63 = vpop.permute.xlu0 %152 }
  0x8a   :  { %387 = vperm.xlu2 %8120, %v93_v0  }
  0x8b   :  { %382 = vperm.xlu1 %8119, %v92_v1   ;;  %377 = vperm.xlu0 %8118, %v91_v2   ;;  %v601_v2 = vld [vmem:[%s14104_s0 + $0x1] sm:$0xff] }
  0x8c   :  { %v8726_v3 = vpop.permute.xlu2 %222 }
  0x8d   :  { %v8728_v4 = vpop.permute.xlu1 %172  ;;  %v8730_v5 = vpop.permute.xlu0 %167 }
  0x92   :  { %402 = vperm.xlu2 %8120, %v96_v6   ;;  %v119_v6 = vld [vmem:[%s14104_s0 + $0x2b0] sm:$0xff] }
  0x93   :  { %397 = vperm.xlu1 %8119, %v95_v7   ;;  %392 = vperm.xlu0 %8118, %v94_v8   ;;  %v118_v7 = vld [vmem:[%s14104_s0 + $0x2a8] sm:$0xff] }
  0x94   :  { %v8741_v9 = vpop.permute.xlu2 %237 }
  0x95   :  { %v8743_v10 = vpop.permute.xlu1 %187  ;;  %v8745_v11 = vpop.permute.xlu0 %182 }
  0x9a   :  { %417 = vperm.xlu2 %8120, %v99_v12  }
  0x9b   :  { %412 = vperm.xlu1 %8119, %v98_v13   ;;  %407 = vperm.xlu0 %8118, %v97_v14   ;;  %v604_v14 = vld [vmem:[%s14104_s0 + $0x19] sm:$0xff] }
  0x9c   :  { %v8756_v15 = vpop.permute.xlu2 %252 }
  0x9d   :  { %v8758_v16 = vpop.permute.xlu1 %202  ;;  %v8760_v17 = vpop.permute.xlu0 %197 }
  0xa2   :  { %432 = vperm.xlu2 %8120, %v102_v18   ;;  %v603_v18 = vld [vmem:[%s14104_s0 + $0x11] sm:$0xff] }
  0xa3   :  { %427 = vperm.xlu1 %8119, %v101_v19   ;;  %422 = vperm.xlu0 %8118, %v100_v20   ;;  %v602_v19 = vld [vmem:[%s14104_s0 + $0x9] sm:$0xff] }
  0xa4   :  { %v8771_v21 = vpop.permute.xlu2 %267 }
  0xa5   :  { %14133 = vst [vmem:[#allocation9_spill] sm:$0xff] %v8771_v21  ;;  %v8773_v22 = vpop.permute.xlu1 %217  ;;  %v8775_v23 = vpop.permute.xlu0 %212  ;;  %v669_v21 = vld [vmem:[%s14104_s0 + $0x251] sm:$0xff] }
  0xaa   :  { %447 = vperm.xlu2 %8120, %v105_v24  }
  0xab   :  { %442 = vperm.xlu1 %8119, %v104_v25   ;;  %437 = vperm.xlu0 %8118, %v103_v26   ;;  %v607_v26 = vld [vmem:[%s14104_s0 + $0x31] sm:$0xff] }
  0xac   :  { %v8786_v27 = vpop.permute.xlu2 %282 }
  0xad   :  { %14134 = vst [vmem:[#allocation10_spill] sm:$0xff] %v8786_v27  ;;  %v8788_v28 = vpop.permute.xlu1 %232  ;;  %v8790_v29 = vpop.permute.xlu0 %227 }
  0xb2   :  { %462 = vperm.xlu2 %8120, %v108_v30   ;;  %v606_v30 = vld [vmem:[%s14104_s0 + $0x29] sm:$0xff] }
  0xb3   :  { %457 = vperm.xlu1 %8119, %v107_v31   ;;  %452 = vperm.xlu0 %8118, %v106_v32   ;;  %v605_v31 = vld [vmem:[%s14104_s0 + $0x21] sm:$0xff] }
  0xb4   :  { %v8801_v33 = vpop.permute.xlu2 %297 }
  0xb5   :  { %14135 = vst [vmem:[#allocation11_spill] sm:$0xff] %v8801_v33  ;;  %v8803_v34 = vpop.permute.xlu1 %247  ;;  %v8805_v35 = vpop.permute.xlu0 %242  ;;  %v667_v33 = vld [vmem:[%s14104_s0 + $0x241] sm:$0xff] }
  0xba   :  { %477 = vperm.xlu2 %8120, %v111_v36  }
  0xbb   :  { %472 = vperm.xlu1 %8119, %v110_v38   ;;  %467 = vperm.xlu0 %8118, %v109_v39   ;;  %v610_v39 = vld [vmem:[%s14104_s0 + $0x49] sm:$0xff] }
  0xbc   :  { %v8816_v40 = vpop.permute.xlu2 %312 }
  0xbd   :  { %14136 = vst [vmem:[#allocation12_spill] sm:$0xff] %v8816_v40  ;;  %v8818_v42 = vpop.permute.xlu1 %262  ;;  %v8820_v43 = vpop.permute.xlu0 %257  ;;  %v664_v40 = vld [vmem:[%s14104_s0 + $0x229] sm:$0xff] }
  0xbe   :  { %14137 = vst [vmem:[#allocation13_spill] sm:$0xff] %v8818_v42  ;;  %v670_v42 = vld [vmem:[%s14104_s0 + $0x259] sm:$0xff] }
  0xbf   :  { %14138 = vst [vmem:[#allocation14_spill] sm:$0xff] %v8820_v43 }
  0xc2   :  { %492 = vperm.xlu2 %8120, %v114_v44   ;;  %v609_v44 = vld [vmem:[%s14104_s0 + $0x41] sm:$0xff] }
  0xc3   :  { %487 = vperm.xlu1 %8119, %v113_v46   ;;  %482 = vperm.xlu0 %8118, %v112_v47   ;;  %v608_v46 = vld [vmem:[%s14104_s0 + $0x39] sm:$0xff] }
  0xc4   :  { %v8831_v48 = vpop.permute.xlu2 %327 }
  0xc5   :  { %14139 = vst [vmem:[#allocation15_spill] sm:$0xff] %v8831_v48  ;;  %v8833_v52 = vpop.permute.xlu1 %277  ;;  %v8835_v53 = vpop.permute.xlu0 %272 }
  0xc6   :  { %14140 = vst [vmem:[#allocation16_spill] sm:$0xff] %v8833_v52  ;;  %v666_v52 = vld [vmem:[%s14104_s0 + $0x239] sm:$0xff] }
  0xc7   :  { %14141 = vst [vmem:[#allocation17_spill] sm:$0xff] %v8835_v53  ;;  %v1935_v53 = vld [vmem:[%s14104_s0 + $0x1cb] sm:$0xff] }
  0xca   :  { %507 = vperm.xlu2 %8120, %v117_v54  }
  0xcb   :  { %502 = vperm.xlu1 %8119, %v116_v58   ;;  %497 = vperm.xlu0 %8118, %v115_v59   ;;  %v613_v59 = vld [vmem:[%s14104_s0 + $0x69] sm:$0xff] }
  0xcc   :  { %v8846_v60 = vpop.permute.xlu2 %342 }
  0xcd   :  { %14142 = vst [vmem:[#allocation18_spill] sm:$0xff] %v8846_v60  ;;  %v8848_v0 = vpop.permute.xlu1 %292  ;;  %v8850_v1 = vpop.permute.xlu0 %287  ;;  %v658_v60 = vld [vmem:[%s14104_s0 + $0x1f1] sm:$0xff] }
  0xce   :  { %14143 = vst [vmem:[#allocation19_spill] sm:$0xff] %v8848_v0 }
  0xcf   :  { %14144 = vst [vmem:[#allocation20_spill] sm:$0xff] %v8850_v1  ;;  %v1308_v1 = vld [vmem:[%s14104_s0 + $0x242] sm:$0xff] }
  0xd2   :  { %683 = vperm.xlu2 %8120, %v601_v2   ;;  %v612_v2 = vld [vmem:[%s14104_s0 + $0x61] sm:$0xff] }
  0xd3   :  { %517 = vperm.xlu1 %8119, %v119_v6   ;;  %512 = vperm.xlu0 %8118, %v118_v7   ;;  %v611_v6 = vld [vmem:[%s14104_s0 + $0x59] sm:$0xff] }
  0xd4   :  { %v8861_v8 = vpop.permute.xlu2 %357 }
  0xd5   :  { %14145 = vst [vmem:[#allocation21_spill] sm:$0xff] %v8861_v8  ;;  %v8863_v12 = vpop.permute.xlu1 %307  ;;  %v8865_v13 = vpop.permute.xlu0 %302 }
  0xd6   :  { %14146 = vst [vmem:[#allocation22_spill] sm:$0xff] %v8863_v12  ;;  %v663_v12 = vld [vmem:[%s14104_s0 + $0x221] sm:$0xff] }
  0xd7   :  { %14147 = vst [vmem:[#allocation23_spill] sm:$0xff] %v8865_v13  ;;  %v1287_v13 = vld [vmem:[%s14104_s0 + $0x18a] sm:$0xff] }
  0xda   :  { %698 = vperm.xlu2 %8120, %v604_v14  }
  0xdb   :  { %693 = vperm.xlu1 %8119, %v603_v18   ;;  %688 = vperm.xlu0 %8118, %v602_v19   ;;  %v616_v19 = vld [vmem:[%s14104_s0 + $0x81] sm:$0xff] }
  0xdc   :  { %v8876_v20 = vpop.permute.xlu2 %372 }
  0xdd   :  { %14148 = vst [vmem:[#allocation24_spill] sm:$0xff] %v8876_v20  ;;  %v8878_v24 = vpop.permute.xlu1 %322  ;;  %v8880_v25 = vpop.permute.xlu0 %317  ;;  %v639_v20 = vld [vmem:[%s14104_s0 + $0x149] sm:$0xff] }
  0xde   :  { %14149 = vst [vmem:[#allocation25_spill] sm:$0xff] %v8878_v24  ;;  %v661_v24 = vld [vmem:[%s14104_s0 + $0x211] sm:$0xff] }
  0xdf   :  { %14150 = vst [vmem:[#allocation26_spill] sm:$0xff] %v8880_v25  ;;  %v660_v25 = vld [vmem:[%s14104_s0 + $0x201] sm:$0xff] }
  0xe2   :  { %713 = vperm.xlu2 %8120, %v607_v26   ;;  %v615_v26 = vld [vmem:[%s14104_s0 + $0x79] sm:$0xff] }
  0xe3   :  { %708 = vperm.xlu1 %8119, %v606_v30   ;;  %703 = vperm.xlu0 %8118, %v605_v31   ;;  %v614_v30 = vld [vmem:[%s14104_s0 + $0x71] sm:$0xff] }
  0xe4   :  { %v8891_v32 = vpop.permute.xlu2 %387 }
  0xe5   :  { %14151 = vst [vmem:[#allocation27_spill] sm:$0xff] %v8891_v32  ;;  %v8893_v36 = vpop.permute.xlu1 %337  ;;  %v8895_v38 = vpop.permute.xlu0 %332 }
  0xe6   :  { %14152 = vst [vmem:[#allocation28_spill] sm:$0xff] %v8893_v36  ;;  %v657_v36 = vld [vmem:[%s14104_s0 + $0x1e9] sm:$0xff] }
  0xe7   :  { %14153 = vst [vmem:[#allocation29_spill] sm:$0xff] %v8895_v38 }
  0xea   :  { %728 = vperm.xlu2 %8120, %v610_v39  }
  0xeb   :  { %723 = vperm.xlu1 %8119, %v609_v44   ;;  %718 = vperm.xlu0 %8118, %v608_v46   ;;  %v619_v46 = vld [vmem:[%s14104_s0 + $0x99] sm:$0xff] }
  0xec   :  { %v8906_v47 = vpop.permute.xlu2 %402 }
  0xed   :  { %14154 = vst [vmem:[#allocation30_spill] sm:$0xff] %v8906_v47  ;;  %v8908_v54 = vpop.permute.xlu1 %352  ;;  %v8910_v58 = vpop.permute.xlu0 %347  ;;  %v624_v47 = vld [vmem:[%s14104_s0 + $0xc9] sm:$0xff] }
  0xee   :  { %14155 = vst [vmem:[#allocation31_spill] sm:$0xff] %v8908_v54  ;;  %v655_v54 = vld [vmem:[%s14104_s0 + $0x1d9] sm:$0xff] }
  0xef   :  { %14156 = vst [vmem:[#allocation32_spill] sm:$0xff] %v8910_v58  ;;  %v654_v58 = vld [vmem:[%s14104_s0 + $0x1d1] sm:$0xff] }
  0xf2   :  { %743 = vperm.xlu2 %8120, %v613_v59   ;;  %v618_v59 = vld [vmem:[%s14104_s0 + $0x91] sm:$0xff] }
  0xf3   :  { %738 = vperm.xlu1 %8119, %v612_v2   ;;  %733 = vperm.xlu0 %8118, %v611_v6   ;;  %v617_v2 = vld [vmem:[%s14104_s0 + $0x89] sm:$0xff] }
  0xf4   :  { %v8921_v7 = vpop.permute.xlu2 %417 }
  0xf5   :  { %14157 = vst [vmem:[#allocation33_spill] sm:$0xff] %v8921_v7  ;;  %v8923_v14 = vpop.permute.xlu1 %367  ;;  %v8925_v18 = vpop.permute.xlu0 %362  ;;  %v625_v7 = vld [vmem:[%s14104_s0 + $0xd1] sm:$0xff] }
  0xf6   :  { %14158 = vst [vmem:[#allocation34_spill] sm:$0xff] %v8923_v14  ;;  %v652_v14 = vld [vmem:[%s14104_s0 + $0x1c1] sm:$0xff] }
  0xf7   :  { %14159 = vst [vmem:[#allocation35_spill] sm:$0xff] %v8925_v18 }
  0xfa   :  { %758 = vperm.xlu2 %8120, %v616_v19  }
  0xfb   :  { %753 = vperm.xlu1 %8119, %v615_v26   ;;  %748 = vperm.xlu0 %8118, %v614_v30   ;;  %v622_v30 = vld [vmem:[%s14104_s0 + $0xb9] sm:$0xff] }
  0xfc   :  { %v8936_v31 = vpop.permute.xlu2 %432 }
  0xfd   :  { %14160 = vst [vmem:[#allocation36_spill] sm:$0xff] %v8936_v31  ;;  %v8938_v39 = vpop.permute.xlu1 %382  ;;  %v8940_v44 = vpop.permute.xlu0 %377  ;;  %v621_v31 = vld [vmem:[%s14104_s0 + $0xb1] sm:$0xff] }
  0xfe   :  { %14161 = vst [vmem:[#allocation37_spill] sm:$0xff] %v8938_v39  ;;  %v633_v39 = vld [vmem:[%s14104_s0 + $0x119] sm:$0xff] }
  0xff   :  { %14162 = vst [vmem:[#allocation38_spill] sm:$0xff] %v8940_v44  ;;  %v643_v44 = vld [vmem:[%s14104_s0 + $0x171] sm:$0xff] }
 0x102   :  { %773 = vperm.xlu2 %8120, %v619_v46   ;;  %v620_v46 = vld [vmem:[%s14104_s0 + $0xa1] sm:$0xff] }
 0x103   :  { %768 = vperm.xlu1 %8119, %v618_v59   ;;  %763 = vperm.xlu0 %8118, %v617_v2  }
 0x104   :  { %v8951_v6 = vpop.permute.xlu2 %447 }
 0x105   :  { %14163 = vst [vmem:[#allocation39_spill] sm:$0xff] %v8951_v6  ;;  %v8953_v19 = vpop.permute.xlu1 %397  ;;  %v8955_v26 = vpop.permute.xlu0 %392 }
 0x106   :  { %14164 = vst [vmem:[#allocation40_spill] sm:$0xff] %v8953_v19  ;;  %v627_v19 = vld [vmem:[%s14104_s0 + $0xe1] sm:$0xff] }
 0x107   :  { %14165 = vst [vmem:[#allocation41_spill] sm:$0xff] %v8955_v26  ;;  %v630_v26 = vld [vmem:[%s14104_s0 + $0xf9] sm:$0xff] }
 0x10a   :  { %788 = vperm.xlu2 %8120, %v622_v30   ;;  %v623_v30 = vld [vmem:[%s14104_s0 + $0xc1] sm:$0xff] }
 0x10b   :  { %783 = vperm.xlu1 %8119, %v621_v31   ;;  %778 = vperm.xlu0 %8118, %v620_v46  }
 0x10c   :  { %v8966_v59 = vpop.permute.xlu2 %462 }
 0x10d   :  { %14166 = vst [vmem:[#allocation42_spill] sm:$0xff] %v8966_v59  ;;  %v8968_v2 = vpop.permute.xlu1 %412  ;;  %v8970_v6 = vpop.permute.xlu0 %407  ;;  %v645_v59 = vld [vmem:[%s14104_s0 + $0x181] sm:$0xff] }
 0x10e   :  { %14167 = vst [vmem:[#allocation43_spill] sm:$0xff] %v8968_v2 }
 0x10f   :  { %14168 = vst [vmem:[#allocation44_spill] sm:$0xff] %v8970_v6  ;;  %v628_v6 = vld [vmem:[%s14104_s0 + $0xe9] sm:$0xff] }
 0x112   :  { %803 = vperm.xlu2 %8120, %v625_v7   ;;  %v626_v7 = vld [vmem:[%s14104_s0 + $0xd9] sm:$0xff] }
 0x113   :  { %798 = vperm.xlu1 %8119, %v624_v47   ;;  %793 = vperm.xlu0 %8118, %v623_v30  }
 0x114   :  { %v8981_v31 = vpop.permute.xlu2 %477 }
 0x115   :  { %14169 = vst [vmem:[#allocation45_spill] sm:$0xff] %v8981_v31  ;;  %v8983_v46 = vpop.permute.xlu1 %427  ;;  %v8985_v2 = vpop.permute.xlu0 %422  ;;  %v651_v31 = vld [vmem:[%s14104_s0 + $0x1b9] sm:$0xff] }
 0x116   :  { %14170 = vst [vmem:[#allocation46_spill] sm:$0xff] %v8983_v46  ;;  %v631_v46 = vld [vmem:[%s14104_s0 + $0x109] sm:$0xff] }
 0x117   :  { %14171 = vst [vmem:[#allocation47_spill] sm:$0xff] %v8985_v2 }
 0x11a   :  { %818 = vperm.xlu2 %8120, %v628_v6   ;;  %v629_v6 = vld [vmem:[%s14104_s0 + $0xf1] sm:$0xff] }
 0x11b   :  { %813 = vperm.xlu1 %8119, %v627_v19   ;;  %808 = vperm.xlu0 %8118, %v626_v7  }
 0x11c   :  { %v8996_v47 = vpop.permute.xlu2 %492 }
 0x11d   :  { %14172 = vst [vmem:[#allocation48_spill] sm:$0xff] %v8996_v47  ;;  %v8998_v30 = vpop.permute.xlu1 %442  ;;  %v9000_v2 = vpop.permute.xlu0 %437  ;;  %v640_v47 = vld [vmem:[%s14104_s0 + $0x151] sm:$0xff] }
 0x11e   :  { %14173 = vst [vmem:[#allocation49_spill] sm:$0xff] %v8998_v30  ;;  %v634_v30 = vld [vmem:[%s14104_s0 + $0x121] sm:$0xff] }
 0x11f   :  { %14174 = vst [vmem:[#allocation50_spill] sm:$0xff] %v9000_v2 }
 0x122   :  { %833 = vperm.xlu2 %8120, %v631_v46   ;;  %v632_v46 = vld [vmem:[%s14104_s0 + $0x111] sm:$0xff] }
 0x123   :  { %828 = vperm.xlu1 %8119, %v630_v26   ;;  %823 = vperm.xlu0 %8118, %v629_v6  }
 0x124   :  { %v9011_v19 = vpop.permute.xlu2 %507 }
 0x125   :  { %14175 = vst [vmem:[#allocation51_spill] sm:$0xff] %v9011_v19  ;;  %v9013_v7 = vpop.permute.xlu1 %457  ;;  %v9015_v2 = vpop.permute.xlu0 %452  ;;  %v637_v19 = vld [vmem:[%s14104_s0 + $0x139] sm:$0xff] }
 0x126   :  { %14176 = vst [vmem:[#allocation52_spill] sm:$0xff] %v9013_v7  ;;  %v636_v7 = vld [vmem:[%s14104_s0 + $0x131] sm:$0xff] }
 0x127   :  { %14177 = vst [vmem:[#allocation53_spill] sm:$0xff] %v9015_v2 }
 0x12a   :  { %848 = vperm.xlu2 %8120, %v634_v30   ;;  %v635_v30 = vld [vmem:[%s14104_s0 + $0x129] sm:$0xff] }
 0x12b   :  { %843 = vperm.xlu1 %8119, %v633_v39   ;;  %838 = vperm.xlu0 %8118, %v632_v46  }
 0x12c   :  { %v9026_v26 = vpop.permute.xlu2 %683 }
 0x12d   :  { %v9028_v6 = vpop.permute.xlu1 %472  ;;  %v9030_v2 = vpop.permute.xlu0 %467 }
 0x12e   :  { %14178 = vst [vmem:[#allocation54_spill] sm:$0xff] %v9028_v6  ;;  %v642_v6 = vld [vmem:[%s14104_s0 + $0x169] sm:$0xff] }
 0x12f   :  { %14179 = vst [vmem:[#allocation55_spill] sm:$0xff] %v9030_v2 }
 0x132   :  { %863 = vperm.xlu2 %8120, %v637_v19   ;;  %v638_v19 = vld [vmem:[%s14104_s0 + $0x141] sm:$0xff] }
 0x133   :  { %858 = vperm.xlu1 %8119, %v636_v7   ;;  %853 = vperm.xlu0 %8118, %v635_v30  }
 0x134   :  { %v9041_v39 = vpop.permute.xlu2 %698 }
 0x135   :  { %v9043_v46 = vpop.permute.xlu1 %487  ;;  %v9045_v32 = vpop.permute.xlu0 %482 }
 0x136   :  { %14180 = vst [vmem:[#allocation56_spill] sm:$0xff] %v9043_v46 }
 0x137   :  { %14181 = vst [vmem:[#allocation57_spill] sm:$0xff] %v9045_v32  ;;  %v648_v32 = vld [vmem:[%s14104_s0 + $0x199] sm:$0xff] }
 0x13a   :  { %878 = vperm.xlu2 %8120, %v640_v47   ;;  %v641_v47 = vld [vmem:[%s14104_s0 + $0x161] sm:$0xff] }
 0x13b   :  { %873 = vperm.xlu1 %8119, %v639_v20   ;;  %868 = vperm.xlu0 %8118, %v638_v19  }
 0x13c   :  { %v9056_v7 = vpop.permute.xlu2 %713 }
 0x13d   :  { %v9058_v30 = vpop.permute.xlu1 %502  ;;  %v9060_v46 = vpop.permute.xlu0 %497 }
 0x13e   :  { %14182 = vst [vmem:[#allocation58_spill] sm:$0xff] %v9058_v30 }
 0x13f   :  { %14183 = vst [vmem:[#allocation59_spill] sm:$0xff] %v9060_v46  ;;  %v646_v46 = vld [vmem:[%s14104_s0 + $0x189] sm:$0xff] }
 0x142   :  { %893 = vperm.xlu2 %8120, %v643_v44   ;;  %v644_v44 = vld [vmem:[%s14104_s0 + $0x179] sm:$0xff] }
 0x143   :  { %888 = vperm.xlu1 %8119, %v642_v6   ;;  %883 = vperm.xlu0 %8118, %v641_v47  }
 0x144   :  { %v9071_v20 = vpop.permute.xlu2 %728 }
 0x145   :  { %v9073_v19 = vpop.permute.xlu1 %517  ;;  %v9075_v30 = vpop.permute.xlu0 %512 }
 0x146   :  { %14184 = vst [vmem:[#allocation60_spill] sm:$0xff] %v9073_v19 }
 0x147   :  { %14185 = vst [vmem:[#allocation61_spill] sm:$0xff] %v9075_v30  ;;  %v649_v30 = vld [vmem:[%s14104_s0 + $0x1a1] sm:$0xff] }
 0x14a   :  { %908 = vperm.xlu2 %8120, %v646_v46   ;;  %v647_v46 = vld [vmem:[%s14104_s0 + $0x191] sm:$0xff] }
 0x14b   :  { %903 = vperm.xlu1 %8119, %v645_v59   ;;  %898 = vperm.xlu0 %8118, %v644_v44  }
 0x14c   :  { %v9086_v6 = vpop.permute.xlu2 %743 }
 0x14d   :  { %v9088_v47 = vpop.permute.xlu1 %693  ;;  %v9090_v19 = vpop.permute.xlu0 %688 }
 0x152   :  { %923 = vperm.xlu2 %8120, %v649_v30   ;;  %v650_v30 = vld [vmem:[%s14104_s0 + $0x1a9] sm:$0xff] }
 0x153   :  { %918 = vperm.xlu1 %8119, %v648_v32   ;;  %913 = vperm.xlu0 %8118, %v647_v46  }
 0x154   :  { %v9101_v59 = vpop.permute.xlu2 %758 }
 0x155   :  { %v9103_v44 = vpop.permute.xlu1 %708  ;;  %v9105_v2 = vpop.permute.xlu0 %703 }
 0x156   :  { %14186 = vst [vmem:[#allocation62_spill] sm:$0xff] %v9105_v2 }
 0x15a   :  { %938 = vperm.xlu2 %8120, %v652_v14   ;;  %v653_v14 = vld [vmem:[%s14104_s0 + $0x1c9] sm:$0xff] }
 0x15b   :  { %933 = vperm.xlu1 %8119, %v651_v31   ;;  %928 = vperm.xlu0 %8118, %v650_v30  }
 0x15c   :  { %v9116_v32 = vpop.permute.xlu2 %773 }
 0x15d   :  { %14187 = vst [vmem:[#allocation63_spill] sm:$0xff] %v9116_v32  ;;  %v9118_v46 = vpop.permute.xlu1 %723  ;;  %v9120_v18 = vpop.permute.xlu0 %718  ;;  %v1944_v32 = vld [vmem:[%s14104_s0 + $0x21b] sm:$0xff] }
 0x15e   :  { %14188 = vst [vmem:[#allocation64_spill] sm:$0xff] %v9118_v46  ;;  %v1938_v46 = vld [vmem:[%s14104_s0 + $0x1e3] sm:$0xff] }
 0x15f   :  { %14189 = vst [vmem:[#allocation65_spill] sm:$0xff] %v9120_v18  ;;  %v1936_v18 = vld [vmem:[%s14104_s0 + $0x1d3] sm:$0xff] }
 0x162   :  { %953 = vperm.xlu2 %8120, %v655_v54   ;;  %v656_v54 = vld [vmem:[%s14104_s0 + $0x1e1] sm:$0xff] }
 0x163   :  { %948 = vperm.xlu1 %8119, %v654_v58   ;;  %943 = vperm.xlu0 %8118, %v653_v14  }
 0x164   :  { %v9131_v31 = vpop.permute.xlu2 %788 }
 0x165   :  { %14190 = vst [vmem:[#allocation66_spill] sm:$0xff] %v9131_v31  ;;  %v9133_v30 = vpop.permute.xlu1 %738  ;;  %v9135_v8 = vpop.permute.xlu0 %733  ;;  %v1923_v31 = vld [vmem:[%s14104_s0 + $0x163] sm:$0xff] }
 0x166   :  { %14191 = vst [vmem:[#allocation67_spill] sm:$0xff] %v9133_v30  ;;  %v1305_v30 = vld [vmem:[%s14104_s0 + $0x22a] sm:$0xff] }
 0x167   :  { %14192 = vst [vmem:[#allocation68_spill] sm:$0xff] %v9135_v8  ;;  %v1302_v8 = vld [vmem:[%s14104_s0 + $0x212] sm:$0xff] }
 0x16a   :  { %968 = vperm.xlu2 %8120, %v658_v60   ;;  %v659_v60 = vld [vmem:[%s14104_s0 + $0x1f9] sm:$0xff] }
 0x16b   :  { %963 = vperm.xlu1 %8119, %v657_v36   ;;  %958 = vperm.xlu0 %8118, %v656_v54  }
 0x16c   :  { %v9146_v58 = vpop.permute.xlu2 %803 }
 0x16d   :  { %14193 = vst [vmem:[#allocation69_spill] sm:$0xff] %v9146_v58  ;;  %v9148_v14 = vpop.permute.xlu1 %753  ;;  %v9150_v38 = vpop.permute.xlu0 %748  ;;  %v1300_v58 = vld [vmem:[%s14104_s0 + $0x1fa] sm:$0xff] }
 0x16e   :  { %14194 = vst [vmem:[#allocation70_spill] sm:$0xff] %v9148_v14  ;;  %v1296_v14 = vld [vmem:[%s14104_s0 + $0x1da] sm:$0xff] }
 0x16f   :  { %14195 = vst [vmem:[#allocation71_spill] sm:$0xff] %v9150_v38  ;;  %v1297_v38 = vld [vmem:[%s14104_s0 + $0x1e2] sm:$0xff] }
 0x172   :  { %983 = vperm.xlu2 %8120, %v661_v24   ;;  %v662_v24 = vld [vmem:[%s14104_s0 + $0x219] sm:$0xff] }
 0x173   :  { %978 = vperm.xlu1 %8119, %v660_v25   ;;  %973 = vperm.xlu0 %8118, %v659_v60  }
 0x174   :  { %v9161_v36 = vpop.permute.xlu2 %818 }
 0x175   :  { %14196 = vst [vmem:[#allocation72_spill] sm:$0xff] %v9161_v36  ;;  %v9163_v54 = vpop.permute.xlu1 %768  ;;  %v9165_v48 = vpop.permute.xlu0 %763  ;;  %v1294_v36 = vld [vmem:[%s14104_s0 + $0x1ca] sm:$0xff] }
 0x176   :  { %14197 = vst [vmem:[#allocation73_spill] sm:$0xff] %v9163_v54 }
 0x177   :  { %14198 = vst [vmem:[#allocation74_spill] sm:$0xff] %v9165_v48  ;;  %v1290_v48 = vld [vmem:[%s14104_s0 + $0x1a2] sm:$0xff] }
 0x17a   :  { %998 = vperm.xlu2 %8120, %v664_v40   ;;  %v665_v40 = vld [vmem:[%s14104_s0 + $0x231] sm:$0xff] }
 0x17b   :  { %993 = vperm.xlu1 %8119, %v663_v12   ;;  %988 = vperm.xlu0 %8118, %v662_v24  }
 0x17c   :  { %v9176_v25 = vpop.permute.xlu2 %833 }
 0x17d   :  { %14199 = vst [vmem:[#allocation75_spill] sm:$0xff] %v9176_v25  ;;  %v9178_v60 = vpop.permute.xlu1 %783  ;;  %v9180_v0 = vpop.permute.xlu0 %778  ;;  %v1291_v25 = vld [vmem:[%s14104_s0 + $0x1aa] sm:$0xff] }
 0x17e   :  { %14200 = vst [vmem:[#allocation76_spill] sm:$0xff] %v9178_v60  ;;  %v1284_v60 = vld [vmem:[%s14104_s0 + $0x172] sm:$0xff] }
 0x17f   :  { %14201 = vst [vmem:[#allocation77_spill] sm:$0xff] %v9180_v0  ;;  %v1281_v0 = vld [vmem:[%s14104_s0 + $0x152] sm:$0xff] }
 0x182   :  { %1013 = vperm.xlu2 %8120, %v667_v33   ;;  %v668_v33 = vld [vmem:[%s14104_s0 + $0x249] sm:$0xff] }
 0x183   :  { %1008 = vperm.xlu1 %8119, %v666_v52   ;;  %1003 = vperm.xlu0 %8118, %v665_v40  }
 0x184   :  { %v9191_v12 = vpop.permute.xlu2 %848 }
 0x185   :  { %14202 = vst [vmem:[#allocation78_spill] sm:$0xff] %v9191_v12  ;;  %v9193_v24 = vpop.permute.xlu1 %798  ;;  %v9195_v27 = vpop.permute.xlu0 %793  ;;  %v672_v12 = vld [vmem:[%s14104_s0 + $0x271] sm:$0xff] }
 0x186   :  { %14203 = vst [vmem:[#allocation79_spill] sm:$0xff] %v9193_v24  ;;  %v673_v24 = vld [vmem:[%s14104_s0 + $0x279] sm:$0xff] }
 0x187   :  { %14204 = vst [vmem:[#allocation80_spill] sm:$0xff] %v9195_v27 }
 0x18a   :  { %1028 = vperm.xlu2 %8120, %v670_v42   ;;  %v671_v42 = vld [vmem:[%s14104_s0 + $0x269] sm:$0xff] }
 0x18b   :  { %1023 = vperm.xlu1 %8119, %v669_v21   ;;  %1018 = vperm.xlu0 %8118, %v668_v33  }
 0x18c   :  { %v9206_v52 = vpop.permute.xlu2 %863 }
 0x18d   :  { %14205 = vst [vmem:[#allocation81_spill] sm:$0xff] %v9206_v52  ;;  %v9208_v40 = vpop.permute.xlu1 %813  ;;  %v9210_v27 = vpop.permute.xlu0 %808  ;;  %v675_v52 = vld [vmem:[%s14104_s0 + $0x289] sm:$0xff] }
 0x18e   :  { %14206 = vst [vmem:[#allocation82_spill] sm:$0xff] %v9208_v40  ;;  %v676_v40 = vld [vmem:[%s14104_s0 + $0x291] sm:$0xff] }
 0x18f   :  { %14207 = vst [vmem:[#allocation83_spill] sm:$0xff] %v9210_v27 }
 0x192   :  { %1043 = vperm.xlu2 %8120, %v673_v24   ;;  %v674_v24 = vld [vmem:[%s14104_s0 + $0x281] sm:$0xff] }
 0x193   :  { %1038 = vperm.xlu1 %8119, %v672_v12   ;;  %1033 = vperm.xlu0 %8118, %v671_v42  }
 0x194   :  { %v9221_v21 = vpop.permute.xlu2 %878 }
 0x195   :  { %14208 = vst [vmem:[#allocation84_spill] sm:$0xff] %v9221_v21  ;;  %v9223_v33 = vpop.permute.xlu1 %828  ;;  %v9225_v27 = vpop.permute.xlu0 %823 }
 0x196   :  { %14209 = vst [vmem:[#allocation85_spill] sm:$0xff] %v9223_v33  ;;  %v678_v33 = vld [vmem:[%s14104_s0 + $0x2a1] sm:$0xff] }
 0x197   :  { %14210 = vst [vmem:[#allocation86_spill] sm:$0xff] %v9225_v27  ;;  %v679_v27 = vld [vmem:[%s14104_s0 + $0x2a9] sm:$0xff] }
 0x19a   :  { %1058 = vperm.xlu2 %8120, %v676_v40   ;;  %v677_v40 = vld [vmem:[%s14104_s0 + $0x299] sm:$0xff] }
 0x19b   :  { %1053 = vperm.xlu1 %8119, %v675_v52   ;;  %1048 = vperm.xlu0 %8118, %v674_v24  }
 0x19c   :  { %v9236_v12 = vpop.permute.xlu2 %893 }
 0x19d   :  { %14211 = vst [vmem:[#allocation87_spill] sm:$0xff] %v9236_v12  ;;  %v9238_v42 = vpop.permute.xlu1 %843  ;;  %v9240_v21 = vpop.permute.xlu0 %838 }
 0x19e   :  { %14212 = vst [vmem:[#allocation88_spill] sm:$0xff] %v9238_v42  ;;  %v1242_v42 = vld [vmem:[%s14104_s0 + $0x2] sm:$0xff] }
 0x19f   :  { %14213 = vst [vmem:[#allocation89_spill] sm:$0xff] %v9240_v21  ;;  %v1243_v21 = vld [vmem:[%s14104_s0 + $0xa] sm:$0xff] }
 0x1a2   :  { %1073 = vperm.xlu2 %8120, %v679_v27   ;;  %v680_v27 = vld [vmem:[%s14104_s0 + $0x2b1] sm:$0xff] }
 0x1a3   :  { %1068 = vperm.xlu1 %8119, %v678_v33   ;;  %1063 = vperm.xlu0 %8118, %v677_v40  }
 0x1a4   :  { %v9251_v52 = vpop.permute.xlu2 %908 }
 0x1a5   :  { %14214 = vst [vmem:[#allocation90_spill] sm:$0xff] %v9251_v52  ;;  %v9253_v24 = vpop.permute.xlu1 %858  ;;  %v9255_v12 = vpop.permute.xlu0 %853 }
 0x1a6   :  { %14215 = vst [vmem:[#allocation91_spill] sm:$0xff] %v9253_v24  ;;  %v1245_v24 = vld [vmem:[%s14104_s0 + $0x1a] sm:$0xff] }
 0x1a7   :  { %14216 = vst [vmem:[#allocation92_spill] sm:$0xff] %v9255_v12  ;;  %v1246_v12 = vld [vmem:[%s14104_s0 + $0x22] sm:$0xff] }
 0x1aa   :  { %1329 = vperm.xlu2 %8120, %v1243_v21   ;;  %v1244_v21 = vld [vmem:[%s14104_s0 + $0x12] sm:$0xff] }
 0x1ab   :  { %1324 = vperm.xlu1 %8119, %v1242_v42   ;;  %1078 = vperm.xlu0 %8118, %v680_v27  }
 0x1ac   :  { %v9266_v33 = vpop.permute.xlu2 %923 }
 0x1ad   :  { %14217 = vst [vmem:[#allocation93_spill] sm:$0xff] %v9266_v33  ;;  %v9268_v40 = vpop.permute.xlu1 %873  ;;  %v9270_v52 = vpop.permute.xlu0 %868 }
 0x1ae   :  { %14218 = vst [vmem:[#allocation94_spill] sm:$0xff] %v9268_v40  ;;  %v1249_v40 = vld [vmem:[%s14104_s0 + $0x3a] sm:$0xff] }
 0x1af   :  { %14219 = vst [vmem:[#allocation95_spill] sm:$0xff] %v9270_v52  ;;  %v1248_v52 = vld [vmem:[%s14104_s0 + $0x32] sm:$0xff] }
 0x1b2   :  { %1344 = vperm.xlu2 %8120, %v1246_v12   ;;  %v1247_v12 = vld [vmem:[%s14104_s0 + $0x2a] sm:$0xff] }
 0x1b3   :  { %1339 = vperm.xlu1 %8119, %v1245_v24   ;;  %1334 = vperm.xlu0 %8118, %v1244_v21  }
 0x1b4   :  { %v9281_v42 = vpop.permute.xlu2 %938 }
 0x1b5   :  { %14220 = vst [vmem:[#allocation96_spill] sm:$0xff] %v9281_v42  ;;  %v9283_v27 = vpop.permute.xlu1 %888  ;;  %v9285_v33 = vpop.permute.xlu0 %883 }
 0x1b6   :  { %14221 = vst [vmem:[#allocation97_spill] sm:$0xff] %v9283_v27  ;;  %v1251_v27 = vld [vmem:[%s14104_s0 + $0x4a] sm:$0xff] }
 0x1b7   :  { %14222 = vst [vmem:[#allocation98_spill] sm:$0xff] %v9285_v33  ;;  %v1252_v33 = vld [vmem:[%s14104_s0 + $0x5a] sm:$0xff] }
 0x1ba   :  { %1359 = vperm.xlu2 %8120, %v1249_v40   ;;  %v1250_v40 = vld [vmem:[%s14104_s0 + $0x42] sm:$0xff] }
 0x1bb   :  { %1354 = vperm.xlu1 %8119, %v1248_v52   ;;  %1349 = vperm.xlu0 %8118, %v1247_v12  }
 0x1bc   :  { %v9296_v24 = vpop.permute.xlu2 %953 }
 0x1bd   :  { %14223 = vst [vmem:[#allocation99_spill] sm:$0xff] %v9296_v24  ;;  %v9298_v21 = vpop.permute.xlu1 %903  ;;  %v9300_v42 = vpop.permute.xlu0 %898 }
 0x1be   :  { %14224 = vst [vmem:[#allocation100_spill] sm:$0xff] %v9298_v21  ;;  %v1255_v21 = vld [vmem:[%s14104_s0 + $0x72] sm:$0xff] }
 0x1bf   :  { %14225 = vst [vmem:[#allocation101_spill] sm:$0xff] %v9300_v42  ;;  %v1254_v42 = vld [vmem:[%s14104_s0 + $0x6a] sm:$0xff] }
 0x1c2   :  { %1374 = vperm.xlu2 %8120, %v1252_v33   ;;  %v1253_v33 = vld [vmem:[%s14104_s0 + $0x62] sm:$0xff] }
 0x1c3   :  { %1369 = vperm.xlu1 %8119, %v1251_v27   ;;  %1364 = vperm.xlu0 %8118, %v1250_v40  }
 0x1c4   :  { %v9311_v52 = vpop.permute.xlu2 %968 }
 0x1c5   :  { %14226 = vst [vmem:[#allocation102_spill] sm:$0xff] %v9311_v52  ;;  %v9313_v12 = vpop.permute.xlu1 %918  ;;  %v9315_v24 = vpop.permute.xlu0 %913 }
 0x1c6   :  { %14227 = vst [vmem:[#allocation103_spill] sm:$0xff] %v9313_v12  ;;  %v1257_v12 = vld [vmem:[%s14104_s0 + $0x82] sm:$0xff] }
 0x1c7   :  { %14228 = vst [vmem:[#allocation104_spill] sm:$0xff] %v9315_v24  ;;  %v1258_v24 = vld [vmem:[%s14104_s0 + $0x8a] sm:$0xff] }
 0x1ca   :  { %1389 = vperm.xlu2 %8120, %v1255_v21   ;;  %v1256_v21 = vld [vmem:[%s14104_s0 + $0x7a] sm:$0xff] }
 0x1cb   :  { %1384 = vperm.xlu1 %8119, %v1254_v42   ;;  %1379 = vperm.xlu0 %8118, %v1253_v33  }
 0x1cc   :  { %v9326_v27 = vpop.permute.xlu2 %983 }
 0x1cd   :  { %14229 = vst [vmem:[#allocation105_spill] sm:$0xff] %v9326_v27  ;;  %v9328_v40 = vpop.permute.xlu1 %933  ;;  %v9330_v52 = vpop.permute.xlu0 %928 }
 0x1ce   :  { %14230 = vst [vmem:[#allocation106_spill] sm:$0xff] %v9328_v40  ;;  %v1261_v40 = vld [vmem:[%s14104_s0 + $0xa2] sm:$0xff] }
 0x1cf   :  { %14231 = vst [vmem:[#allocation107_spill] sm:$0xff] %v9330_v52  ;;  %v1260_v52 = vld [vmem:[%s14104_s0 + $0x9a] sm:$0xff] }
 0x1d2   :  { %1404 = vperm.xlu2 %8120, %v1258_v24   ;;  %v1259_v24 = vld [vmem:[%s14104_s0 + $0x92] sm:$0xff] }
 0x1d3   :  { %1399 = vperm.xlu1 %8119, %v1257_v12   ;;  %1394 = vperm.xlu0 %8118, %v1256_v21  }
 0x1d4   :  { %v9341_v42 = vpop.permute.xlu2 %998 }
 0x1d5   :  { %14232 = vst [vmem:[#allocation108_spill] sm:$0xff] %v9341_v42  ;;  %v9343_v33 = vpop.permute.xlu1 %948  ;;  %v9345_v27 = vpop.permute.xlu0 %943 }
 0x1d6   :  { %14233 = vst [vmem:[#allocation109_spill] sm:$0xff] %v9343_v33  ;;  %v1263_v33 = vld [vmem:[%s14104_s0 + $0xba] sm:$0xff] }
 0x1d7   :  { %14234 = vst [vmem:[#allocation110_spill] sm:$0xff] %v9345_v27  ;;  %v1264_v27 = vld [vmem:[%s14104_s0 + $0xc2] sm:$0xff] }
 0x1da   :  { %1419 = vperm.xlu2 %8120, %v1261_v40   ;;  %v1262_v40 = vld [vmem:[%s14104_s0 + $0xb2] sm:$0xff] }
 0x1db   :  { %1414 = vperm.xlu1 %8119, %v1260_v52   ;;  %1409 = vperm.xlu0 %8118, %v1259_v24  }
 0x1dc   :  { %v9356_v12 = vpop.permute.xlu2 %1013 }
 0x1dd   :  { %14235 = vst [vmem:[#allocation111_spill] sm:$0xff] %v9356_v12  ;;  %v9358_v21 = vpop.permute.xlu1 %963  ;;  %v9360_v42 = vpop.permute.xlu0 %958 }
 0x1de   :  { %14236 = vst [vmem:[#allocation112_spill] sm:$0xff] %v9358_v21  ;;  %v1267_v21 = vld [vmem:[%s14104_s0 + $0xda] sm:$0xff] }
 0x1df   :  { %14237 = vst [vmem:[#allocation113_spill] sm:$0xff] %v9360_v42  ;;  %v1266_v42 = vld [vmem:[%s14104_s0 + $0xd2] sm:$0xff] }
 0x1e2   :  { %1434 = vperm.xlu2 %8120, %v1264_v27   ;;  %v1265_v27 = vld [vmem:[%s14104_s0 + $0xca] sm:$0xff] }
 0x1e3   :  { %1429 = vperm.xlu1 %8119, %v1263_v33   ;;  %1424 = vperm.xlu0 %8118, %v1262_v40  }
 0x1e4   :  { %v9371_v52 = vpop.permute.xlu2 %1028 }
 0x1e5   :  { %14238 = vst [vmem:[#allocation114_spill] sm:$0xff] %v9371_v52  ;;  %v9373_v24 = vpop.permute.xlu1 %978  ;;  %v9375_v12 = vpop.permute.xlu0 %973  ;;  %v1269_v52 = vld [vmem:[%s14104_s0 + $0xea] sm:$0xff] }
 0x1e6   :  { %14239 = vst [vmem:[#allocation115_spill] sm:$0xff] %v9373_v24  ;;  %v1270_v24 = vld [vmem:[%s14104_s0 + $0xf2] sm:$0xff] }
 0x1e7   :  { %14240 = vst [vmem:[#allocation116_spill] sm:$0xff] %v9375_v12 }
 0x1ea   :  { %1449 = vperm.xlu2 %8120, %v1267_v21   ;;  %v1268_v21 = vld [vmem:[%s14104_s0 + $0xe2] sm:$0xff] }
 0x1eb   :  { %1444 = vperm.xlu1 %8119, %v1266_v42   ;;  %1439 = vperm.xlu0 %8118, %v1265_v27  }
 0x1ec   :  { %v9386_v33 = vpop.permute.xlu2 %1043 }
 0x1ed   :  { %14241 = vst [vmem:[#allocation117_spill] sm:$0xff] %v9386_v33  ;;  %v9388_v40 = vpop.permute.xlu1 %993  ;;  %v9390_v12 = vpop.permute.xlu0 %988  ;;  %v1272_v33 = vld [vmem:[%s14104_s0 + $0x10a] sm:$0xff] }
 0x1ee   :  { %14242 = vst [vmem:[#allocation118_spill] sm:$0xff] %v9388_v40 }
 0x1ef   :  { %14243 = vst [vmem:[#allocation119_spill] sm:$0xff] %v9390_v12  ;;  %v1273_v12 = vld [vmem:[%s14104_s0 + $0x112] sm:$0xff] }
 0x1f2   :  { %1464 = vperm.xlu2 %8120, %v1270_v24   ;;  %v1271_v24 = vld [vmem:[%s14104_s0 + $0xfa] sm:$0xff] }
 0x1f3   :  { %1459 = vperm.xlu1 %8119, %v1269_v52   ;;  %1454 = vperm.xlu0 %8118, %v1268_v21  }
 0x1f4   :  { %v9401_v42 = vpop.permute.xlu2 %1058 }
 0x1f5   :  { %14244 = vst [vmem:[#allocation120_spill] sm:$0xff] %v9401_v42  ;;  %v9403_v27 = vpop.permute.xlu1 %1008  ;;  %v9405_v40 = vpop.permute.xlu0 %1003  ;;  %v1275_v42 = vld [vmem:[%s14104_s0 + $0x122] sm:$0xff] }
 0x1f6   :  { %14245 = vst [vmem:[#allocation121_spill] sm:$0xff] %v9403_v27  ;;  %v1276_v27 = vld [vmem:[%s14104_s0 + $0x12a] sm:$0xff] }
 0x1f7   :  { %14246 = vst [vmem:[#allocation122_spill] sm:$0xff] %v9405_v40 }
 0x1fa   :  { %1479 = vperm.xlu2 %8120, %v1273_v12   ;;  %v1274_v12 = vld [vmem:[%s14104_s0 + $0x11a] sm:$0xff] }
 0x1fb   :  { %1474 = vperm.xlu1 %8119, %v1272_v33   ;;  %1469 = vperm.xlu0 %8118, %v1271_v24  }
 0x1fc   :  { %v9416_v52 = vpop.permute.xlu2 %1073 }
 0x1fd   :  { %14247 = vst [vmem:[#allocation123_spill] sm:$0xff] %v9416_v52  ;;  %v9418_v21 = vpop.permute.xlu1 %1023  ;;  %v9420_v40 = vpop.permute.xlu0 %1018 }
 0x1fe   :  { %14248 = vst [vmem:[#allocation124_spill] sm:$0xff] %v9418_v21  ;;  %v1278_v21 = vld [vmem:[%s14104_s0 + $0x13a] sm:$0xff] }
 0x1ff   :  { %14249 = vst [vmem:[#allocation125_spill] sm:$0xff] %v9420_v40  ;;  %v1279_v40 = vld [vmem:[%s14104_s0 + $0x142] sm:$0xff] }
 0x202   :  { %1494 = vperm.xlu2 %8120, %v1276_v27   ;;  %v1277_v27 = vld [vmem:[%s14104_s0 + $0x132] sm:$0xff] }
 0x203   :  { %1489 = vperm.xlu1 %8119, %v1275_v42   ;;  %1484 = vperm.xlu0 %8118, %v1274_v12  }
 0x204   :  { %v9431_v33 = vpop.permute.xlu2 %1329 }
 0x205   :  { %v9433_v24 = vpop.permute.xlu1 %1038  ;;  %v9435_v52 = vpop.permute.xlu0 %1033 }
 0x206   :  { %14250 = vst [vmem:[#allocation126_spill] sm:$0xff] %v9433_v24  ;;  %v1282_v24 = vld [vmem:[%s14104_s0 + $0x162] sm:$0xff] }
 0x207   :  { %14251 = vst [vmem:[#allocation127_spill] sm:$0xff] %v9435_v52 }
 0x20a   :  { %1509 = vperm.xlu2 %8120, %v1279_v40   ;;  %v1280_v40 = vld [vmem:[%s14104_s0 + $0x14a] sm:$0xff] }
 0x20b   :  { %1504 = vperm.xlu1 %8119, %v1278_v21   ;;  %1499 = vperm.xlu0 %8118, %v1277_v27  }
 0x20c   :  { %v9446_v42 = vpop.permute.xlu2 %1344 }
 0x20d   :  { %14252 = vst [vmem:[#allocation128_spill] sm:$0xff] %v9446_v42  ;;  %v9448_v12 = vpop.permute.xlu1 %1053  ;;  %v9450_v52 = vpop.permute.xlu0 %1048 }
 0x20e   :  { %14253 = vst [vmem:[#allocation129_spill] sm:$0xff] %v9448_v12 }
 0x20f   :  { %14254 = vst [vmem:[#allocation130_spill] sm:$0xff] %v9450_v52  ;;  %v1285_v52 = vld [vmem:[%s14104_s0 + $0x17a] sm:$0xff] }
 0x212   :  { %1524 = vperm.xlu2 %8120, %v1282_v24   ;;  %v1283_v24 = vld [vmem:[%s14104_s0 + $0x16a] sm:$0xff] }
 0x213   :  { %1519 = vperm.xlu1 %8119, %v1281_v0   ;;  %1514 = vperm.xlu0 %8118, %v1280_v40  }
 0x214   :  { %v9461_v21 = vpop.permute.xlu2 %1359 }
 0x215   :  { %14255 = vst [vmem:[#allocation131_spill] sm:$0xff] %v9461_v21  ;;  %v9463_v27 = vpop.permute.xlu1 %1068  ;;  %v9465_v12 = vpop.permute.xlu0 %1063  ;;  %v1933_v21 = vld [vmem:[%s14104_s0 + $0x1bb] sm:$0xff] }
 0x216   :  { %14256 = vst [vmem:[#allocation132_spill] sm:$0xff] %v9463_v27 }
 0x217   :  { %14257 = vst [vmem:[#allocation133_spill] sm:$0xff] %v9465_v12  ;;  %v1288_v12 = vld [vmem:[%s14104_s0 + $0x192] sm:$0xff] }
 0x21a   :  { %1539 = vperm.xlu2 %8120, %v1285_v52   ;;  %v1286_v52 = vld [vmem:[%s14104_s0 + $0x182] sm:$0xff] }
 0x21b   :  { %1534 = vperm.xlu1 %8119, %v1284_v60   ;;  %1529 = vperm.xlu0 %8118, %v1283_v24  }
 0x21c   :  { %v9476_v0 = vpop.permute.xlu2 %1374 }
 0x21d   :  { %14258 = vst [vmem:[#allocation134_spill] sm:$0xff] %v9476_v0  ;;  %v9478_v40 = vpop.permute.xlu1 %1324  ;;  %v9480_v27 = vpop.permute.xlu0 %1078  ;;  %v1299_v0 = vld [vmem:[%s14104_s0 + $0x1f2] sm:$0xff] }
 0x21e   :  { %14259 = vst [vmem:[#allocation135_spill] sm:$0xff] %v9480_v27 }
 0x222   :  { %1554 = vperm.xlu2 %8120, %v1288_v12   ;;  %v1289_v12 = vld [vmem:[%s14104_s0 + $0x19a] sm:$0xff] }
 0x223   :  { %1549 = vperm.xlu1 %8119, %v1287_v13   ;;  %1544 = vperm.xlu0 %8118, %v1286_v52  }
 0x224   :  { %v9491_v60 = vpop.permute.xlu2 %1389 }
 0x225   :  { %14260 = vst [vmem:[#allocation136_spill] sm:$0xff] %v9491_v60  ;;  %v9493_v24 = vpop.permute.xlu1 %1339  ;;  %v9495_v27 = vpop.permute.xlu0 %1334  ;;  %v1293_v60 = vld [vmem:[%s14104_s0 + $0x1c2] sm:$0xff] }
 0x22a   :  { %1569 = vperm.xlu2 %8120, %v1291_v25   ;;  %v1292_v25 = vld [vmem:[%s14104_s0 + $0x1ba] sm:$0xff] }
 0x22b   :  { %1564 = vperm.xlu1 %8119, %v1290_v48   ;;  %1559 = vperm.xlu0 %8118, %v1289_v12  }
 0x22c   :  { %v9506_v13 = vpop.permute.xlu2 %1404 }
 0x22d   :  { %14261 = vst [vmem:[#allocation137_spill] sm:$0xff] %v9506_v13  ;;  %v9508_v52 = vpop.permute.xlu1 %1354  ;;  %v9510_v54 = vpop.permute.xlu0 %1349 }
 0x22e   :  { %14262 = vst [vmem:[#allocation138_spill] sm:$0xff] %v9510_v54 }
 0x232   :  { %1584 = vperm.xlu2 %8120, %v1294_v36   ;;  %v1295_v36 = vld [vmem:[%s14104_s0 + $0x1d2] sm:$0xff] }
 0x233   :  { %1579 = vperm.xlu1 %8119, %v1293_v60   ;;  %1574 = vperm.xlu0 %8118, %v1292_v25  }
 0x234   :  { %v9521_v48 = vpop.permute.xlu2 %1419 }
 0x235   :  { %14263 = vst [vmem:[#allocation139_spill] sm:$0xff] %v9521_v48  ;;  %v9523_v12 = vpop.permute.xlu1 %1369  ;;  %v9525_v13 = vpop.permute.xlu0 %1364 }
 0x236   :  { %14264 = vst [vmem:[#allocation140_spill] sm:$0xff] %v9525_v13  ;;  %v1926_v13 = vld [vmem:[%s14104_s0 + $0x17b] sm:$0xff] }
 0x23a   :  { %1599 = vperm.xlu2 %8120, %v1297_v38   ;;  %v1298_v38 = vld [vmem:[%s14104_s0 + $0x1ea] sm:$0xff] }
 0x23b   :  { %1594 = vperm.xlu1 %8119, %v1296_v14   ;;  %1589 = vperm.xlu0 %8118, %v1295_v36  }
 0x23c   :  { %v9536_v60 = vpop.permute.xlu2 %1434 }
 0x23d   :  { %14265 = vst [vmem:[#allocation141_spill] sm:$0xff] %v9536_v60  ;;  %v9538_v25 = vpop.permute.xlu1 %1384  ;;  %v9540_v48 = vpop.permute.xlu0 %1379 }
 0x23e   :  { %14266 = vst [vmem:[#allocation142_spill] sm:$0xff] %v9540_v48  ;;  %v1303_v48 = vld [vmem:[%s14104_s0 + $0x21a] sm:$0xff] }
 0x242   :  { %1614 = vperm.xlu2 %8120, %v1300_v58   ;;  %v1301_v58 = vld [vmem:[%s14104_s0 + $0x202] sm:$0xff] }
 0x243   :  { %1609 = vperm.xlu1 %8119, %v1299_v0   ;;  %1604 = vperm.xlu0 %8118, %v1298_v38  }
 0x244   :  { %v9551_v14 = vpop.permute.xlu2 %1449 }
 0x245   :  { %14267 = vst [vmem:[#allocation143_spill] sm:$0xff] %v9551_v14  ;;  %v9553_v36 = vpop.permute.xlu1 %1399  ;;  %v9555_v60 = vpop.permute.xlu0 %1394 }
 0x246   :  { %14268 = vst [vmem:[#allocation144_spill] sm:$0xff] %v9553_v36 }
 0x247   :  { %14269 = vst [vmem:[#allocation145_spill] sm:$0xff] %v9555_v60  ;;  %v1306_v60 = vld [vmem:[%s14104_s0 + $0x232] sm:$0xff] }
 0x24a   :  { %1629 = vperm.xlu2 %8120, %v1303_v48   ;;  %v1304_v48 = vld [vmem:[%s14104_s0 + $0x222] sm:$0xff] }
 0x24b   :  { %1624 = vperm.xlu1 %8119, %v1302_v8   ;;  %1619 = vperm.xlu0 %8118, %v1301_v58  }
 0x24c   :  { %v9566_v0 = vpop.permute.xlu2 %1464 }
 0x24d   :  { %14270 = vst [vmem:[#allocation146_spill] sm:$0xff] %v9566_v0  ;;  %v9568_v38 = vpop.permute.xlu1 %1414  ;;  %v9570_v14 = vpop.permute.xlu0 %1409 }
 0x24e   :  { %14271 = vst [vmem:[#allocation147_spill] sm:$0xff] %v9568_v38  ;;  %v1932_v38 = vld [vmem:[%s14104_s0 + $0x1ab] sm:$0xff] }
 0x24f   :  { %14272 = vst [vmem:[#allocation148_spill] sm:$0xff] %v9570_v14  ;;  %v1309_v14 = vld [vmem:[%s14104_s0 + $0x24a] sm:$0xff] }
 0x252   :  { %1644 = vperm.xlu2 %8120, %v1306_v60   ;;  %v1307_v60 = vld [vmem:[%s14104_s0 + $0x23a] sm:$0xff] }
 0x253   :  { %1639 = vperm.xlu1 %8119, %v1305_v30   ;;  %1634 = vperm.xlu0 %8118, %v1304_v48  }
 0x254   :  { %v9581_v8 = vpop.permute.xlu2 %1479 }
 0x255   :  { %14273 = vst [vmem:[#allocation149_spill] sm:$0xff] %v9581_v8  ;;  %v9583_v58 = vpop.permute.xlu1 %1429  ;;  %v9585_v0 = vpop.permute.xlu0 %1424 }
 0x256   :  { %14274 = vst [vmem:[#allocation150_spill] sm:$0xff] %v9583_v58  ;;  %v1311_v58 = vld [vmem:[%s14104_s0 + $0x25a] sm:$0xff] }
 0x257   :  { %14275 = vst [vmem:[#allocation151_spill] sm:$0xff] %v9585_v0  ;;  %v1312_v0 = vld [vmem:[%s14104_s0 + $0x26a] sm:$0xff] }
 0x25a   :  { %1659 = vperm.xlu2 %8120, %v1309_v14   ;;  %v1310_v14 = vld [vmem:[%s14104_s0 + $0x252] sm:$0xff] }
 0x25b   :  { %1654 = vperm.xlu1 %8119, %v1308_v1   ;;  %1649 = vperm.xlu0 %8118, %v1307_v60  }
 0x25c   :  { %v9596_v30 = vpop.permute.xlu2 %1494 }
 0x25d   :  { %14276 = vst [vmem:[#allocation152_spill] sm:$0xff] %v9596_v30  ;;  %v9598_v48 = vpop.permute.xlu1 %1444  ;;  %v9600_v8 = vpop.permute.xlu0 %1439 }
 0x25e   :  { %14277 = vst [vmem:[#allocation153_spill] sm:$0xff] %v9598_v48  ;;  %v1314_v48 = vld [vmem:[%s14104_s0 + $0x27a] sm:$0xff] }
 0x25f   :  { %14278 = vst [vmem:[#allocation154_spill] sm:$0xff] %v9600_v8  ;;  %v1315_v8 = vld [vmem:[%s14104_s0 + $0x282] sm:$0xff] }
 0x262   :  { %1674 = vperm.xlu2 %8120, %v1312_v0   ;;  %v1313_v0 = vld [vmem:[%s14104_s0 + $0x272] sm:$0xff] }
 0x263   :  { %1669 = vperm.xlu1 %8119, %v1311_v58   ;;  %1664 = vperm.xlu0 %8118, %v1310_v14  }
 0x264   :  { %v9611_v1 = vpop.permute.xlu2 %1509 }
 0x265   :  { %14279 = vst [vmem:[#allocation155_spill] sm:$0xff] %v9611_v1  ;;  %v9613_v60 = vpop.permute.xlu1 %1459  ;;  %v9615_v30 = vpop.permute.xlu0 %1454 }
 0x266   :  { %14280 = vst [vmem:[#allocation156_spill] sm:$0xff] %v9613_v60  ;;  %v1317_v60 = vld [vmem:[%s14104_s0 + $0x292] sm:$0xff] }
 0x267   :  { %14281 = vst [vmem:[#allocation157_spill] sm:$0xff] %v9615_v30  ;;  %v1318_v30 = vld [vmem:[%s14104_s0 + $0x29a] sm:$0xff] }
 0x26a   :  { %1689 = vperm.xlu2 %8120, %v1315_v8   ;;  %v1316_v8 = vld [vmem:[%s14104_s0 + $0x28a] sm:$0xff] }
 0x26b   :  { %1684 = vperm.xlu1 %8119, %v1314_v48   ;;  %1679 = vperm.xlu0 %8118, %v1313_v0  }
 0x26c   :  { %v9626_v58 = vpop.permute.xlu2 %1524 }
 0x26d   :  { %14282 = vst [vmem:[#allocation158_spill] sm:$0xff] %v9626_v58  ;;  %v9628_v14 = vpop.permute.xlu1 %1474  ;;  %v9630_v1 = vpop.permute.xlu0 %1469 }
 0x26e   :  { %14283 = vst [vmem:[#allocation159_spill] sm:$0xff] %v9628_v14  ;;  %v1320_v14 = vld [vmem:[%s14104_s0 + $0x2aa] sm:$0xff] }
 0x26f   :  { %14284 = vst [vmem:[#allocation160_spill] sm:$0xff] %v9630_v1  ;;  %v1321_v1 = vld [vmem:[%s14104_s0 + $0x2b2] sm:$0xff] }
 0x272   :  { %1704 = vperm.xlu2 %8120, %v1318_v30   ;;  %v1319_v30 = vld [vmem:[%s14104_s0 + $0x2a2] sm:$0xff] }
 0x273   :  { %1699 = vperm.xlu1 %8119, %v1317_v60   ;;  %1694 = vperm.xlu0 %8118, %v1316_v8  }
 0x274   :  { %v9641_v48 = vpop.permute.xlu2 %1539 }
 0x275   :  { %14285 = vst [vmem:[#allocation161_spill] sm:$0xff] %v9641_v48  ;;  %v9643_v0 = vpop.permute.xlu1 %1489  ;;  %v9645_v58 = vpop.permute.xlu0 %1484 }
 0x276   :  { %14286 = vst [vmem:[#allocation162_spill] sm:$0xff] %v9643_v0  ;;  %v1884_v0 = vld [vmem:[%s14104_s0 + $0xb] sm:$0xff] }
 0x277   :  { %14287 = vst [vmem:[#allocation163_spill] sm:$0xff] %v9645_v58  ;;  %v1885_v58 = vld [vmem:[%s14104_s0 + $0x13] sm:$0xff] }
 0x27a   :  { %1719 = vperm.xlu2 %8120, %v1321_v1   ;;  %v1883_v1 = vld [vmem:[%s14104_s0 + $0x3] sm:$0xff] }
 0x27b   :  { %1714 = vperm.xlu1 %8119, %v1320_v14   ;;  %1709 = vperm.xlu0 %8118, %v1319_v30  }
 0x27c   :  { %v9656_v60 = vpop.permute.xlu2 %1554 }
 0x27d   :  { %14288 = vst [vmem:[#allocation164_spill] sm:$0xff] %v9656_v60  ;;  %v9658_v8 = vpop.permute.xlu1 %1504  ;;  %v9660_v48 = vpop.permute.xlu0 %1499 }
 0x27e   :  { %14289 = vst [vmem:[#allocation165_spill] sm:$0xff] %v9658_v8  ;;  %v1887_v8 = vld [vmem:[%s14104_s0 + $0x23] sm:$0xff] }
 0x27f   :  { %14290 = vst [vmem:[#allocation166_spill] sm:$0xff] %v9660_v48  ;;  %v1888_v48 = vld [vmem:[%s14104_s0 + $0x2b] sm:$0xff] }
 0x282   :  { %1975 = vperm.xlu2 %8120, %v1885_v58   ;;  %v1886_v58 = vld [vmem:[%s14104_s0 + $0x1b] sm:$0xff] }
 0x283   :  { %1970 = vperm.xlu1 %8119, %v1884_v0   ;;  %1965 = vperm.xlu0 %8118, %v1883_v1  }
 0x284   :  { %v9671_v14 = vpop.permute.xlu2 %1569 }
 0x285   :  { %14291 = vst [vmem:[#allocation167_spill] sm:$0xff] %v9671_v14  ;;  %v9673_v30 = vpop.permute.xlu1 %1519  ;;  %v9675_v60 = vpop.permute.xlu0 %1514 }
 0x286   :  { %14292 = vst [vmem:[#allocation168_spill] sm:$0xff] %v9673_v30  ;;  %v1891_v30 = vld [vmem:[%s14104_s0 + $0x43] sm:$0xff] }
 0x287   :  { %14293 = vst [vmem:[#allocation169_spill] sm:$0xff] %v9675_v60  ;;  %v1890_v60 = vld [vmem:[%s14104_s0 + $0x3b] sm:$0xff] }
 0x28a   :  { %1990 = vperm.xlu2 %8120, %v1888_v48   ;;  %v1889_v48 = vld [vmem:[%s14104_s0 + $0x33] sm:$0xff] }
 0x28b   :  { %1985 = vperm.xlu1 %8119, %v1887_v8   ;;  %1980 = vperm.xlu0 %8118, %v1886_v58  }
 0x28c   :  { %v9686_v0 = vpop.permute.xlu2 %1584 }
 0x28d   :  { %14294 = vst [vmem:[#allocation170_spill] sm:$0xff] %v9686_v0  ;;  %v9688_v1 = vpop.permute.xlu1 %1534  ;;  %v9690_v14 = vpop.permute.xlu0 %1529 }
 0x28e   :  { %14295 = vst [vmem:[#allocation171_spill] sm:$0xff] %v9688_v1  ;;  %v1894_v1 = vld [vmem:[%s14104_s0 + $0x63] sm:$0xff] }
 0x28f   :  { %14296 = vst [vmem:[#allocation172_spill] sm:$0xff] %v9690_v14  ;;  %v1893_v14 = vld [vmem:[%s14104_s0 + $0x5b] sm:$0xff] }
 0x292   :  { %2005 = vperm.xlu2 %8120, %v1891_v30   ;;  %v1892_v30 = vld [vmem:[%s14104_s0 + $0x4b] sm:$0xff] }
 0x293   :  { %2000 = vperm.xlu1 %8119, %v1890_v60   ;;  %1995 = vperm.xlu0 %8118, %v1889_v48  }
 0x294   :  { %v9701_v8 = vpop.permute.xlu2 %1599 }
 0x295   :  { %14297 = vst [vmem:[#allocation173_spill] sm:$0xff] %v9701_v8  ;;  %v9703_v58 = vpop.permute.xlu1 %1549  ;;  %v9705_v0 = vpop.permute.xlu0 %1544 }
 0x296   :  { %14298 = vst [vmem:[#allocation174_spill] sm:$0xff] %v9703_v58  ;;  %v1897_v58 = vld [vmem:[%s14104_s0 + $0x7b] sm:$0xff] }
 0x297   :  { %14299 = vst [vmem:[#allocation175_spill] sm:$0xff] %v9705_v0  ;;  %v1896_v0 = vld [vmem:[%s14104_s0 + $0x73] sm:$0xff] }
 0x29a   :  { %2020 = vperm.xlu2 %8120, %v1894_v1   ;;  %v1895_v1 = vld [vmem:[%s14104_s0 + $0x6b] sm:$0xff] }
 0x29b   :  { %2015 = vperm.xlu1 %8119, %v1893_v14   ;;  %2010 = vperm.xlu0 %8118, %v1892_v30  }
 0x29c   :  { %v9716_v60 = vpop.permute.xlu2 %1614 }
 0x29d   :  { %14300 = vst [vmem:[#allocation176_spill] sm:$0xff] %v9716_v60  ;;  %v9718_v48 = vpop.permute.xlu1 %1564  ;;  %v9720_v8 = vpop.permute.xlu0 %1559 }
 0x29e   :  { %14301 = vst [vmem:[#allocation177_spill] sm:$0xff] %v9718_v48  ;;  %v1900_v48 = vld [vmem:[%s14104_s0 + $0x93] sm:$0xff] }
 0x29f   :  { %14302 = vst [vmem:[#allocation178_spill] sm:$0xff] %v9720_v8  ;;  %v1899_v8 = vld [vmem:[%s14104_s0 + $0x8b] sm:$0xff] }
 0x2a2   :  { %2035 = vperm.xlu2 %8120, %v1897_v58   ;;  %v1898_v58 = vld [vmem:[%s14104_s0 + $0x83] sm:$0xff] }
 0x2a3   :  { %2030 = vperm.xlu1 %8119, %v1896_v0   ;;  %2025 = vperm.xlu0 %8118, %v1895_v1  }
 0x2a4   :  { %v9731_v14 = vpop.permute.xlu2 %1629 }
 0x2a5   :  { %14303 = vst [vmem:[#allocation179_spill] sm:$0xff] %v9731_v14  ;;  %v9733_v30 = vpop.permute.xlu1 %1579  ;;  %v9735_v60 = vpop.permute.xlu0 %1574 }
 0x2a6   :  { %14304 = vst [vmem:[#allocation180_spill] sm:$0xff] %v9733_v30  ;;  %v1902_v30 = vld [vmem:[%s14104_s0 + $0xa3] sm:$0xff] }
 0x2a7   :  { %14305 = vst [vmem:[#allocation181_spill] sm:$0xff] %v9735_v60  ;;  %v1903_v60 = vld [vmem:[%s14104_s0 + $0xb3] sm:$0xff] }
 0x2aa   :  { %2050 = vperm.xlu2 %8120, %v1900_v48   ;;  %v1901_v48 = vld [vmem:[%s14104_s0 + $0x9b] sm:$0xff] }
 0x2ab   :  { %2045 = vperm.xlu1 %8119, %v1899_v8   ;;  %2040 = vperm.xlu0 %8118, %v1898_v58  }
 0x2ac   :  { %v9746_v0 = vpop.permute.xlu2 %1644 }
 0x2ad   :  { %14306 = vst [vmem:[#allocation182_spill] sm:$0xff] %v9746_v0  ;;  %v9748_v1 = vpop.permute.xlu1 %1594  ;;  %v9750_v14 = vpop.permute.xlu0 %1589 }
 0x2ae   :  { %14307 = vst [vmem:[#allocation183_spill] sm:$0xff] %v9748_v1  ;;  %v1906_v1 = vld [vmem:[%s14104_s0 + $0xcb] sm:$0xff] }
 0x2af   :  { %14308 = vst [vmem:[#allocation184_spill] sm:$0xff] %v9750_v14  ;;  %v1905_v14 = vld [vmem:[%s14104_s0 + $0xc3] sm:$0xff] }
 0x2b2   :  { %2065 = vperm.xlu2 %8120, %v1903_v60   ;;  %v1904_v60 = vld [vmem:[%s14104_s0 + $0xbb] sm:$0xff] }
 0x2b3   :  { %2060 = vperm.xlu1 %8119, %v1902_v30   ;;  %2055 = vperm.xlu0 %8118, %v1901_v48  }
 0x2b4   :  { %v9761_v8 = vpop.permute.xlu2 %1659 }
 0x2b5   :  { %14309 = vst [vmem:[#allocation185_spill] sm:$0xff] %v9761_v8  ;;  %v9763_v58 = vpop.permute.xlu1 %1609  ;;  %v9765_v0 = vpop.permute.xlu0 %1604  ;;  %v1908_v8 = vld [vmem:[%s14104_s0 + $0xdb] sm:$0xff] }
 0x2b6   :  { %14310 = vst [vmem:[#allocation186_spill] sm:$0xff] %v9763_v58 }
 0x2b7   :  { %14311 = vst [vmem:[#allocation187_spill] sm:$0xff] %v9765_v0  ;;  %v1909_v0 = vld [vmem:[%s14104_s0 + $0xe3] sm:$0xff] }
 0x2ba   :  { %2080 = vperm.xlu2 %8120, %v1906_v1   ;;  %v1907_v1 = vld [vmem:[%s14104_s0 + $0xd3] sm:$0xff] }
 0x2bb   :  { %2075 = vperm.xlu1 %8119, %v1905_v14   ;;  %2070 = vperm.xlu0 %8118, %v1904_v60  }
 0x2bc   :  { %v9776_v30 = vpop.permute.xlu2 %1674 }
 0x2bd   :  { %14312 = vst [vmem:[#allocation188_spill] sm:$0xff] %v9776_v30  ;;  %v9778_v48 = vpop.permute.xlu1 %1624  ;;  %v9780_v58 = vpop.permute.xlu0 %1619  ;;  %v1911_v30 = vld [vmem:[%s14104_s0 + $0xf3] sm:$0xff] }
 0x2be   :  { %14313 = vst [vmem:[#allocation189_spill] sm:$0xff] %v9778_v48 }
 0x2bf   :  { %14314 = vst [vmem:[#allocation190_spill] sm:$0xff] %v9780_v58  ;;  %v1912_v58 = vld [vmem:[%s14104_s0 + $0xfb] sm:$0xff] }
 0x2c2   :  { %2095 = vperm.xlu2 %8120, %v1909_v0   ;;  %v1910_v0 = vld [vmem:[%s14104_s0 + $0xeb] sm:$0xff] }
 0x2c3   :  { %2090 = vperm.xlu1 %8119, %v1908_v8   ;;  %2085 = vperm.xlu0 %8118, %v1907_v1  }
 0x2c4   :  { %v9791_v14 = vpop.permute.xlu2 %1689 }
 0x2c5   :  { %14315 = vst [vmem:[#allocation191_spill] sm:$0xff] %v9791_v14  ;;  %v9793_v60 = vpop.permute.xlu1 %1639  ;;  %v9795_v48 = vpop.permute.xlu0 %1634  ;;  %v1914_v14 = vld [vmem:[%s14104_s0 + $0x113] sm:$0xff] }
 0x2c6   :  { %14316 = vst [vmem:[#allocation192_spill] sm:$0xff] %v9793_v60 }
 0x2c7   :  { %14317 = vst [vmem:[#allocation193_spill] sm:$0xff] %v9795_v48  ;;  %v1915_v48 = vld [vmem:[%s14104_s0 + $0x11b] sm:$0xff] }
 0x2ca   :  { %2110 = vperm.xlu2 %8120, %v1912_v58   ;;  %v1913_v58 = vld [vmem:[%s14104_s0 + $0x10b] sm:$0xff] }
 0x2cb   :  { %2105 = vperm.xlu1 %8119, %v1911_v30   ;;  %2100 = vperm.xlu0 %8118, %v1910_v0  }
 0x2cc   :  { %v9806_v8 = vpop.permute.xlu2 %1704 }
 0x2cd   :  { %14318 = vst [vmem:[#allocation194_spill] sm:$0xff] %v9806_v8  ;;  %v9808_v1 = vpop.permute.xlu1 %1654  ;;  %v9810_v60 = vpop.permute.xlu0 %1649  ;;  %v1917_v8 = vld [vmem:[%s14104_s0 + $0x12b] sm:$0xff] }
 0x2ce   :  { %14319 = vst [vmem:[#allocation195_spill] sm:$0xff] %v9808_v1 }
 0x2cf   :  { %14320 = vst [vmem:[#allocation196_spill] sm:$0xff] %v9810_v60  ;;  %v1918_v60 = vld [vmem:[%s14104_s0 + $0x133] sm:$0xff] }
 0x2d2   :  { %2125 = vperm.xlu2 %8120, %v1915_v48   ;;  %v1916_v48 = vld [vmem:[%s14104_s0 + $0x123] sm:$0xff] }
 0x2d3   :  { %2120 = vperm.xlu1 %8119, %v1914_v14   ;;  %2115 = vperm.xlu0 %8118, %v1913_v58  }
 0x2d4   :  { %v9821_v30 = vpop.permute.xlu2 %1719 }
 0x2d5   :  { %14321 = vst [vmem:[#allocation197_spill] sm:$0xff] %v9821_v30  ;;  %v9823_v0 = vpop.permute.xlu1 %1669  ;;  %v9825_v1 = vpop.permute.xlu0 %1664 }
 0x2d6   :  { %14322 = vst [vmem:[#allocation198_spill] sm:$0xff] %v9823_v0  ;;  %v1920_v0 = vld [vmem:[%s14104_s0 + $0x143] sm:$0xff] }
 0x2d7   :  { %14323 = vst [vmem:[#allocation199_spill] sm:$0xff] %v9825_v1  ;;  %v1921_v1 = vld [vmem:[%s14104_s0 + $0x14b] sm:$0xff] }
 0x2da   :  { %2140 = vperm.xlu2 %8120, %v1918_v60   ;;  %v1919_v60 = vld [vmem:[%s14104_s0 + $0x13b] sm:$0xff] }
 0x2db   :  { %2135 = vperm.xlu1 %8119, %v1917_v8   ;;  %2130 = vperm.xlu0 %8118, %v1916_v48  }
 0x2dc   :  { %v9836_v14 = vpop.permute.xlu2 %1975 }
 0x2dd   :  { %v9838_v58 = vpop.permute.xlu1 %1684  ;;  %v9840_v30 = vpop.permute.xlu0 %1679 }
 0x2de   :  { %14324 = vst [vmem:[#allocation200_spill] sm:$0xff] %v9838_v58 }
 0x2df   :  { %14325 = vst [vmem:[#allocation201_spill] sm:$0xff] %v9840_v30  ;;  %v1924_v30 = vld [vmem:[%s14104_s0 + $0x16b] sm:$0xff] }
 0x2e2   :  { %2155 = vperm.xlu2 %8120, %v1921_v1   ;;  %v1922_v1 = vld [vmem:[%s14104_s0 + $0x153] sm:$0xff] }
 0x2e3   :  { %2150 = vperm.xlu1 %8119, %v1920_v0   ;;  %2145 = vperm.xlu0 %8118, %v1919_v60  }
 0x2e4   :  { %v9851_v8 = vpop.permute.xlu2 %1990 }
 0x2e5   :  { %14326 = vst [vmem:[#allocation202_spill] sm:$0xff] %v9851_v8  ;;  %v9853_v48 = vpop.permute.xlu1 %1699  ;;  %v9855_v58 = vpop.permute.xlu0 %1694 }
 0x2e6   :  { %14327 = vst [vmem:[#allocation203_spill] sm:$0xff] %v9853_v48 }
 0x2e7   :  { %14328 = vst [vmem:[#allocation204_spill] sm:$0xff] %v9855_v58  ;;  %v1927_v58 = vld [vmem:[%s14104_s0 + $0x183] sm:$0xff] }
 0x2ea   :  { %2170 = vperm.xlu2 %8120, %v1924_v30   ;;  %v1925_v30 = vld [vmem:[%s14104_s0 + $0x173] sm:$0xff] }
 0x2eb   :  { %2165 = vperm.xlu1 %8119, %v1923_v31   ;;  %2160 = vperm.xlu0 %8118, %v1922_v1  }
 0x2ec   :  { %v9866_v0 = vpop.permute.xlu2 %2005 }
 0x2ed   :  { %14329 = vst [vmem:[#allocation205_spill] sm:$0xff] %v9866_v0  ;;  %v9868_v60 = vpop.permute.xlu1 %1714  ;;  %v9870_v48 = vpop.permute.xlu0 %1709  ;;  %v1929_v0 = vld [vmem:[%s14104_s0 + $0x193] sm:$0xff] }
 0x2ee   :  { %14330 = vst [vmem:[#allocation206_spill] sm:$0xff] %v9868_v60 }
 0x2ef   :  { %14331 = vst [vmem:[#allocation207_spill] sm:$0xff] %v9870_v48  ;;  %v1930_v48 = vld [vmem:[%s14104_s0 + $0x19b] sm:$0xff] }
 0x2f2   :  { %2185 = vperm.xlu2 %8120, %v1927_v58   ;;  %v1928_v58 = vld [vmem:[%s14104_s0 + $0x18b] sm:$0xff] }
 0x2f3   :  { %2180 = vperm.xlu1 %8119, %v1926_v13   ;;  %2175 = vperm.xlu0 %8118, %v1925_v30  }
 0x2f4   :  { %v9881_v31 = vpop.permute.xlu2 %2020 }
 0x2f5   :  { %14332 = vst [vmem:[#allocation208_spill] sm:$0xff] %v9881_v31  ;;  %v9883_v1 = vpop.permute.xlu1 %1970  ;;  %v9885_v60 = vpop.permute.xlu0 %1965 }
 0x2fa   :  { %2200 = vperm.xlu2 %8120, %v1930_v48   ;;  %v1931_v48 = vld [vmem:[%s14104_s0 + $0x1a3] sm:$0xff] }
 0x2fb   :  { %2195 = vperm.xlu1 %8119, %v1929_v0   ;;  %2190 = vperm.xlu0 %8118, %v1928_v58  }
 0x2fc   :  { %v9896_v13 = vpop.permute.xlu2 %2035 }
 0x2fd   :  { %14333 = vst [vmem:[#allocation209_spill] sm:$0xff] %v9896_v13  ;;  %v9898_v30 = vpop.permute.xlu1 %1985  ;;  %v9900_v31 = vpop.permute.xlu0 %1980 }
 0x2fe   :  { %14334 = vst [vmem:[#allocation210_spill] sm:$0xff] %v9898_v30  ;;  %v1941_v30 = vld [vmem:[%s14104_s0 + $0x1fb] sm:$0xff] }
 0x302   :  { %2215 = vperm.xlu2 %8120, %v1933_v21   ;;  %v1934_v21 = vld [vmem:[%s14104_s0 + $0x1c3] sm:$0xff] }
 0x303   :  { %2210 = vperm.xlu1 %8119, %v1932_v38   ;;  %2205 = vperm.xlu0 %8118, %v1931_v48  }
 0x304   :  { %v9911_v0 = vpop.permute.xlu2 %2050 }
 0x305   :  { %14335 = vst [vmem:[#allocation211_spill] sm:$0xff] %v9911_v0  ;;  %v9913_v58 = vpop.permute.xlu1 %2000  ;;  %v9915_v13 = vpop.permute.xlu0 %1995 }
 0x306   :  { %14336 = vst [vmem:[#allocation212_spill] sm:$0xff] %v9913_v58  ;;  %v1939_v58 = vld [vmem:[%s14104_s0 + $0x1eb] sm:$0xff] }
 0x30a   :  { %2230 = vperm.xlu2 %8120, %v1936_v18   ;;  %v1937_v18 = vld [vmem:[%s14104_s0 + $0x1db] sm:$0xff] }
 0x30b   :  { %2225 = vperm.xlu1 %8119, %v1935_v53   ;;  %2220 = vperm.xlu0 %8118, %v1934_v21  }
 0x30c   :  { %v9926_v38 = vpop.permute.xlu2 %2065 }
 0x30d   :  { %14337 = vst [vmem:[#allocation213_spill] sm:$0xff] %v9926_v38  ;;  %v9928_v48 = vpop.permute.xlu1 %2015  ;;  %v9930_v0 = vpop.permute.xlu0 %2010 }
 0x30e   :  { %14338 = vst [vmem:[#allocation214_spill] sm:$0xff] %v9928_v48  ;;  %v1942_v48 = vld [vmem:[%s14104_s0 + $0x203] sm:$0xff] }
 0x312   :  { %2245 = vperm.xlu2 %8120, %v1939_v58   ;;  %v1940_v58 = vld [vmem:[%s14104_s0 + $0x1f3] sm:$0xff] }
 0x313   :  { %2240 = vperm.xlu1 %8119, %v1938_v46   ;;  %2235 = vperm.xlu0 %8118, %v1937_v18  }
 0x314   :  { %v9941_v53 = vpop.permute.xlu2 %2080 }
 0x315   :  { %14339 = vst [vmem:[#allocation215_spill] sm:$0xff] %v9941_v53  ;;  %v9943_v21 = vpop.permute.xlu1 %2030  ;;  %v9945_v38 = vpop.permute.xlu0 %2025 }
 0x316   :  { %14340 = vst [vmem:[#allocation216_spill] sm:$0xff] %v9943_v21  ;;  %v1945_v21 = vld [vmem:[%s14104_s0 + $0x223] sm:$0xff] }
 0x31a   :  { %2260 = vperm.xlu2 %8120, %v1942_v48   ;;  %v1943_v48 = vld [vmem:[%s14104_s0 + $0x213] sm:$0xff] }
 0x31b   :  { %2255 = vperm.xlu1 %8119, %v1941_v30   ;;  %2250 = vperm.xlu0 %8118, %v1940_v58  }
 0x31c   :  { %v9956_v46 = vpop.permute.xlu2 %2095 }
 0x31d   :  { %14341 = vst [vmem:[#allocation217_spill] sm:$0xff] %v9956_v46  ;;  %v9958_v18 = vpop.permute.xlu1 %2045  ;;  %v9960_v53 = vpop.permute.xlu0 %2040 }
 0x31e   :  { %14342 = vst [vmem:[#allocation218_spill] sm:$0xff] %v9958_v18  ;;  %v1948_v18 = vld [vmem:[%s14104_s0 + $0x23b] sm:$0xff] }
 0x31f   :  { %14343 = vst [vmem:[#allocation219_spill] sm:$0xff] %v9960_v53  ;;  %v1947_v53 = vld [vmem:[%s14104_s0 + $0x233] sm:$0xff] }
 0x322   :  { %2275 = vperm.xlu2 %8120, %v1945_v21   ;;  %v1946_v21 = vld [vmem:[%s14104_s0 + $0x22b] sm:$0xff] }
 0x323   :  { %2270 = vperm.xlu1 %8119, %v1944_v32   ;;  %2265 = vperm.xlu0 %8118, %v1943_v48  }
 0x324   :  { %v9971_v30 = vpop.permute.xlu2 %2110 }
 0x325   :  { %14344 = vst [vmem:[#allocation220_spill] sm:$0xff] %v9971_v30  ;;  %v9973_v58 = vpop.permute.xlu1 %2060  ;;  %v9975_v46 = vpop.permute.xlu0 %2055 }
 0x326   :  { %14345 = vst [vmem:[#allocation221_spill] sm:$0xff] %v9973_v58  ;;  %v1951_v58 = vld [vmem:[%s14104_s0 + $0x253] sm:$0xff] }
 0x327   :  { %14346 = vst [vmem:[#allocation222_spill] sm:$0xff] %v9975_v46  ;;  %v1950_v46 = vld [vmem:[%s14104_s0 + $0x24b] sm:$0xff] }
 0x32a   :  { %2290 = vperm.xlu2 %8120, %v1948_v18   ;;  %v1949_v18 = vld [vmem:[%s14104_s0 + $0x243] sm:$0xff] }
 0x32b   :  { %2285 = vperm.xlu1 %8119, %v1947_v53   ;;  %2280 = vperm.xlu0 %8118, %v1946_v21  }
 0x32c   :  { %v9986_v32 = vpop.permute.xlu2 %2125 }
 0x32d   :  { %14347 = vst [vmem:[#allocation223_spill] sm:$0xff] %v9986_v32  ;;  %v9988_v48 = vpop.permute.xlu1 %2075  ;;  %v9990_v30 = vpop.permute.xlu0 %2070 }
 0x32e   :  { %14348 = vst [vmem:[#allocation224_spill] sm:$0xff] %v9988_v48  ;;  %v1954_v48 = vld [vmem:[%s14104_s0 + $0x273] sm:$0xff] }
 0x32f   :  { %14349 = vst [vmem:[#allocation225_spill] sm:$0xff] %v9990_v30  ;;  %v1953_v30 = vld [vmem:[%s14104_s0 + $0x26b] sm:$0xff] }
 0x332   :  { %2305 = vperm.xlu2 %8120, %v1951_v58   ;;  %v1952_v58 = vld [vmem:[%s14104_s0 + $0x25b] sm:$0xff] }
 0x333   :  { %2300 = vperm.xlu1 %8119, %v1950_v46   ;;  %2295 = vperm.xlu0 %8118, %v1949_v18  }
 0x334   :  { %v10001_v53 = vpop.permute.xlu2 %2140 }
 0x335   :  { %14350 = vst [vmem:[#allocation226_spill] sm:$0xff] %v10001_v53  ;;  %v10003_v21 = vpop.permute.xlu1 %2090  ;;  %v10005_v32 = vpop.permute.xlu0 %2085 }
 0x336   :  { %14351 = vst [vmem:[#allocation227_spill] sm:$0xff] %v10003_v21  ;;  %v1957_v21 = vld [vmem:[%s14104_s0 + $0x28b] sm:$0xff] }
 0x337   :  { %14352 = vst [vmem:[#allocation228_spill] sm:$0xff] %v10005_v32  ;;  %v1956_v32 = vld [vmem:[%s14104_s0 + $0x283] sm:$0xff] }
 0x33a   :  { %2320 = vperm.xlu2 %8120, %v1954_v48   ;;  %v1955_v48 = vld [vmem:[%s14104_s0 + $0x27b] sm:$0xff] }
 0x33b   :  { %2315 = vperm.xlu1 %8119, %v1953_v30   ;;  %2310 = vperm.xlu0 %8118, %v1952_v58  }
 0x33c   :  { %v10016_v46 = vpop.permute.xlu2 %2155 }
 0x33d   :  { %14353 = vst [vmem:[#allocation229_spill] sm:$0xff] %v10016_v46  ;;  %v10018_v18 = vpop.permute.xlu1 %2105  ;;  %v10020_v53 = vpop.permute.xlu0 %2100 }
 0x33e   :  { %14354 = vst [vmem:[#allocation230_spill] sm:$0xff] %v10018_v18  ;;  %v1960_v18 = vld [vmem:[%s14104_s0 + $0x2a3] sm:$0xff] }
 0x33f   :  { %14355 = vst [vmem:[#allocation231_spill] sm:$0xff] %v10020_v53  ;;  %v1959_v53 = vld [vmem:[%s14104_s0 + $0x29b] sm:$0xff] }
 0x342   :  { %2335 = vperm.xlu2 %8120, %v1957_v21   ;;  %v1958_v21 = vld [vmem:[%s14104_s0 + $0x293] sm:$0xff] }
 0x343   :  { %2330 = vperm.xlu1 %8119, %v1956_v32   ;;  %2325 = vperm.xlu0 %8118, %v1955_v48  }
 0x344   :  { %v10031_v30 = vpop.permute.xlu2 %2170 }
 0x345   :  { %14356 = vst [vmem:[#allocation232_spill] sm:$0xff] %v10031_v30  ;;  %v10033_v58 = vpop.permute.xlu1 %2120  ;;  %v10035_v46 = vpop.permute.xlu0 %2115 }
 0x346   :  { %14357 = vst [vmem:[#allocation233_spill] sm:$0xff] %v10033_v58  ;;  %v2524_v58 = vld [vmem:[%s14104_s0 + $0x4] sm:$0xff] }
 0x347   :  { %14358 = vst [vmem:[#allocation234_spill] sm:$0xff] %v10035_v46  ;;  %v1962_v46 = vld [vmem:[%s14104_s0 + $0x2b3] sm:$0xff] }
 0x34a   :  { %2350 = vperm.xlu2 %8120, %v1960_v18   ;;  %v1961_v18 = vld [vmem:[%s14104_s0 + $0x2ab] sm:$0xff] }
 0x34b   :  { %2345 = vperm.xlu1 %8119, %v1959_v53   ;;  %2340 = vperm.xlu0 %8118, %v1958_v21  }
 0x34c   :  { %v10046_v32 = vpop.permute.xlu2 %2185 }
 0x34d   :  { %14359 = vst [vmem:[#allocation235_spill] sm:$0xff] %v10046_v32  ;;  %v10048_v48 = vpop.permute.xlu1 %2135  ;;  %v10050_v30 = vpop.permute.xlu0 %2130 }
 0x34e   :  { %14360 = vst [vmem:[#allocation236_spill] sm:$0xff] %v10048_v48  ;;  %v2527_v48 = vld [vmem:[%s14104_s0 + $0x1c] sm:$0xff] }
 0x34f   :  { %14361 = vst [vmem:[#allocation237_spill] sm:$0xff] %v10050_v30  ;;  %v2526_v30 = vld [vmem:[%s14104_s0 + $0x14] sm:$0xff] }
 0x352   :  { %2606 = vperm.xlu2 %8120, %v2524_v58   ;;  %v2525_v58 = vld [vmem:[%s14104_s0 + $0xc] sm:$0xff] }
 0x353   :  { %2360 = vperm.xlu1 %8119, %v1962_v46   ;;  %2355 = vperm.xlu0 %8118, %v1961_v18  }
 0x354   :  { %v10061_v53 = vpop.permute.xlu2 %2200 }
 0x355   :  { %14362 = vst [vmem:[#allocation238_spill] sm:$0xff] %v10061_v53  ;;  %v10063_v21 = vpop.permute.xlu1 %2150  ;;  %v10065_v32 = vpop.permute.xlu0 %2145 }
 0x356   :  { %14363 = vst [vmem:[#allocation239_spill] sm:$0xff] %v10063_v21  ;;  %v2530_v21 = vld [vmem:[%s14104_s0 + $0x34] sm:$0xff] }
 0x357   :  { %14364 = vst [vmem:[#allocation240_spill] sm:$0xff] %v10065_v32  ;;  %v2529_v32 = vld [vmem:[%s14104_s0 + $0x2c] sm:$0xff] }
 0x35a   :  { %2621 = vperm.xlu2 %8120, %v2527_v48   ;;  %v2528_v48 = vld [vmem:[%s14104_s0 + $0x24] sm:$0xff] }
 0x35b   :  { %2616 = vperm.xlu1 %8119, %v2526_v30   ;;  %2611 = vperm.xlu0 %8118, %v2525_v58  }
 0x35c   :  { %v10076_v46 = vpop.permute.xlu2 %2215 }
 0x35d   :  { %14365 = vst [vmem:[#allocation241_spill] sm:$0xff] %v10076_v46  ;;  %v10078_v18 = vpop.permute.xlu1 %2165  ;;  %v10080_v53 = vpop.permute.xlu0 %2160 }
 0x35e   :  { %14366 = vst [vmem:[#allocation242_spill] sm:$0xff] %v10078_v18  ;;  %v2533_v18 = vld [vmem:[%s14104_s0 + $0x4c] sm:$0xff] }
 0x35f   :  { %14367 = vst [vmem:[#allocation243_spill] sm:$0xff] %v10080_v53  ;;  %v2532_v53 = vld [vmem:[%s14104_s0 + $0x44] sm:$0xff] }
 0x362   :  { %2636 = vperm.xlu2 %8120, %v2530_v21   ;;  %v2531_v21 = vld [vmem:[%s14104_s0 + $0x3c] sm:$0xff] }
 0x363   :  { %2631 = vperm.xlu1 %8119, %v2529_v32   ;;  %2626 = vperm.xlu0 %8118, %v2528_v48  }
 0x364   :  { %v10091_v30 = vpop.permute.xlu2 %2230 }
 0x365   :  { %14368 = vst [vmem:[#allocation244_spill] sm:$0xff] %v10091_v30  ;;  %v10093_v58 = vpop.permute.xlu1 %2180  ;;  %v10095_v46 = vpop.permute.xlu0 %2175 }
 0x366   :  { %14369 = vst [vmem:[#allocation245_spill] sm:$0xff] %v10093_v58  ;;  %v2536_v58 = vld [vmem:[%s14104_s0 + $0x6c] sm:$0xff] }
 0x367   :  { %14370 = vst [vmem:[#allocation246_spill] sm:$0xff] %v10095_v46  ;;  %v2535_v46 = vld [vmem:[%s14104_s0 + $0x64] sm:$0xff] }
 0x36a   :  { %2651 = vperm.xlu2 %8120, %v2533_v18   ;;  %v2534_v18 = vld [vmem:[%s14104_s0 + $0x5c] sm:$0xff] }
 0x36b   :  { %2646 = vperm.xlu1 %8119, %v2532_v53   ;;  %2641 = vperm.xlu0 %8118, %v2531_v21  }
 0x36c   :  { %v10106_v32 = vpop.permute.xlu2 %2245 }
 0x36d   :  { %14371 = vst [vmem:[#allocation247_spill] sm:$0xff] %v10106_v32  ;;  %v10108_v48 = vpop.permute.xlu1 %2195  ;;  %v10110_v30 = vpop.permute.xlu0 %2190 }
 0x36e   :  { %14372 = vst [vmem:[#allocation248_spill] sm:$0xff] %v10108_v48  ;;  %v2539_v48 = vld [vmem:[%s14104_s0 + $0x84] sm:$0xff] }
 0x36f   :  { %14373 = vst [vmem:[#allocation249_spill] sm:$0xff] %v10110_v30  ;;  %v2538_v30 = vld [vmem:[%s14104_s0 + $0x7c] sm:$0xff] }
 0x372   :  { %2666 = vperm.xlu2 %8120, %v2536_v58   ;;  %v2537_v58 = vld [vmem:[%s14104_s0 + $0x74] sm:$0xff] }
 0x373   :  { %2661 = vperm.xlu1 %8119, %v2535_v46   ;;  %2656 = vperm.xlu0 %8118, %v2534_v18  }
 0x374   :  { %v10121_v53 = vpop.permute.xlu2 %2260 }
 0x375   :  { %14374 = vst [vmem:[#allocation250_spill] sm:$0xff] %v10121_v53  ;;  %v10123_v21 = vpop.permute.xlu1 %2210  ;;  %v10125_v32 = vpop.permute.xlu0 %2205 }
 0x376   :  { %14375 = vst [vmem:[#allocation251_spill] sm:$0xff] %v10123_v21  ;;  %v2542_v21 = vld [vmem:[%s14104_s0 + $0x9c] sm:$0xff] }
 0x377   :  { %14376 = vst [vmem:[#allocation252_spill] sm:$0xff] %v10125_v32  ;;  %v2541_v32 = vld [vmem:[%s14104_s0 + $0x94] sm:$0xff] }
 0x37a   :  { %2681 = vperm.xlu2 %8120, %v2539_v48   ;;  %v2540_v48 = vld [vmem:[%s14104_s0 + $0x8c] sm:$0xff] }
 0x37b   :  { %2676 = vperm.xlu1 %8119, %v2538_v30   ;;  %2671 = vperm.xlu0 %8118, %v2537_v58  }
 0x37c   :  { %v10136_v46 = vpop.permute.xlu2 %2275 }
 0x37d   :  { %14377 = vst [vmem:[#allocation253_spill] sm:$0xff] %v10136_v46  ;;  %v10138_v18 = vpop.permute.xlu1 %2225  ;;  %v10140_v53 = vpop.permute.xlu0 %2220 }
 0x37e   :  { %14378 = vst [vmem:[#allocation254_spill] sm:$0xff] %v10138_v18  ;;  %v2545_v18 = vld [vmem:[%s14104_s0 + $0xbc] sm:$0xff] }
 0x37f   :  { %14379 = vst [vmem:[#allocation255_spill] sm:$0xff] %v10140_v53  ;;  %v2544_v53 = vld [vmem:[%s14104_s0 + $0xb4] sm:$0xff] }
 0x382   :  { %2696 = vperm.xlu2 %8120, %v2542_v21   ;;  %v2543_v21 = vld [vmem:[%s14104_s0 + $0xa4] sm:$0xff] }
 0x383   :  { %2691 = vperm.xlu1 %8119, %v2541_v32   ;;  %2686 = vperm.xlu0 %8118, %v2540_v48  }
 0x384   :  { %v10151_v30 = vpop.permute.xlu2 %2290 }
 0x385   :  { %14380 = vst [vmem:[#allocation256_spill] sm:$0xff] %v10151_v30  ;;  %v10153_v58 = vpop.permute.xlu1 %2240  ;;  %v10155_v46 = vpop.permute.xlu0 %2235 }
 0x386   :  { %14381 = vst [vmem:[#allocation257_spill] sm:$0xff] %v10153_v58  ;;  %v2548_v58 = vld [vmem:[%s14104_s0 + $0xd4] sm:$0xff] }
 0x387   :  { %14382 = vst [vmem:[#allocation258_spill] sm:$0xff] %v10155_v46  ;;  %v2547_v46 = vld [vmem:[%s14104_s0 + $0xcc] sm:$0xff] }
 0x38a   :  { %2711 = vperm.xlu2 %8120, %v2545_v18   ;;  %v2546_v18 = vld [vmem:[%s14104_s0 + $0xc4] sm:$0xff] }
 0x38b   :  { %2706 = vperm.xlu1 %8119, %v2544_v53   ;;  %2701 = vperm.xlu0 %8118, %v2543_v21  }
 0x38c   :  { %v10166_v32 = vpop.permute.xlu2 %2305 }
 0x38d   :  { %14383 = vst [vmem:[#allocation259_spill] sm:$0xff] %v10166_v32  ;;  %v10168_v48 = vpop.permute.xlu1 %2255  ;;  %v10170_v30 = vpop.permute.xlu0 %2250  ;;  %v8461_v32 = vmov 0.0  }
 0x38e   :  { %14384 = vst [vmem:[#allocation260_spill] sm:$0xff] %v10168_v48 }
 0x38f   :  { %14385 = vst [vmem:[#allocation261_spill] sm:$0xff] %v10170_v30  ;;  %v2551_v30 = vld [vmem:[%s14104_s0 + $0xec] sm:$0xff] }
 0x390   :  { %3338 = vst.msk [vmem:[#allocation2 + $0x51] sm:$0x1] %vm3329_vm0, %v8461_v32 }
 0x391   :  { %3330 = vst.msk [vmem:[#allocation2] sm:$0x1] %vm3329_vm0, %v8461_v32 }
 0x392   :  { %2726 = vperm.xlu2 %8120, %v2548_v58   ;;  %v2549_v58 = vld [vmem:[%s14104_s0 + $0xdc] sm:$0xff]  ;;  %3331 = vst.msk [vmem:[#allocation2 + $0x58] sm:$0x1] %vm3329_vm0, %v8461_v32 }
 0x393   :  { %2721 = vperm.xlu1 %8119, %v2547_v46   ;;  %2716 = vperm.xlu0 %8118, %v2546_v18   ;;  %v2550_v46 = vld [vmem:[%s14104_s0 + $0xe4] sm:$0xff]  ;;  %3332 = vst.msk [vmem:[#allocation2 + $0xb0] sm:$0x1] %vm3329_vm0, %v8461_v32 }
 0x394   :  { %v10181_v53 = vpop.permute.xlu2 %2320  ;;  %3333 = vst.msk [vmem:[#allocation2 + $0x108] sm:$0x1] %vm3329_vm0, %v8461_v32 }
 0x395   :  { %14386 = vst [vmem:[#allocation262_spill] sm:$0xff] %v10181_v53  ;;  %v10183_v21 = vpop.permute.xlu1 %2270  ;;  %v10185_v48 = vpop.permute.xlu0 %2265 }
 0x396   :  { %14387 = vst [vmem:[#allocation263_spill] sm:$0xff] %v10183_v21 }
 0x397   :  { %14388 = vst [vmem:[#allocation264_spill] sm:$0xff] %v10185_v48 }
 0x398   :  { %3334 = vst.msk [vmem:[#allocation2 + $0x160] sm:$0x1] %vm3329_vm0, %v8461_v32 }
 0x399   :  { %3335 = vst.msk [vmem:[#allocation2 + $0x1b8] sm:$0x1] %vm3329_vm0, %v8461_v32 }
 0x39a   :  { %2741 = vperm.xlu2 %8120, %v2551_v30   ;;  %3336 = vst.msk [vmem:[#allocation2 + $0x210] sm:$0x1] %vm3329_vm0, %v8461_v32  ;;  %v2554_v30 = vld [vmem:[%s14104_s0 + $0x10c] sm:$0xff] }
 0x39b   :  { %2736 = vperm.xlu1 %8119, %v2550_v46   ;;  %2731 = vperm.xlu0 %8118, %v2549_v58   ;;  %3337 = vst.msk [vmem:[#allocation2 + $0x268] sm:$0x1] %vm3329_vm0, %v8461_v32  ;;  %v39_v46 = vld [vmem:[%s14105_s1] sm:$0x1f] }
 0x39c   :  { %v10206_v18 = vpop.permute.xlu2 %2335  ;;  %v2553_v58 = vld [vmem:[%s14104_s0 + $0xfc] sm:$0xff]  ;;  %3339 = vst.msk [vmem:[#allocation2 + $0xa9] sm:$0x1] %vm3329_vm0, %v8461_v32  ;;  %v10250_v42 = vperm.slane %v39_v46, 2  ;;  %v10281_v54 = vperm.slane %v39_v46, 4 }
 0x39d   :  { %14389 = vst [vmem:[#allocation265_spill] sm:$0xff] %v10206_v18  ;;  %v10210_v48 = vpop.permute.xlu1 %2285  ;;  %v10212_v21 = vpop.permute.xlu0 %2280  ;;  %v10240_v18 = vperm.slane %v39_v46, 0 }
 0x39e   :  { %14390 = vst [vmem:[#allocation266_spill] sm:$0xff] %v10210_v48  ;;  %v2552_v48 = vld [vmem:[%s14104_s0 + $0xf4] sm:$0xff] }
 0x39f   :  { %14391 = vst [vmem:[#allocation267_spill] sm:$0xff] %v10212_v21  ;;  %v10234_v21 = vperm.slane %v39_v46, 1 }
 0x3a0   :  { %3340 = vst.msk [vmem:[#allocation2 + $0x101] sm:$0x1] %vm3329_vm0, %v8461_v32 }
 0x3a1   :  { %3341 = vst.msk [vmem:[#allocation2 + $0x159] sm:$0x1] %vm3329_vm0, %v8461_v32  ;;  %v1082_v8 = vmul.f32 %v10234_v21, %v9026_v26  ;;  %v10264_v26 = vperm.slane %v39_v46, 3 }
 0x3a2   :  { %2756 = vperm.xlu2 %8120, %v2554_v30   ;;  %3342 = vst.msk [vmem:[#allocation2 + $0x1b1] sm:$0x1] %vm3329_vm0, %v8461_v32 }
 0x3a3   :  { %2751 = vperm.xlu1 %8119, %v2553_v58   ;;  %2746 = vperm.xlu0 %8118, %v2552_v48   ;;  %3343 = vst.msk [vmem:[#allocation2 + $0x209] sm:$0x1] %vm3329_vm0, %v8461_v32  ;;  %v521_v48 = vmul.f32 %v10240_v18, %v8685_v51  ;;  %v1723_v58 = vmul.f32 %v10250_v42, %v9478_v40  ;;  %v2555_v51 = vld [vmem:[%s14104_s0 + $0x114] sm:$0xff] }
 0x3a4   :  { %v10244_v53 = vpop.permute.xlu2 %2350  ;;  %3344 = vst.msk [vmem:[#allocation2 + $0x261] sm:$0x1] %vm3329_vm0, %v8461_v32 }
 0x3a5   :  { %14392 = vst [vmem:[#allocation268_spill] sm:$0xff] %v10244_v53  ;;  %v10252_v30 = vpop.permute.xlu1 %2300  ;;  %v10254_v36 = vpop.permute.xlu0 %2295  ;;  %v2557_v53 = vld [vmem:[%s14104_s0 + $0x124] sm:$0xff]  ;;  %v1162_v40 = vadd.f32 %v1082_v8, %v521_v48  ;;  %v1085_v8 = vmul.f32 %v10234_v21, %v9041_v39  ;;  %v1726_v39 = vmul.f32 %v10250_v42, %v9493_v24 }
 0x3a6   :  { %14393 = vst [vmem:[#allocation269_spill] sm:$0xff] %v10252_v30  ;;  %v2364_v30 = vmul.f32 %v10264_v26, %v9885_v60 }
 0x3a7   :  { %14394 = vst [vmem:[#allocation270_spill] sm:$0xff] %v10254_v36  ;;  %v2556_v36 = vld [vmem:[%s14104_s0 + $0x11c] sm:$0xff]  ;;  %v1803_v2 = vadd.f32 %v1723_v58, %v1162_v40  ;;  %v2559_v58 = vld [vmem:[%s14104_s0 + $0x134] sm:$0xff] }
 0x3a8   :  { %3345 = vst.msk [vmem:[#allocation2 + $0x2b9] sm:$0x1] %vm3329_vm0, %v8461_v32  ;;  %vm7403_vm0 = vcmask 1046534  }
 0x3a9   :  { %5250 = vst.msk [vmem:[#allocation3 + $0x50] sm:$0xff] %vm3346_vm1, %v8461_v32  ;;  %v2444_v60 = vadd.f32 %v2364_v30, %v1803_v2  ;;  %v524_v2 = vmul.f32 %v10240_v18, %v8698_v56  ;;  %v2367_v56 = vmul.f32 %v10264_v26, %v9900_v31 }
 0x3aa   :  { %5251 = vst.msk [vmem:[#allocation3 + $0xa8] sm:$0xff] %vm3346_vm1, %v8461_v32  ;;  %2771 = vperm.xlu2 %8120, %v2557_v53   ;;  %v10296_v53 = vld [vmem:[%s14106_s2] ss:$0 sm:$0xff] }
 0x3ab   :  { %5252 = vst.msk [vmem:[#allocation3 + $0x100] sm:$0xff] %vm3346_vm1, %v8461_v32  ;;  %2766 = vperm.xlu1 %8119, %v2556_v36   ;;  %2761 = vperm.xlu0 %8118, %v2555_v51   ;;  %v2558_v51 = vld [vmem:[%s14104_s0 + $0x12c] sm:$0xff] }
 0x3ac   :  { %5253 = vst.msk [vmem:[#allocation3 + $0x158] sm:$0xff] %vm3346_vm1, %v8461_v32  ;;  %v2607_v43 = vpop.permute.xlu2 %2606 }
 0x3ad   :  { %5254 = vst.msk [vmem:[#allocation3 + $0x1b0] sm:$0xff] %vm3346_vm1, %v8461_v32  ;;  %v3005_v46 = vmul.f32 %v10281_v54, %v2607_v43  ;;  %v10299_v36 = vpop.permute.xlu1 %2315  ;;  %v10301_v48 = vpop.permute.xlu0 %2310  ;;  %v2560_v43 = vld [vmem:[%s14104_s0 + $0x13c] sm:$0xff] }
 0x3ae   :  { %5255 = vst.msk [vmem:[#allocation3 + $0x208] sm:$0xff] %vm3346_vm1, %v8461_v32 }
 0x3af   :  { %14395 = vst [vmem:[#allocation271_spill] sm:$0xff] %v10299_v36  ;;  %v3085_v30 = vadd.f32 %v3005_v46, %v2444_v60  ;;  %v1088_v36 = vmul.f32 %v10234_v21, %v9056_v7  ;;  %v2370_v7 = vmul.f32 %v10264_v26, %v9915_v13 }
 0x3b0   :  { %14396 = vst [vmem:[#allocation272_spill] sm:$0xff] %v10301_v48 }
 0x3b1   :  { %5256 = vst.msk [vmem:[#allocation3 + $0x260] sm:$0xff] %vm3346_vm1, %v8461_v32  ;;  %v10323_v40 = vadd.f32 %v10296_v53, %v3085_v30  ;;  %v1729_v30 = vmul.f32 %v10250_v42, %v9508_v52 }
 0x3b2   :  { %5257 = vst.msk [vmem:[#allocation3 + $0x2b8] sm:$0xff] %vm3346_vm1, %v8461_v32  ;;  %v1165_v32 = vadd.f32 %v1085_v8, %v524_v2  ;;  %2786 = vperm.xlu2 %8120, %v2560_v43  }
 0x3b3   :  { %v14116_v60 = vmax.f32 %v10323_v40, 0.0  ;;  %2781 = vperm.xlu1 %8119, %v2559_v58   ;;  %2776 = vperm.xlu0 %8118, %v2558_v51  }
 0x3b4   :  { %v1806_v24 = vadd.f32 %v1726_v39, %v1165_v32  ;;  %v2622_v46 = vpop.permute.xlu2 %2621  ;;  %v527_v39 = vmul.f32 %v10240_v18, %v8715_v63 }
 0x3b5   :  { %3347 = vst.msk [vmem:[#allocation2 + $0x1] sm:$0xff] %vm3346_vm1, %v14116_v60  ;;  %v3008_v31 = vmul.f32 %v10281_v54, %v2622_v46  ;;  %v10332_v8 = vpop.permute.xlu1 %2330  ;;  %v10334_v2 = vpop.permute.xlu0 %2325  ;;  %v1091_v46 = vmul.f32 %v10234_v21, %v9071_v20  ;;  %v10362_v20 = vmul.f32 %v10240_v18, %v8648_v37  ;;  %v523_v37 = vmul.f32 %v10240_v18, %v8683_v50 }
 0x3b6   :  { %v2447_v48 = vadd.f32 %v2367_v56, %v1806_v24  ;;  %v1168_v58 = vadd.f32 %v1088_v36, %v527_v39  ;;  %v530_v36 = vmul.f32 %v10240_v18, %v8730_v5  ;;  %v10366_v39 = vmul.f32 %v10240_v18, %v8659_v41 }
 0x3b7   :  { %v2373_v5 = vmul.f32 %v10264_v26, %v9930_v0  ;;  %v10385_v41 = vmul.f32 %v10240_v18, %v8696_v55  ;;  %v10391_v0 = vmul.f32 %v10240_v18, %v8711_v61  ;;  %v10400_v50 = vmul.f32 %v10240_v18, %v8726_v3 }
 0x3b8   :  { %v3088_v43 = vadd.f32 %v3008_v31, %v2447_v48  ;;  %v1809_v32 = vadd.f32 %v1729_v30, %v1168_v58  ;;  %v1732_v48 = vmul.f32 %v10250_v42, %v9523_v12  ;;  %v10370_v30 = vmul.f32 %v10240_v18, %v8670_v45 }
 0x3b9   :  { %v10379_v12 = vmul.f32 %v10240_v18, %v8681_v49  ;;  %v522_v45 = vmul.f32 %v10240_v18, %v8700_v57  ;;  %v10404_v55 = vmul.f32 %v10240_v18, %v8728_v4  ;;  %v10408_v57 = vmul.f32 %v10240_v18, %v8741_v9 }
 0x3ba   :  { %v10343_v51 = vadd.f32 %v10296_v53, %v3088_v43  ;;  %v2450_v60 = vadd.f32 %v2370_v7, %v1809_v32  ;;  %v1171_v43 = vadd.f32 %v1091_v46, %v530_v36  ;;  %v10412_v61 = vmul.f32 %v10240_v18, %v8743_v10 }
 0x3bb   :  { %v533_v32 = vmul.f32 %v10240_v18, %v8745_v11  ;;  %v1094_v3 = vmul.f32 %v10234_v21, %v9086_v6  ;;  %v10428_v10 = vmul.f32 %v10240_v18, %v8756_v15  ;;  %v10432_v11 = vmul.f32 %v10240_v18, %v8758_v16 }
 0x3bc   :  { %v3252_v56 = vmax.f32 %v10343_v51, 0.0  ;;  %v2637_v24 = vpop.permute.xlu2 %2636  ;;  %v1812_v49 = vadd.f32 %v1732_v48, %v1171_v43  ;;  %v1084_v6 = vmul.f32 %v10234_v21, %v9088_v47  ;;  %v536_v36 = vmul.f32 %v10240_v18, %v8760_v17 }
 0x3bd   :  { %v3011_v63 = vmul.f32 %v10281_v54, %v2637_v24  ;;  %v10352_v52 = vpop.permute.xlu1 %2345  ;;  %v10354_v13 = vpop.permute.xlu0 %2340  ;;  %v10442_v48 = vmul.f32 %v10240_v18, %v8773_v22  ;;  %v1735_v15 = vmul.f32 %v10250_v42, %v9538_v25  ;;  %v10448_v16 = vmul.f32 %v10240_v18, %v8775_v23 }
 0x3be   :  { %3350 = vst.msk [vmem:[#allocation2 + $0x19] sm:$0xff] %vm3346_vm1, %v3252_v56  ;;  %v2453_v24 = vadd.f32 %v2373_v5, %v1812_v49  ;;  %v10452_v47 = vmul.f32 %v10240_v18, %v8788_v28  ;;  %v1725_v17 = vmul.f32 %v10250_v42, %v9495_v27  ;;  %v10460_v22 = vmul.f32 %v10240_v18, %v8790_v29 }
 0x3bf   :  { %14397 = vst [vmem:[#allocation273_spill] sm:$0xff] %v10352_v52  ;;  %v3091_v31 = vadd.f32 %v3011_v63, %v2450_v60  ;;  %v10395_v60 = vmul.f32 %v10240_v18, %v8713_v62  ;;  %v1083_v63 = vmul.f32 %v10234_v21, %v9090_v19  ;;  %v1724_v19 = vmul.f32 %v10250_v42, %v9431_v33  ;;  %v14579_v52 = vld [vmem:[#allocation271_spill] sm:$0xff] }
 0x3c0   :  { %v1174_v25 = vadd.f32 %v1094_v3, %v533_v32  ;;  %v2376_v43 = vmul.f32 %v10264_v26, %v9945_v38  ;;  %v1164_v5 = vadd.f32 %v1084_v6, %v523_v37  ;;  %v2366_v49 = vmul.f32 %v10264_v26, %v9836_v14  ;;  %v14400_v3 = vld [vmem:[#allocation14_spill] sm:$0xff] }
 0x3c1   :  { %v10375_v58 = vadd.f32 %v10296_v53, %v3091_v31  ;;  %v1163_v28 = vadd.f32 %v1083_v63, %v522_v45  ;;  %v2365_v33 = vmul.f32 %v10264_v26, %v9883_v1  ;;  %v10473_v27 = vmul.f32 %v10240_v18, %v8803_v34 }
 0x3c2   :  { %v1097_v29 = vmul.f32 %v10234_v21, %v9101_v59  ;;  %v10480_v37 = vmul.f32 %v10240_v18, %v8805_v35  ;;  %v1087_v14 = vmul.f32 %v10234_v21, %v9103_v44  ;;  %v1805_v32 = vadd.f32 %v1725_v17, %v1164_v5 }
 0x3c3   :  { %v14120_v7 = vmax.f32 %v10375_v58, 0.0  ;;  %v1804_v45 = vadd.f32 %v1724_v19, %v1163_v28  ;;  %v10486_v34 = vmul.f32 %v10240_v18, %v14400_v3  ;;  %v14403_v28 = vld [vmem:[#allocation144_spill] sm:$0xff] }
 0x3c4   :  { %v2652_v62 = vpop.permute.xlu2 %2651  ;;  %v2446_v44 = vadd.f32 %v2366_v49, %v1805_v32  ;;  %v1177_v17 = vadd.f32 %v1097_v29, %v536_v36  ;;  %v1167_v3 = vadd.f32 %v1087_v14, %v10366_v39  ;;  %v14406_v36 = vld [vmem:[#allocation219_spill] sm:$0xff]  ;;  %v14408_v39 = vld [vmem:[#allocation210_spill] sm:$0xff] }
 0x3c5   :  { %3353 = vst.msk [vmem:[#allocation2 + $0x31] sm:$0xff] %vm3346_vm1, %v14120_v7  ;;  %v3014_v4 = vmul.f32 %v10281_v54, %v2652_v62  ;;  %v10422_v9 = vpop.permute.xlu1 %2360  ;;  %v10424_v46 = vpop.permute.xlu0 %2355  ;;  %v1815_v62 = vadd.f32 %v1735_v15, %v1174_v25  ;;  %v2445_v15 = vadd.f32 %v2365_v33, %v1804_v45  ;;  %v14402_v25 = vld [vmem:[#allocation138_spill] sm:$0xff]  ;;  %v2379_v29 = vmul.f32 %v10264_v26, %v14406_v36 }
 0x3c6   :  { %14398 = vst [vmem:[#allocation274_spill] sm:$0xff] %v10422_v9  ;;  %v1728_v5 = vmul.f32 %v10250_v42, %v14402_v25  ;;  %v14405_v45 = vld [vmem:[#allocation202_spill] sm:$0xff]  ;;  %v2368_v14 = vmul.f32 %v10264_v26, %v14408_v39  ;;  %v14410_v25 = vld [vmem:[#allocation17_spill] sm:$0xff] }
 0x3c7   :  { %14399 = vst [vmem:[#allocation275_spill] sm:$0xff] %v10424_v46  ;;  %v3094_v31 = vadd.f32 %v3014_v4, %v2453_v24  ;;  %v14401_v24 = vld [vmem:[#allocation62_spill] sm:$0xff]  ;;  %v2456_v4 = vadd.f32 %v2376_v43, %v1815_v62  ;;  %v1738_v43 = vmul.f32 %v10250_v42, %v14403_v28  ;;  %v2369_v32 = vmul.f32 %v10264_v26, %v14405_v45 }
 0x3c8   :  { %v1086_v59 = vmul.f32 %v10234_v21, %v14401_v24  ;;  %v14404_v24 = vld [vmem:[#allocation128_spill] sm:$0xff]  ;;  %v10524_v28 = vmul.f32 %v10240_v18, %v14410_v25  ;;  %v14414_v25 = vld [vmem:[#allocation131_spill] sm:$0xff] }
 0x3c9   :  { %v10465_v23 = vadd.f32 %v10296_v53, %v3094_v31 }
 0x3ca   :  { %v1166_v33 = vadd.f32 %v1086_v59, %v10362_v20  ;;  %v14409_v59 = vld [vmem:[#allocation64_spill] sm:$0xff] }
 0x3cb   :  { %v14117_v38 = vmax.f32 %v10465_v23, 0.0 }
 0x3cc   :  { %v2667_v1 = vpop.permute.xlu2 %2666 }
 0x3cd   :  { %3356 = vst.msk [vmem:[#allocation2 + $0x49] sm:$0xff] %vm3346_vm1, %v14117_v38  ;;  %v3017_v35 = vmul.f32 %v10281_v54, %v2667_v1  ;;  %v2617_v6 = vpop.permute.xlu1 %2616  ;;  %v2612_v63 = vpop.permute.xlu0 %2611  ;;  %v1727_v1 = vmul.f32 %v10250_v42, %v14404_v24 }
 0x3ce   :  { %v3007_v31 = vmul.f32 %v10281_v54, %v2617_v6  ;;  %v3006_v19 = vmul.f32 %v10281_v54, %v2612_v63  ;;  %v14407_v63 = vld [vmem:[#allocation63_spill] sm:$0xff] }
 0x3cf   :  { %v3097_v62 = vadd.f32 %v3017_v35, %v2456_v4  ;;  %v1100_v4 = vmul.f32 %v10234_v21, %v14407_v63 }
 0x3d0   :  { %v3087_v38 = vadd.f32 %v3007_v31, %v2446_v44  ;;  %v3086_v49 = vadd.f32 %v3006_v19, %v2445_v15  ;;  %v1090_v44 = vmul.f32 %v10234_v21, %v14409_v59  ;;  %v1808_v15 = vadd.f32 %v1728_v5, %v1167_v3 }
 0x3d1   :  { %v10509_v6 = vadd.f32 %v10296_v53, %v3097_v62  ;;  %v1818_v31 = vadd.f32 %v1738_v43, %v1177_v17  ;;  %v1807_v62 = vadd.f32 %v1727_v1, %v1166_v33 }
 0x3d2   :  { %v10516_v35 = vadd.f32 %v10296_v53, %v3087_v38  ;;  %v3170_v20 = vadd.f32 %v10296_v53, %v3086_v49  ;;  %v14411_v38 = vld [vmem:[#allocation65_spill] sm:$0xff]  ;;  %v2449_v49 = vadd.f32 %v2369_v32, %v1808_v15  ;;  %v14412_v32 = vmax.f32 %v10323_v40, 0.0  ;;  %v14413_v15 = vld [vmem:[#allocation147_spill] sm:$0xff] }
 0x3d3   :  { %v14119_v19 = vmax.f32 %v10509_v6, 0.0  ;;  %v1089_v63 = vmul.f32 %v10234_v21, %v14411_v38  ;;  %v2459_v39 = vadd.f32 %v2379_v29, %v1818_v31  ;;  %v2448_v3 = vadd.f32 %v2368_v14, %v1807_v62 }
 0x3d4   :  { %v3251_v24 = vmax.f32 %v10516_v35, 0.0  ;;  %v3250_v45 = vmax.f32 %v3170_v20, 0.0  ;;  %v2682_v36 = vpop.permute.xlu2 %2681  ;;  %v1180_v20 = vadd.f32 %v1100_v4, %v10448_v16  ;;  %v1170_v59 = vadd.f32 %v1090_v44, %v10370_v30  ;;  %v14416_v30 = vld [vmem:[#allocation66_spill] sm:$0xff]  ;;  %v14433_v35 = vld [vmem:[#allocation136_spill] sm:$0xff] }
 0x3d5   :  { %3359 = vst.msk [vmem:[#allocation2 + $0x69] sm:$0xff] %vm3346_vm1, %v14119_v19  ;;  %v3020_v17 = vmul.f32 %v10281_v54, %v2682_v36  ;;  %v2632_v5 = vpop.permute.xlu1 %2631  ;;  %v2627_v43 = vpop.permute.xlu0 %2626  ;;  %v1741_v31 = vmul.f32 %v10250_v42, %v14413_v15  ;;  %v1730_v62 = vmul.f32 %v10250_v42, %v14414_v25  ;;  %v14415_v36 = vld [vmem:[#allocation140_spill] sm:$0xff]  ;;  %v1169_v40 = vadd.f32 %v1089_v63, %v10395_v60  ;;  %v14417_v4 = vld [vmem:[#allocation222_spill] sm:$0xff] }
 0x3d6   :  { %3349 = vst.msk [vmem:[#allocation2 + $0x11] sm:$0xff] %vm3346_vm1, %v3251_v24  ;;  %v3010_v1 = vmul.f32 %v10281_v54, %v2632_v5  ;;  %v3009_v33 = vmul.f32 %v10281_v54, %v2627_v43  ;;  %v8121_v29 = vpack.i.bf16 %v3250_v45, %v14412_v32  ;;  %v1731_v38 = vmul.f32 %v10250_v42, %v14415_v36  ;;  %v14419_v32 = vld [vmem:[#allocation212_spill] sm:$0xff]  ;;  %v14429_v19 = vld [vmem:[#allocation214_spill] sm:$0xff] }
 0x3d7   :  { %3348 = vst.msk [vmem:[#allocation2 + $0x9] sm:$0xff] %vm3346_vm1, %v3250_v45  ;;  %v3100_v14 = vadd.f32 %v3020_v17, %v2459_v39  ;;  %v1103_v16 = vmul.f32 %v10234_v21, %v14416_v30  ;;  %v2382_v44 = vmul.f32 %v10264_v26, %v14417_v4  ;;  %v14418_v39 = vld [vmem:[#allocation205_spill] sm:$0xff]  ;;  %v14420_v63 = vld [vmem:[#allocation20_spill] sm:$0xff]  ;;  %v1821_v15 = vadd.f32 %v1741_v31, %v1180_v20 }
 0x3d8   :  { %v3090_v5 = vadd.f32 %v3010_v1, %v2449_v49  ;;  %v3089_v43 = vadd.f32 %v3009_v33, %v2448_v3  ;;  %8122 = vrot.lane.b32.xlu1 %v8121_v29, %s8462_s12  ;;  %v2372_v17 = vmul.f32 %v10264_v26, %v14418_v39  ;;  %v2371_v49 = vmul.f32 %v10264_v26, %v14419_v32  ;;  %v14421_v33 = vld [vmem:[#allocation67_spill] sm:$0xff]  ;;  %v14422_v39 = vld [vmem:[#allocation68_spill] sm:$0xff] }
 0x3d9   :  { %v10556_v45 = vadd.f32 %v10296_v53, %v3100_v14  ;;  %v10570_v1 = vmul.f32 %v10240_v18, %v14420_v63  ;;  %v1093_v29 = vmul.f32 %v10234_v21, %v14421_v33  ;;  %v1810_v25 = vadd.f32 %v1730_v62, %v1169_v40 }
 0x3da   :  { %v10563_v3 = vadd.f32 %v10296_v53, %v3090_v5  ;;  %v10566_v60 = vadd.f32 %v10296_v53, %v3089_v43  ;;  %v1811_v36 = vadd.f32 %v1731_v38, %v1170_v59  ;;  %v1183_v43 = vadd.f32 %v1103_v16, %v10460_v22  ;;  %v2561_v59 = vld [vmem:[%s14104_s0 + $0x144] sm:$0xff] }
 0x3db   :  { %v14118_v14 = vmax.f32 %v10556_v45, 0.0  ;;  %v1092_v32 = vmul.f32 %v10234_v21, %v14422_v39  ;;  %v2462_v63 = vadd.f32 %v2382_v44, %v1821_v15  ;;  %v2451_v40 = vadd.f32 %v2371_v49, %v1810_v25  ;;  %v14424_v49 = vld [vmem:[#allocation134_spill] sm:$0xff] }
 0x3dc   :  { %v3254_v30 = vmax.f32 %v10563_v3, 0.0  ;;  %v3253_v5 = vmax.f32 %v10566_v60, 0.0  ;;  %v2697_v4 = vpop.permute.xlu2 %2696  ;;  %v2452_v38 = vadd.f32 %v2372_v17, %v1811_v36  ;;  %v1173_v15 = vadd.f32 %v1093_v29, %v10379_v12  ;;  %v14425_v36 = vld [vmem:[#allocation142_spill] sm:$0xff] }
 0x3dd   :  { %3362 = vst.msk [vmem:[#allocation2 + $0x81] sm:$0xff] %vm3346_vm1, %v14118_v14  ;;  %v3023_v20 = vmul.f32 %v10281_v54, %v2697_v4  ;;  %v2647_v31 = vpop.permute.xlu1 %2646  ;;  %v2642_v62 = vpop.permute.xlu0 %2641  ;;  %v14423_v4 = vld [vmem:[#allocation150_spill] sm:$0xff]  ;;  %v1733_v25 = vmul.f32 %v10250_v42, %v14424_v49 }
 0x3de   :  { %3352 = vst.msk [vmem:[#allocation2 + $0x29] sm:$0xff] %vm3346_vm1, %v3254_v30  ;;  %v3013_v22 = vmul.f32 %v10281_v54, %v2647_v31  ;;  %v3012_v16 = vmul.f32 %v10281_v54, %v2642_v62  ;;  %v3508_v44 = vld [vmem:[#allocation2 + $0xa] sm:$0xff]  ;;  %v3507_v33 = vld [vmem:[#allocation2 + $0x2] sm:$0xff]  ;;  %v1744_v39 = vmul.f32 %v10250_v42, %v14423_v4  ;;  %v1734_v31 = vmul.f32 %v10250_v42, %v14425_v36 }
 0x3df   :  { %3351 = vst.msk [vmem:[#allocation2 + $0x21] sm:$0xff] %vm3346_vm1, %v3253_v5  ;;  %v3103_v17 = vadd.f32 %v3023_v20, %v2462_v63  ;;  %3989 = vrot.lane.b32.xlu2 %v3508_v44, %s8463_s15  ;;  %3987 = vrot.lane.b32.xlu0 %v3507_v33, %s8463_s15  ;;  %v1172_v62 = vadd.f32 %v1092_v32, %v10404_v55  ;;  %v14426_v4 = vld [vmem:[#allocation69_spill] sm:$0xff]  ;;  %v14428_v33 = vld [vmem:[#allocation208_spill] sm:$0xff]  ;;  %v14430_v32 = vld [vmem:[#allocation70_spill] sm:$0xff] }
 0x3e0   :  { %v3093_v12 = vadd.f32 %v3013_v22, %v2452_v38  ;;  %v3092_v29 = vadd.f32 %v3012_v16, %v2451_v40  ;;  %2791 = vperm.xlu1 %8119, %v2561_v59   ;;  %v1106_v14 = vmul.f32 %v10234_v21, %v14426_v4  ;;  %v14427_v63 = vld [vmem:[#allocation225_spill] sm:$0xff]  ;;  %v2375_v49 = vmul.f32 %v10264_v26, %v14428_v33  ;;  %v14431_v40 = vld [vmem:[#allocation71_spill] sm:$0xff] }
 0x3e1   :  { %v2385_v20 = vmul.f32 %v10264_v26, %v14427_v63  ;;  %v10610_v44 = vadd.f32 %v10296_v53, %v3103_v17  ;;  %v2374_v36 = vmul.f32 %v10264_v26, %v14429_v19  ;;  %v1096_v59 = vmul.f32 %v10234_v21, %v14430_v32 }
 0x3e2   :  { %v10617_v38 = vadd.f32 %v10296_v53, %v3093_v12  ;;  %v10620_v55 = vadd.f32 %v10296_v53, %v3092_v29  ;;  %v1095_v22 = vmul.f32 %v10234_v21, %v14431_v40  ;;  %v1824_v16 = vadd.f32 %v1744_v39, %v1183_v43 }
 0x3e3   :  { %v14123_v17 = vmax.f32 %v10610_v44, 0.0  ;;  %v1813_v4 = vadd.f32 %v1733_v25, %v1172_v62  ;;  %v1814_v63 = vadd.f32 %v1734_v31, %v1173_v15  ;;  %v1186_v7 = vadd.f32 %v1106_v14, %v10480_v37  ;;  %v3509_v31 = vld [vmem:[#allocation2 + $0x12] sm:$0xff] }
 0x3e4   :  { %v3257_v33 = vmax.f32 %v10617_v38, 0.0  ;;  %v3256_v19 = vmax.f32 %v10620_v55, 0.0  ;;  %v2712_v12 = vpop.permute.xlu2 %2711  ;;  %v2465_v29 = vadd.f32 %v2385_v20, %v1824_v16  ;;  %v8126_v15 = vpack.i.bf16 %v3252_v56, %v3251_v24  ;;  %v14432_v20 = vld [vmem:[#allocation153_spill] sm:$0xff]  ;;  %v14463_v55 = vld [vmem:[#allocation162_spill] sm:$0xff] }
 0x3e5   :  { %3365 = vst.msk [vmem:[#allocation2 + $0x99] sm:$0xff] %vm3346_vm1, %v14123_v17  ;;  %v3026_v32 = vmul.f32 %v10281_v54, %v2712_v12  ;;  %v2662_v40 = vpop.permute.xlu1 %2661  ;;  %v2657_v43 = vpop.permute.xlu0 %2656  ;;  %v2455_v39 = vadd.f32 %v2375_v49, %v1814_v63  ;;  %v2454_v25 = vadd.f32 %v2374_v36, %v1813_v4  ;;  %v1176_v62 = vadd.f32 %v1096_v59, %v10385_v41  ;;  %v14434_v49 = vld [vmem:[#allocation145_spill] sm:$0xff]  ;;  %v14435_v63 = vld [vmem:[#allocation72_spill] sm:$0xff] }
 0x3e6   :  { %3355 = vst.msk [vmem:[#allocation2 + $0x41] sm:$0xff] %vm3346_vm1, %v3257_v33  ;;  %v3016_v37 = vmul.f32 %v10281_v54, %v2662_v40  ;;  %v3015_v14 = vmul.f32 %v10281_v54, %v2657_v43  ;;  %v1747_v16 = vmul.f32 %v10250_v42, %v14432_v20  ;;  %v3511_v56 = vld [vmem:[#allocation2 + $0x22] sm:$0xff]  ;;  %v1736_v24 = vmul.f32 %v10250_v42, %v14433_v35 }
 0x3e7   :  { %3354 = vst.msk [vmem:[#allocation2 + $0x39] sm:$0xff] %vm3346_vm1, %v3256_v19  ;;  %v3106_v51 = vadd.f32 %v3026_v32, %v2465_v29  ;;  %8127 = vrot.lane.b32.xlu2 %v8126_v15, %s8462_s12  ;;  %3991 = vrot.lane.b32.xlu0 %v3509_v31, %s8463_s15  ;;  %v1737_v36 = vmul.f32 %v10250_v42, %v14434_v49  ;;  %v14436_v29 = vld [vmem:[#allocation228_spill] sm:$0xff]  ;;  %v14437_v43 = vld [vmem:[#allocation209_spill] sm:$0xff] }
 0x3e8   :  { %v3096_v41 = vadd.f32 %v3016_v37, %v2455_v39  ;;  %v3095_v59 = vadd.f32 %v3015_v14, %v2454_v25  ;;  %3995 = vrot.lane.b32.xlu1 %v3511_v56, %s8463_s15  ;;  %v1175_v4 = vadd.f32 %v1095_v22, %v10412_v61  ;;  %v1109_v12 = vmul.f32 %v10234_v21, %v14435_v63  ;;  %v14438_v31 = vld [vmem:[#allocation216_spill] sm:$0xff]  ;;  %v14439_v22 = vld [vmem:[#allocation73_spill] sm:$0xff]  ;;  %v14440_v14 = vld [vmem:[#allocation74_spill] sm:$0xff] }
 0x3e9   :  { %v2388_v32 = vmul.f32 %v10264_v26, %v14436_v29  ;;  %v10662_v40 = vadd.f32 %v10296_v53, %v3106_v51  ;;  %v2378_v15 = vmul.f32 %v10264_v26, %v14437_v43  ;;  %v2377_v39 = vmul.f32 %v10264_v26, %v14438_v31 }
 0x3ea   :  { %v10669_v25 = vadd.f32 %v10296_v53, %v3096_v41  ;;  %v10672_v61 = vadd.f32 %v10296_v53, %v3095_v59  ;;  %v1099_v37 = vmul.f32 %v10234_v21, %v14439_v22  ;;  %v1098_v20 = vmul.f32 %v10234_v21, %v14440_v14 }
 0x3eb   :  { %v1827_v51 = vadd.f32 %v1747_v16, %v1186_v7  ;;  %v14122_v56 = vmax.f32 %v10662_v40, 0.0  ;;  %v1816_v35 = vadd.f32 %v1736_v24, %v1175_v4  ;;  %v1817_v49 = vadd.f32 %v1737_v36, %v1176_v62  ;;  %v2562_v16 = vld [vmem:[%s14104_s0 + $0x14c] sm:$0xff] }
 0x3ec   :  { %v3260_v63 = vmax.f32 %v10669_v25, 0.0  ;;  %v3259_v29 = vmax.f32 %v10672_v61, 0.0  ;;  %v2727_v41 = vpop.permute.xlu2 %2726  ;;  %v1189_v43 = vadd.f32 %v1109_v12, %v10486_v34  ;;  %v8131_v62 = vpack.i.bf16 %v3254_v30, %v3253_v5  ;;  %v3510_v12 = vld [vmem:[#allocation2 + $0x1a] sm:$0xff]  ;;  %v14442_v5 = vld [vmem:[#allocation137_spill] sm:$0xff] }
 0x3ed   :  { %v2468_v59 = vadd.f32 %v2388_v32, %v1827_v51  ;;  %3368 = vst.msk [vmem:[#allocation2 + $0xb9] sm:$0xff] %vm3346_vm1, %v14122_v56  ;;  %v3029_v31 = vmul.f32 %v10281_v54, %v2727_v41  ;;  %v2677_v22 = vpop.permute.xlu1 %2676  ;;  %v2672_v7 = vpop.permute.xlu0 %2671  ;;  %v2458_v24 = vadd.f32 %v2378_v15, %v1817_v49  ;;  %v2457_v34 = vadd.f32 %v2377_v39, %v1816_v35  ;;  %v14441_v32 = vld [vmem:[#allocation156_spill] sm:$0xff]  ;;  %v14444_v35 = vld [vmem:[#allocation75_spill] sm:$0xff]  ;;  %v14473_v61 = vld [vmem:[#allocation157_spill] sm:$0xff] }
 0x3ee   :  { %3358 = vst.msk [vmem:[#allocation2 + $0x61] sm:$0xff] %vm3346_vm1, %v3260_v63  ;;  %v3019_v36 = vmul.f32 %v10281_v54, %v2677_v22  ;;  %v3018_v4 = vmul.f32 %v10281_v54, %v2672_v7  ;;  %v1179_v60 = vadd.f32 %v1099_v37, %v10391_v0  ;;  %v1750_v3 = vmul.f32 %v10250_v42, %v14441_v32  ;;  %v14443_v39 = vld [vmem:[#allocation148_spill] sm:$0xff]  ;;  %v14445_v41 = vld [vmem:[#allocation231_spill] sm:$0xff] }
 0x3ef   :  { %3357 = vst.msk [vmem:[#allocation2 + $0x59] sm:$0xff] %vm3346_vm1, %v3259_v29  ;;  %v3109_v30 = vadd.f32 %v3029_v31, %v2468_v59  ;;  %8132 = vrot.lane.b32.xlu2 %v8131_v62, %s8462_s12  ;;  %3993 = vrot.lane.b32.xlu0 %v3510_v12, %s8463_s15  ;;  %v1739_v15 = vmul.f32 %v10250_v42, %v14442_v5  ;;  %v14446_v22 = vld [vmem:[#allocation211_spill] sm:$0xff]  ;;  %v14447_v62 = vld [vmem:[#allocation218_spill] sm:$0xff] }
 0x3f0   :  { %v1740_v14 = vmul.f32 %v10250_v42, %v14443_v39  ;;  %v3099_v51 = vadd.f32 %v3019_v36, %v2458_v24  ;;  %v3098_v0 = vadd.f32 %v3018_v4, %v2457_v34  ;;  %2796 = vperm.xlu1 %8119, %v2562_v16   ;;  %v1178_v37 = vadd.f32 %v1098_v20, %v10432_v11  ;;  %v14448_v20 = vld [vmem:[#allocation23_spill] sm:$0xff]  ;;  %v14449_v34 = vld [vmem:[#allocation76_spill] sm:$0xff] }
 0x3f1   :  { %v1112_v49 = vmul.f32 %v10234_v21, %v14444_v35  ;;  %v2391_v59 = vmul.f32 %v10264_v26, %v14445_v41  ;;  %v10716_v31 = vadd.f32 %v10296_v53, %v3109_v30  ;;  %v2381_v7 = vmul.f32 %v10264_v26, %v14446_v22  ;;  %v14450_v41 = vld [vmem:[#allocation77_spill] sm:$0xff] }
 0x3f2   :  { %v2380_v12 = vmul.f32 %v10264_v26, %v14447_v62  ;;  %v10723_v24 = vadd.f32 %v10296_v53, %v3099_v51  ;;  %v10726_v11 = vadd.f32 %v10296_v53, %v3098_v0  ;;  %v10730_v16 = vmul.f32 %v10240_v18, %v14448_v20  ;;  %v14451_v20 = vld [vmem:[#allocation151_spill] sm:$0xff] }
 0x3f3   :  { %v1102_v36 = vmul.f32 %v10234_v21, %v14449_v34  ;;  %v1830_v4 = vadd.f32 %v1750_v3, %v1189_v43  ;;  %v14121_v32 = vmax.f32 %v10716_v31, 0.0  ;;  %v1819_v30 = vadd.f32 %v1739_v15, %v1178_v37 }
 0x3f4   :  { %v1820_v5 = vadd.f32 %v1740_v14, %v1179_v60  ;;  %v3263_v39 = vmax.f32 %v10723_v24, 0.0  ;;  %v3262_v51 = vmax.f32 %v10726_v11, 0.0  ;;  %v2742_v35 = vpop.permute.xlu2 %2741  ;;  %v1192_v0 = vadd.f32 %v1112_v49, %v10524_v28  ;;  %v3513_v49 = vld [vmem:[#allocation2 + $0x32] sm:$0xff]  ;;  %v4393_v24 = vld [vmem:[%s14107_s3 + $0x28] sm:$0xff] }
 0x3f5   :  { %v1101_v22 = vmul.f32 %v10234_v21, %v14450_v41  ;;  %v2471_v62 = vadd.f32 %v2391_v59, %v1830_v4  ;;  %3371 = vst.msk [vmem:[#allocation2 + $0xd1] sm:$0xff] %vm3346_vm1, %v14121_v32  ;;  %v3032_v43 = vmul.f32 %v10281_v54, %v2742_v35  ;;  %v2692_v3 = vpop.permute.xlu1 %2691  ;;  %v2687_v15 = vpop.permute.xlu0 %2686  ;;  %v2460_v14 = vadd.f32 %v2380_v12, %v1819_v30  ;;  %v3512_v59 = vld [vmem:[#allocation2 + $0x2a] sm:$0xff]  ;;  %v14452_v4 = vld [vmem:[#allocation159_spill] sm:$0xff] }
 0x3f6   :  { %v2461_v60 = vadd.f32 %v2381_v7, %v1820_v5  ;;  %3361 = vst.msk [vmem:[#allocation2 + $0x79] sm:$0xff] %vm3346_vm1, %v3263_v39  ;;  %v3022_v28 = vmul.f32 %v10281_v54, %v2692_v3  ;;  %v3021_v37 = vmul.f32 %v10281_v54, %v2687_v15  ;;  %v1743_v34 = vmul.f32 %v10250_v42, %v14451_v20  ;;  %v3514_v12 = vld [vmem:[#allocation2 + $0x3a] sm:$0xff] }
 0x3f7   :  { %v1753_v35 = vmul.f32 %v10250_v42, %v14452_v4  ;;  %3360 = vst.msk [vmem:[#allocation2 + $0x71] sm:$0xff] %vm3346_vm1, %v3262_v51  ;;  %v3112_v7 = vadd.f32 %v3032_v43, %v2471_v62  ;;  %3999 = vrot.lane.b32.xlu2 %v3513_v49, %s8463_s15  ;;  %3997 = vrot.lane.b32.xlu0 %v3512_v59, %s8463_s15  ;;  %v14453_v5 = vld [vmem:[#allocation139_spill] sm:$0xff]  ;;  %v14454_v4 = vld [vmem:[#allocation213_spill] sm:$0xff]  ;;  %v14455_v62 = vld [vmem:[#allocation234_spill] sm:$0xff] }
 0x3f8   :  { %v1182_v30 = vadd.f32 %v1102_v36, %v10400_v50  ;;  %v1742_v41 = vmul.f32 %v10250_v42, %v14453_v5  ;;  %v3102_v3 = vadd.f32 %v3022_v28, %v2461_v60  ;;  %v3101_v15 = vadd.f32 %v3021_v37, %v2460_v14  ;;  %4001 = vrot.lane.b32.xlu1 %v3514_v12, %s8463_s15  ;;  %v14456_v59 = vld [vmem:[#allocation78_spill] sm:$0xff]  ;;  %v14457_v36 = vld [vmem:[#allocation221_spill] sm:$0xff]  ;;  %v14459_v5 = vld [vmem:[#allocation80_spill] sm:$0xff] }
 0x3f9   :  { %v1181_v20 = vadd.f32 %v1101_v22, %v10442_v48  ;;  %v2384_v32 = vmul.f32 %v10264_v26, %v14454_v4  ;;  %v2394_v43 = vmul.f32 %v10264_v26, %v14455_v62  ;;  %v10768_v49 = vadd.f32 %v10296_v53, %v3112_v7  ;;  %v14458_v22 = vld [vmem:[#allocation79_spill] sm:$0xff] }
 0x3fa   :  { %v1115_v50 = vmul.f32 %v10234_v21, %v14456_v59  ;;  %v2383_v60 = vmul.f32 %v10264_v26, %v14457_v36  ;;  %v10775_v14 = vadd.f32 %v10296_v53, %v3102_v3  ;;  %v10778_v48 = vadd.f32 %v10296_v53, %v3101_v15 }
 0x3fb   :  { %v1105_v28 = vmul.f32 %v10234_v21, %v14458_v22  ;;  %v1823_v37 = vadd.f32 %v1743_v34, %v1182_v30  ;;  %v1833_v12 = vadd.f32 %v1753_v35, %v1192_v0  ;;  %v3276_v7 = vmax.f32 %v10768_v49, 0.0  ;;  %v4401_v49 = vld [vmem:[%s14107_s3 + $0x68] sm:$0xff] }
 0x3fc   :  { %v1104_v4 = vmul.f32 %v10234_v21, %v14459_v5  ;;  %v1822_v62 = vadd.f32 %v1742_v41, %v1181_v20  ;;  %v3266_v59 = vmax.f32 %v10775_v14, 0.0  ;;  %v3265_v36 = vmax.f32 %v10778_v48, 0.0  ;;  %v2757_v3 = vpop.permute.xlu2 %2756  ;;  %v14464_v5 = vld [vmem:[#allocation141_spill] sm:$0xff]  ;;  %v4388_v48 = vld [vmem:[%s14107_s3] sm:$0xff] }
 0x3fd   :  { %v2464_v56 = vadd.f32 %v2384_v32, %v1823_v37  ;;  %v2474_v17 = vadd.f32 %v2394_v43, %v1833_v12  ;;  %3374 = vst.msk [vmem:[#allocation2 + $0xe9] sm:$0xff] %vm3346_vm1, %v3276_v7  ;;  %v3035_v34 = vmul.f32 %v10281_v54, %v2757_v3  ;;  %v2707_v0 = vpop.permute.xlu1 %2706  ;;  %v2702_v35 = vpop.permute.xlu0 %2701  ;;  %v14460_v30 = vmax.f32 %v10375_v58, 0.0  ;;  %v3515_v43 = vld [vmem:[#allocation2 + $0x42] sm:$0xff]  ;;  %v14462_v12 = vld [vmem:[#allocation154_spill] sm:$0xff] }
 0x3fe   :  { %v2463_v15 = vadd.f32 %v2383_v60, %v1822_v62  ;;  %3364 = vst.msk [vmem:[#allocation2 + $0x91] sm:$0xff] %vm3346_vm1, %v3266_v59  ;;  %v3025_v32 = vmul.f32 %v10281_v54, %v2707_v0  ;;  %v3024_v20 = vmul.f32 %v10281_v54, %v2702_v35  ;;  %v14461_v22 = vmax.f32 %v10465_v23, 0.0  ;;  %v14465_v0 = vld [vmem:[#allocation215_spill] sm:$0xff]  ;;  %v4389_v14 = vld [vmem:[%s14107_s3 + $0x8] sm:$0xff] }
 0x3ff   :  { %v8136_v41 = vpack.i.bf16 %v3256_v19, %v14460_v30  ;;  %v1746_v58 = vmul.f32 %v10250_v42, %v14462_v12  ;;  %v1756_v19 = vmul.f32 %v10250_v42, %v14463_v55  ;;  %3363 = vst.msk [vmem:[#allocation2 + $0x89] sm:$0xff] %vm3346_vm1, %v3265_v36  ;;  %v3115_v60 = vadd.f32 %v3035_v34, %v2474_v17  ;;  %v14466_v30 = vld [vmem:[#allocation237_spill] sm:$0xff] }
 0x400   :  { %v8141_v37 = vpack.i.bf16 %v14461_v22, %v3257_v33  ;;  %4003 = vrot.lane.b32.xlu2 %v3515_v43, %s8463_s15  ;;  %v1195_v38 = vadd.f32 %v1115_v50, %v10570_v1  ;;  %v1745_v23 = vmul.f32 %v10250_v42, %v14464_v5  ;;  %v3105_v33 = vadd.f32 %v3025_v32, %v2464_v56  ;;  %v14467_v50 = vld [vmem:[#allocation224_spill] sm:$0xff]  ;;  %v14469_v22 = vld [vmem:[#allocation82_spill] sm:$0xff]  ;;  %v14470_v5 = vld [vmem:[#allocation83_spill] sm:$0xff] }
 0x401   :  { %8137 = vrot.lane.b32.xlu0 %v8136_v41, %s8462_s12  ;;  %v3104_v62 = vadd.f32 %v3024_v20, %v2463_v15  ;;  %v1185_v3 = vadd.f32 %v1105_v28, %v10408_v57  ;;  %v2387_v35 = vmul.f32 %v10264_v26, %v14465_v0  ;;  %v2397_v17 = vmul.f32 %v10264_v26, %v14466_v30  ;;  %v14468_v57 = vld [vmem:[#allocation81_spill] sm:$0xff] }
 0x402   :  { %8142 = vrot.lane.b32.xlu1 %v8141_v37, %s8462_s12  ;;  %v10823_v34 = vadd.f32 %v10296_v53, %v3115_v60  ;;  %v1184_v1 = vadd.f32 %v1104_v4, %v10452_v47  ;;  %v2386_v41 = vmul.f32 %v10264_v26, %v14467_v50  ;;  %v10829_v56 = vadd.f32 %v10296_v53, %v3105_v33  ;;  %v2563_v60 = vld [vmem:[%s14104_s0 + $0x154] sm:$0xff]  ;;  %v14471_v50 = vld [vmem:[#allocation165_spill] sm:$0xff] }
 0x403   :  { %v10832_v15 = vadd.f32 %v10296_v53, %v3104_v62  ;;  %v1118_v28 = vmul.f32 %v10234_v21, %v14468_v57  ;;  %v1826_v32 = vadd.f32 %v1746_v58, %v1185_v3  ;;  %v1836_v20 = vadd.f32 %v1756_v19, %v1195_v38 }
 0x404   :  { %v3279_v43 = vmax.f32 %v10823_v34, 0.0  ;;  %v1108_v37 = vmul.f32 %v10234_v21, %v14469_v22  ;;  %v1825_v47 = vadd.f32 %v1745_v23, %v1184_v1  ;;  %v3269_v4 = vmax.f32 %v10829_v56, 0.0  ;;  %v2772_v55 = vpop.permute.xlu2 %2771  ;;  %v3516_v1 = vld [vmem:[#allocation2 + $0x4a] sm:$0xff]  ;;  %v14474_v22 = vld [vmem:[#allocation240_spill] sm:$0xff] }
 0x405   :  { %v3268_v12 = vmax.f32 %v10832_v15, 0.0  ;;  %v1107_v33 = vmul.f32 %v10234_v21, %v14470_v5  ;;  %v2467_v58 = vadd.f32 %v2387_v35, %v1826_v32  ;;  %v2477_v19 = vadd.f32 %v2397_v17, %v1836_v20  ;;  %v2722_v23 = vpop.permute.xlu1 %2721  ;;  %v2717_v62 = vpop.permute.xlu0 %2716  ;;  %v14472_v32 = vld [vmem:[#allocation143_spill] sm:$0xff]  ;;  %v4392_v34 = vld [vmem:[%s14107_s3 + $0x20] sm:$0xff] }
 0x406   :  { %3377 = vst.msk [vmem:[#allocation2 + $0x109] sm:$0xff] %vm3346_vm1, %v3279_v43  ;;  %v3038_v38 = vmul.f32 %v10281_v54, %v2772_v55  ;;  %v2466_v3 = vadd.f32 %v2386_v41, %v1825_v47  ;;  %v3028_v0 = vmul.f32 %v10281_v54, %v2722_v23  ;;  %v3027_v30 = vmul.f32 %v10281_v54, %v2717_v62 }
 0x407   :  { %3367 = vst.msk [vmem:[#allocation2 + $0xb1] sm:$0xff] %vm3346_vm1, %v3269_v4  ;;  %v8146_v35 = vpack.i.bf16 %v3260_v63, %v3259_v29  ;;  %v1198_v17 = vadd.f32 %v1118_v28, %v10730_v16  ;;  %v1759_v57 = vmul.f32 %v10250_v42, %v14471_v50  ;;  %v1748_v20 = vmul.f32 %v10250_v42, %v14472_v32 }
 0x408   :  { %3366 = vst.msk [vmem:[#allocation2 + $0xa1] sm:$0xff] %vm3346_vm1, %v3268_v12  ;;  %v3118_v41 = vadd.f32 %v3038_v38, %v2477_v19  ;;  %4005 = vrot.lane.b32.xlu2 %v3516_v1, %s8463_s15  ;;  %v1749_v25 = vmul.f32 %v10250_v42, %v14473_v61  ;;  %v3108_v63 = vadd.f32 %v3028_v0, %v2467_v58  ;;  %v14476_v19 = vld [vmem:[#allocation227_spill] sm:$0xff] }
 0x409   :  { %2801 = vperm.xlu0 %8118, %v2563_v60   ;;  %v3107_v29 = vadd.f32 %v3027_v30, %v2466_v3  ;;  %v1188_v16 = vadd.f32 %v1108_v37, %v10428_v10  ;;  %v1187_v28 = vadd.f32 %v1107_v33, %v10473_v27  ;;  %v2400_v47 = vmul.f32 %v10264_v26, %v14474_v22  ;;  %v14475_v60 = vld [vmem:[#allocation217_spill] sm:$0xff] }
 0x40a   :  { %8147 = vrot.lane.b32.xlu1 %v8146_v35, %s8462_s12  ;;  %v10876_v55 = vadd.f32 %v10296_v53, %v3118_v41  ;;  %v2390_v5 = vmul.f32 %v10264_v26, %v14475_v60  ;;  %v2389_v38 = vmul.f32 %v10264_v26, %v14476_v19  ;;  %v10883_v58 = vadd.f32 %v10296_v53, %v3108_v63  ;;  %v14477_v30 = vld [vmem:[#allocation85_spill] sm:$0xff]  ;;  %v14478_v35 = vld [vmem:[#allocation86_spill] sm:$0xff] }
 0x40b   :  { %v10886_v23 = vadd.f32 %v10296_v53, %v3107_v29  ;;  %v1839_v10 = vadd.f32 %v1759_v57, %v1198_v17  ;;  %v1828_v37 = vadd.f32 %v1748_v20, %v1187_v28  ;;  %v1829_v33 = vadd.f32 %v1749_v25, %v1188_v16  ;;  %v3518_v29 = vld [vmem:[#allocation2 + $0x62] sm:$0xff]  ;;  %v3517_v16 = vld [vmem:[#allocation2 + $0x5a] sm:$0xff]  ;;  %v3519_v19 = vld [vmem:[#allocation2 + $0x6a] sm:$0xff] }
 0x40c   :  { %v3282_v27 = vmax.f32 %v10876_v55, 0.0  ;;  %v3272_v62 = vmax.f32 %v10883_v58, 0.0  ;;  %v2787_v0 = vpop.permute.xlu2 %2786  ;;  %v1111_v1 = vmul.f32 %v10234_v21, %v14477_v30  ;;  %v1110_v50 = vmul.f32 %v10234_v21, %v14478_v35  ;;  %v14479_v28 = vld [vmem:[#allocation9_spill] sm:$0xff]  ;;  %v4403_v35 = vld [vmem:[%s14107_s3 + $0x78] sm:$0xff] }
 0x40d   :  { %v3271_v3 = vmax.f32 %v10886_v23, 0.0  ;;  %v2480_v41 = vadd.f32 %v2400_v47, %v1839_v10  ;;  %v3041_v17 = vmul.f32 %v10281_v54, %v2787_v0  ;;  %v2737_v57 = vpop.permute.xlu1 %2736  ;;  %v2732_v32 = vpop.permute.xlu0 %2731  ;;  %v2470_v20 = vadd.f32 %v2390_v5, %v1829_v33  ;;  %v14480_v47 = vld [vmem:[#allocation160_spill] sm:$0xff]  ;;  %4576 = vmatpush.msra.mxu0 %v4403_v35  ;;  %8079 = vmatpush.msra.mxu3 %v4403_v35  ;;  %v4391_v55 = vld [vmem:[%s14107_s3 + $0x18] sm:$0xff]  ;;  %v14506_v23 = vld [vmem:[#allocation22_spill] sm:$0xff] }
 0x40e   :  { %3380 = vst.msk [vmem:[#allocation2 + $0x121] sm:$0xff] %vm3346_vm1, %v3282_v27  ;;  %v2469_v61 = vadd.f32 %v2389_v38, %v1828_v37  ;;  %v3031_v25 = vmul.f32 %v10281_v54, %v2737_v57  ;;  %v3030_v63 = vmul.f32 %v10281_v54, %v2732_v32  ;;  %v550_v22 = vmul.f32 %v10240_v18, %v14479_v28  ;;  %v14481_v38 = vld [vmem:[#allocation13_spill] sm:$0xff]  ;;  %v14482_v37 = vld [vmem:[#allocation146_spill] sm:$0xff]  ;;  %v14483_v57 = vld [vmem:[#allocation220_spill] sm:$0xff] }
 0x40f   :  { %3370 = vst.msk [vmem:[#allocation2 + $0xc9] sm:$0xff] %vm3346_vm1, %v3272_v62  ;;  %v1752_v60 = vmul.f32 %v10250_v42, %v14480_v47  ;;  %v3121_v5 = vadd.f32 %v3041_v17, %v2480_v41  ;;  %v549_v10 = vmul.f32 %v10240_v18, %v14481_v38  ;;  %v1751_v33 = vmul.f32 %v10250_v42, %v14482_v37  ;;  %v4402_v41 = vld [vmem:[%s14107_s3 + $0x70] sm:$0xff]  ;;  %v2564_v38 = vld [vmem:[%s14104_s0 + $0x164] sm:$0xff]  ;;  %v3525_v15 = vld [vmem:[#allocation2 + $0x9a] sm:$0xff] }
 0x410   :  { %3369 = vst.msk [vmem:[#allocation2 + $0xc1] sm:$0xff] %vm3346_vm1, %v3271_v3  ;;  %4009 = vrot.lane.b32.xlu2 %v3518_v29, %s8463_s15  ;;  %v3111_v0 = vadd.f32 %v3031_v25, %v2470_v20  ;;  %v3110_v30 = vadd.f32 %v3030_v63, %v2469_v61  ;;  %v1191_v17 = vadd.f32 %v1111_v1, %v550_v22  ;;  %v14484_v61 = vld [vmem:[#allocation230_spill] sm:$0xff] }
 0x411   :  { %4007 = vrot.lane.b32.xlu0 %v3517_v16, %s8463_s15  ;;  %v2393_v32 = vmul.f32 %v10264_v26, %v14483_v57  ;;  %v10927_v29 = vadd.f32 %v10296_v53, %v3121_v5  ;;  %v1190_v20 = vadd.f32 %v1110_v50, %v549_v10  ;;  %v2392_v25 = vmul.f32 %v10264_v26, %v14484_v61  ;;  %v14485_v22 = vld [vmem:[#allocation10_spill] sm:$0xff]  ;;  %v14486_v10 = vld [vmem:[#allocation88_spill] sm:$0xff] }
 0x412   :  { %4011 = vrot.lane.b32.xlu1 %v3519_v19, %s8463_s15  ;;  %v3195_v63 = vadd.f32 %v10296_v53, %v3111_v0  ;;  %v10933_v16 = vadd.f32 %v10296_v53, %v3110_v30  ;;  %v1832_v28 = vadd.f32 %v1752_v60, %v1191_v17  ;;  %4577 = vmatpush.msra.mxu0 %v4402_v41  ;;  %v14487_v0 = vld [vmem:[#allocation89_spill] sm:$0xff] }
 0x413   :  { %v3285_v1 = vmax.f32 %v10927_v29, 0.0  ;;  %8080 = vmatpush.msra.mxu3 %v4402_v41  ;;  %v553_v47 = vmul.f32 %v10240_v18, %v14485_v22  ;;  %v1831_v5 = vadd.f32 %v1751_v33, %v1190_v20  ;;  %v1114_v37 = vmul.f32 %v10234_v21, %v14486_v10  ;;  %v14490_v22 = vld [vmem:[#allocation149_spill] sm:$0xff]  ;;  %v14491_v10 = vld [vmem:[#allocation163_spill] sm:$0xff] }
 0x414   :  { %v3275_v19 = vmax.f32 %v3195_v63, 0.0  ;;  %v3274_v50 = vmax.f32 %v10933_v16, 0.0  ;;  %v1113_v60 = vmul.f32 %v10234_v21, %v14487_v0  ;;  %v2473_v30 = vadd.f32 %v2393_v32, %v1832_v28  ;;  %v14489_v63 = vld [vmem:[#allocation16_spill] sm:$0xff]  ;;  %4578 = vmatpush.msra.mxu0 %v4401_v49  ;;  %v14492_v0 = vld [vmem:[#allocation223_spill] sm:$0xff] }
 0x415   :  { %3383 = vst.msk [vmem:[#allocation2 + $0x139] sm:$0xff] %vm3346_vm1, %v3285_v1  ;;  %v2752_v35 = vpop.permute.xlu1 %2751  ;;  %v2747_v33 = vpop.permute.xlu0 %2746  ;;  %v14488_v41 = vmax.f32 %v10509_v6, 0.0  ;;  %v2472_v57 = vadd.f32 %v2392_v25, %v1831_v5  ;;  %v552_v28 = vmul.f32 %v10240_v18, %v14489_v63  ;;  %v1754_v6 = vmul.f32 %v10250_v42, %v14490_v22  ;;  %8081 = vmatpush.msra.mxu3 %v4401_v49  ;;  %v2565_v22 = vld [vmem:[%s14104_s0 + $0x16c] sm:$0xff] }
 0x416   :  { %3373 = vst.msk [vmem:[#allocation2 + $0xe1] sm:$0xff] %vm3346_vm1, %v3275_v19  ;;  %v3034_v20 = vmul.f32 %v10281_v54, %v2752_v35  ;;  %v3033_v61 = vmul.f32 %v10281_v54, %v2747_v33  ;;  %v10958_v32 = vpack.i.bf16 %v3276_v7, %v3275_v19  ;;  %v1755_v11 = vmul.f32 %v10250_v42, %v14491_v10  ;;  %v14493_v33 = vld [vmem:[#allocation233_spill] sm:$0xff]  ;;  %v14495_v10 = vld [vmem:[#allocation91_spill] sm:$0xff] }
 0x417   :  { %v8151_v17 = vpack.i.bf16 %v3262_v51, %v14488_v41  ;;  %3372 = vst.msk [vmem:[#allocation2 + $0xd9] sm:$0xff] %vm3346_vm1, %v3274_v50  ;;  %v3521_v51 = vld [vmem:[#allocation2 + $0x7a] sm:$0xff]  ;;  %v1194_v5 = vadd.f32 %v1114_v37, %v553_v47  ;;  %v1193_v19 = vadd.f32 %v1113_v60, %v552_v28  ;;  %v2396_v35 = vmul.f32 %v10264_v26, %v14492_v0  ;;  %v3520_v0 = vld [vmem:[#allocation2 + $0x72] sm:$0xff] }
 0x418   :  { %v3114_v7 = vadd.f32 %v3034_v20, %v2473_v30  ;;  %v3113_v25 = vadd.f32 %v3033_v61, %v2472_v57  ;;  %v2395_v41 = vmul.f32 %v10264_v26, %v14493_v33  ;;  %v4399_v30 = vld [vmem:[%s14107_s3 + $0x58] sm:$0xff]  ;;  %v4398_v57 = vld [vmem:[%s14107_s3 + $0x50] sm:$0xff]  ;;  %v558_v58 = vmul.f32 %v10240_v18, %v14506_v23 }
 0x419   :  { %8152 = vrot.lane.b32.xlu2 %v8151_v17, %s8462_s12  ;;  %2806 = vperm.xlu0 %8118, %v2564_v38   ;;  %v4400_v38 = vld [vmem:[%s14107_s3 + $0x60] sm:$0xff]  ;;  %v1834_v37 = vadd.f32 %v1754_v6, %v1193_v19  ;;  %v1835_v60 = vadd.f32 %v1755_v11, %v1194_v5  ;;  %v14494_v20 = vld [vmem:[#allocation11_spill] sm:$0xff] }
 0x41a   :  { %4015 = vrot.lane.b32.xlu1 %v3521_v51, %s8463_s15  ;;  %v3198_v17 = vadd.f32 %v10296_v53, %v3114_v7  ;;  %v3197_v47 = vadd.f32 %v10296_v53, %v3113_v25  ;;  %4579 = vmatpush.msra.mxu0 %v4400_v38  ;;  %v556_v61 = vmul.f32 %v10240_v18, %v14494_v20  ;;  %v14496_v6 = vld [vmem:[#allocation92_spill] sm:$0xff] }
 0x41b   :  { %8082 = vmatpush.msra.mxu3 %v4400_v38  ;;  %v1117_v53 = vmul.f32 %v10234_v21, %v14495_v10  ;;  %v1116_v11 = vmul.f32 %v10234_v21, %v14496_v6  ;;  %v2476_v51 = vadd.f32 %v2396_v35, %v1835_v60  ;;  %v2475_v49 = vadd.f32 %v2395_v41, %v1834_v37  ;;  %v14497_v38 = vld [vmem:[#allocation19_spill] sm:$0xff]  ;;  %v14499_v41 = vld [vmem:[#allocation166_spill] sm:$0xff]  ;;  %v4397_v60 = vld [vmem:[%s14107_s3 + $0x48] sm:$0xff] }
 0x41c   :  { %v3278_v63 = vmax.f32 %v3198_v17, 0.0  ;;  %v3277_v28 = vmax.f32 %v3197_v47, 0.0  ;;  %4580 = vmatpush.msra.mxu0 %v4399_v30  ;;  %v555_v17 = vmul.f32 %v10240_v18, %v14497_v38  ;;  %v14498_v47 = vld [vmem:[#allocation152_spill] sm:$0xff]  ;;  %v1758_v37 = vmul.f32 %v10250_v42, %v14499_v41 }
 0x41d   :  { %v2767_v7 = vpop.permute.xlu1 %2766  ;;  %v2762_v25 = vpop.permute.xlu0 %2761  ;;  %8083 = vmatpush.msra.mxu3 %v4399_v30  ;;  %v1757_v35 = vmul.f32 %v10250_v42, %v14498_v47  ;;  %v3522_v30 = vld [vmem:[#allocation2 + $0x82] sm:$0xff]  ;;  %v1197_v10 = vadd.f32 %v1117_v53, %v556_v61  ;;  %v4395_v53 = vld [vmem:[%s14107_s3 + $0x38] sm:$0xff] }
 0x41e   :  { %3376 = vst.msk [vmem:[#allocation2 + $0xf9] sm:$0xff] %vm3346_vm1, %v3278_v63  ;;  %v3037_v5 = vmul.f32 %v10281_v54, %v2767_v7  ;;  %v3036_v19 = vmul.f32 %v10281_v54, %v2762_v25  ;;  %4581 = vmatpush.msra.mxu0 %v4398_v57  ;;  %v11001_v33 = vpack.i.bf16 %v3278_v63, %v3277_v28  ;;  %v14500_v7 = vld [vmem:[#allocation226_spill] sm:$0xff]  ;;  %v14501_v38 = vld [vmem:[#allocation236_spill] sm:$0xff] }
 0x41f   :  { %3375 = vst.msk [vmem:[#allocation2 + $0xf1] sm:$0xff] %vm3346_vm1, %v3277_v28  ;;  %v1196_v6 = vadd.f32 %v1116_v11, %v555_v17  ;;  %v2399_v25 = vmul.f32 %v10264_v26, %v14500_v7  ;;  %v2398_v28 = vmul.f32 %v10264_v26, %v14501_v38  ;;  %8084 = vmatpush.msra.mxu3 %v4398_v57  ;;  %v4394_v57 = vld [vmem:[%s14107_s3 + $0x30] sm:$0xff]  ;;  %v3528_v56 = vld [vmem:[#allocation2 + $0xba] sm:$0xff] }
 0x420   :  { %v3117_v20 = vadd.f32 %v3037_v5, %v2476_v51  ;;  %v3116_v63 = vadd.f32 %v3036_v19, %v2475_v49  ;;  %4582 = vmatpush.msra.mxu0 %v4397_v60  ;;  %v11025_v51 = vld [vmem:[%s14106_s2] ss:$0 sm:$0xff]  ;;  %v1838_v5 = vadd.f32 %v1758_v37, %v1197_v10  ;;  %v4390_v38 = vld [vmem:[%s14107_s3 + $0x10] sm:$0xff] }
 0x421   :  { %2811 = vperm.xlu2 %8120, %v2565_v22   ;;  %4013 = vrot.lane.b32.xlu0 %v3520_v0, %s8463_s15  ;;  %v4396_v22 = vld [vmem:[%s14107_s3 + $0x40] sm:$0xff]  ;;  %v1837_v11 = vadd.f32 %v1757_v35, %v1196_v6 }
 0x422   :  { %4017 = vrot.lane.b32.xlu1 %v3522_v30, %s8463_s15  ;;  %v3201_v49 = vadd.f32 %v11025_v51, %v3117_v20  ;;  %v3200_v61 = vadd.f32 %v11025_v51, %v3116_v63  ;;  %4583 = vmatpush.msra.mxu0 %v4396_v22  ;;  %v2479_v17 = vadd.f32 %v2399_v25, %v1838_v5  ;;  %v14502_v20 = vmax.f32 %v10556_v45, 0.0  ;;  %v3524_v45 = vld [vmem:[#allocation2 + $0x92] sm:$0xff] }
 0x423   :  { %8085 = vmatpush.msra.mxu3 %v4397_v60  ;;  %v2478_v47 = vadd.f32 %v2398_v28, %v1837_v11  ;;  %v3523_v60 = vld [vmem:[#allocation2 + $0x8a] sm:$0xff]  ;;  %v14503_v11 = vmax.f32 %v10610_v44, 0.0  ;;  %v4404_v44 = vld [vmem:[%s14107_s3 + $0x80] sm:$0xff] }
 0x424   :  { %v3281_v19 = vmax.f32 %v3201_v49, 0.0  ;;  %v3280_v0 = vmax.f32 %v3200_v61, 0.0  ;;  %4584 = vmatpush.msra.mxu0 %v4395_v53  ;;  %v8156_v63 = vpack.i.bf16 %v14502_v20, %v3263_v39  ;;  %v2566_v49 = vld [vmem:[%s14104_s0 + $0x174] sm:$0xff]  ;;  %v4405_v61 = vld [vmem:[%s14107_s3 + $0x88] sm:$0xff] }
 0x425   :  { %v2782_v41 = vpop.permute.xlu1 %2781  ;;  %v2777_v30 = vpop.permute.xlu0 %2776  ;;  %8086 = vmatpush.msra.mxu3 %v4396_v22  ;;  %v8166_v5 = vpack.i.bf16 %v3268_v12, %v14503_v11 }
 0x426   :  { %3379 = vst.msk [vmem:[#allocation2 + $0x119] sm:$0xff] %vm3346_vm1, %v3281_v19  ;;  %v3040_v35 = vmul.f32 %v10281_v54, %v2782_v41  ;;  %v3039_v37 = vmul.f32 %v10281_v54, %v2777_v30  ;;  %4585 = vmatpush.msra.mxu0 %v4394_v57  ;;  %v11044_v10 = vpack.i.bf16 %v3280_v0, %v3279_v43 }
 0x427   :  { %3378 = vst.msk [vmem:[#allocation2 + $0x111] sm:$0xff] %vm3346_vm1, %v3280_v0  ;;  %v11054_v39 = vpack.i.bf16 %v3282_v27, %v3281_v19  ;;  %8087 = vmatpush.msra.mxu3 %v4395_v53  ;;  %v4406_v27 = vld [vmem:[%s14107_s3 + $0x90] sm:$0x3f]  ;;  %v8161_v53 = vpack.i.bf16 %v3266_v59, %v3265_v36  ;;  %v2567_v59 = vld [vmem:[%s14104_s0 + $0x17c] sm:$0xff]  ;;  %v14504_v19 = vmax.f32 %v10662_v40, 0.0  ;;  %v8176_v30 = vpack.i.bf16 %v3272_v62, %v3271_v3  ;;  %v2568_v40 = vld [vmem:[%s14104_s0 + $0x184] sm:$0xff] }
 0x428   :  { %v3120_v6 = vadd.f32 %v3040_v35, %v2479_v17  ;;  %v3119_v7 = vadd.f32 %v3039_v37, %v2478_v47  ;;  %4586 = vmatpush.msra.mxu0 %v4393_v24  ;;  %7939 = vmatpush.msk.msra.mxu1 %vm4572_vm2, %v4406_v27  ;;  %v3526_v36 = vld [vmem:[#allocation2 + $0xa2] sm:$0xff]  ;;  %v3527_v17 = vld [vmem:[#allocation2 + $0xb2] sm:$0xff]  ;;  %s8475_s3 = smov 92  }
 0x429   :  { %4019 = vrot.lane.b32.xlu2 %v3523_v60, %s8463_s15  ;;  %8157 = vrot.lane.b32.xlu0 %v8156_v63, %s8462_s12  ;;  %v8171_v0 = vpack.i.bf16 %v14504_v19, %v3269_v4  ;;  %v3529_v47 = vld [vmem:[#allocation2 + $0xc2] sm:$0xff]  ;;  %v14505_v63 = vld [vmem:[#allocation95_spill] sm:$0xff] }
 0x42a   :  { %4021 = vrot.lane.b32.xlu1 %v3524_v45, %s8463_s15  ;;  %v3204_v43 = vadd.f32 %v11025_v51, %v3120_v6  ;;  %v3203_v25 = vadd.f32 %v11025_v51, %v3119_v7  ;;  %4587 = vmatpush.msra.mxu0 %v4392_v34  ;;  %v1119_v35 = vmul.f32 %v10234_v21, %v14505_v63  ;;  %v14507_v62 = vld [vmem:[#allocation155_spill] sm:$0xff]  ;;  %v3530_v45 = vld [vmem:[#allocation2 + $0xca] sm:$0xff] }
 0x42b   :  { %8088 = vmatpush.msra.mxu3 %v4394_v57  ;;  %8095 = vmatpush.msk.msra.mxu2 %vm4572_vm2, %v4406_v27  ;;  %v1760_v3 = vmul.f32 %v10250_v42, %v14507_v62  ;;  %v3531_v60 = vld [vmem:[#allocation2 + $0xd2] sm:$0xff]  ;;  %vm7409_vm2 = vcmask 162816  }
 0x42c   :  { %v3284_v28 = vmax.f32 %v3204_v43, 0.0  ;;  %v3283_v22 = vmax.f32 %v3203_v25, 0.0  ;;  %4588 = vmatpush.msra.mxu0 %v4391_v55  ;;  %4847 = vmatpush.msra.mxu1 %v4405_v61  ;;  %v14508_v6 = vld [vmem:[#allocation239_spill] sm:$0xff]  ;;  %v3427_v43 = vld [vmem:[#allocation2] sm:$0xff] }
 0x42d   :  { %8089 = vmatpush.msra.mxu3 %v4393_v24  ;;  %8096 = vmatpush.msra.mxu2 %v4405_v61  ;;  %v1199_v24 = vadd.f32 %v1119_v35, %v558_v58  ;;  %v2401_v7 = vmul.f32 %v10264_v26, %v14508_v6  ;;  %v14513_v35 = vld [vmem:[#allocation229_spill] sm:$0xff]  ;;  %v3429_v58 = vld [vmem:[#allocation2 + $0x10] sm:$0xff] }
 0x42e   :  { %3382 = vst.msk [vmem:[#allocation2 + $0x131] sm:$0xff] %vm3346_vm1, %v3284_v28  ;;  %4589 = vmatpush.msra.mxu0 %v4390_v38  ;;  %v11086_v57 = vpack.i.bf16 %v3284_v28, %v3283_v22  ;;  %4848 = vmatpush.msra.mxu1 %v4404_v44  ;;  %v2402_v23 = vmul.f32 %v10264_v26, %v14513_v35 }
 0x42f   :  { %3381 = vst.msk [vmem:[#allocation2 + $0x129] sm:$0xff] %vm3346_vm1, %v3283_v22  ;;  %8090 = vmatpush.msra.mxu3 %v4392_v34  ;;  %8097 = vmatpush.msra.mxu2 %v4404_v44  ;;  %v3532_v34 = vld [vmem:[#allocation2 + $0xda] sm:$0xff]  ;;  %v1840_v25 = vadd.f32 %v1760_v3, %v1199_v24  ;;  %v3533_v44 = vld [vmem:[#allocation2 + $0xe2] sm:$0xff] }
 0x430   :  { %4590 = vmatpush.msra.mxu0 %v4389_v14 }
 0x431   :  { %2816 = vperm.xlu2 %8120, %v2566_v49   ;;  %8162 = vrot.lane.b32.xlu0 %v8161_v53, %s8462_s12  ;;  %v2481_v49 = vadd.f32 %v2401_v7, %v1840_v25  ;;  %v3535_v25 = vld [vmem:[#allocation2 + $0xf2] sm:$0xff] }
 0x432   :  { %8167 = vrot.lane.b32.xlu1 %v8166_v5, %s8462_s12  ;;  %4591 = vmatpush.msra.mxu0 %v4388_v48  ;;  %v14509_v5 = vmax.f32 %v10716_v31, 0.0 }
 0x433   :  { %8091 = vmatpush.msra.mxu3 %v4391_v55 }
 0x435   :  { %8092 = vmatpush.msra.mxu3 %v4390_v38 }
 0x437   :  { %8093 = vmatpush.msra.mxu3 %v4389_v14  ;;  %v8181_v14 = vpack.i.bf16 %v3274_v50, %v14509_v5  ;;  %v2570_v5 = vld [vmem:[%s14104_s0 + $0x194] sm:$0xff] }
 0x439   :  { %4025 = vrot.lane.b32.xlu2 %v3526_v36, %s8463_s15  ;;  %4023 = vrot.lane.b32.xlu0 %v3525_v15, %s8463_s15  ;;  %v3990_v12 = vpop.permute.xlu2 %3989 }
 0x43a   :  { %2821 = vperm.xlu1 %8119, %v2567_v59   ;;  %8094 = vmatpush.msra.mxu3 %v4388_v48  ;;  %v3428_v48 = vld [vmem:[#allocation2 + $0x8] sm:$0xff] }
 0x441   :  { %8172 = vrot.lane.b32.xlu2 %v8171_v0, %s8462_s12  ;;  %4027 = vrot.lane.b32.xlu0 %v3527_v17, %s8463_s15  ;;  %v11112_v41 = vpop.permute.xlu2 %8127  ;;  %v14510_v0 = vld [vmem:[#allocation94_spill] sm:$0xff] }
 0x442   :  { %4031 = vrot.lane.b32.xlu1 %v3529_v47, %s8463_s15  ;;  %v1120_v17 = vmul.f32 %v10234_v21, %v14510_v0  ;;  %v14511_v47 = vld [vmem:[#allocation12_spill] sm:$0xff] }
 0x449   :  { %8177 = vrot.lane.b32.xlu2 %v8176_v30, %s8462_s12  ;;  %4029 = vrot.lane.b32.xlu0 %v3528_v56, %s8463_s15  ;;  %v11123_v4 = vpop.permute.xlu2 %8132  ;;  %v559_v30 = vmul.f32 %v10240_v18, %v14511_v47 }
 0x44a   :  { %2826 = vperm.xlu1 %8119, %v2568_v40   ;;  %v8123_v20 = vpop.permute.xlu1 %8122  ;;  %v14512_v40 = vld [vmem:[#allocation169_spill] sm:$0xff] }
 0x44b   :  { %v8124_v37 = vunpack.i.l.bf16 %v8123_v20  ;;  %v8125_v61 = vunpack.i.h.bf16 %v8123_v20  ;;  %v1761_v56 = vmul.f32 %v10250_v42, %v14512_v40  ;;  %v3534_v20 = vld [vmem:[#allocation2 + $0xea] sm:$0xff]  ;;  %v1200_v63 = vadd.f32 %v1120_v17, %v559_v30  ;;  %v14516_v40 = vld [vmem:[#allocation15_spill] sm:$0xff] }
 0x44d   :  { %v4227_v38 = vsel %vm3346_vm1, %v3427_v43, %v8124_v37  ;;  %v4228_v36 = vsel %vm3346_vm1, %v3428_v48, %v8125_v61  ;;  %v1841_v62 = vadd.f32 %v1761_v56, %v1200_v63  ;;  %v3431_v48 = vld [vmem:[#allocation2 + $0x20] sm:$0xff]  ;;  %v562_v56 = vmul.f32 %v10240_v18, %v14516_v40  ;;  %v14518_v63 = vld [vmem:[#allocation26_spill] sm:$0xff] }
 0x44e   :  { %v4309_v19 = vsel %vm4307_vm4, %v4228_v36, %v3990_v12  ;;  %v14514_v36 = vld [vmem:[#allocation97_spill] sm:$0xff]  ;;  %v560_v35 = vmul.f32 %v10240_v18, %v14518_v63 }
 0x44f   :  { %v2482_v6 = vadd.f32 %v2402_v23, %v1841_v62  ;;  %v14519_v23 = vld [vmem:[#allocation168_spill] sm:$0xff]  ;;  %v3541_v40 = vld [vmem:[#allocation2 + $0x12a] sm:$0xff] }
 0x450   :  { %v2571_v62 = vld [vmem:[%s14104_s0 + $0x19c] sm:$0xff] }
 0x451   :  { %4035 = vrot.lane.b32.xlu2 %v3531_v60, %s8463_s15  ;;  %4033 = vrot.lane.b32.xlu0 %v3530_v45, %s8463_s15  ;;  %v11136_v55 = vpop.permute.xlu2 %3999  ;;  %v3988_v27 = vpop.permute.xlu0 %3987 }
 0x452   :  { %4037 = vrot.lane.b32.xlu1 %v3532_v34, %s8463_s15  ;;  %7940 = vmatmul.msk.f32.vlgmr.msra.gmra.mxu1 %vm4411_vm3, %v3988_v27  ;;  %v2792_v28 = vpop.permute.xlu1 %2791  ;;  %v4308_v22 = vsel %vm4307_vm4, %v4227_v38, %v3988_v27  ;;  %v8130_v34 = vunpack.i.h.bf16 %v11112_v41  ;;  %v3537_v38 = vld [vmem:[#allocation2 + $0x10a] sm:$0xff] }
 0x453   :  { %v3042_v53 = vmul.f32 %v10281_v54, %v2792_v28  ;;  %4592 = vmatmul.f32.vlgmr.msra.gmra.mxu0 %v4308_v22  ;;  %v3430_v28 = vld [vmem:[#allocation2 + $0x18] sm:$0xff] }
 0x455   :  { %v3122_v11 = vadd.f32 %v3042_v53, %v2481_v49 }
 0x457   :  { %v11147_v59 = vadd.f32 %v11025_v51, %v3122_v11 }
 0x459   :  { %4039 = vrot.lane.b32.xlu2 %v3533_v44, %s8463_s15  ;;  %8182 = vrot.lane.b32.xlu0 %v8181_v14, %s8462_s12  ;;  %v3286_v15 = vmax.f32 %v11147_v59, 0.0  ;;  %v3992_v16 = vpop.permute.xlu0 %3991  ;;  %v8134_v14 = vunpack.i.l.bf16 %v11123_v4  ;;  %v3539_v44 = vld [vmem:[#allocation2 + $0x11a] sm:$0xff] }
 0x45a   :  { %8187 = vrot.lane.b32.xlu1 %v10958_v32, %s8462_s12  ;;  %v11155_v31 = vpop.permute.xlu2 %4003  ;;  %7941 = vmatmul.msk.f32.gmra.mxu1 %vm4411_vm3, %v3990_v12  ;;  %v3996_v50 = vpop.permute.xlu1 %3995  ;;  %v2569_v32 = vld [vmem:[%s14104_s0 + $0x18c] sm:$0xff]  ;;  %v8129_v12 = vunpack.i.l.bf16 %v11112_v41  ;;  %v4230_v41 = vsel %vm3346_vm1, %v3430_v28, %v8130_v34 }
 0x45b   :  { %3384 = vst.msk [vmem:[#allocation2 + $0x141] sm:$0xff] %vm3346_vm1, %v3286_v15  ;;  %4595 = vmatmul.f32.gmra.mxu0 %v4309_v19  ;;  %v4231_v17 = vsel %vm3346_vm1, %v3431_v48, %v8134_v14  ;;  %v3538_v34 = vld [vmem:[#allocation2 + $0x112] sm:$0xff] }
 0x45c   :  { %v4229_v60 = vsel %vm3346_vm1, %v3429_v58, %v8129_v12  ;;  %v4312_v30 = vsel %vm4307_vm4, %v4231_v17, %v3996_v50  ;;  %v14517_v12 = vld [vmem:[#allocation172_spill] sm:$0xff]  ;;  %v1762_v58 = vmul.f32 %v10250_v42, %v14519_v23 }
 0x45d   :  { %v4310_v24 = vsel %vm4307_vm4, %v4229_v60, %v3992_v16  ;;  %v14520_v60 = vld [vmem:[#allocation232_spill] sm:$0xff] }
 0x461   :  { %4041 = vrot.lane.b32.xlu2 %v3534_v20, %s8463_s15  ;;  %2831 = vperm.xlu0 %8118, %v2569_v32   ;;  %v3994_v37 = vpop.permute.xlu0 %3993  ;;  %v14515_v32 = vld [vmem:[#allocation84_spill] sm:$0xff]  ;;  %v1764_v20 = vmul.f32 %v10250_v42, %v14517_v12  ;;  %v3542_v12 = vld [vmem:[#allocation2 + $0x132] sm:$0xff] }
 0x462   :  { %8192 = vrot.lane.b32.xlu1 %v11001_v33, %s8462_s12  ;;  %v11177_v3 = vpop.permute.xlu2 %4005  ;;  %7942 = vmatmul.msk.f32.gmra.mxu1 %vm4411_vm3, %v3992_v16  ;;  %v2797_v45 = vpop.permute.xlu1 %2796  ;;  %v3536_v33 = vld [vmem:[#allocation2 + $0xfa] sm:$0xff]  ;;  %v4311_v11 = vsel %vm4307_vm4, %v4230_v41, %v3994_v37  ;;  %v1123_v16 = vmul.f32 %v10234_v21, %v14514_v36  ;;  %v1121_v47 = vmul.f32 %v10234_v21, %v14515_v32 }
 0x463   :  { %v3043_v7 = vmul.f32 %v10281_v54, %v2797_v45  ;;  %4598 = vmatmul.f32.gmra.mxu0 %v4310_v24  ;;  %v8135_v45 = vunpack.i.h.bf16 %v11123_v4 }
 0x464   :  { %v1201_v24 = vadd.f32 %v1121_v47, %v560_v35  ;;  %v14522_v35 = vld [vmem:[#allocation98_spill] sm:$0xff] }
 0x465   :  { %v3123_v43 = vadd.f32 %v3043_v7, %v2482_v6  ;;  %v14521_v6 = vld [vmem:[#allocation243_spill] sm:$0xff]  ;;  %v1122_v23 = vmul.f32 %v10234_v21, %v14522_v35 }
 0x466   :  { %v2403_v7 = vmul.f32 %v10264_v26, %v14521_v6  ;;  %v14525_v6 = vld [vmem:[#allocation158_spill] sm:$0xff] }
 0x467   :  { %v11185_v27 = vadd.f32 %v11025_v51, %v3123_v43 }
 0x469   :  { %4045 = vrot.lane.b32.xlu2 %v3536_v33, %s8463_s15  ;;  %4043 = vrot.lane.b32.xlu0 %v3535_v25, %s8463_s15  ;;  %v3287_v22 = vmax.f32 %v11185_v27, 0.0  ;;  %v3998_v61 = vpop.permute.xlu0 %3997  ;;  %v3540_v33 = vld [vmem:[#allocation2 + $0x122] sm:$0xff]  ;;  %v1842_v25 = vadd.f32 %v1762_v58, %v1201_v24 }
 0x46a   :  { %4047 = vrot.lane.b32.xlu1 %v3537_v38, %s8463_s15  ;;  %v11191_v49 = vpop.permute.xlu2 %4009  ;;  %7943 = vmatmul.msk.f32.gmra.mxu1 %vm4411_vm3, %v3994_v37  ;;  %v11195_v53 = vpop.permute.xlu1 %4001  ;;  %v1203_v37 = vadd.f32 %v1123_v16, %v562_v56  ;;  %v3432_v38 = vld [vmem:[#allocation2 + $0x28] sm:$0xff]  ;;  %v3433_v56 = vld [vmem:[#allocation2 + $0x30] sm:$0xff] }
 0x46b   :  { %3385 = vst.msk [vmem:[#allocation2 + $0x149] sm:$0xff] %vm3346_vm1, %v3287_v22  ;;  %4601 = vmatmul.f32.gmra.mxu0 %v4311_v11  ;;  %v2483_v4 = vadd.f32 %v2403_v7, %v1842_v25  ;;  %v1763_v7 = vmul.f32 %v10250_v42, %v14525_v6  ;;  %v14527_v25 = vld [vmem:[#allocation171_spill] sm:$0xff] }
 0x46c   :  { %v1844_v43 = vadd.f32 %v1764_v20, %v1203_v37  ;;  %v14523_v37 = vld [vmem:[#allocation87_spill] sm:$0xff] }
 0x471   :  { %8197 = vrot.lane.b32.xlu2 %v11044_v10, %s8462_s12  ;;  %2836 = vperm.xlu0 %8118, %v2570_v5   ;;  %v4232_v5 = vsel %vm3346_vm1, %v3432_v38, %v8135_v45  ;;  %v14524_v45 = vld [vmem:[#allocation25_spill] sm:$0xff]  ;;  %v1765_v38 = vmul.f32 %v10250_v42, %v14527_v25 }
 0x472   :  { %4051 = vrot.lane.b32.xlu1 %v3539_v44, %s8463_s15  ;;  %7944 = vmatmul.msk.f32.gmra.mxu1 %vm4411_vm3, %v3996_v50  ;;  %v2405_v50 = vmul.f32 %v10264_v26, %v14520_v60  ;;  %v4313_v36 = vsel %vm4307_vm4, %v4232_v5, %v3998_v61  ;;  %v1124_v60 = vmul.f32 %v10234_v21, %v14523_v37  ;;  %v14529_v5 = vld [vmem:[#allocation246_spill] sm:$0xff] }
 0x473   :  { %v11210_v19 = vpop.permute.xlu2 %8152  ;;  %v11212_v0 = vpop.permute.xlu0 %8137  ;;  %4604 = vmatmul.f32.gmra.mxu0 %v4312_v30  ;;  %v561_v24 = vmul.f32 %v10240_v18, %v14524_v45  ;;  %v3543_v45 = vld [vmem:[#allocation2 + $0x13a] sm:$0xff] }
 0x474   :  { %v11218_v10 = vpop.permute.xlu1 %8142  ;;  %v2485_v28 = vadd.f32 %v2405_v50, %v1844_v43  ;;  %v8139_v16 = vunpack.i.l.bf16 %v11212_v0  ;;  %v14526_v43 = vld [vmem:[#allocation29_spill] sm:$0xff] }
 0x479   :  { %2841 = vperm.xlu2 %8120, %v2571_v62   ;;  %4049 = vrot.lane.b32.xlu0 %v3538_v34, %s8463_s15  ;;  %v8140_v34 = vunpack.i.h.bf16 %v11212_v0 }
 0x47a   :  { %4053 = vrot.lane.b32.xlu1 %v3540_v33, %s8463_s15  ;;  %7945 = vmatmul.msk.f32.gmra.mxu1 %vm4411_vm3, %v3998_v61  ;;  %v4233_v61 = vsel %vm3346_vm1, %v3433_v56, %v8139_v16  ;;  %v563_v33 = vmul.f32 %v10240_v18, %v14526_v43 }
 0x47b   :  { %v2812_v41 = vpop.permute.xlu2 %2811  ;;  %v2802_v11 = vpop.permute.xlu0 %2801  ;;  %4607 = vmatmul.f32.gmra.mxu0 %v4313_v36  ;;  %v4314_v50 = vsel %vm4307_vm4, %v4233_v61, %v11136_v55 }
 0x47c   :  { %v3046_v14 = vmul.f32 %v10281_v54, %v2812_v41  ;;  %v3044_v44 = vmul.f32 %v10281_v54, %v2802_v11  ;;  %v11243_v48 = vpop.permute.xlu1 %8147  ;;  %v14528_v41 = vld [vmem:[#allocation242_spill] sm:$0xff]  ;;  %v1204_v0 = vadd.f32 %v1124_v60, %v563_v33 }
 0x47d   :  { %v2404_v11 = vmul.f32 %v10264_v26, %v14528_v41 }
 0x47e   :  { %v3126_v17 = vadd.f32 %v3046_v14, %v2485_v28  ;;  %v3124_v32 = vadd.f32 %v3044_v44, %v2483_v4  ;;  %v1202_v28 = vadd.f32 %v1122_v23, %v561_v24  ;;  %v2406_v4 = vmul.f32 %v10264_v26, %v14529_v5  ;;  %v3434_v44 = vld [vmem:[#allocation2 + $0x38] sm:$0xff]  ;;  %v2573_v23 = vld [vmem:[%s14104_s0 + $0x1ac] sm:$0xff]  ;;  %v3435_v24 = vld [vmem:[#allocation2 + $0x40] sm:$0xff] }
 0x47f   :  { %v8211_v14 = vpack.i.bf16 %v3286_v15, %v3285_v1  ;;  %v4234_v16 = vsel %vm3346_vm1, %v3434_v44, %v8140_v34  ;;  %v8144_v15 = vunpack.i.l.bf16 %v11218_v10  ;;  %v2594_v5 = vld [vmem:[%s14104_s0 + $0x26c] sm:$0xff] }
 0x480   :  { %v11248_v47 = vadd.f32 %v11025_v51, %v3126_v17  ;;  %v11251_v30 = vadd.f32 %v11025_v51, %v3124_v32  ;;  %v1843_v36 = vadd.f32 %v1763_v7, %v1202_v28  ;;  %v1845_v17 = vadd.f32 %v1765_v38, %v1204_v0  ;;  %v2593_v28 = vld [vmem:[%s14104_s0 + $0x25c] sm:$0xff] }
 0x481   :  { %4055 = vrot.lane.b32.xlu2 %v3541_v40, %s8463_s15  ;;  %8202 = vrot.lane.b32.xlu0 %v11054_v39, %s8462_s12  ;;  %v8145_v38 = vunpack.i.h.bf16 %v11218_v10 }
 0x482   :  { %v3290_v20 = vmax.f32 %v11248_v47, 0.0  ;;  %v3288_v63 = vmax.f32 %v11251_v30, 0.0  ;;  %4057 = vrot.lane.b32.xlu1 %v3542_v12, %s8463_s15  ;;  %7946 = vmatmul.msk.f32.gmra.mxu1 %vm4411_vm3, %v11136_v55  ;;  %v2572_v55 = vld [vmem:[%s14104_s0 + $0x1a4] sm:$0xff]  ;;  %v2484_v32 = vadd.f32 %v2404_v11, %v1843_v36  ;;  %v2486_v12 = vadd.f32 %v2406_v4, %v1845_v17  ;;  %v2592_v30 = vld [vmem:[%s14104_s0 + $0x254] sm:$0xff] }
 0x483   :  { %v11262_v58 = vpop.permute.xlu2 %4019  ;;  %v11264_v62 = vpop.permute.xlu0 %4007  ;;  %4610 = vmatmul.f32.gmra.mxu0 %v4314_v50  ;;  %v3544_v50 = vld [vmem:[#allocation2 + $0x142] sm:$0xff] }
 0x484   :  { %3388 = vst.msk [vmem:[#allocation2 + $0x169] sm:$0xff] %vm3346_vm1, %v3290_v20  ;;  %v11273_v39 = vpop.permute.xlu1 %4011  ;;  %v3436_v11 = vld [vmem:[#allocation2 + $0x48] sm:$0xff] }
 0x485   :  { %3386 = vst.msk [vmem:[#allocation2 + $0x151] sm:$0xff] %vm3346_vm1, %v3288_v63 }
 0x489   :  { %2846 = vperm.xlu2 %8120, %v2572_v55   ;;  %8207 = vrot.lane.b32.xlu0 %v11086_v57, %s8462_s12  ;;  %v4315_v57 = vsel %vm4307_vm4, %v4234_v16, %v11195_v53  ;;  %v8216_v55 = vpack.i.bf16 %v3288_v63, %v3287_v22  ;;  %v8149_v63 = vunpack.i.l.bf16 %v11243_v48 }
 0x48a   :  { %8212 = vrot.lane.b32.xlu1 %v8211_v14, %s8462_s12  ;;  %7947 = vmatmul.msk.f32.gmra.mxu1 %vm4411_vm3, %v11195_v53  ;;  %v4235_v53 = vsel %vm3346_vm1, %v3435_v24, %v8144_v15  ;;  %v3437_v14 = vld [vmem:[#allocation2 + $0x58] sm:$0xff] }
 0x48b   :  { %v2817_v40 = vpop.permute.xlu2 %2816  ;;  %v2807_v56 = vpop.permute.xlu0 %2806  ;;  %4613 = vmatmul.f32.gmra.mxu0 %v4315_v57  ;;  %v4316_v25 = vsel %vm4307_vm4, %v4235_v53, %v11155_v31  ;;  %v4237_v36 = vsel %vm3346_vm1, %v3437_v14, %v8149_v63  ;;  %v14532_v57 = vld [vmem:[#allocation161_spill] sm:$0xff] }
 0x48c   :  { %v3047_v29 = vmul.f32 %v10281_v54, %v2817_v40  ;;  %v3045_v59 = vmul.f32 %v10281_v54, %v2807_v56  ;;  %v11308_v1 = vpop.permute.xlu1 %4015  ;;  %v3545_v41 = vld [vmem:[#allocation2 + $0x14a] sm:$0xff]  ;;  %v3546_v4 = vld [vmem:[#allocation2 + $0x152] sm:$0xff]  ;;  %v4318_v17 = vsel %vm4307_vm4, %v4237_v36, %v11264_v62  ;;  %v8150_v56 = vunpack.i.h.bf16 %v11243_v48 }
 0x48d   :  { %v1766_v15 = vmul.f32 %v10250_v42, %v14532_v57 }
 0x48e   :  { %v3127_v61 = vadd.f32 %v3047_v29, %v2486_v12  ;;  %v3125_v35 = vadd.f32 %v3045_v59, %v2484_v32  ;;  %v14530_v32 = vld [vmem:[#allocation101_spill] sm:$0xff]  ;;  %v2595_v12 = vld [vmem:[%s14104_s0 + $0x274] sm:$0xff]  ;;  %v14531_v29 = vld [vmem:[#allocation28_spill] sm:$0xff] }
 0x48f   :  { %v1125_v40 = vmul.f32 %v10234_v21, %v14530_v32  ;;  %v564_v59 = vmul.f32 %v10240_v18, %v14531_v29 }
 0x490   :  { %v11317_v37 = vadd.f32 %v11025_v51, %v3127_v61  ;;  %v11320_v60 = vadd.f32 %v11025_v51, %v3125_v35  ;;  %v3438_v35 = vld [vmem:[#allocation2 + $0x60] sm:$0xff] }
 0x491   :  { %4061 = vrot.lane.b32.xlu2 %v3544_v50, %s8463_s15  ;;  %4059 = vrot.lane.b32.xlu0 %v3543_v45, %s8463_s15  ;;  %v4238_v45 = vsel %vm3346_vm1, %v3438_v35, %v8150_v56 }
 0x492   :  { %v3291_v6 = vmax.f32 %v11317_v37, 0.0  ;;  %v3289_v7 = vmax.f32 %v11320_v60, 0.0  ;;  %2851 = vperm.xlu1 %8119, %v2573_v23   ;;  %7948 = vmatmul.msk.f32.gmra.mxu1 %vm4411_vm3, %v11155_v31  ;;  %v4236_v31 = vsel %vm3346_vm1, %v3436_v11, %v8145_v38  ;;  %v1205_v23 = vadd.f32 %v1125_v40, %v564_v59  ;;  %v2596_v11 = vld [vmem:[%s14104_s0 + $0x27c] sm:$0xff]  ;;  %v14535_v40 = vld [vmem:[#allocation18_spill] sm:$0xff] }
 0x493   :  { %v11327_v34 = vpop.permute.xlu2 %4025  ;;  %v11329_v43 = vpop.permute.xlu0 %4013  ;;  %4616 = vmatmul.f32.gmra.mxu0 %v4316_v25  ;;  %v4317_v22 = vsel %vm4307_vm4, %v4236_v31, %v11177_v3  ;;  %v8154_v31 = vunpack.i.l.bf16 %v11210_v19  ;;  %v565_v56 = vmul.f32 %v10240_v18, %v14535_v40  ;;  %v8155_v59 = vunpack.i.h.bf16 %v11210_v19  ;;  %v3440_v37 = vld [vmem:[#allocation2 + $0x70] sm:$0xff] }
 0x494   :  { %3389 = vst.msk [vmem:[#allocation2 + $0x171] sm:$0xff] %vm3346_vm1, %v3291_v6  ;;  %v11336_v33 = vpop.permute.xlu1 %4017  ;;  %v1846_v24 = vadd.f32 %v1766_v15, %v1205_v23  ;;  %v14537_v15 = vld [vmem:[#allocation235_spill] sm:$0xff] }
 0x495   :  { %3387 = vst.msk [vmem:[#allocation2 + $0x161] sm:$0xff] %vm3346_vm1, %v3289_v7 }
 0x499   :  { %8217 = vrot.lane.b32.xlu2 %v8216_v55, %s8462_s12  ;;  %4063 = vrot.lane.b32.xlu0 %v3545_v41, %s8463_s15  ;;  %v4319_v55 = vsel %vm4307_vm4, %v4238_v45, %v11191_v49 }
 0x49a   :  { %2951 = vperm.xlu1 %8119, %v2593_v28   ;;  %7949 = vmatmul.msk.f32.gmra.mxu1 %vm4411_vm3, %v11177_v3 }
 0x49b   :  { %v11354_v10 = vpop.permute.xlu2 %8172  ;;  %v11356_v0 = vpop.permute.xlu0 %8157  ;;  %4619 = vmatmul.f32.gmra.mxu0 %v4317_v22  ;;  %v3548_v48 = vld [vmem:[#allocation2 + $0x16a] sm:$0xff] }
 0x49c   :  { %v11360_v27 = vpop.permute.xlu1 %4021  ;;  %v3547_v61 = vld [vmem:[#allocation2 + $0x162] sm:$0xff] }
 0x4a1   :  { %4065 = vrot.lane.b32.xlu2 %v3546_v4, %s8463_s15  ;;  %2946 = vperm.xlu0 %8118, %v2592_v30   ;;  %v8221_v30 = vpack.i.bf16 %v3290_v20, %v3289_v7  ;;  %v14534_v7 = vld [vmem:[#allocation100_spill] sm:$0xff] }
 0x4a2   :  { %2956 = vperm.xlu1 %8119, %v2594_v5   ;;  %7950 = vmatmul.msk.f32.gmra.mxu1 %vm4411_vm3, %v11264_v62  ;;  %v14533_v62 = vld [vmem:[#allocation245_spill] sm:$0xff] }
 0x4a3   :  { %v11372_v44 = vpop.permute.xlu2 %8177  ;;  %v11374_v3 = vpop.permute.xlu0 %8162  ;;  %4622 = vmatmul.f32.gmra.mxu0 %v4318_v17  ;;  %v2407_v50 = vmul.f32 %v10264_v26, %v14533_v62  ;;  %v3439_v5 = vld [vmem:[#allocation2 + $0x68] sm:$0xff]  ;;  %v1126_v17 = vmul.f32 %v10234_v21, %v14534_v7  ;;  %v4240_v62 = vsel %vm3346_vm1, %v3440_v37, %v8155_v59 }
 0x4a4   :  { %v11379_v16 = vpop.permute.xlu1 %8167  ;;  %v4239_v60 = vsel %vm3346_vm1, %v3439_v5, %v8154_v31  ;;  %v8164_v37 = vunpack.i.l.bf16 %v11374_v3 }
 0x4a5   :  { %v2487_v28 = vadd.f32 %v2407_v50, %v1846_v24  ;;  %v4320_v20 = vsel %vm4307_vm4, %v4239_v60, %v11273_v39  ;;  %v1206_v57 = vadd.f32 %v1126_v17, %v565_v56  ;;  %v4321_v50 = vsel %vm4307_vm4, %v4240_v62, %v11329_v43  ;;  %v2599_v60 = vld [vmem:[%s14104_s0 + $0x294] sm:$0xff] }
 0x4a6   :  { %v8159_v24 = vunpack.i.l.bf16 %v11356_v0  ;;  %v14538_v17 = vld [vmem:[#allocation103_spill] sm:$0xff] }
 0x4a9   :  { %2961 = vperm.xlu2 %8120, %v2595_v12   ;;  %4067 = vrot.lane.b32.xlu0 %v3547_v61, %s8463_s15  ;;  %v14536_v12 = vld [vmem:[#allocation175_spill] sm:$0xff]  ;;  %v2408_v61 = vmul.f32 %v10264_v26, %v14537_v15  ;;  %v14541_v15 = vld [vmem:[#allocation178_spill] sm:$0xff] }
 0x4aa   :  { %4069 = vrot.lane.b32.xlu1 %v3548_v48, %s8463_s15  ;;  %7951 = vmatmul.msk.f32.gmra.mxu1 %vm4411_vm3, %v11191_v49  ;;  %v2597_v49 = vld [vmem:[%s14104_s0 + $0x284] sm:$0xff]  ;;  %v1767_v29 = vmul.f32 %v10250_v42, %v14536_v12 }
 0x4ab   :  { %v11398_v53 = vpop.permute.xlu2 %4035  ;;  %v11400_v25 = vpop.permute.xlu0 %4023  ;;  %4625 = vmatmul.f32.gmra.mxu0 %v4319_v55  ;;  %v2575_v55 = vld [vmem:[%s14104_s0 + $0x1c4] sm:$0xff] }
 0x4ac   :  { %v2822_v38 = vpop.permute.xlu1 %2821 }
 0x4ad   :  { %v3048_v41 = vmul.f32 %v10281_v54, %v2822_v38 }
 0x4af   :  { %v3128_v22 = vadd.f32 %v3048_v41, %v2487_v28  ;;  %v2598_v41 = vld [vmem:[%s14104_s0 + $0x28c] sm:$0xff] }
 0x4b1   :  { %v3212_v63 = vadd.f32 %v11025_v51, %v3128_v22  ;;  %2966 = vperm.xlu2 %8120, %v2596_v11   ;;  %8222 = vrot.lane.b32.xlu0 %v8221_v30, %s8462_s12  ;;  %v3441_v11 = vld [vmem:[#allocation2 + $0x78] sm:$0xff] }
 0x4b2   :  { %2971 = vperm.xlu1 %8119, %v2597_v49   ;;  %7952 = vmatmul.msk.f32.gmra.mxu1 %vm4411_vm3, %v11273_v39  ;;  %v2574_v39 = vld [vmem:[%s14104_s0 + $0x1bc] sm:$0xff]  ;;  %v4241_v31 = vsel %vm3346_vm1, %v3441_v11, %v8159_v24  ;;  %v3443_v11 = vld [vmem:[#allocation2 + $0x88] sm:$0xff] }
 0x4b3   :  { %v3292_v4 = vmax.f32 %v3212_v63, 0.0  ;;  %v11420_v14 = vpop.permute.xlu2 %4039  ;;  %v11422_v36 = vpop.permute.xlu0 %4027  ;;  %4628 = vmatmul.f32.gmra.mxu0 %v4320_v20  ;;  %v4322_v5 = vsel %vm4307_vm4, %v4241_v31, %v11308_v1  ;;  %v3442_v20 = vld [vmem:[#allocation2 + $0x80] sm:$0xff] }
 0x4b4   :  { %v11427_v47 = vpop.permute.xlu1 %4031  ;;  %v11517_v24 = vld [vmem:[%s14108_s4] ss:$0 sm:$0xff] }
 0x4b5   :  { %3390 = vst.msk [vmem:[#allocation2 + $0x179] sm:$0xff] %vm3346_vm1, %v3292_v4  ;;  %v8226_v32 = vpack.i.bf16 %v3292_v4, %v3291_v6  ;;  %v1847_v6 = vadd.f32 %v1767_v29, %v1206_v57  ;;  %v8160_v4 = vunpack.i.h.bf16 %v11356_v0  ;;  %v14539_v0 = vld [vmem:[#allocation90_spill] sm:$0xff] }
 0x4b6   :  { %v1127_v56 = vmul.f32 %v10234_v21, %v14539_v0 }
 0x4b7   :  { %v2488_v45 = vadd.f32 %v2408_v61, %v1847_v6  ;;  %v4242_v7 = vsel %vm3346_vm1, %v3442_v20, %v8160_v4  ;;  %v1770_v61 = vmul.f32 %v10250_v42, %v14541_v15  ;;  %v14542_v6 = vld [vmem:[#allocation32_spill] sm:$0xff]  ;;  %v4243_v4 = vsel %vm3346_vm1, %v3443_v11, %v8164_v37 }
 0x4b8   :  { %v4323_v29 = vsel %vm4307_vm4, %v4242_v7, %v11336_v33  ;;  %v566_v62 = vmul.f32 %v10240_v18, %v14542_v6  ;;  %v2591_v7 = vld [vmem:[%s14104_s0 + $0x24c] sm:$0xff]  ;;  %v4324_v15 = vsel %vm4307_vm4, %v4243_v4, %v11262_v58 }
 0x4b9   :  { %8227 = vrot.lane.b32.xlu2 %v8226_v32, %s8462_s12  ;;  %v1129_v32 = vmul.f32 %v10234_v21, %v14538_v17  ;;  %v14547_v4 = vld [vmem:[#allocation93_spill] sm:$0xff] }
 0x4ba   :  { %2856 = vperm.xlu1 %8119, %v2574_v39   ;;  %7953 = vmatmul.msk.f32.gmra.mxu1 %vm4411_vm3, %v11329_v43  ;;  %v14540_v39 = vld [vmem:[#allocation21_spill] sm:$0xff] }
 0x4bb   :  { %v11447_v35 = vpop.permute.xlu2 %4041  ;;  %v11449_v23 = vpop.permute.xlu0 %4029  ;;  %4631 = vmatmul.f32.gmra.mxu0 %v4321_v50  ;;  %v568_v57 = vmul.f32 %v10240_v18, %v14540_v39 }
 0x4bc   :  { %v2827_v19 = vpop.permute.xlu1 %2826  ;;  %v3549_v48 = vld [vmem:[#allocation2 + $0x172] sm:$0xff] }
 0x4bd   :  { %v3049_v38 = vmul.f32 %v10281_v54, %v2827_v19  ;;  %4071 = vrot.lane.b32.xlu0 %v3549_v48, %s8463_s15  ;;  %v14543_v19 = vld [vmem:[#allocation174_spill] sm:$0xff]  ;;  %v1209_v48 = vadd.f32 %v1129_v32, %v568_v57 }
 0x4be   :  { %v1768_v50 = vmul.f32 %v10250_v42, %v14543_v19 }
 0x4bf   :  { %v3129_v28 = vadd.f32 %v3049_v38, %v2488_v45  ;;  %v2577_v38 = vld [vmem:[%s14104_s0 + $0x1d4] sm:$0xff]  ;;  %v1850_v31 = vadd.f32 %v1770_v61, %v1209_v48  ;;  %v8165_v61 = vunpack.i.h.bf16 %v11374_v3 }
 0x4c1   :  { %v11466_v43 = vadd.f32 %v11025_v51, %v3129_v28  ;;  %2861 = vperm.xlu2 %8120, %v2575_v55   ;;  %v1207_v55 = vadd.f32 %v1127_v56, %v566_v62  ;;  %v14545_v28 = vld [vmem:[#allocation249_spill] sm:$0xff] }
 0x4c2   :  { %2976 = vperm.xlu1 %8119, %v2598_v41   ;;  %7954 = vmatmul.msk.f32.gmra.mxu1 %vm4411_vm3, %v11308_v1  ;;  %v2409_v41 = vmul.f32 %v10264_v26, %v14545_v28  ;;  %v2576_v28 = vld [vmem:[%s14104_s0 + $0x1cc] sm:$0xff] }
 0x4c3   :  { %v14127_v22 = vmax.f32 %v11466_v43, 0.0  ;;  %v11470_v30 = vpop.permute.xlu2 %4045  ;;  %v11472_v49 = vpop.permute.xlu0 %4033  ;;  %4634 = vmatmul.f32.gmra.mxu0 %v4322_v5 }
 0x4c4   :  { %v11476_v63 = vpop.permute.xlu1 %4037 }
 0x4c5   :  { %3391 = vst.msk [vmem:[#allocation2 + $0x181] sm:$0xff] %vm3346_vm1, %v14127_v22 }
 0x4ca   :  { %2981 = vperm.xlu1 %8119, %v2599_v60   ;;  %7955 = vmatmul.msk.f32.gmra.mxu1 %vm4411_vm3, %v11336_v33  ;;  %v14544_v33 = vld [vmem:[#allocation238_spill] sm:$0xff]  ;;  %v1848_v60 = vadd.f32 %v1768_v50, %v1207_v55 }
 0x4cb   :  { %v11490_v40 = vpop.permute.xlu2 %8197  ;;  %v11492_v1 = vpop.permute.xlu0 %8182  ;;  %4637 = vmatmul.f32.gmra.mxu0 %v4323_v29  ;;  %v2411_v45 = vmul.f32 %v10264_v26, %v14544_v33  ;;  %v3444_v33 = vld [vmem:[#allocation2 + $0x90] sm:$0xff] }
 0x4cc   :  { %v11498_v12 = vpop.permute.xlu1 %8187  ;;  %v3550_v59 = vld [vmem:[#allocation2 + $0x17a] sm:$0xff]  ;;  %v2489_v29 = vadd.f32 %v2409_v41, %v1848_v60  ;;  %v1130_v60 = vmul.f32 %v10234_v21, %v14547_v4 }
 0x4cd   :  { %4073 = vrot.lane.b32.xlu0 %v3550_v59, %s8463_s15  ;;  %v2491_v17 = vadd.f32 %v2411_v45, %v1850_v31  ;;  %v14546_v41 = vld [vmem:[#allocation104_spill] sm:$0xff]  ;;  %v3445_v4 = vld [vmem:[#allocation2 + $0x98] sm:$0xff] }
 0x4ce   :  { %v1128_v11 = vmul.f32 %v10234_v21, %v14546_v41 }
 0x4cf   :  { %v4850_v5 = vpop.f32.mrf.mxu1 }
 0x4d0   :  { %v4593_v20 = vpop.f32.mrf.mxu0 }
 0x4d1   :  { %v4594_v32 = vadd.f32 %v11517_v24, %v4593_v20 }
 0x4d2   :  { %2871 = vperm.xlu1 %8119, %v2577_v38   ;;  %7956 = vmatmul.msk.f32.gmra.mxu1 %vm4411_vm3, %v11262_v58  ;;  %v4244_v58 = vsel %vm3346_vm1, %v3444_v33, %v8165_v61 }
 0x4d3   :  { %v2842_v0 = vpop.permute.xlu2 %2841  ;;  %v2832_v56 = vpop.permute.xlu0 %2831  ;;  %v4851_v37 = vadd.f32 %v4850_v5, %v4594_v32  ;;  %4640 = vmatmul.f32.gmra.mxu0 %v4324_v15  ;;  %v14551_v15 = vld [vmem:[#allocation177_spill] sm:$0xff] }
 0x4d4   :  { %v3052_v59 = vmul.f32 %v10281_v54, %v2842_v0  ;;  %v3050_v39 = vmul.f32 %v10281_v54, %v2832_v56  ;;  %v11533_v57 = vpop.permute.xlu1 %8192  ;;  %v14549_v0 = vld [vmem:[#allocation164_spill] sm:$0xff]  ;;  %v1771_v61 = vmul.f32 %v10250_v42, %v14551_v15 }
 0x4d5   :  { %2941 = vperm.xlu0 %8118, %v2591_v7   ;;  %v5090_v19 = vmax.f32 %v4851_v37, 0.0  ;;  %v4325_v7 = vsel %vm4307_vm4, %v4244_v58, %v11360_v27  ;;  %v1769_v56 = vmul.f32 %v10250_v42, %v14549_v0  ;;  %v14552_v37 = vld [vmem:[#allocation248_spill] sm:$0xff] }
 0x4d6   :  { %v3132_v6 = vadd.f32 %v3052_v59, %v2491_v17  ;;  %v3130_v62 = vadd.f32 %v3050_v39, %v2489_v29  ;;  %v14548_v17 = vld [vmem:[#allocation31_spill] sm:$0xff]  ;;  %v14553_v58 = vld [vmem:[#allocation252_spill] sm:$0xff] }
 0x4d7   :  { %5170 = vst.msk [vmem:[#allocation3] sm:$0xff] %vm3346_vm1, %v5090_v19  ;;  %v4853_v45 = vpop.f32.mrf.mxu1  ;;  %v567_v32 = vmul.f32 %v10240_v18, %v14548_v17  ;;  %v14550_v59 = vld [vmem:[#allocation35_spill] sm:$0xff] }
 0x4d8   :  { %v11539_v50 = vadd.f32 %v11025_v51, %v3132_v6  ;;  %v11542_v48 = vadd.f32 %v11025_v51, %v3130_v62  ;;  %v4596_v55 = vpop.f32.mrf.mxu0  ;;  %v569_v39 = vmul.f32 %v10240_v18, %v14550_v59  ;;  %v2410_v6 = vmul.f32 %v10264_v26, %v14552_v37 }
 0x4d9   :  { %v4597_v51 = vadd.f32 %v11517_v24, %v4596_v55  ;;  %v8169_v62 = vunpack.i.l.bf16 %v11379_v16  ;;  %v2412_v55 = vmul.f32 %v10264_v26, %v14553_v58 }
 0x4da   :  { %v14125_v3 = vmax.f32 %v11539_v50, 0.0  ;;  %v14128_v38 = vmax.f32 %v11542_v48, 0.0  ;;  %7957 = vmatmul.msk.f32.gmra.mxu1 %vm4411_vm3, %v11360_v27  ;;  %v1208_v27 = vadd.f32 %v1128_v11, %v567_v32  ;;  %v1210_v33 = vadd.f32 %v1130_v60, %v569_v39 }
 0x4db   :  { %v11554_v31 = vpop.permute.xlu2 %4055  ;;  %v11556_v5 = vpop.permute.xlu0 %4043  ;;  %v4854_v29 = vadd.f32 %v4853_v45, %v4597_v51  ;;  %4643 = vmatmul.f32.gmra.mxu0 %v4325_v7  ;;  %v4245_v0 = vsel %vm3346_vm1, %v3445_v4, %v8169_v62 }
 0x4dc   :  { %3394 = vst.msk [vmem:[#allocation2 + $0x199] sm:$0xff] %vm3346_vm1, %v14125_v3  ;;  %v11565_v20 = vpop.permute.xlu1 %4047  ;;  %v1849_v45 = vadd.f32 %v1769_v56, %v1208_v27  ;;  %v1851_v41 = vadd.f32 %v1771_v61, %v1210_v33  ;;  %v4326_v15 = vsel %vm4307_vm4, %v4245_v0, %v11400_v25  ;;  %v8170_v61 = vunpack.i.h.bf16 %v11379_v16 }
 0x4dd   :  { %3392 = vst.msk [vmem:[#allocation2 + $0x189] sm:$0xff] %vm3346_vm1, %v14128_v38  ;;  %2866 = vperm.xlu0 %8118, %v2576_v28   ;;  %v5091_v19 = vmax.f32 %v4854_v29, 0.0  ;;  %v8174_v0 = vunpack.i.l.bf16 %v11354_v10  ;;  %v8179_v3 = vunpack.i.l.bf16 %v11372_v44 }
 0x4de   :  { %v2490_v7 = vadd.f32 %v2410_v6, %v1849_v45  ;;  %v2492_v59 = vadd.f32 %v2412_v55, %v1851_v41 }
 0x4df   :  { %5171 = vst.msk [vmem:[#allocation3 + $0x8] sm:$0xff] %vm3346_vm1, %v5091_v19  ;;  %v4856_v28 = vpop.f32.mrf.mxu1  ;;  %v11601_v19 = vld [vmem:[%s14106_s2] ss:$0 sm:$0xff] }
 0x4e0   :  { %v4599_v51 = vpop.f32.mrf.mxu0 }
 0x4e1   :  { %v4600_v11 = vadd.f32 %v11517_v24, %v4599_v51 }
 0x4e2   :  { %7958 = vmatmul.msk.f32.gmra.mxu1 %vm4411_vm3, %v11400_v25  ;;  %v3446_v25 = vld [vmem:[#allocation2 + $0xa0] sm:$0xff] }
 0x4e3   :  { %v2847_v17 = vpop.permute.xlu2 %2846  ;;  %v2837_v32 = vpop.permute.xlu0 %2836  ;;  %v4857_v27 = vadd.f32 %v4856_v28, %v4600_v11  ;;  %4646 = vmatmul.f32.gmra.mxu0 %v4326_v15  ;;  %v4246_v55 = vsel %vm3346_vm1, %v3446_v25, %v8170_v61 }
 0x4e4   :  { %v3053_v60 = vmul.f32 %v10281_v54, %v2847_v17  ;;  %v3051_v29 = vmul.f32 %v10281_v54, %v2837_v32  ;;  %v3551_v56 = vld [vmem:[#allocation2 + $0x182] sm:$0xff]  ;;  %v11592_v39 = vpop.permute.xlu1 %4051  ;;  %v4327_v17 = vsel %vm4307_vm4, %v4246_v55, %v11327_v34 }
 0x4e5   :  { %4075 = vrot.lane.b32.xlu2 %v3551_v56, %s8463_s15  ;;  %v5092_v62 = vmax.f32 %v4857_v27, 0.0  ;;  %v3447_v56 = vld [vmem:[#allocation2 + $0xb0] sm:$0xff] }
 0x4e6   :  { %v3133_v37 = vadd.f32 %v3053_v60, %v2492_v59  ;;  %v3131_v6 = vadd.f32 %v3051_v29, %v2490_v7 }
 0x4e7   :  { %5172 = vst.msk [vmem:[#allocation3 + $0x10] sm:$0xff] %vm3346_vm1, %v5092_v62  ;;  %v4859_v16 = vpop.f32.mrf.mxu1 }
 0x4e8   :  { %v11604_v33 = vadd.f32 %v11601_v19, %v3133_v37  ;;  %v11607_v58 = vadd.f32 %v11601_v19, %v3131_v6  ;;  %v4602_v41 = vpop.f32.mrf.mxu0 }
 0x4e9   :  { %v4603_v51 = vadd.f32 %v11517_v24, %v4602_v41 }
 0x4ea   :  { %v14124_v45 = vmax.f32 %v11604_v33, 0.0  ;;  %v14126_v28 = vmax.f32 %v11607_v58, 0.0  ;;  %7959 = vmatmul.msk.f32.gmra.mxu1 %vm4411_vm3, %v11327_v34  ;;  %v4247_v34 = vsel %vm3346_vm1, %v3447_v56, %v8174_v0 }
 0x4eb   :  { %v11614_v4 = vpop.permute.xlu2 %4061  ;;  %v11616_v7 = vpop.permute.xlu0 %4049  ;;  %v4860_v32 = vadd.f32 %v4859_v16, %v4603_v51  ;;  %4649 = vmatmul.f32.gmra.mxu0 %v4327_v17  ;;  %v4328_v62 = vsel %vm4307_vm4, %v4247_v34, %v11422_v36  ;;  %v8175_v16 = vunpack.i.h.bf16 %v11354_v10  ;;  %v3448_v17 = vld [vmem:[#allocation2 + $0xb8] sm:$0xff] }
 0x4ec   :  { %3395 = vst.msk [vmem:[#allocation2 + $0x1a1] sm:$0xff] %vm3346_vm1, %v14124_v45  ;;  %v11623_v11 = vpop.permute.xlu1 %4053 }
 0x4ed   :  { %3393 = vst.msk [vmem:[#allocation2 + $0x191] sm:$0xff] %vm3346_vm1, %v14126_v28  ;;  %v5093_v59 = vmax.f32 %v4860_v32, 0.0  ;;  %v14562_v28 = vld [vmem:[#allocation262_spill] sm:$0xff] }
 0x4ef   :  { %5173 = vst.msk [vmem:[#allocation3 + $0x18] sm:$0xff] %vm3346_vm1, %v5093_v59  ;;  %v4862_v60 = vpop.f32.mrf.mxu1 }
 0x4f0   :  { %v4605_v29 = vpop.f32.mrf.mxu0 }
 0x4f1   :  { %v4606_v15 = vadd.f32 %v11517_v24, %v4605_v29 }
 0x4f2   :  { %7960 = vmatmul.msk.f32.gmra.mxu1 %vm4411_vm3, %v11422_v36  ;;  %v4248_v36 = vsel %vm3346_vm1, %v3448_v17, %v8175_v16  ;;  %v14559_v16 = vld [vmem:[#allocation201_spill] sm:$0xff] }
 0x4f3   :  { %v11633_v61 = vpop.permute.xlu2 %8217  ;;  %v11635_v27 = vpop.permute.xlu0 %8202  ;;  %v4863_v25 = vadd.f32 %v4862_v60, %v4606_v15  ;;  %4652 = vmatmul.f32.gmra.mxu0 %v4328_v62  ;;  %v14556_v60 = vld [vmem:[#allocation126_spill] sm:$0xff]  ;;  %v4329_v56 = vsel %vm4307_vm4, %v4248_v36, %v11449_v23  ;;  %v14557_v15 = vld [vmem:[#allocation107_spill] sm:$0xff]  ;;  %v14558_v62 = vld [vmem:[#allocation45_spill] sm:$0xff] }
 0x4f4   :  { %14554 = vst [vmem:[#allocation14_spill] sm:$0xff] %v11633_v61  ;;  %v3552_v37 = vld [vmem:[#allocation2 + $0x18a] sm:$0xff]  ;;  %v11640_v6 = vpop.permute.xlu1 %4057  ;;  %v1153_v29 = vmul.f32 %v10234_v21, %v14556_v60  ;;  %v1131_v34 = vmul.f32 %v10234_v21, %v14557_v15  ;;  %v14561_v60 = vld [vmem:[#allocation167_spill] sm:$0xff] }
 0x4f5   :  { %4077 = vrot.lane.b32.xlu0 %v3552_v37, %s8463_s15  ;;  %v5094_v55 = vmax.f32 %v4863_v25, 0.0  ;;  %v592_v25 = vmul.f32 %v10240_v18, %v14558_v62  ;;  %v1772_v45 = vmul.f32 %v10250_v42, %v14561_v60 }
 0x4f7   :  { %5174 = vst.msk [vmem:[#allocation3 + $0x20] sm:$0xff] %vm3346_vm1, %v5094_v55  ;;  %v4865_v41 = vpop.f32.mrf.mxu1  ;;  %v1794_v55 = vmul.f32 %v10250_v42, %v14559_v16  ;;  %v1233_v36 = vadd.f32 %v1153_v29, %v592_v25 }
 0x4f8   :  { %v4608_v51 = vpop.f32.mrf.mxu0 }
 0x4f9   :  { %v4609_v32 = vadd.f32 %v11517_v24, %v4608_v51  ;;  %v14560_v51 = vld [vmem:[#allocation34_spill] sm:$0xff]  ;;  %v1874_v16 = vadd.f32 %v1794_v55, %v1233_v36 }
 0x4fa   :  { %7961 = vmatmul.msk.f32.gmra.mxu1 %vm4411_vm3, %v11449_v23  ;;  %v570_v17 = vmul.f32 %v10240_v18, %v14560_v51  ;;  %v3449_v51 = vld [vmem:[#allocation2 + $0xc0] sm:$0xff] }
 0x4fb   :  { %v11648_v0 = vpop.permute.xlu2 %4065  ;;  %v11650_v59 = vpop.permute.xlu0 %8207  ;;  %v4866_v37 = vadd.f32 %v4865_v41, %v4609_v32  ;;  %4655 = vmatmul.f32.gmra.mxu0 %v4329_v56  ;;  %v2435_v41 = vmul.f32 %v10264_v26, %v14562_v28  ;;  %v14563_v56 = vld [vmem:[#allocation251_spill] sm:$0xff]  ;;  %v4249_v29 = vsel %vm3346_vm1, %v3449_v51, %v8179_v3 }
 0x4fc   :  { %14555 = vst [vmem:[#allocation62_spill] sm:$0xff] %v11648_v0  ;;  %v11657_v10 = vpop.permute.xlu1 %8212  ;;  %v1211_v32 = vadd.f32 %v1131_v34, %v570_v17  ;;  %v2413_v15 = vmul.f32 %v10264_v26, %v14563_v56  ;;  %v14565_v17 = vld [vmem:[#allocation114_spill] sm:$0xff]  ;;  %v14567_v56 = vld [vmem:[#allocation57_spill] sm:$0xff] }
 0x4fd   :  { %v5095_v23 = vmax.f32 %v4866_v37, 0.0  ;;  %v14564_v37 = vld [vmem:[#allocation117_spill] sm:$0xff]  ;;  %v2515_v34 = vadd.f32 %v2435_v41, %v1874_v16  ;;  %v14568_v16 = vld [vmem:[#allocation200_spill] sm:$0xff]  ;;  %v14569_v0 = vld [vmem:[#allocation198_spill] sm:$0xff] }
 0x4fe   :  { %v1852_v38 = vadd.f32 %v1772_v45, %v1211_v32  ;;  %v1154_v28 = vmul.f32 %v10234_v21, %v14564_v37  ;;  %v4330_v45 = vsel %vm4307_vm4, %v4249_v29, %v11427_v47  ;;  %v14566_v32 = vld [vmem:[#allocation55_spill] sm:$0xff]  ;;  %v1795_v51 = vmul.f32 %v10250_v42, %v14568_v16  ;;  %v3450_v16 = vld [vmem:[#allocation2 + $0xc8] sm:$0xff] }
 0x4ff   :  { %5175 = vst.msk [vmem:[#allocation3 + $0x28] sm:$0xff] %vm3346_vm1, %v5095_v23  ;;  %v4868_v62 = vpop.f32.mrf.mxu1  ;;  %v590_v41 = vmul.f32 %v10240_v18, %v14566_v32  ;;  %v8180_v29 = vunpack.i.h.bf16 %v11372_v44 }
 0x500   :  { %v4611_v22 = vpop.f32.mrf.mxu0  ;;  %v2493_v23 = vadd.f32 %v2413_v15, %v1852_v38 }
 0x501   :  { %v4612_v60 = vadd.f32 %v11517_v24, %v4611_v22  ;;  %v1151_v22 = vmul.f32 %v10234_v21, %v14565_v17 }
 0x502   :  { %7962 = vmatmul.msk.f32.gmra.mxu1 %vm4411_vm3, %v11427_v47  ;;  %v1792_v47 = vmul.f32 %v10250_v42, %v14569_v0 }
 0x503   :  { %v2962_v9 = vpop.permute.xlu2 %2961  ;;  %v11678_v46 = vpop.permute.xlu0 %4059  ;;  %v4869_v36 = vadd.f32 %v4868_v62, %v4612_v60  ;;  %4658 = vmatmul.f32.gmra.mxu0 %v4330_v45  ;;  %v14570_v62 = vld [vmem:[#allocation42_spill] sm:$0xff]  ;;  %v2436_v45 = vmul.f32 %v10264_v26, %v10334_v2  ;;  %v1231_v32 = vadd.f32 %v1151_v22, %v590_v41  ;;  %v14574_v2 = vld [vmem:[#allocation199_spill] sm:$0xff] }
 0x504   :  { %v3076_v25 = vmul.f32 %v10281_v54, %v2962_v9  ;;  %v2852_v55 = vpop.permute.xlu1 %2851  ;;  %v593_v9 = vmul.f32 %v10240_v18, %v14567_v56  ;;  %v589_v60 = vmul.f32 %v10240_v18, %v14570_v62  ;;  %v14571_v56 = vld [vmem:[#allocation124_spill] sm:$0xff] }
 0x505   :  { %v3054_v3 = vmul.f32 %v10281_v54, %v2852_v55  ;;  %v5096_v38 = vmax.f32 %v4869_v36, 0.0 }
 0x506   :  { %v3156_v37 = vadd.f32 %v3076_v25, %v2515_v34  ;;  %v1234_v55 = vadd.f32 %v1154_v28, %v593_v9  ;;  %v1150_v34 = vmul.f32 %v10234_v21, %v14571_v56  ;;  %v14572_v25 = vld [vmem:[#allocation272_spill] sm:$0xff]  ;;  %v14573_v28 = vld [vmem:[#allocation127_spill] sm:$0xff] }
 0x507   :  { %v3134_v15 = vadd.f32 %v3054_v3, %v2493_v23  ;;  %v2433_v0 = vmul.f32 %v10264_v26, %v14572_v25  ;;  %5176 = vst.msk [vmem:[#allocation3 + $0x30] sm:$0xff] %vm3346_vm1, %v5096_v38  ;;  %v4871_v23 = vpop.f32.mrf.mxu1  ;;  %v1152_v36 = vmul.f32 %v10234_v21, %v14573_v28  ;;  %v1791_v3 = vmul.f32 %v10250_v42, %v14574_v2  ;;  %v14576_v2 = vld [vmem:[#allocation54_spill] sm:$0xff] }
 0x508   :  { %v11705_v17 = vadd.f32 %v11601_v19, %v3156_v37  ;;  %v1875_v9 = vadd.f32 %v1795_v51, %v1234_v55  ;;  %v4614_v41 = vpop.f32.mrf.mxu0  ;;  %v1872_v37 = vadd.f32 %v1792_v47, %v1231_v32  ;;  %v4250_v25 = vsel %vm3346_vm1, %v3450_v16, %v8180_v29 }
 0x509   :  { %v11713_v44 = vadd.f32 %v11601_v19, %v3134_v15  ;;  %v4615_v38 = vadd.f32 %v11517_v24, %v4614_v41  ;;  %v4331_v55 = vsel %vm4307_vm4, %v4250_v25, %v11472_v49  ;;  %v8184_v28 = vunpack.i.l.bf16 %v11492_v1  ;;  %v14577_v41 = vld [vmem:[#allocation188_spill] sm:$0xff] }
 0x50a   :  { %v14131_v22 = vmax.f32 %v11705_v17, 0.0  ;;  %v2516_v61 = vadd.f32 %v2436_v45, %v1875_v9  ;;  %7963 = vmatmul.msk.f32.gmra.mxu1 %vm4411_vm3, %v11472_v49  ;;  %v2513_v32 = vadd.f32 %v2433_v0, %v1872_v37  ;;  %v591_v9 = vmul.f32 %v10240_v18, %v14576_v2  ;;  %v14578_v49 = vld [vmem:[#allocation259_spill] sm:$0xff] }
 0x50b   :  { %v3298_v62 = vmax.f32 %v11713_v44, 0.0  ;;  %v2967_v56 = vpop.permute.xlu2 %2966  ;;  %v11722_v15 = vpop.permute.xlu0 %4063  ;;  %v4872_v29 = vadd.f32 %v4871_v23, %v4615_v38  ;;  %4661 = vmatmul.f32.gmra.mxu0 %v4331_v55  ;;  %v1793_v16 = vmul.f32 %v10250_v42, %v14577_v41  ;;  %v2432_v0 = vmul.f32 %v10264_v26, %v14578_v49 }
 0x50c   :  { %14575 = vst [vmem:[#allocation138_spill] sm:$0xff] %v11722_v15  ;;  %v3077_v51 = vmul.f32 %v10281_v54, %v2967_v56  ;;  %v2952_v47 = vpop.permute.xlu1 %2951  ;;  %v1232_v15 = vadd.f32 %v1152_v36, %v591_v9  ;;  %v2434_v23 = vmul.f32 %v10264_v26, %v14579_v52  ;;  %v14582_v9 = vld [vmem:[#allocation180_spill] sm:$0xff] }
 0x50d   :  { %3418 = vst.msk [vmem:[#allocation2 + $0x271] sm:$0xff] %vm3346_vm1, %v14131_v22  ;;  %v3074_v45 = vmul.f32 %v10281_v54, %v2952_v47  ;;  %v1230_v22 = vadd.f32 %v1150_v34, %v589_v60  ;;  %v5097_v37 = vmax.f32 %v4872_v29, 0.0  ;;  %v3451_v47 = vld [vmem:[#allocation2 + $0xd0] sm:$0xff] }
 0x50e   :  { %3396 = vst.msk [vmem:[#allocation2 + $0x1a9] sm:$0xff] %vm3346_vm1, %v3298_v62  ;;  %v3157_v56 = vadd.f32 %v3077_v51, %v2516_v61  ;;  %v4251_v60 = vsel %vm3346_vm1, %v3451_v47, %v8184_v28  ;;  %v14580_v34 = vld [vmem:[#allocation38_spill] sm:$0xff]  ;;  %v1873_v29 = vadd.f32 %v1793_v16, %v1232_v15 }
 0x50f   :  { %v3154_v25 = vadd.f32 %v3074_v45, %v2513_v32  ;;  %v1871_v55 = vadd.f32 %v1791_v3, %v1230_v22  ;;  %5177 = vst.msk [vmem:[#allocation3 + $0x38] sm:$0xff] %vm3346_vm1, %v5097_v37  ;;  %v4874_v61 = vpop.f32.mrf.mxu1  ;;  %v572_v51 = vmul.f32 %v10240_v18, %v14580_v34  ;;  %v14581_v32 = vld [vmem:[#allocation96_spill] sm:$0xff]  ;;  %v1774_v3 = vmul.f32 %v10250_v42, %v14582_v9 }
 0x510   :  { %v11747_v38 = vadd.f32 %v11601_v19, %v3157_v56  ;;  %v1133_v36 = vmul.f32 %v10234_v21, %v14581_v32  ;;  %v4617_v45 = vpop.f32.mrf.mxu0  ;;  %v2514_v37 = vadd.f32 %v2434_v23, %v1873_v29  ;;  %v14584_v29 = vld [vmem:[#allocation255_spill] sm:$0xff] }
 0x511   :  { %v3238_v2 = vadd.f32 %v11601_v19, %v3154_v25  ;;  %v2512_v22 = vadd.f32 %v2432_v0, %v1871_v55  ;;  %v4618_v56 = vadd.f32 %v11517_v24, %v4617_v45  ;;  %v4332_v0 = vsel %vm4307_vm4, %v4251_v60, %v11398_v53 }
 0x512   :  { %v3321_v52 = vmax.f32 %v11747_v38, 0.0  ;;  %7964 = vmatmul.msk.f32.gmra.mxu1 %vm4411_vm3, %v11398_v53  ;;  %v8185_v25 = vunpack.i.h.bf16 %v11492_v1  ;;  %v14583_v55 = vmax.f32 %v11542_v48, 0.0  ;;  %v1213_v32 = vadd.f32 %v1133_v36, %v572_v51  ;;  %v3452_v1 = vld [vmem:[#allocation2 + $0xd8] sm:$0xff] }
 0x513   :  { %v3318_v41 = vmax.f32 %v3238_v2, 0.0  ;;  %v11760_v49 = vpop.permute.xlu2 %8227  ;;  %v2947_v28 = vpop.permute.xlu0 %2946  ;;  %v4875_v47 = vadd.f32 %v4874_v61, %v4618_v56  ;;  %4664 = vmatmul.f32.gmra.mxu0 %v4332_v0  ;;  %v2415_v45 = vmul.f32 %v10264_v26, %v14584_v29  ;;  %v8204_v38 = vunpack.i.l.bf16 %v11635_v27 }
 0x514   :  { %3419 = vst.msk [vmem:[#allocation2 + $0x279] sm:$0xff] %vm3346_vm1, %v3321_v52  ;;  %v3073_v15 = vmul.f32 %v10281_v54, %v2947_v28  ;;  %v2957_v16 = vpop.permute.xlu1 %2956  ;;  %v1854_v60 = vadd.f32 %v1774_v3, %v1213_v32 }
 0x515   :  { %3416 = vst.msk [vmem:[#allocation2 + $0x259] sm:$0xff] %vm3346_vm1, %v3318_v41  ;;  %v3075_v23 = vmul.f32 %v10281_v54, %v2957_v16  ;;  %v8236_v2 = vpack.i.bf16 %v3318_v41, %v14583_v55  ;;  %v5098_v9 = vmax.f32 %v4875_v47, 0.0  ;;  %v14586_v55 = vld [vmem:[#allocation130_spill] sm:$0xff] }
 0x516   :  { %v3153_v34 = vadd.f32 %v3073_v15, %v2512_v22  ;;  %v4252_v22 = vsel %vm3346_vm1, %v3452_v1, %v8185_v25  ;;  %v2495_v41 = vadd.f32 %v2415_v45, %v1854_v60  ;;  %v14585_v25 = vmax.f32 %v11466_v43, 0.0  ;;  %v14587_v43 = vld [vmem:[#allocation56_spill] sm:$0xff]  ;;  %v14588_v45 = vld [vmem:[#allocation191_spill] sm:$0xff] }
 0x517   :  { %v3155_v28 = vadd.f32 %v3075_v23, %v2514_v37  ;;  %8237 = vrot.lane.b32.xlu0 %v8236_v2, %s8462_s12  ;;  %5178 = vst.msk [vmem:[#allocation3 + $0x40] sm:$0xff] %vm3346_vm1, %v5098_v9  ;;  %v4877_v48 = vpop.f32.mrf.mxu1  ;;  %v4333_v0 = vsel %vm4307_vm4, %v4252_v22, %v11476_v63  ;;  %v2578_v23 = vld [vmem:[%s14104_s0 + $0x1dc] sm:$0xff]  ;;  %v1155_v2 = vmul.f32 %v10234_v21, %v14586_v55 }
 0x518   :  { %v3237_v53 = vadd.f32 %v11601_v19, %v3153_v34  ;;  %v4620_v36 = vpop.f32.mrf.mxu0  ;;  %v8189_v34 = vunpack.i.l.bf16 %v11498_v12  ;;  %v1796_v9 = vmul.f32 %v10250_v42, %v14588_v45  ;;  %v3453_v1 = vld [vmem:[#allocation2 + $0xe0] sm:$0xff] }
 0x519   :  { %v11781_v61 = vadd.f32 %v11601_v19, %v3155_v28  ;;  %v4621_v37 = vadd.f32 %v11517_v24, %v4620_v36 }
 0x51a   :  { %v3317_v51 = vmax.f32 %v3237_v53, 0.0  ;;  %7965 = vmatmul.msk.f32.gmra.mxu1 %vm4411_vm3, %v11476_v63  ;;  %v594_v63 = vmul.f32 %v10240_v18, %v14587_v43 }
 0x51b   :  { %v3319_v56 = vmax.f32 %v11781_v61, 0.0  ;;  %v2862_v15 = vpop.permute.xlu2 %2861  ;;  %v4878_v32 = vadd.f32 %v4877_v48, %v4621_v37  ;;  %4667 = vmatmul.f32.gmra.mxu0 %v4333_v0  ;;  %v2437_v48 = vmul.f32 %v10264_v26, %v10332_v8  ;;  %v2600_v0 = vld [vmem:[%s14104_s0 + $0x29c] sm:$0xff] }
 0x51c   :  { %3415 = vst.msk [vmem:[#allocation2 + $0x251] sm:$0xff] %vm3346_vm1, %v3317_v51  ;;  %v3056_v3 = vmul.f32 %v10281_v54, %v2862_v15  ;;  %v11790_v16 = vpop.permute.xlu1 %4069  ;;  %v8231_v47 = vpack.i.bf16 %v3317_v51, %v14585_v25  ;;  %v1235_v60 = vadd.f32 %v1155_v2, %v594_v63  ;;  %v4253_v51 = vsel %vm3346_vm1, %v3453_v1, %v8189_v34  ;;  %v14589_v25 = vld [vmem:[#allocation106_spill] sm:$0xff]  ;;  %v11833_v34 = vpop.permute.xlu0 %4067  ;;  %v3576_v43 = vld [vmem:[#allocation2 + $0x25a] sm:$0xff] }
 0x51d   :  { %3417 = vst.msk [vmem:[#allocation2 + $0x269] sm:$0xff] %vm3346_vm1, %v3319_v56  ;;  %v5099_v28 = vmax.f32 %v4878_v32, 0.0  ;;  %v8190_v2 = vunpack.i.h.bf16 %v11498_v12  ;;  %v14590_v63 = vld [vmem:[#allocation24_spill] sm:$0xff] }
 0x51e   :  { %v3136_v29 = vadd.f32 %v3056_v3, %v2495_v41  ;;  %8232 = vrot.lane.b32.xlu2 %v8231_v47, %s8462_s12  ;;  %v1876_v37 = vadd.f32 %v1796_v9, %v1235_v60  ;;  %v1132_v47 = vmul.f32 %v10234_v21, %v14589_v25  ;;  %v571_v45 = vmul.f32 %v10240_v18, %v14590_v63  ;;  %v14591_v9 = vld [vmem:[#allocation181_spill] sm:$0xff]  ;;  %v3553_v63 = vld [vmem:[#allocation2 + $0x192] sm:$0xff] }
 0x51f   :  { %2876 = vperm.xlu0 %8118, %v2578_v23   ;;  %5179 = vst.msk [vmem:[#allocation3 + $0x48] sm:$0xff] %vm3346_vm1, %v5099_v28  ;;  %v4880_v22 = vpop.f32.mrf.mxu1  ;;  %v4334_v23 = vsel %vm4307_vm4, %v4253_v51, %v11420_v14  ;;  %v1773_v28 = vmul.f32 %v10250_v42, %v14591_v9 }
 0x520   :  { %v11811_v53 = vadd.f32 %v11601_v19, %v3136_v29  ;;  %v4623_v41 = vpop.f32.mrf.mxu0  ;;  %v2517_v55 = vadd.f32 %v2437_v48, %v1876_v37  ;;  %v1212_v12 = vadd.f32 %v1132_v47, %v571_v45  ;;  %v14592_v48 = vld [vmem:[#allocation241_spill] sm:$0xff]  ;;  %v14594_v45 = vld [vmem:[#allocation48_spill] sm:$0xff] }
 0x521   :  { %v4624_v15 = vadd.f32 %v11517_v24, %v4623_v41  ;;  %v2601_v37 = vld [vmem:[%s14104_s0 + $0x2a4] sm:$0xff]  ;;  %v595_v9 = vmul.f32 %v10240_v18, %v14594_v45 }
 0x522   :  { %v3300_v36 = vmax.f32 %v11811_v53, 0.0  ;;  %7966 = vmatmul.msk.f32.gmra.mxu1 %vm4411_vm3, %v11420_v14  ;;  %v3454_v14 = vld [vmem:[#allocation2 + $0xe8] sm:$0xff]  ;;  %v8214_v53 = vunpack.i.l.bf16 %v11657_v10 }
 0x523   :  { %v3575_v3 = vld [vmem:[#allocation2 + $0x252] sm:$0xff]  ;;  %v4881_v32 = vadd.f32 %v4880_v22, %v4624_v15  ;;  %4670 = vmatmul.f32.gmra.mxu0 %v4334_v23  ;;  %v2414_v22 = vmul.f32 %v10264_v26, %v14592_v48  ;;  %v4254_v15 = vsel %vm3346_vm1, %v3454_v14, %v8190_v2 }
 0x524   :  { %3398 = vst.msk [vmem:[#allocation2 + $0x1c1] sm:$0xff] %vm3346_vm1, %v3300_v36  ;;  %4123 = vrot.lane.b32.xlu1 %v3575_v3, %s8463_s15  ;;  %v2972_v8 = vpop.permute.xlu1 %2971  ;;  %v11869_v14 = vpop.permute.xlu0 %8222 }
 0x525   :  { %v3078_v29 = vmul.f32 %v10281_v54, %v2972_v8  ;;  %v5100_v1 = vmax.f32 %v4881_v32, 0.0  ;;  %v14593_v8 = vld [vmem:[#allocation129_spill] sm:$0xff]  ;;  %v4335_v32 = vsel %vm4307_vm4, %v4254_v15, %v11447_v35 }
 0x526   :  { %2986 = vperm.xlu2 %8120, %v2600_v0   ;;  %v1853_v0 = vadd.f32 %v1773_v28, %v1212_v12  ;;  %v1156_v23 = vmul.f32 %v10234_v21, %v14593_v8  ;;  %v3577_v28 = vld [vmem:[#allocation2 + $0x26a] sm:$0xff] }
 0x527   :  { %v3158_v60 = vadd.f32 %v3078_v29, %v2517_v55  ;;  %4125 = vrot.lane.b32.xlu0 %v3576_v43, %s8463_s15  ;;  %5180 = vst.msk [vmem:[#allocation3 + $0x58] sm:$0xff] %vm3346_vm1, %v5100_v1  ;;  %v4883_v41 = vpop.f32.mrf.mxu1  ;;  %v14595_v1 = vld [vmem:[#allocation204_spill] sm:$0xff] }
 0x528   :  { %v4626_v3 = vpop.f32.mrf.mxu0  ;;  %v2494_v29 = vadd.f32 %v2414_v22, %v1853_v0  ;;  %v1236_v22 = vadd.f32 %v1156_v23, %v595_v9  ;;  %v14597_v23 = vld [vmem:[#allocation120_spill] sm:$0xff]  ;;  %v14598_v9 = vmax.f32 %v11607_v58, 0.0 }
 0x529   :  { %v11845_v51 = vadd.f32 %v11601_v19, %v3158_v60  ;;  %v4627_v47 = vadd.f32 %v11517_v24, %v4626_v3  ;;  %v1797_v60 = vmul.f32 %v10250_v42, %v14595_v1 }
 0x52a   :  { %7967 = vmatmul.msk.f32.gmra.mxu1 %vm4411_vm3, %v11447_v35  ;;  %v8194_v35 = vunpack.i.l.bf16 %v11533_v57 }
 0x52b   :  { %v3322_v25 = vmax.f32 %v11845_v51, 0.0  ;;  %v4884_v2 = vadd.f32 %v4883_v41, %v4627_v47  ;;  %4673 = vmatmul.f32.gmra.mxu0 %v4335_v32  ;;  %v14596_v41 = vld [vmem:[#allocation265_spill] sm:$0xff]  ;;  %v3455_v47 = vld [vmem:[#allocation2 + $0xf0] sm:$0xff]  ;;  %v1877_v8 = vadd.f32 %v1797_v60, %v1236_v22  ;;  %v8195_v60 = vunpack.i.h.bf16 %v11533_v57  ;;  %v14600_v22 = vld [vmem:[#allocation203_spill] sm:$0xff] }
 0x52c   :  { %2991 = vperm.xlu1 %8119, %v2601_v37   ;;  %v2857_v55 = vpop.permute.xlu1 %2856  ;;  %v2438_v37 = vmul.f32 %v10264_v26, %v14596_v41  ;;  %v1798_v61 = vmul.f32 %v10250_v42, %v14600_v22  ;;  %v14603_v22 = vld [vmem:[#allocation125_spill] sm:$0xff] }
 0x52d   :  { %3420 = vst.msk [vmem:[#allocation2 + $0x281] sm:$0xff] %vm3346_vm1, %v3322_v25  ;;  %v3055_v43 = vmul.f32 %v10281_v54, %v2857_v55  ;;  %v5101_v12 = vmax.f32 %v4884_v2, 0.0  ;;  %v4255_v2 = vsel %vm3346_vm1, %v3455_v47, %v8194_v35 }
 0x52e   :  { %4079 = vrot.lane.b32.xlu2 %v3553_v63, %s8463_s15  ;;  %v4336_v45 = vsel %vm4307_vm4, %v4255_v2, %v11556_v5  ;;  %v2518_v1 = vadd.f32 %v2438_v37, %v1877_v8  ;;  %v3456_v37 = vld [vmem:[#allocation2 + $0xf8] sm:$0xff] }
 0x52f   :  { %v3135_v48 = vadd.f32 %v3055_v43, %v2494_v29  ;;  %4127 = vrot.lane.b32.xlu0 %v3577_v28, %s8463_s15  ;;  %5181 = vst.msk [vmem:[#allocation3 + $0x60] sm:$0xff] %vm3346_vm1, %v5101_v12  ;;  %v4886_v3 = vpop.f32.mrf.mxu1  ;;  %v3554_v29 = vld [vmem:[#allocation2 + $0x19a] sm:$0xff]  ;;  %v1157_v43 = vmul.f32 %v10234_v21, %v14597_v23  ;;  %v8241_v28 = vpack.i.bf16 %v3319_v56, %v14598_v9  ;;  %v11902_v56 = vpop.permute.xlu0 %4071 }
 0x530   :  { %v4629_v0 = vpop.f32.mrf.mxu0 }
 0x531   :  { %v11876_v15 = vadd.f32 %v11601_v19, %v3135_v48  ;;  %v4630_v32 = vadd.f32 %v11517_v24, %v4629_v0  ;;  %v3555_v48 = vld [vmem:[#allocation2 + $0x1a2] sm:$0xff]  ;;  %v2439_v0 = vmul.f32 %v10264_v26, %v10354_v13 }
 0x532   :  { %7968 = vmatmul.msk.f32.gmra.mxu1 %vm4411_vm3, %v11556_v5  ;;  %v14599_v5 = vld [vmem:[#allocation59_spill] sm:$0xff]  ;;  %v2579_v13 = vld [vmem:[%s14104_s0 + $0x1e4] sm:$0xff] }
 0x533   :  { %v3299_v55 = vmax.f32 %v11876_v15, 0.0  ;;  %v4887_v35 = vadd.f32 %v4886_v3, %v4630_v32  ;;  %4676 = vmatmul.f32.gmra.mxu0 %v4336_v45  ;;  %v596_v58 = vmul.f32 %v10240_v18, %v14599_v5  ;;  %v2602_v32 = vld [vmem:[%s14104_s0 + $0x2ac] sm:$0xff]  ;;  %v14602_v5 = vld [vmem:[#allocation27_spill] sm:$0xff] }
 0x534   :  { %4081 = vrot.lane.b32.xlu1 %v3554_v29, %s8463_s15  ;;  %v2977_v63 = vpop.permute.xlu1 %2976  ;;  %v4256_v29 = vsel %vm3346_vm1, %v3456_v37, %v8195_v60  ;;  %v14601_v45 = vld [vmem:[#allocation109_spill] sm:$0xff]  ;;  %v2603_v60 = vld [vmem:[%s14104_s0 + $0x2b4] sm:$0xff]  ;;  %v2582_v15 = vld [vmem:[%s14104_s0 + $0x1fc] sm:$0xff] }
 0x535   :  { %3397 = vst.msk [vmem:[#allocation2 + $0x1b9] sm:$0xff] %vm3346_vm1, %v3299_v55  ;;  %v3079_v12 = vmul.f32 %v10281_v54, %v2977_v63  ;;  %v5102_v57 = vmax.f32 %v4887_v35, 0.0  ;;  %v1237_v3 = vadd.f32 %v1157_v43, %v596_v58  ;;  %v1135_v9 = vmul.f32 %v10234_v21, %v14601_v45  ;;  %v2580_v45 = vld [vmem:[%s14104_s0 + $0x1ec] sm:$0xff] }
 0x536   :  { %8242 = vrot.lane.b32.xlu2 %v8241_v28, %s8462_s12  ;;  %v574_v58 = vmul.f32 %v10240_v18, %v14602_v5 }
 0x537   :  { %v3159_v41 = vadd.f32 %v3079_v12, %v2518_v1  ;;  %4083 = vrot.lane.b32.xlu0 %v3555_v48, %s8463_s15  ;;  %5182 = vst.msk [vmem:[#allocation3 + $0x68] sm:$0xff] %vm3346_vm1, %v5102_v57  ;;  %v4889_v8 = vpop.f32.mrf.mxu1  ;;  %v1878_v23 = vadd.f32 %v1798_v61, %v1237_v3  ;;  %v4337_v1 = vsel %vm4307_vm4, %v4256_v29, %v11470_v30 }
 0x538   :  { %v4632_v2 = vpop.f32.mrf.mxu0  ;;  %v1149_v61 = vmul.f32 %v10234_v21, %v14603_v22  ;;  %v1215_v29 = vadd.f32 %v1135_v9, %v574_v58  ;;  %v14608_v22 = vld [vmem:[#allocation269_spill] sm:$0xff] }
 0x539   :  { %v11909_v47 = vadd.f32 %v11601_v19, %v3159_v41  ;;  %v4633_v43 = vadd.f32 %v11517_v24, %v4632_v2  ;;  %v2519_v35 = vadd.f32 %v2439_v0, %v1878_v23  ;;  %v8199_v41 = vunpack.i.l.bf16 %v11490_v40  ;;  %v14606_v2 = vld [vmem:[#allocation244_spill] sm:$0xff] }
 0x53a   :  { %7969 = vmatmul.msk.f32.gmra.mxu1 %vm4411_vm3, %v11470_v30  ;;  %v14604_v30 = vld [vmem:[#allocation184_spill] sm:$0xff]  ;;  %v2417_v23 = vmul.f32 %v10264_v26, %v14606_v2 }
 0x53b   :  { %v3323_v63 = vmax.f32 %v11909_v47, 0.0  ;;  %v4890_v12 = vadd.f32 %v4889_v8, %v4633_v43  ;;  %4679 = vmatmul.f32.gmra.mxu0 %v4337_v1  ;;  %v1776_v57 = vmul.f32 %v10250_v42, %v14604_v30  ;;  %v14605_v8 = vld [vmem:[#allocation52_spill] sm:$0xff]  ;;  %v14607_v1 = vld [vmem:[#allocation185_spill] sm:$0xff]  ;;  %v2431_v30 = vmul.f32 %v10264_v26, %v14608_v22 }
 0x53c   :  { %2996 = vperm.xlu1 %8119, %v2602_v32   ;;  %v2982_v28 = vpop.permute.xlu1 %2981  ;;  %v588_v32 = vmul.f32 %v10240_v18, %v14605_v8 }
 0x53d   :  { %3421 = vst.msk [vmem:[#allocation2 + $0x289] sm:$0xff] %vm3346_vm1, %v3323_v63  ;;  %v3080_v48 = vmul.f32 %v10281_v54, %v2982_v28  ;;  %v5103_v37 = vmax.f32 %v4890_v12, 0.0  ;;  %v3457_v12 = vld [vmem:[#allocation2 + $0x108] sm:$0xff]  ;;  %v1856_v9 = vadd.f32 %v1776_v57, %v1215_v29  ;;  %v14610_v57 = vmax.f32 %v11705_v17, 0.0 }
 0x53e   :  { %2881 = vperm.xlu2 %8120, %v2579_v13   ;;  %v1229_v28 = vadd.f32 %v1149_v61, %v588_v32  ;;  %v4257_v58 = vsel %vm3346_vm1, %v3457_v12, %v8199_v41  ;;  %v2581_v41 = vld [vmem:[%s14104_s0 + $0x1f4] sm:$0xff]  ;;  %v8200_v17 = vunpack.i.h.bf16 %v11490_v40 }
 0x53f   :  { %v3160_v3 = vadd.f32 %v3080_v48, %v2519_v35  ;;  %3001 = vperm.xlu0 %8118, %v2603_v60   ;;  %v11940_v0 = vpop.permute.xlu0 %4073  ;;  %5183 = vst.msk [vmem:[#allocation3 + $0x70] sm:$0xff] %vm3346_vm1, %v5103_v37  ;;  %v4892_v13 = vpop.f32.mrf.mxu1  ;;  %v1790_v60 = vmul.f32 %v10250_v42, %v14607_v1  ;;  %v4338_v37 = vsel %vm4307_vm4, %v4257_v58, %v11565_v20  ;;  %v14612_v58 = vld [vmem:[#allocation37_spill] sm:$0xff] }
 0x540   :  { %v4635_v35 = vpop.f32.mrf.mxu0  ;;  %v2497_v32 = vadd.f32 %v2417_v23, %v1856_v9 }
 0x541   :  { %v11948_v43 = vadd.f32 %v11601_v19, %v3160_v3  ;;  %v4636_v5 = vadd.f32 %v11517_v24, %v4635_v35  ;;  %v14609_v3 = vmax.f32 %v11539_v50, 0.0  ;;  %v14611_v50 = vld [vmem:[#allocation110_spill] sm:$0xff] }
 0x542   :  { %7970 = vmatmul.msk.f32.gmra.mxu1 %vm4411_vm3, %v11565_v20  ;;  %v1134_v20 = vmul.f32 %v10234_v21, %v14611_v50  ;;  %v3578_v50 = vld [vmem:[#allocation2 + $0x272] sm:$0xff] }
 0x543   :  { %v3324_v48 = vmax.f32 %v11948_v43, 0.0  ;;  %v8246_v8 = vpack.i.bf16 %v14610_v57, %v14609_v3  ;;  %v4893_v29 = vadd.f32 %v4892_v13, %v4636_v5  ;;  %4682 = vmatmul.f32.gmra.mxu0 %v4338_v37  ;;  %v573_v13 = vmul.f32 %v10240_v18, %v14612_v58  ;;  %v14613_v5 = vld [vmem:[#allocation170_spill] sm:$0xff]  ;;  %v12086_v43 = vpop.permute.xlu2 %4075 }
 0x544   :  { %2886 = vperm.xlu1 %8119, %v2580_v45   ;;  %v2872_v61 = vpop.permute.xlu1 %2871  ;;  %v1870_v45 = vadd.f32 %v1790_v60, %v1229_v28  ;;  %v1775_v22 = vmul.f32 %v10250_v42, %v14613_v5  ;;  %v14614_v37 = vmax.f32 %v11604_v33, 0.0  ;;  %v3458_v3 = vld [vmem:[#allocation2 + $0x110] sm:$0xff] }
 0x545   :  { %3422 = vst.msk [vmem:[#allocation2 + $0x291] sm:$0xff] %vm3346_vm1, %v3324_v48  ;;  %v3058_v2 = vmul.f32 %v10281_v54, %v2872_v61  ;;  %v5104_v1 = vmax.f32 %v4893_v29, 0.0  ;;  %v1214_v57 = vadd.f32 %v1134_v20, %v573_v13  ;;  %v14615_v29 = vld [vmem:[#allocation254_spill] sm:$0xff] }
 0x546   :  { %8247 = vrot.lane.b32.xlu2 %v8246_v8, %s8462_s12  ;;  %v2511_v12 = vadd.f32 %v2431_v30, %v1870_v45  ;;  %v8251_v30 = vpack.i.bf16 %v3321_v52, %v14614_v37 }
 0x547   :  { %v3138_v35 = vadd.f32 %v3058_v2, %v2497_v32  ;;  %2891 = vperm.xlu0 %8118, %v2581_v41   ;;  %v2942_v23 = vpop.permute.xlu0 %2941  ;;  %5184 = vst.msk [vmem:[#allocation3 + $0x78] sm:$0xff] %vm3346_vm1, %v5104_v1  ;;  %v4895_v60 = vpop.f32.mrf.mxu1  ;;  %v4258_v32 = vsel %vm3346_vm1, %v3458_v3, %v8200_v17  ;;  %v2416_v2 = vmul.f32 %v10264_v26, %v14615_v29  ;;  %v3557_v1 = vld [vmem:[#allocation2 + $0x1ba] sm:$0xff] }
 0x548   :  { %v3072_v9 = vmul.f32 %v10281_v54, %v2942_v23  ;;  %v4638_v61 = vpop.f32.mrf.mxu0  ;;  %v4339_v33 = vsel %vm4307_vm4, %v4258_v32, %v11616_v7  ;;  %v1855_v20 = vadd.f32 %v1775_v22, %v1214_v57  ;;  %v3556_v57 = vld [vmem:[#allocation2 + $0x1aa] sm:$0xff] }
 0x549   :  { %v11984_v28 = vadd.f32 %v11601_v19, %v3138_v35  ;;  %v4639_v41 = vadd.f32 %v11517_v24, %v4638_v61 }
 0x54a   :  { %v3152_v40 = vadd.f32 %v3072_v9, %v2511_v12  ;;  %7971 = vmatmul.msk.f32.gmra.mxu1 %vm4411_vm3, %v11616_v7  ;;  %v2496_v7 = vadd.f32 %v2416_v2, %v1855_v20  ;;  %v3459_v9 = vld [vmem:[#allocation2 + $0x118] sm:$0xff]  ;;  %v8256_v2 = vpack.i.bf16 %v3322_v25, %v3298_v62  ;;  %v3461_v20 = vld [vmem:[#allocation2 + $0x128] sm:$0xff] }
 0x54b   :  { %v3302_v8 = vmax.f32 %v11984_v28, 0.0  ;;  %v4896_v52 = vadd.f32 %v4895_v60, %v4639_v41  ;;  %4685 = vmatmul.f32.gmra.mxu0 %v4339_v33  ;;  %v4259_v13 = vsel %vm3346_vm1, %v3459_v9, %v8204_v38  ;;  %v8209_v33 = vunpack.i.l.bf16 %v11650_v59  ;;  %v3462_v9 = vld [vmem:[#allocation2 + $0x130] sm:$0xff]  ;;  %v14638_v28 = vld [vmem:[#allocation135_spill] sm:$0xff] }
 0x54c   :  { %v11998_v45 = vadd.f32 %v11601_v19, %v3152_v40  ;;  %8252 = vrot.lane.b32.xlu1 %v8251_v30, %s8462_s12  ;;  %v3579_v40 = vld [vmem:[#allocation2 + $0x27a] sm:$0xff]  ;;  %v4340_v37 = vsel %vm4307_vm4, %v4259_v13, %v11592_v39  ;;  %v8205_v30 = vunpack.i.h.bf16 %v11635_v27 }
 0x54d   :  { %3400 = vst.msk [vmem:[#allocation2 + $0x1d1] sm:$0xff] %vm3346_vm1, %v3302_v8  ;;  %v5105_v35 = vmax.f32 %v4896_v52, 0.0  ;;  %v3581_v52 = vld [vmem:[#allocation2 + $0x28a] sm:$0xff] }
 0x54e   :  { %v3316_v17 = vmax.f32 %v11998_v45, 0.0  ;;  %4129 = vrot.lane.b32.xlu2 %v3578_v50, %s8463_s15 }
 0x54f   :  { %4087 = vrot.lane.b32.xlu0 %v3557_v1, %s8463_s15  ;;  %v2867_v23 = vpop.permute.xlu0 %2866  ;;  %5185 = vst.msk [vmem:[#allocation3 + $0x80] sm:$0xff] %vm3346_vm1, %v5105_v35  ;;  %v4898_v58 = vpop.f32.mrf.mxu1  ;;  %v8210_v35 = vunpack.i.h.bf16 %v11650_v59 }
 0x550   :  { %3414 = vst.msk [vmem:[#allocation2 + $0x249] sm:$0xff] %vm3346_vm1, %v3316_v17  ;;  %v3057_v12 = vmul.f32 %v10281_v54, %v2867_v23  ;;  %v4641_v5 = vpop.f32.mrf.mxu0 }
 0x551   :  { %v4642_v22 = vadd.f32 %v11517_v24, %v4641_v5  ;;  %v8261_v24 = vpack.i.bf16 %v3323_v63, %v3299_v55  ;;  %v12046_v63 = vld [vmem:[%s14108_s4] ss:$0 sm:$0xff]  ;;  %v4262_v13 = vsel %vm3346_vm1, %v3462_v9, %v8210_v35  ;;  %v2583_v5 = vld [vmem:[%s14104_s0 + $0x204] sm:$0xff] }
 0x552   :  { %v3137_v60 = vadd.f32 %v3057_v12, %v2496_v7  ;;  %7972 = vmatmul.msk.f32.gmra.mxu1 %vm4411_vm3, %v11592_v39  ;;  %v3460_v39 = vld [vmem:[#allocation2 + $0x120] sm:$0xff] }
 0x553   :  { %v4899_v3 = vadd.f32 %v4898_v58, %v4642_v22  ;;  %4688 = vmatmul.f32.gmra.mxu0 %v4340_v37  ;;  %v4260_v55 = vsel %vm3346_vm1, %v3460_v39, %v8205_v30  ;;  %v3580_v7 = vld [vmem:[#allocation2 + $0x282] sm:$0xff]  ;;  %v4343_v22 = vsel %vm4307_vm4, %v4262_v13, %v11640_v6  ;;  %v3463_v30 = vld [vmem:[#allocation2 + $0x138] sm:$0xff] }
 0x554   :  { %v12020_v61 = vadd.f32 %v11601_v19, %v3137_v60  ;;  %4131 = vrot.lane.b32.xlu1 %v3579_v40, %s8463_s15  ;;  %v4341_v29 = vsel %vm4307_vm4, %v4260_v55, %v11623_v11  ;;  %v3464_v55 = vld [vmem:[#allocation2 + $0x140] sm:$0xff] }
 0x555   :  { %v5106_v41 = vmax.f32 %v4899_v3, 0.0 }
 0x556   :  { %v3301_v19 = vmax.f32 %v12020_v61, 0.0  ;;  %4085 = vrot.lane.b32.xlu2 %v3556_v57, %s8463_s15  ;;  %v4263_v57 = vsel %vm3346_vm1, %v3463_v30, %v8214_v53  ;;  %v12128_v53 = vld [vmem:[%s14106_s2] ss:$0 sm:$0xff] }
 0x557   :  { %8262 = vrot.lane.b32.xlu0 %v8261_v24, %s8462_s12  ;;  %5186 = vst.msk [vmem:[#allocation3 + $0x88] sm:$0xff] %vm3346_vm1, %v5106_v41  ;;  %v4901_v27 = vpop.f32.mrf.mxu1  ;;  %v8215_v24 = vunpack.i.h.bf16 %v11657_v10 }
 0x558   :  { %3399 = vst.msk [vmem:[#allocation2 + $0x1c9] sm:$0xff] %vm3346_vm1, %v3301_v19  ;;  %v4644_v47 = vpop.f32.mrf.mxu0 }
 0x559   :  { %v4645_v32 = vadd.f32 %v12046_v63, %v4644_v47  ;;  %v14616_v47 = vld [vmem:[#allocation133_spill] sm:$0xff] }
 0x55a   :  { %7973 = vmatmul.msk.f32.gmra.mxu1 %vm4411_vm3, %v11623_v11  ;;  %v4261_v11 = vsel %vm3346_vm1, %v3461_v20, %v8209_v33  ;;  %v14617_v33 = vld [vmem:[#allocation58_spill] sm:$0xff] }
 0x55b   :  { %v4902_v38 = vadd.f32 %v4901_v27, %v4645_v32  ;;  %4691 = vmatmul.f32.gmra.mxu0 %v4341_v29  ;;  %v4342_v25 = vsel %vm4307_vm4, %v4261_v11, %v11554_v31  ;;  %v1158_v32 = vmul.f32 %v10234_v21, %v14616_v47  ;;  %v597_v10 = vmul.f32 %v10240_v18, %v14617_v33  ;;  %v14619_v11 = vld [vmem:[#allocation273_spill] sm:$0xff]  ;;  %v3466_v47 = vld [vmem:[#allocation2 + $0x150] sm:$0xff]  ;;  %v14624_v33 = vld [vmem:[#allocation183_spill] sm:$0xff] }
 0x55c   :  { %2896 = vperm.xlu1 %8119, %v2582_v15   ;;  %v1777_v61 = vmul.f32 %v10250_v42, %v14624_v33 }
 0x55d   :  { %v5107_v50 = vmax.f32 %v4902_v38, 0.0  ;;  %v14618_v38 = vld [vmem:[#allocation194_spill] sm:$0xff] }
 0x55e   :  { %8257 = vrot.lane.b32.xlu2 %v8256_v2, %s8462_s12  ;;  %v4264_v2 = vsel %vm3346_vm1, %v3464_v55, %v8215_v24 }
 0x55f   :  { %4135 = vrot.lane.b32.xlu0 %v3581_v52, %s8463_s15  ;;  %5187 = vst.msk [vmem:[#allocation3 + $0x90] sm:$0xff] %vm3346_vm1, %v5107_v50  ;;  %v4904_v1 = vpop.f32.mrf.mxu1  ;;  %v3558_v62 = vld [vmem:[#allocation2 + $0x1c2] sm:$0xff]  ;;  %v3559_v39 = vld [vmem:[#allocation2 + $0x1ca] sm:$0xff]  ;;  %v1799_v52 = vmul.f32 %v10250_v42, %v14618_v38  ;;  %v4345_v20 = vsel %vm4307_vm4, %v4264_v2, %v11614_v4  ;;  %v8224_v38 = vunpack.i.l.bf16 %v11869_v14 }
 0x560   :  { %v4647_v44 = vpop.f32.mrf.mxu0  ;;  %v14623_v2 = vld [vmem:[#allocation41_spill] sm:$0xff] }
 0x561   :  { %v4648_v51 = vadd.f32 %v12046_v63, %v4647_v44  ;;  %v2440_v44 = vmul.f32 %v10264_v26, %v14619_v11 }
 0x562   :  { %7974 = vmatmul.msk.f32.gmra.mxu1 %vm4411_vm3, %v11554_v31  ;;  %v8266_v31 = vpack.i.bf16 %v3324_v48, %v3300_v36 }
 0x563   :  { %v4905_v23 = vadd.f32 %v4904_v1, %v4648_v51  ;;  %4694 = vmatmul.f32.gmra.mxu0 %v4342_v25  ;;  %v1238_v1 = vadd.f32 %v1158_v32, %v597_v10  ;;  %v14620_v25 = vld [vmem:[#allocation14_spill] sm:$0xff] }
 0x564   :  { %4089 = vrot.lane.b32.xlu1 %v3558_v62, %s8463_s15  ;;  %v8219_v35 = vunpack.i.l.bf16 %v14620_v25 }
 0x565   :  { %v5108_v12 = vmax.f32 %v4905_v23, 0.0  ;;  %v1879_v62 = vadd.f32 %v1799_v52, %v1238_v1 }
 0x566   :  { %4133 = vrot.lane.b32.xlu2 %v3580_v7, %s8463_s15 }
 0x567   :  { %5188 = vst.msk [vmem:[#allocation3 + $0x98] sm:$0xff] %vm3346_vm1, %v5108_v12  ;;  %v4907_v58 = vpop.f32.mrf.mxu1  ;;  %v2520_v12 = vadd.f32 %v2440_v44, %v1879_v62  ;;  %v12115_v9 = vpop.permute.xlu0 %4077 }
 0x568   :  { %v4650_v60 = vpop.f32.mrf.mxu0 }
 0x569   :  { %v4651_v59 = vadd.f32 %v12046_v63, %v4650_v60  ;;  %v3465_v60 = vld [vmem:[#allocation2 + $0x148] sm:$0xff] }
 0x56a   :  { %7975 = vmatmul.msk.f32.gmra.mxu1 %vm4411_vm3, %v11640_v6  ;;  %v4344_v6 = vsel %vm4307_vm4, %v4263_v57, %v11678_v46 }
 0x56b   :  { %v4908_v40 = vadd.f32 %v4907_v58, %v4651_v59  ;;  %4697 = vmatmul.f32.gmra.mxu0 %v4343_v22  ;;  %v14621_v22 = vld [vmem:[#allocation138_spill] sm:$0xff] }
 0x56c   :  { %8267 = vrot.lane.b32.xlu1 %v8266_v31, %s8462_s12 }
 0x56d   :  { %v5109_v36 = vmax.f32 %v4908_v40, 0.0 }
 0x56e   :  { %2901 = vperm.xlu2 %8120, %v2583_v5   ;;  %v4265_v5 = vsel %vm3346_vm1, %v3465_v60, %v8219_v35  ;;  %v3467_v35 = vld [vmem:[#allocation2 + $0x160] sm:$0xff] }
 0x56f   :  { %5189 = vst.msk [vmem:[#allocation3 + $0xa0] sm:$0xff] %vm3346_vm1, %v5109_v36  ;;  %v4910_v48 = vpop.f32.mrf.mxu1  ;;  %v4346_v40 = vsel %vm4307_vm4, %v4265_v5, %v14621_v22  ;;  %v14628_v5 = vld [vmem:[#allocation40_spill] sm:$0xff] }
 0x570   :  { %v4653_v37 = vpop.f32.mrf.mxu0 }
 0x571   :  { %v4654_v3 = vadd.f32 %v12046_v63, %v4653_v37  ;;  %v8220_v37 = vunpack.i.h.bf16 %v14620_v25  ;;  %v2585_v25 = vld [vmem:[%s14104_s0 + $0x21c] sm:$0xff] }
 0x572   :  { %7976 = vmatmul.msk.f32.gmra.mxu1 %vm4411_vm3, %v11678_v46 }
 0x573   :  { %v4911_v41 = vadd.f32 %v4910_v48, %v4654_v3  ;;  %4700 = vmatmul.f32.gmra.mxu0 %v4344_v6 }
 0x575   :  { %v5110_v27 = vmax.f32 %v4911_v41, 0.0 }
 0x576   :  { %4091 = vrot.lane.b32.xlu2 %v3559_v39, %s8463_s15  ;;  %v14622_v39 = vld [vmem:[#allocation99_spill] sm:$0xff] }
 0x577   :  { %5190 = vst.msk [vmem:[#allocation3 + $0xb0] sm:$0xff] %vm3346_vm1, %v5110_v27  ;;  %v4913_v29 = vpop.f32.mrf.mxu1  ;;  %v1136_v27 = vmul.f32 %v10234_v21, %v14622_v39  ;;  %v8225_v39 = vunpack.i.h.bf16 %v11869_v14 }
 0x578   :  { %v12097_v15 = vpop.permute.xlu2 %8232  ;;  %v4656_v46 = vpop.f32.mrf.mxu0 }
 0x579   :  { %v4657_v50 = vadd.f32 %v12046_v63, %v4656_v46  ;;  %v575_v46 = vmul.f32 %v10240_v18, %v14623_v2  ;;  %v8235_v60 = vunpack.i.h.bf16 %v12097_v15 }
 0x57a   :  { %7977 = vmatmul.msk.f32.gmra.mxu1 %vm4411_vm3, %v11614_v4 }
 0x57b   :  { %v4914_v51 = vadd.f32 %v4913_v29, %v4657_v50  ;;  %4703 = vmatmul.f32.gmra.mxu0 %v4345_v20  ;;  %v4266_v29 = vsel %vm3346_vm1, %v3466_v47, %v8220_v37  ;;  %v1216_v50 = vadd.f32 %v1136_v27, %v575_v46  ;;  %v14626_v20 = vld [vmem:[#allocation258_spill] sm:$0xff]  ;;  %v14631_v47 = vld [vmem:[#allocation132_spill] sm:$0xff] }
 0x57c   :  { %v2418_v1 = vmul.f32 %v10264_v26, %v14626_v20 }
 0x57d   :  { %v5111_v23 = vmax.f32 %v4914_v51, 0.0  ;;  %v1857_v44 = vadd.f32 %v1777_v61, %v1216_v50 }
 0x57f   :  { %5191 = vst.msk [vmem:[#allocation3 + $0xb8] sm:$0xff] %vm3346_vm1, %v5111_v23  ;;  %v4916_v13 = vpop.f32.mrf.mxu1  ;;  %v14627_v23 = vld [vmem:[#allocation113_spill] sm:$0xff] }
 0x580   :  { %v2987_v7 = vpop.permute.xlu2 %2986  ;;  %v4659_v4 = vpop.f32.mrf.mxu0 }
 0x581   :  { %v3081_v58 = vmul.f32 %v10281_v54, %v2987_v7  ;;  %v4660_v59 = vadd.f32 %v12046_v63, %v4659_v4  ;;  %v1137_v7 = vmul.f32 %v10234_v21, %v14627_v23  ;;  %v2498_v4 = vadd.f32 %v2418_v1, %v1857_v44  ;;  %v3468_v1 = vld [vmem:[#allocation2 + $0x168] sm:$0xff] }
 0x582   :  { %7978 = vmatmul.msk.f32.gmra.mxu1 %vm4411_vm3, %v14621_v22  ;;  %v576_v22 = vmul.f32 %v10240_v18, %v14628_v5 }
 0x583   :  { %v3161_v31 = vadd.f32 %v3081_v58, %v2520_v12  ;;  %v4917_v48 = vadd.f32 %v4916_v13, %v4660_v59  ;;  %4706 = vmatmul.f32.gmra.mxu0 %v4346_v40  ;;  %v4267_v13 = vsel %vm3346_vm1, %v3467_v35, %v8224_v38  ;;  %v14629_v40 = vld [vmem:[#allocation173_spill] sm:$0xff]  ;;  %v14633_v38 = vld [vmem:[#allocation207_spill] sm:$0xff]  ;;  %v4268_v35 = vsel %vm3346_vm1, %v3468_v1, %v8225_v39 }
 0x584   :  { %v14635_v1 = vld [vmem:[#allocation123_spill] sm:$0xff] }
 0x585   :  { %v3245_v36 = vadd.f32 %v12128_v53, %v3161_v31  ;;  %v5112_v3 = vmax.f32 %v4917_v48, 0.0 }
 0x587   :  { %v3325_v30 = vmax.f32 %v3245_v36, 0.0  ;;  %v4919_v6 = vpop.f32.mrf.mxu1  ;;  %5192 = vst.msk [vmem:[#allocation3 + $0xc0] sm:$0xff] %vm3346_vm1, %v5112_v3  ;;  %v1778_v36 = vmul.f32 %v10250_v42, %v14629_v40  ;;  %v1217_v3 = vadd.f32 %v1137_v7, %v576_v22  ;;  %v14634_v7 = vld [vmem:[#allocation268_spill] sm:$0xff]  ;;  %v3496_v40 = vld [vmem:[#allocation2 + $0x258] sm:$0xff] }
 0x588   :  { %v12132_v57 = vpop.permute.xlu2 %4079  ;;  %v4662_v55 = vpop.f32.mrf.mxu0 }
 0x589   :  { %3423 = vst.msk [vmem:[#allocation2 + $0x299] sm:$0xff] %vm3346_vm1, %v3325_v30  ;;  %v12135_v24 = vpop.permute.xlu0 %8237  ;;  %v8271_v41 = vpack.i.bf16 %v3325_v30, %v3301_v19  ;;  %v4663_v32 = vadd.f32 %v12046_v63, %v4662_v55  ;;  %v14625_v19 = vld [vmem:[#allocation62_spill] sm:$0xff]  ;;  %v4348_v30 = vsel %vm4307_vm4, %v4267_v13, %v11833_v34  ;;  %v1858_v33 = vadd.f32 %v1778_v36, %v1217_v3 }
 0x58a   :  { %7979 = vmatmul.msk.f32.gmra.mxu1 %vm4411_vm3, %v14625_v19  ;;  %v4347_v10 = vsel %vm4307_vm4, %v4266_v29, %v14625_v19  ;;  %v3495_v55 = vld [vmem:[#allocation2 + $0x250] sm:$0xff]  ;;  %v14632_v19 = vld [vmem:[#allocation51_spill] sm:$0xff] }
 0x58b   :  { %8272 = vrot.lane.b32.xlu1 %v8271_v41, %s8462_s12  ;;  %v4920_v52 = vadd.f32 %v4919_v6, %v4663_v32  ;;  %4709 = vmatmul.f32.gmra.mxu0 %v4347_v10  ;;  %v14630_v6 = vld [vmem:[#allocation257_spill] sm:$0xff]  ;;  %v1159_v32 = vmul.f32 %v10234_v21, %v14631_v47  ;;  %v4295_v46 = vsel %vm3346_vm1, %v3495_v55, %v8235_v60 }
 0x58c   :  { %v2419_v41 = vmul.f32 %v10264_v26, %v14630_v6  ;;  %v598_v10 = vmul.f32 %v10240_v18, %v14632_v19 }
 0x58d   :  { %v5113_v11 = vmax.f32 %v4920_v52, 0.0  ;;  %v1800_v52 = vmul.f32 %v10250_v42, %v14633_v38 }
 0x58e   :  { %v1239_v23 = vadd.f32 %v1159_v32, %v598_v10 }
 0x58f   :  { %5193 = vst.msk [vmem:[#allocation3 + $0xc8] sm:$0xff] %vm3346_vm1, %v5113_v11  ;;  %v4922_v12 = vpop.f32.mrf.mxu1  ;;  %v2499_v11 = vadd.f32 %v2419_v41, %v1858_v33  ;;  %v3469_v33 = vld [vmem:[#allocation2 + $0x170] sm:$0xff] }
 0x590   :  { %v12156_v51 = vpop.permute.xlu2 %8242  ;;  %v3582_v62 = vld [vmem:[#allocation2 + $0x292] sm:$0xff]  ;;  %v4665_v59 = vpop.f32.mrf.mxu0 }
 0x591   :  { %4137 = vrot.lane.b32.xlu0 %v3582_v62, %s8463_s15  ;;  %v2877_v58 = vpop.permute.xlu0 %2876  ;;  %v4666_v48 = vadd.f32 %v12046_v63, %v4665_v59  ;;  %v4349_v59 = vsel %vm4307_vm4, %v4268_v35, %v11790_v16  ;;  %v8230_v35 = vunpack.i.h.bf16 %v11760_v49 }
 0x592   :  { %v3059_v31 = vmul.f32 %v10281_v54, %v2877_v58  ;;  %7980 = vmatmul.msk.f32.gmra.mxu1 %vm4411_vm3, %v11833_v34  ;;  %v2584_v34 = vld [vmem:[%s14104_s0 + $0x214] sm:$0xff]  ;;  %v8240_v58 = vunpack.i.h.bf16 %v12135_v24 }
 0x593   :  { %2911 = vperm.xlu1 %8119, %v2585_v25   ;;  %v4923_v27 = vadd.f32 %v4922_v12, %v4666_v48  ;;  %4712 = vmatmul.f32.gmra.mxu0 %v4348_v30  ;;  %v2441_v12 = vmul.f32 %v10264_v26, %v14634_v7  ;;  %v8229_v48 = vunpack.i.l.bf16 %v11760_v49 }
 0x594   :  { %v3139_v37 = vadd.f32 %v3059_v31, %v2498_v4  ;;  %v1880_v31 = vadd.f32 %v1800_v52, %v1239_v23  ;;  %v4296_v30 = vsel %vm3346_vm1, %v3496_v40, %v8240_v58 }
 0x595   :  { %v5114_v61 = vmax.f32 %v4923_v27, 0.0  ;;  %v4269_v19 = vsel %vm3346_vm1, %v3469_v33, %v8229_v48 }
 0x596   :  { %v12183_v29 = vadd.f32 %v12128_v53, %v3139_v37  ;;  %v12185_v2 = vpop.permute.xlu1 %4123  ;;  %v2521_v36 = vadd.f32 %v2441_v12, %v1880_v31  ;;  %v4350_v10 = vsel %vm4307_vm4, %v4269_v19, %v11902_v56 }
 0x597   :  { %v4376_v14 = vsel %vm4307_vm4, %v4295_v46, %v12185_v2  ;;  %5194 = vst.msk [vmem:[#allocation3 + $0xd0] sm:$0xff] %vm3346_vm1, %v5114_v61  ;;  %v4925_v62 = vpop.f32.mrf.mxu1  ;;  %v8245_v46 = vunpack.i.h.bf16 %v12156_v51 }
 0x598   :  { %v3303_v50 = vmax.f32 %v12183_v29, 0.0  ;;  %v2882_v20 = vpop.permute.xlu2 %2881  ;;  %4796 = vmatmul.f32.vlgmr.msra.gmra.mxu3 %v4376_v14  ;;  %v4668_v13 = vpop.f32.mrf.mxu0 }
 0x599   :  { %v3060_v44 = vmul.f32 %v10281_v54, %v2882_v20  ;;  %2906 = vperm.xlu0 %8118, %v2584_v34   ;;  %v12200_v25 = vpop.permute.xlu0 %4125  ;;  %v4669_v60 = vadd.f32 %v12046_v63, %v4668_v13  ;;  %v3497_v20 = vld [vmem:[#allocation2 + $0x268] sm:$0xff] }
 0x59a   :  { %3401 = vst.msk [vmem:[#allocation2 + $0x1d9] sm:$0xff] %vm3346_vm1, %v3303_v50  ;;  %7981 = vmatmul.msk.f32.gmra.mxu1 %vm4411_vm3, %v11790_v16  ;;  %v4377_v16 = vsel %vm4307_vm4, %v4296_v30, %v12200_v25  ;;  %v14636_v13 = vld [vmem:[#allocation61_spill] sm:$0xff] }
 0x59b   :  { %v3140_v4 = vadd.f32 %v3060_v44, %v2499_v11  ;;  %v4926_v22 = vadd.f32 %v4925_v62, %v4669_v60  ;;  %4715 = vmatmul.f32.gmra.mxu0 %v4349_v59  ;;  %v1160_v11 = vmul.f32 %v10234_v21, %v14635_v1  ;;  %v4297_v62 = vsel %vm3346_vm1, %v3497_v20, %v8245_v46  ;;  %v14637_v60 = vld [vmem:[#allocation206_spill] sm:$0xff] }
 0x59c   :  { %v1801_v31 = vmul.f32 %v10250_v42, %v14637_v60 }
 0x59d   :  { %v12215_v5 = vadd.f32 %v12128_v53, %v3140_v4  ;;  %v5115_v6 = vmax.f32 %v4926_v22, 0.0  ;;  %v599_v4 = vmul.f32 %v10240_v18, %v14636_v13 }
 0x59e   :  { %v2992_v37 = vpop.permute.xlu1 %2991 }
 0x59f   :  { %v3304_v3 = vmax.f32 %v12215_v5, 0.0  ;;  %v3082_v41 = vmul.f32 %v10281_v54, %v2992_v37  ;;  %v4928_v55 = vpop.f32.mrf.mxu1  ;;  %5195 = vst.msk [vmem:[#allocation3 + $0xd8] sm:$0xff] %vm3346_vm1, %v5115_v6  ;;  %v1240_v48 = vadd.f32 %v1160_v11, %v599_v4  ;;  %v14639_v37 = vld [vmem:[#allocation275_spill] sm:$0xff] }
 0x5a0   :  { %v12223_v39 = vpop.permute.xlu2 %8247  ;;  %4799 = vmatmul.f32.gmra.mxu3 %v4377_v16  ;;  %v4671_v34 = vpop.f32.mrf.mxu0  ;;  %v2442_v30 = vmul.f32 %v10264_v26, %v14639_v37  ;;  %v14640_v16 = vld [vmem:[#allocation60_spill] sm:$0xff]  ;;  %v14645_v4 = vld [vmem:[#allocation187_spill] sm:$0xff] }
 0x5a1   :  { %3402 = vst.msk [vmem:[#allocation2 + $0x1e1] sm:$0xff] %vm3346_vm1, %v3304_v3  ;;  %v3162_v27 = vadd.f32 %v3082_v41, %v2521_v36  ;;  %v4128_v47 = vpop.permute.xlu0 %4127  ;;  %v3560_v32 = vld [vmem:[#allocation2 + $0x1d2] sm:$0xff]  ;;  %v4672_v14 = vadd.f32 %v12046_v63, %v4671_v34  ;;  %v8250_v22 = vunpack.i.h.bf16 %v12223_v39  ;;  %v1881_v46 = vadd.f32 %v1801_v31, %v1240_v48 }
 0x5a2   :  { %4093 = vrot.lane.b32.xlu2 %v3560_v32, %s8463_s15  ;;  %8010 = vmatmul.msk.f32.vlgmr.msra.gmra.mxu2 %vm4411_vm3, %v4128_v47  ;;  %v4378_v7 = vsel %vm4307_vm4, %v4297_v62, %v4128_v47  ;;  %v3470_v36 = vld [vmem:[#allocation2 + $0x178] sm:$0xff]  ;;  %v8234_v34 = vunpack.i.l.bf16 %v12097_v15  ;;  %v1779_v60 = vmul.f32 %v10250_v42, %v14645_v4 }
 0x5a3   :  { %v3246_v61 = vadd.f32 %v12128_v53, %v3162_v27  ;;  %7982 = vmatmul.msk.f32.gmra.mxu1 %vm4411_vm3, %v11902_v56  ;;  %v4929_v52 = vadd.f32 %v4928_v55, %v4672_v14  ;;  %4718 = vmatmul.f32.gmra.mxu0 %v4350_v10  ;;  %v4270_v41 = vsel %vm3346_vm1, %v3470_v36, %v8230_v35  ;;  %v14641_v55 = vld [vmem:[#allocation197_spill] sm:$0xff]  ;;  %v14642_v14 = vld [vmem:[#allocation112_spill] sm:$0xff] }
 0x5a4   :  { %v600_v27 = vmul.f32 %v10240_v18, %v14640_v16  ;;  %v1802_v47 = vmul.f32 %v10250_v42, %v14641_v55  ;;  %v4351_v32 = vsel %vm4307_vm4, %v4270_v41, %v11940_v0  ;;  %v1138_v19 = vmul.f32 %v10234_v21, %v14642_v14 }
 0x5a5   :  { %v3326_v38 = vmax.f32 %v3246_v61, 0.0  ;;  %v5116_v23 = vmax.f32 %v4929_v52, 0.0  ;;  %v3498_v61 = vld [vmem:[#allocation2 + $0x270] sm:$0xff]  ;;  %v2522_v62 = vadd.f32 %v2442_v30, %v1881_v46  ;;  %v14647_v30 = vld [vmem:[#allocation247_spill] sm:$0xff]  ;;  %v8239_v14 = vunpack.i.l.bf16 %v12135_v24 }
 0x5a6   :  { %v12241_v44 = vpop.permute.xlu1 %4081  ;;  %v4298_v11 = vsel %vm3346_vm1, %v3498_v61, %v8250_v22  ;;  %v14646_v22 = vld [vmem:[#allocation102_spill] sm:$0xff] }
 0x5a7   :  { %3424 = vst.msk [vmem:[#allocation2 + $0x2a1] sm:$0xff] %vm3346_vm1, %v3326_v38  ;;  %v8276_v56 = vpack.i.bf16 %v3326_v38, %v3302_v8  ;;  %v4931_v49 = vpop.f32.mrf.mxu1  ;;  %v1161_v8 = vmul.f32 %v10234_v21, %v14638_v28  ;;  %v14643_v38 = vld [vmem:[#allocation274_spill] sm:$0xff] }
 0x5a8   :  { %v4130_v12 = vpop.permute.xlu2 %4129  ;;  %4802 = vmatmul.f32.gmra.mxu3 %v4378_v7  ;;  %v3561_v58 = vld [vmem:[#allocation2 + $0x1da] sm:$0xff]  ;;  %5196 = vst.msk [vmem:[#allocation3 + $0xe0] sm:$0xff] %vm3346_vm1, %v5116_v23  ;;  %v4674_v40 = vpop.f32.mrf.mxu0  ;;  %v2443_v52 = vmul.f32 %v10264_v26, %v14643_v38 }
 0x5a9   :  { %8277 = vrot.lane.b32.xlu0 %v8276_v56, %s8462_s12  ;;  %4095 = vrot.lane.b32.xlu1 %v3561_v58, %s8463_s15  ;;  %v12256_v59 = vpop.permute.xlu0 %4083  ;;  %v4675_v6 = vadd.f32 %v12046_v63, %v4674_v40  ;;  %v1241_v10 = vadd.f32 %v1161_v8, %v600_v27  ;;  %v4379_v15 = vsel %vm4307_vm4, %v4298_v11, %v4130_v12  ;;  %v3471_v56 = vld [vmem:[#allocation2 + $0x180] sm:$0xff]  ;;  %v14644_v58 = vld [vmem:[#allocation30_spill] sm:$0xff] }
 0x5aa   :  { %8011 = vmatmul.msk.f32.gmra.mxu2 %vm4411_vm3, %v4130_v12  ;;  %v577_v13 = vmul.f32 %v10240_v18, %v14644_v58  ;;  %v4271_v8 = vsel %vm3346_vm1, %v3471_v56, %v8234_v34  ;;  %v1139_v12 = vmul.f32 %v10234_v21, %v14646_v22  ;;  %v14648_v27 = vld [vmem:[#allocation44_spill] sm:$0xff]  ;;  %v3472_v56 = vld [vmem:[#allocation2 + $0x188] sm:$0xff] }
 0x5ab   :  { %7983 = vmatmul.msk.f32.gmra.mxu1 %vm4411_vm3, %v11940_v0  ;;  %v4932_v33 = vadd.f32 %v4931_v49, %v4675_v6  ;;  %4721 = vmatmul.f32.gmra.mxu0 %v4351_v32  ;;  %v1882_v23 = vadd.f32 %v1802_v47, %v1241_v10  ;;  %v2420_v6 = vmul.f32 %v10264_v26, %v14647_v30  ;;  %v14649_v47 = vld [vmem:[#allocation186_spill] sm:$0xff] }
 0x5ac   :  { %v1218_v37 = vadd.f32 %v1138_v19, %v577_v13  ;;  %v578_v55 = vmul.f32 %v10240_v18, %v14648_v27  ;;  %v1780_v32 = vmul.f32 %v10250_v42, %v14649_v47  ;;  %v4352_v34 = vsel %vm4307_vm4, %v4271_v8, %v12086_v43 }
 0x5ad   :  { %v5117_v35 = vmax.f32 %v4932_v33, 0.0  ;;  %v2523_v40 = vadd.f32 %v2443_v52, %v1882_v23  ;;  %v2586_v33 = vld [vmem:[%s14104_s0 + $0x224] sm:$0xff] }
 0x5ae   :  { %v2997_v20 = vpop.permute.xlu1 %2996  ;;  %v3583_v1 = vld [vmem:[#allocation2 + $0x29a] sm:$0xff]  ;;  %v1859_v61 = vadd.f32 %v1779_v60, %v1218_v37  ;;  %v1219_v38 = vadd.f32 %v1139_v12, %v578_v55  ;;  %v14650_v52 = vld [vmem:[#allocation261_spill] sm:$0xff]  ;;  %v4272_v60 = vsel %vm3346_vm1, %v3472_v56, %v8239_v14  ;;  %v8244_v12 = vunpack.i.l.bf16 %v12156_v51 }
 0x5af   :  { %v3083_v0 = vmul.f32 %v10281_v54, %v2997_v20  ;;  %4139 = vrot.lane.b32.xlu2 %v3583_v1, %s8463_s15  ;;  %5197 = vst.msk [vmem:[#allocation3 + $0xe8] sm:$0xff] %vm3346_vm1, %v5117_v35  ;;  %v4934_v49 = vpop.f32.mrf.mxu1  ;;  %v2421_v20 = vmul.f32 %v10264_v26, %v14650_v52  ;;  %v4353_v22 = vsel %vm4307_vm4, %v4272_v60, %v12115_v9 }
 0x5b0   :  { %v12283_v7 = vpop.permute.xlu2 %4085  ;;  %4805 = vmatmul.f32.gmra.mxu3 %v4379_v15  ;;  %v4677_v48 = vpop.f32.mrf.mxu0 }
 0x5b1   :  { %v3163_v31 = vadd.f32 %v3083_v0, %v2522_v62  ;;  %v3002_v28 = vpop.permute.xlu0 %3001  ;;  %v4678_v16 = vadd.f32 %v12046_v63, %v4677_v48  ;;  %v2500_v62 = vadd.f32 %v2420_v6, %v1859_v61  ;;  %v1860_v0 = vadd.f32 %v1780_v32, %v1219_v38  ;;  %v14652_v61 = vld [vmem:[#allocation33_spill] sm:$0xff] }
 0x5b2   :  { %v3084_v36 = vmul.f32 %v10281_v54, %v3002_v28  ;;  %v580_v14 = vmul.f32 %v10240_v18, %v14652_v61 }
 0x5b3   :  { %v3247_v41 = vadd.f32 %v12128_v53, %v3163_v31  ;;  %7984 = vmatmul.msk.f32.gmra.mxu1 %vm4411_vm3, %v12086_v43  ;;  %v4935_v10 = vadd.f32 %v4934_v49, %v4678_v16  ;;  %4724 = vmatmul.f32.gmra.mxu0 %v4352_v34  ;;  %v2501_v31 = vadd.f32 %v2421_v20, %v1860_v0  ;;  %v14651_v16 = vld [vmem:[#allocation115_spill] sm:$0xff]  ;;  %v2587_v20 = vld [vmem:[%s14104_s0 + $0x22c] sm:$0xff]  ;;  %v14655_v0 = vld [vmem:[#allocation116_spill] sm:$0xff] }
 0x5b4   :  { %v3164_v46 = vadd.f32 %v3084_v36, %v2523_v40  ;;  %v1141_v27 = vmul.f32 %v10234_v21, %v14651_v16  ;;  %v1140_v56 = vmul.f32 %v10234_v21, %v14655_v0  ;;  %v14658_v16 = vld [vmem:[#allocation260_spill] sm:$0xff] }
 0x5b5   :  { %v3327_v19 = vmax.f32 %v3247_v41, 0.0  ;;  %v5118_v43 = vmax.f32 %v4935_v10, 0.0  ;;  %v3473_v41 = vld [vmem:[#allocation2 + $0x190] sm:$0xff] }
 0x5b6   :  { %v12313_v1 = vadd.f32 %v12128_v53, %v3164_v46  ;;  %v2887_v11 = vpop.permute.xlu1 %2886  ;;  %v4273_v46 = vsel %vm3346_vm1, %v3473_v41, %v8244_v12 }
 0x5b7   :  { %3425 = vst.msk [vmem:[#allocation2 + $0x2a9] sm:$0xff] %vm3346_vm1, %v3327_v19  ;;  %v3061_v35 = vmul.f32 %v10281_v54, %v2887_v11  ;;  %2916 = vperm.xlu2 %8120, %v2586_v33   ;;  %v8281_v24 = vpack.i.bf16 %v3327_v19, %v3303_v50  ;;  %v4937_v13 = vpop.f32.mrf.mxu1  ;;  %v14653_v19 = vld [vmem:[#allocation190_spill] sm:$0xff]  ;;  %v4354_v52 = vsel %vm4307_vm4, %v4273_v46, %v12132_v57 }
 0x5b8   :  { %v3328_v15 = vmax.f32 %v12313_v1, 0.0  ;;  %v12320_v23 = vpop.permute.xlu2 %8257  ;;  %5198 = vst.msk [vmem:[#allocation3 + $0xf0] sm:$0xff] %vm3346_vm1, %v5118_v43  ;;  %v4680_v50 = vpop.f32.mrf.mxu0  ;;  %v1782_v10 = vmul.f32 %v10250_v42, %v14653_v19  ;;  %v1221_v11 = vadd.f32 %v1141_v27, %v580_v14  ;;  %v2422_v27 = vmul.f32 %v10264_v26, %v14658_v16 }
 0x5b9   :  { %v3141_v58 = vadd.f32 %v3061_v35, %v2500_v62  ;;  %8282 = vrot.lane.b32.xlu1 %v8281_v24, %s8462_s12  ;;  %v2892_v4 = vpop.permute.xlu0 %2891  ;;  %v4681_v28 = vadd.f32 %v12046_v63, %v4680_v50  ;;  %v14654_v62 = vld [vmem:[#allocation250_spill] sm:$0xff]  ;;  %v3499_v24 = vld [vmem:[#allocation2 + $0x278] sm:$0xff] }
 0x5ba   :  { %3426 = vst.msk [vmem:[#allocation2 + $0x2b1] sm:$0xff] %vm3346_vm1, %v3328_v15  ;;  %v3062_v29 = vmul.f32 %v10281_v54, %v2892_v4  ;;  %v2423_v43 = vmul.f32 %v10264_v26, %v14654_v62  ;;  %v1862_v60 = vadd.f32 %v1782_v10, %v1221_v11  ;;  %v2588_v50 = vld [vmem:[%s14104_s0 + $0x234] sm:$0xff]  ;;  %v8286_v11 = vpack.i.bf16 %v3328_v15, %v3304_v3  ;;  %v3500_v62 = vld [vmem:[#allocation2 + $0x280] sm:$0xff] }
 0x5bb   :  { %v12330_v49 = vadd.f32 %v12128_v53, %v3141_v58  ;;  %7985 = vmatmul.msk.f32.gmra.mxu1 %vm4411_vm3, %v12115_v9  ;;  %v4938_v36 = vadd.f32 %v4937_v13, %v4681_v28  ;;  %4727 = vmatmul.f32.gmra.mxu0 %v4353_v22  ;;  %v14656_v28 = vld [vmem:[#allocation43_spill] sm:$0xff]  ;;  %v14657_v22 = vld [vmem:[#allocation176_spill] sm:$0xff] }
 0x5bc   :  { %v3142_v8 = vadd.f32 %v3062_v29, %v2501_v31  ;;  %v1781_v12 = vmul.f32 %v10250_v42, %v14657_v22  ;;  %v3475_v3 = vld [vmem:[#allocation2 + $0x1a0] sm:$0xff] }
 0x5bd   :  { %v3305_v40 = vmax.f32 %v12330_v49, 0.0  ;;  %v5119_v6 = vmax.f32 %v4938_v36, 0.0  ;;  %v3476_v49 = vld [vmem:[#allocation2 + $0x1a8] sm:$0xff] }
 0x5be   :  { %v12340_v48 = vadd.f32 %v12128_v53, %v3142_v8  ;;  %v12342_v37 = vpop.permute.xlu1 %8252  ;;  %v3584_v30 = vld [vmem:[#allocation2 + $0x2a2] sm:$0xff]  ;;  %v579_v8 = vmul.f32 %v10240_v18, %v14656_v28 }
 0x5bf   :  { %3403 = vst.msk [vmem:[#allocation2 + $0x1e9] sm:$0xff] %vm3346_vm1, %v3305_v40  ;;  %4141 = vrot.lane.b32.xlu0 %v3584_v30, %s8463_s15  ;;  %v4940_v55 = vpop.f32.mrf.mxu1  ;;  %v8255_v34 = vunpack.i.h.bf16 %v12342_v37 }
 0x5c0   :  { %v3306_v9 = vmax.f32 %v12340_v48, 0.0  ;;  %v12349_v51 = vpop.permute.xlu2 %4133  ;;  %5199 = vst.msk [vmem:[#allocation3 + $0xf8] sm:$0xff] %vm3346_vm1, %v5119_v6  ;;  %v4683_v33 = vpop.f32.mrf.mxu0  ;;  %v1220_v41 = vadd.f32 %v1140_v56, %v579_v8 }
 0x5c1   :  { %v12354_v47 = vpop.permute.xlu0 %4087  ;;  %v3585_v32 = vld [vmem:[#allocation2 + $0x2aa] sm:$0xff]  ;;  %v4684_v38 = vadd.f32 %v12046_v63, %v4683_v33  ;;  %v4299_v4 = vsel %vm3346_vm1, %v3499_v24, %v8255_v34  ;;  %v3474_v34 = vld [vmem:[#allocation2 + $0x198] sm:$0xff] }
 0x5c2   :  { %3404 = vst.msk [vmem:[#allocation2 + $0x1f1] sm:$0xff] %vm3346_vm1, %v3306_v9  ;;  %4143 = vrot.lane.b32.xlu1 %v3585_v32, %s8463_s15  ;;  %v1861_v19 = vadd.f32 %v1781_v12, %v1220_v41  ;;  %v3501_v12 = vld [vmem:[#allocation2 + $0x288] sm:$0xff] }
 0x5c3   :  { %7986 = vmatmul.msk.f32.gmra.mxu1 %vm4411_vm3, %v12132_v57  ;;  %v4941_v35 = vadd.f32 %v4940_v55, %v4684_v38  ;;  %4730 = vmatmul.f32.gmra.mxu0 %v4354_v52  ;;  %v8249_v57 = vunpack.i.l.bf16 %v12223_v39  ;;  %v2503_v39 = vadd.f32 %v2423_v43, %v1862_v60  ;;  %v8260_v55 = vunpack.i.h.bf16 %v12320_v23 }
 0x5c4   :  { %v8254_v38 = vunpack.i.l.bf16 %v12342_v37  ;;  %v2502_v43 = vadd.f32 %v2422_v27, %v1861_v19  ;;  %v3477_v19 = vld [vmem:[#allocation2 + $0x1b8] sm:$0xff] }
 0x5c5   :  { %v5120_v31 = vmax.f32 %v4941_v35, 0.0  ;;  %v4274_v14 = vsel %vm3346_vm1, %v3474_v34, %v8249_v57  ;;  %v4300_v0 = vsel %vm3346_vm1, %v3500_v62, %v8260_v55  ;;  %v2589_v55 = vld [vmem:[%s14104_s0 + $0x23c] sm:$0xff] }
 0x5c6   :  { %v4132_v58 = vpop.permute.xlu1 %4131  ;;  %v3562_v13 = vld [vmem:[#allocation2 + $0x1e2] sm:$0xff]  ;;  %v4355_v10 = vsel %vm4307_vm4, %v4274_v14, %v12241_v44  ;;  %v4381_v5 = vsel %vm4307_vm4, %v4300_v0, %v12349_v51  ;;  %v5340_v62 = vld [vmem:[#allocation3 + $0x12] ss:$2 sm:$0xff] }
 0x5c7   :  { %2921 = vperm.xlu0 %8118, %v2587_v20   ;;  %4097 = vrot.lane.b32.xlu2 %v3562_v13, %s8463_s15  ;;  %v4380_v29 = vsel %vm4307_vm4, %v4299_v4, %v4132_v58  ;;  %5200 = vst.msk [vmem:[#allocation3 + $0x108] sm:$0xff] %vm3346_vm1, %v5120_v31  ;;  %v4943_v6 = vpop.f32.mrf.mxu1  ;;  %v5418_v14 = vld [vmem:[#allocation3 + $0x4] ss:$2 sm:$0xff] }
 0x5c8   :  { %8012 = vmatmul.msk.f32.gmra.mxu2 %vm4411_vm3, %v4132_v58  ;;  %v2902_v36 = vpop.permute.xlu2 %2901  ;;  %4808 = vmatmul.f32.gmra.mxu3 %v4380_v29  ;;  %v4686_v46 = vpop.f32.mrf.mxu0  ;;  %v4275_v58 = vsel %vm3346_vm1, %v3475_v3, %v8254_v38  ;;  %v5338_v29 = vld [vmem:[#allocation3 + $0x2] ss:$2 sm:$0xff] }
 0x5c9   :  { %v3064_v30 = vmul.f32 %v10281_v54, %v2902_v36  ;;  %v12395_v32 = vpop.permute.xlu0 %8262  ;;  %v4687_v61 = vadd.f32 %v12046_v63, %v4686_v46  ;;  %v3563_v24 = vld [vmem:[#allocation2 + $0x1ea] sm:$0xff]  ;;  %v4356_v31 = vsel %vm4307_vm4, %v4275_v58, %v12256_v59  ;;  %v8291_v22 = vpack.i.bf16 %v5338_v29, %v3305_v40  ;;  %v3586_v36 = vld [vmem:[#allocation2 + $0x2b2] sm:$0xff] }
 0x5ca   :  { %2926 = vperm.xlu1 %8119, %v2588_v50   ;;  %v8265_v13 = vunpack.i.h.bf16 %v12395_v32  ;;  %v8259_v50 = vunpack.i.l.bf16 %v12320_v23  ;;  %v8264_v46 = vunpack.i.l.bf16 %v12395_v32  ;;  %v5498_v0 = vld [vmem:[#allocation3 + $0x6] ss:$2 sm:$0xff] }
 0x5cb   :  { %v3144_v33 = vadd.f32 %v3064_v30, %v2503_v39  ;;  %7987 = vmatmul.msk.f32.gmra.mxu1 %vm4411_vm3, %v12241_v44  ;;  %v4944_v20 = vadd.f32 %v4943_v6, %v4687_v61  ;;  %4733 = vmatmul.f32.gmra.mxu0 %v4355_v10 }
 0x5cc   :  { %v4301_v39 = vsel %vm3346_vm1, %v3501_v12, %v8265_v13  ;;  %v4276_v6 = vsel %vm3346_vm1, %v3476_v49, %v8259_v50  ;;  %v4277_v10 = vsel %vm3346_vm1, %v3477_v19, %v8264_v46  ;;  %v14661_v19 = vld [vmem:[#allocation179_spill] sm:$0xff] }
 0x5cd   :  { %v12405_v52 = vadd.f32 %v12128_v53, %v3144_v33  ;;  %v5121_v56 = vmax.f32 %v4944_v20, 0.0  ;;  %v4357_v27 = vsel %vm4307_vm4, %v4276_v6, %v12283_v7 }
 0x5ce   :  { %v2897_v35 = vpop.permute.xlu1 %2896 }
 0x5cf   :  { %v3308_v44 = vmax.f32 %v12405_v52, 0.0  ;;  %v3063_v37 = vmul.f32 %v10281_v54, %v2897_v35  ;;  %8287 = vrot.lane.b32.xlu2 %v8286_v11, %s8462_s12  ;;  %4099 = vrot.lane.b32.xlu0 %v3563_v24, %s8463_s15  ;;  %v4946_v15 = vpop.f32.mrf.mxu1  ;;  %5201 = vst.msk [vmem:[#allocation3 + $0x110] sm:$0xff] %vm3346_vm1, %v5121_v56  ;;  %v4358_v11 = vsel %vm4307_vm4, %v4277_v10, %v12354_v47  ;;  %v14666_v52 = vld [vmem:[#allocation264_spill] sm:$0xff] }
 0x5d0   :  { %8013 = vmatmul.msk.f32.gmra.mxu2 %vm4411_vm3, %v12349_v51  ;;  %4811 = vmatmul.f32.gmra.mxu3 %v4381_v5  ;;  %v4689_v4 = vpop.f32.mrf.mxu0  ;;  %v8296_v24 = vpack.i.bf16 %v5340_v62, %v3306_v9  ;;  %v4092_v29 = vpop.permute.xlu2 %4091 }
 0x5d1   :  { %3406 = vst.msk [vmem:[#allocation2 + $0x201] sm:$0xff] %vm3346_vm1, %v3308_v44  ;;  %v3143_v1 = vadd.f32 %v3063_v37, %v2502_v43  ;;  %v4690_v51 = vadd.f32 %v12046_v63, %v4689_v4  ;;  %v4136_v57 = vpop.permute.xlu0 %4135  ;;  %v5578_v37 = vld [vmem:[#allocation3 + $0x8] ss:$2 sm:$0xff] }
 0x5d3   :  { %v12427_v60 = vadd.f32 %v12128_v53, %v3143_v1  ;;  %7988 = vmatmul.msk.f32.gmra.mxu1 %vm4411_vm3, %v12256_v59  ;;  %v4947_v8 = vadd.f32 %v4946_v15, %v4690_v51  ;;  %4736 = vmatmul.f32.gmra.mxu0 %v4356_v31  ;;  %v4382_v59 = vsel %vm4307_vm4, %v4301_v39, %v4136_v57  ;;  %v2590_v15 = vld [vmem:[%s14104_s0 + $0x244] sm:$0xff]  ;;  %v5420_v51 = vld [vmem:[#allocation3 + $0x14] ss:$2 sm:$0xff] }
 0x5d5   :  { %v3307_v28 = vmax.f32 %v12427_v60, 0.0  ;;  %v5122_v30 = vmax.f32 %v4947_v8, 0.0  ;;  %v5342_v8 = vld [vmem:[#allocation3 + $0x22] ss:$2 sm:$0xff] }
 0x5d6   :  { %v4090_v23 = vpop.permute.xlu1 %4089 }
 0x5d7   :  { %3405 = vst.msk [vmem:[#allocation2 + $0x1f9] sm:$0xff] %vm3346_vm1, %v3307_v28  ;;  %4145 = vrot.lane.b32.xlu2 %v3586_v36, %s8463_s15  ;;  %8292 = vrot.lane.b32.xlu0 %v8291_v22, %s8462_s12  ;;  %v4949_v40 = vpop.f32.mrf.mxu1  ;;  %v8301_v12 = vpack.i.bf16 %v5342_v8, %v3307_v28  ;;  %v5500_v36 = vld [vmem:[#allocation3 + $0x16] ss:$2 sm:$0xff] }
 0x5d8   :  { %8014 = vmatmul.msk.f32.gmra.mxu2 %vm4411_vm3, %v4136_v57  ;;  %4814 = vmatmul.f32.gmra.mxu3 %v4382_v59  ;;  %5202 = vst.msk [vmem:[#allocation3 + $0x118] sm:$0xff] %vm3346_vm1, %v5122_v30  ;;  %v4692_v41 = vpop.f32.mrf.mxu0  ;;  %v5580_v30 = vld [vmem:[#allocation3 + $0x18] ss:$2 sm:$0xff] }
 0x5d9   :  { %v4693_v16 = vadd.f32 %v12046_v63, %v4692_v41  ;;  %v14659_v28 = vld [vmem:[#allocation119_spill] sm:$0xff] }
 0x5da   :  { %v1143_v41 = vmul.f32 %v10234_v21, %v14659_v28  ;;  %v3503_v28 = vld [vmem:[#allocation2 + $0x298] sm:$0xff] }
 0x5db   :  { %7989 = vmatmul.msk.f32.gmra.mxu1 %vm4411_vm3, %v12283_v7  ;;  %v4950_v34 = vadd.f32 %v4949_v40, %v4693_v16  ;;  %4739 = vmatmul.f32.gmra.mxu0 %v4357_v27  ;;  %v5422_v27 = vld [vmem:[#allocation3 + $0x24] ss:$2 sm:$0xff] }
 0x5dd   :  { %v5123_v61 = vmax.f32 %v4950_v34, 0.0 }
 0x5de   :  { %v3564_v33 = vld [vmem:[#allocation2 + $0x1f2] sm:$0xff]  ;;  %v12461_v38 = vpop.permute.xlu1 %8267  ;;  %v3565_v13 = vld [vmem:[#allocation2 + $0x1fa] sm:$0xff] }
 0x5df   :  { %2931 = vperm.xlu2 %8120, %v2589_v55   ;;  %4101 = vrot.lane.b32.xlu1 %v3564_v33, %s8463_s15  ;;  %5203 = vst.msk [vmem:[#allocation3 + $0x120] sm:$0xff] %vm3346_vm1, %v5123_v61  ;;  %v4952_v7 = vpop.f32.mrf.mxu1  ;;  %v8269_v43 = vunpack.i.l.bf16 %v12461_v38  ;;  %v3566_v55 = vld [vmem:[#allocation2 + $0x202] sm:$0xff]  ;;  %v8270_v46 = vunpack.i.h.bf16 %v12461_v38  ;;  %v14660_v61 = vld [vmem:[#allocation46_spill] sm:$0xff] }
 0x5e0   :  { %5857 = vrot.lane.b32.xlu0 %v5418_v14, %s8463_s15  ;;  %v4695_v20 = vpop.f32.mrf.mxu0  ;;  %v3479_v33 = vld [vmem:[#allocation2 + $0x1c8] sm:$0xff]  ;;  %v582_v14 = vmul.f32 %v10240_v18, %v14660_v61 }
 0x5e1   :  { %v4696_v32 = vadd.f32 %v12046_v63, %v4695_v20 }
 0x5e3   :  { %7990 = vmatmul.msk.f32.gmra.mxu1 %vm4411_vm3, %v12354_v47  ;;  %v4953_v35 = vadd.f32 %v4952_v7, %v4696_v32  ;;  %4742 = vmatmul.f32.gmra.mxu0 %v4358_v11  ;;  %v3478_v47 = vld [vmem:[#allocation2 + $0x1c0] sm:$0xff]  ;;  %v1784_v7 = vmul.f32 %v10250_v42, %v14661_v19  ;;  %v1223_v32 = vadd.f32 %v1143_v41, %v582_v14  ;;  %v14662_v11 = vld [vmem:[#allocation263_spill] sm:$0xff] }
 0x5e4   :  { %v4278_v3 = vsel %vm3346_vm1, %v3478_v47, %v8269_v43  ;;  %v2425_v62 = vmul.f32 %v10264_v26, %v14662_v11  ;;  %v14663_v47 = vld [vmem:[#allocation105_spill] sm:$0xff]  ;;  %v14668_v41 = vld [vmem:[#allocation36_spill] sm:$0xff] }
 0x5e5   :  { %v5124_v56 = vmax.f32 %v4953_v35, 0.0  ;;  %v4359_v9 = vsel %vm4307_vm4, %v4278_v3, %v4090_v23  ;;  %v3502_v35 = vld [vmem:[#allocation2 + $0x290] sm:$0xff]  ;;  %v1864_v3 = vadd.f32 %v1784_v7, %v1223_v32 }
 0x5e6   :  { %v5504_v11 = vld [vmem:[#allocation3 + $0x36] ss:$2 sm:$0xff] }
 0x5e7   :  { %8297 = vrot.lane.b32.xlu2 %v8296_v24, %s8462_s12  ;;  %6017 = vrot.lane.b32.xlu1 %v5498_v0, %s8464_s14  ;;  %5204 = vst.msk [vmem:[#allocation3 + $0x128] sm:$0xff] %vm3346_vm1, %v5124_v56  ;;  %v4955_v5 = vpop.f32.mrf.mxu1  ;;  %v12519_v24 = vld [vmem:[%s14108_s4] ss:$0 sm:$0xff] }
 0x5e8   :  { %6177 = vrot.lane.b32.xlu0 %v5578_v37, %s8465_s16  ;;  %v4698_v1 = vpop.f32.mrf.mxu0  ;;  %v4302_v37 = vsel %vm3346_vm1, %v3502_v35, %v8270_v46 }
 0x5e9   :  { %v4699_v48 = vadd.f32 %v12046_v63, %v4698_v1 }
 0x5eb   :  { %7991 = vmatmul.msk.f32.gmra.mxu1 %vm4411_vm3, %v4090_v23  ;;  %v4956_v58 = vadd.f32 %v4955_v5, %v4699_v48  ;;  %4745 = vmatmul.f32.gmra.mxu0 %v4359_v9  ;;  %v1142_v5 = vmul.f32 %v10234_v21, %v14663_v47  ;;  %v5344_v48 = vld [vmem:[#allocation3 + $0x32] ss:$2 sm:$0xff] }
 0x5ed   :  { %v5125_v4 = vmax.f32 %v4956_v58, 0.0  ;;  %v8306_v58 = vpack.i.bf16 %v5344_v48, %v3308_v44  ;;  %v2424_v44 = vmul.f32 %v10264_v26, %v14666_v52 }
 0x5ef   :  { %2936 = vperm.xlu2 %8120, %v2590_v15   ;;  %4103 = vrot.lane.b32.xlu1 %v3565_v13, %s8463_s15  ;;  %5205 = vst.msk [vmem:[#allocation3 + $0x130] sm:$0xff] %vm3346_vm1, %v5125_v4  ;;  %v4958_v57 = vpop.f32.mrf.mxu1  ;;  %v14664_v13 = vld [vmem:[#allocation47_spill] sm:$0xff] }
 0x5f0   :  { %5859 = vrot.lane.b32.xlu0 %v5420_v51, %s8463_s15  ;;  %v4701_v31 = vpop.f32.mrf.mxu0  ;;  %v581_v4 = vmul.f32 %v10240_v18, %v14664_v13  ;;  %v14665_v51 = vld [vmem:[#allocation189_spill] sm:$0xff] }
 0x5f1   :  { %v4702_v50 = vadd.f32 %v12046_v63, %v4701_v31  ;;  %v2505_v31 = vadd.f32 %v2425_v62, %v1864_v3  ;;  %v5424_v62 = vld [vmem:[#allocation3 + $0x34] ss:$2 sm:$0xff] }
 0x5f3   :  { %7992 = vmatmul.msk.f32.gmra.mxu1 %vm4411_vm3, %v4092_v29  ;;  %v4959_v22 = vadd.f32 %v4958_v57, %v4702_v50  ;;  %v1783_v57 = vmul.f32 %v10250_v42, %v14665_v51  ;;  %v5582_v50 = vld [vmem:[#allocation3 + $0x28] ss:$2 sm:$0xff] }
 0x5f5   :  { %v5126_v39 = vmax.f32 %v4959_v22, 0.0 }
 0x5f7   :  { %8302 = vrot.lane.b32.xlu2 %v8301_v12, %s8462_s12  ;;  %6019 = vrot.lane.b32.xlu1 %v5500_v36, %s8464_s14  ;;  %5206 = vst.msk [vmem:[#allocation3 + $0x138] sm:$0xff] %vm3346_vm1, %v5126_v39  ;;  %v4961_v59 = vpop.f32.mrf.mxu1  ;;  %v1222_v12 = vadd.f32 %v1142_v5, %v581_v4  ;;  %v5584_v4 = vld [vmem:[#allocation3 + $0x38] ss:$2 sm:$0xff] }
 0x5f8   :  { %6179 = vrot.lane.b32.xlu0 %v5580_v30, %s8465_s16  ;;  %v4704_v23 = vpop.f32.mrf.mxu0 }
 0x5f9   :  { %v4705_v49 = vadd.f32 %v12046_v63, %v4704_v23  ;;  %v5502_v63 = vld [vmem:[#allocation3 + $0x26] ss:$2 sm:$0xff] }
 0x5fb   :  { %v4962_v6 = vadd.f32 %v4961_v59, %v4705_v49  ;;  %v14667_v59 = vld [vmem:[#allocation118_spill] sm:$0xff]  ;;  %v1863_v49 = vadd.f32 %v1783_v57, %v1222_v12 }
 0x5fc   :  { %v12494_v40 = vpop.permute.xlu2 %4093  ;;  %v1144_v23 = vmul.f32 %v10234_v21, %v14667_v59  ;;  %v6472_v57 = vld [vmem:[%s14109_s5 + $0x70] sm:$0xff]  ;;  %v6469_v59 = vld [vmem:[%s14109_s5 + $0x58] sm:$0xff] }
 0x5fd   :  { %v12496_v60 = vpop.permute.xlu1 %8272  ;;  %7993 = vmatmul.msk.f32.gmra.mxu1 %vm4411_vm3, %v12494_v40  ;;  %v5127_v34 = vmax.f32 %v4962_v6, 0.0 }
 0x5fe   :  { %v8274_v16 = vunpack.i.l.bf16 %v12496_v60  ;;  %v8275_v8 = vunpack.i.h.bf16 %v12496_v60 }
 0x5ff   :  { %5861 = vrot.lane.b32.xlu2 %v5422_v27, %s8463_s15  ;;  %4105 = vrot.lane.b32.xlu1 %v3566_v55, %s8463_s15  ;;  %5207 = vst.msk [vmem:[#allocation3 + $0x140] sm:$0xff] %vm3346_vm1, %v5127_v34  ;;  %v4964_v38 = vpop.f32.mrf.mxu1  ;;  %v14669_v27 = vld [vmem:[#allocation193_spill] sm:$0xff] }
 0x600   :  { %6021 = vrot.lane.b32.xlu0 %v5502_v63, %s8464_s14  ;;  %v4279_v10 = vsel %vm3346_vm1, %v3479_v33, %v8274_v16  ;;  %v4707_v43 = vpop.f32.mrf.mxu0  ;;  %v583_v16 = vmul.f32 %v10240_v18, %v14668_v41  ;;  %v1785_v55 = vmul.f32 %v10250_v42, %v14669_v27  ;;  %v4303_v63 = vsel %vm3346_vm1, %v3503_v28, %v8275_v8 }
 0x601   :  { %v4360_v20 = vsel %vm4307_vm4, %v4279_v10, %v4092_v29  ;;  %v4708_v0 = vadd.f32 %v12519_v24, %v4707_v43  ;;  %v2504_v33 = vadd.f32 %v2424_v44, %v1863_v49  ;;  %v6470_v44 = vld [vmem:[%s14109_s5 + $0x60] sm:$0xff]  ;;  %v3480_v49 = vld [vmem:[#allocation2 + $0x1d0] sm:$0xff] }
 0x602   :  { %4748 = vmatmul.f32.gmra.mxu0 %v4360_v20  ;;  %v1224_v10 = vadd.f32 %v1144_v23, %v583_v16  ;;  %v5506_v23 = vld [vmem:[#allocation3 + $0x46] ss:$2 sm:$0xff] }
 0x603   :  { %v4138_v56 = vpop.permute.xlu0 %4137  ;;  %v4965_v9 = vadd.f32 %v4964_v38, %v4708_v0  ;;  %v14670_v38 = vld [vmem:[#allocation253_spill] sm:$0xff]  ;;  %v6468_v16 = vld [vmem:[%s14109_s5 + $0x50] sm:$0xff] }
 0x604   :  { %8015 = vmatmul.msk.f32.gmra.mxu2 %vm4411_vm3, %v4138_v56  ;;  %v4383_v1 = vsel %vm4307_vm4, %v4302_v37, %v4138_v56  ;;  %v2426_v20 = vmul.f32 %v10264_v26, %v14670_v38  ;;  %v1865_v35 = vadd.f32 %v1785_v55, %v1224_v10  ;;  %v6488_v55 = vld [vmem:[%s14109_s5 + $0xf0] sm:$0xff] }
 0x605   :  { %v2912_v15 = vpop.permute.xlu1 %2911  ;;  %4817 = vmatmul.f32.gmra.mxu3 %v4383_v1  ;;  %v5128_v22 = vmax.f32 %v4965_v9, 0.0 }
 0x606   :  { %v3066_v29 = vmul.f32 %v10281_v54, %v2912_v15  ;;  %v2506_v47 = vadd.f32 %v2426_v20, %v1865_v35  ;;  %v6466_v20 = vld [vmem:[%s14109_s5 + $0x40] sm:$0xff] }
 0x607   :  { %6181 = vrot.lane.b32.xlu2 %v5582_v50, %s8465_s16  ;;  %8307 = vrot.lane.b32.xlu1 %v8306_v58, %s8462_s12  ;;  %5208 = vst.msk [vmem:[#allocation3 + $0x148] sm:$0xff] %vm3346_vm1, %v5128_v22  ;;  %v4967_v39 = vpop.f32.mrf.mxu1  ;;  %v6473_v58 = vld [vmem:[%s14109_s5 + $0x78] sm:$0xff] }
 0x608   :  { %v3146_v36 = vadd.f32 %v3066_v29, %v2505_v31  ;;  %v4710_v60 = vpop.f32.mrf.mxu0  ;;  %6619 = vmatpush.msrb.mxu2 %v6473_v58 }
 0x609   :  { %v4140_v30 = vpop.permute.xlu2 %4139  ;;  %v4711_v46 = vadd.f32 %v12519_v24, %v4710_v60  ;;  %v6489_v60 = vld [vmem:[%s14109_s5 + $0xf8] sm:$0x3] }
 0x60a   :  { %v12543_v6 = vadd.f32 %v12128_v53, %v3146_v36  ;;  %v4384_v19 = vsel %vm4307_vm4, %v4303_v63, %v4140_v30  ;;  %6620 = vmatpush.msrb.mxu2 %v6472_v57  ;;  %8020 = vmatpush.msk.msrb.mxu3 %vm6615_vm5, %v6489_v60  ;;  %vm7466_vm5 = vcmask 654816  }
 0x60b   :  { %v2907_v34 = vpop.permute.xlu0 %2906  ;;  %v4968_v7 = vadd.f32 %v4967_v39, %v4711_v46 }
 0x60c   :  { %v3310_v61 = vmax.f32 %v12543_v6, 0.0  ;;  %v3065_v14 = vmul.f32 %v10281_v54, %v2907_v34  ;;  %8016 = vmatmul.msk.f32.gmra.mxu2 %vm4411_vm3, %v4140_v30  ;;  %6757 = vmatpush.msrb.mxu3 %v6488_v55  ;;  %v6483_v6 = vld [vmem:[%s14109_s5 + $0xc8] sm:$0xff] }
 0x60d   :  { %4820 = vmatmul.f32.gmra.mxu3 %v4384_v19  ;;  %v5129_v43 = vmax.f32 %v4968_v7, 0.0  ;;  %v6487_v7 = vld [vmem:[%s14109_s5 + $0xe8] sm:$0xff] }
 0x60e   :  { %3408 = vst.msk [vmem:[#allocation2 + $0x219] sm:$0xff] %vm3346_vm1, %v3310_v61  ;;  %v3145_v32 = vadd.f32 %v3065_v14, %v2504_v33  ;;  %v5346_v33 = vld [vmem:[#allocation3 + $0x42] ss:$2 sm:$0xff]  ;;  %6758 = vmatpush.msrb.mxu3 %v6487_v7 }
 0x60f   :  { %6023 = vrot.lane.b32.xlu2 %v5504_v11, %s8464_s14  ;;  %5863 = vrot.lane.b32.xlu1 %v5424_v62, %s8463_s15  ;;  %5209 = vst.msk [vmem:[#allocation3 + $0x150] sm:$0xff] %vm3346_vm1, %v5129_v43  ;;  %v4970_v56 = vpop.f32.mrf.mxu1  ;;  %v6467_v14 = vld [vmem:[%s14109_s5 + $0x48] sm:$0xff]  ;;  %v6465_v62 = vld [vmem:[%s14109_s5 + $0x38] sm:$0xff] }
 0x610   :  { %v3229_v0 = vadd.f32 %v12128_v53, %v3145_v32  ;;  %v4713_v1 = vpop.f32.mrf.mxu0  ;;  %v6486_v32 = vld [vmem:[%s14109_s5 + $0xe0] sm:$0xff]  ;;  %v6485_v43 = vld [vmem:[%s14109_s5 + $0xd8] sm:$0xff] }
 0x611   :  { %v2917_v37 = vpop.permute.xlu2 %2916  ;;  %v4714_v48 = vadd.f32 %v12519_v24, %v4713_v1  ;;  %6759 = vmatpush.msrb.mxu3 %v6486_v32  ;;  %v6463_v1 = vld [vmem:[%s14109_s5 + $0x28] sm:$0xff]  ;;  %v3504_v32 = vld [vmem:[#allocation2 + $0x2a0] sm:$0xff] }
 0x612   :  { %v3309_v5 = vmax.f32 %v3229_v0, 0.0  ;;  %v3067_v3 = vmul.f32 %v10281_v54, %v2917_v37  ;;  %v5348_v0 = vld [vmem:[#allocation3 + $0x5a] ss:$2 sm:$0xff] }
 0x613   :  { %v4971_v15 = vadd.f32 %v4970_v56, %v4714_v48  ;;  %v6464_v56 = vld [vmem:[%s14109_s5 + $0x30] sm:$0xff]  ;;  %v8316_v37 = vpack.i.bf16 %v5348_v0, %v3310_v61  ;;  %6760 = vmatpush.msrb.mxu3 %v6485_v43 }
 0x614   :  { %3407 = vst.msk [vmem:[#allocation2 + $0x211] sm:$0xff] %vm3346_vm1, %v3309_v5  ;;  %v3147_v9 = vadd.f32 %v3067_v3, %v2506_v47  ;;  %v6484_v47 = vld [vmem:[%s14109_s5 + $0xd0] sm:$0xff] }
 0x615   :  { %v5130_v51 = vmax.f32 %v4971_v15, 0.0  ;;  %6761 = vmatpush.msrb.mxu3 %v6484_v47  ;;  %v6479_v47 = vld [vmem:[%s14109_s5 + $0xa8] sm:$0xff] }
 0x616   :  { %v12571_v13 = vadd.f32 %v12128_v53, %v3147_v9  ;;  %v6471_v53 = vld [vmem:[%s14109_s5 + $0x68] sm:$0xff] }
 0x617   :  { %6183 = vrot.lane.b32.xlu1 %v5584_v4, %s8465_s16  ;;  %5210 = vst.msk [vmem:[#allocation3 + $0x160] sm:$0xff] %vm3346_vm1, %v5130_v51  ;;  %v4973_v29 = vpop.f32.mrf.mxu1  ;;  %6621 = vmatpush.msrb.mxu2 %v6471_v53  ;;  %v5426_v4 = vld [vmem:[#allocation3 + $0x44] ss:$2 sm:$0xff] }
 0x618   :  { %v3311_v31 = vmax.f32 %v12571_v13, 0.0  ;;  %v4716_v50 = vpop.f32.mrf.mxu0  ;;  %v6462_v51 = vld [vmem:[%s14109_s5 + $0x20] sm:$0xff]  ;;  %6762 = vmatpush.msrb.mxu3 %v6483_v6 }
 0x619   :  { %v4717_v8 = vadd.f32 %v12519_v24, %v4716_v50  ;;  %6622 = vmatpush.msrb.mxu2 %v6470_v44  ;;  %v6482_v53 = vld [vmem:[%s14109_s5 + $0xc0] sm:$0xff]  ;;  %v14671_v44 = vld [vmem:[#allocation121_spill] sm:$0xff] }
 0x61a   :  { %3409 = vst.msk [vmem:[#allocation2 + $0x221] sm:$0xff] %vm3346_vm1, %v3311_v31  ;;  %6763 = vmatpush.msrb.mxu3 %v6482_v53 }
 0x61b   :  { %v12586_v22 = vpop.f32.mrf.mxu3  ;;  %v12588_v12 = vpop.permute.xlu1 %4095  ;;  %v3567_v52 = vld [vmem:[#allocation2 + $0x212] sm:$0xff]  ;;  %v4974_v39 = vadd.f32 %v4973_v29, %v4717_v8  ;;  %6623 = vmatpush.msrb.mxu2 %v6469_v59 }
 0x61c   :  { %v12593_v36 = vpop.permute.xlu0 %8277  ;;  %7994 = vmatmul.msk.f32.gmra.mxu1 %vm4411_vm3, %v12588_v12  ;;  %4107 = vrot.lane.b32.xlu0 %v3567_v52, %s8463_s15  ;;  %v3481_v8 = vld [vmem:[#allocation2 + $0x1d8] sm:$0xff] }
 0x61d   :  { %v8279_v30 = vunpack.i.l.bf16 %v12593_v36  ;;  %v5131_v28 = vmax.f32 %v4974_v39, 0.0  ;;  %6624 = vmatpush.msrb.mxu2 %v6468_v16  ;;  %v6461_v52 = vld [vmem:[%s14109_s5 + $0x18] sm:$0xff]  ;;  %v1147_v39 = vmul.f32 %v10234_v21, %v14671_v44 }
 0x61e   :  { %v14672_v16 = vld [vmem:[#allocation39_spill] sm:$0xff] }
 0x61f   :  { %6025 = vrot.lane.b32.xlu1 %v5506_v23, %s8464_s14  ;;  %v4280_v41 = vsel %vm3346_vm1, %v3480_v49, %v8279_v30  ;;  %5211 = vst.msk [vmem:[#allocation3 + $0x168] sm:$0xff] %vm3346_vm1, %v5131_v28  ;;  %6625 = vmatpush.msrb.mxu2 %v6467_v14  ;;  %v8280_v30 = vunpack.i.h.bf16 %v12593_v36  ;;  %v6481_v49 = vld [vmem:[%s14109_s5 + $0xb8] sm:$0xff]  ;;  %v586_v36 = vmul.f32 %v10240_v18, %v14672_v16 }
 0x620   :  { %v4361_v27 = vsel %vm4307_vm4, %v4280_v41, %v12494_v40  ;;  %v4976_v46 = vpop.f32.mrf.mxu1  ;;  %v4719_v19 = vpop.f32.mrf.mxu0  ;;  %v8311_v40 = vpack.i.bf16 %v5346_v33, %v3309_v5  ;;  %v6460_v41 = vld [vmem:[%s14109_s5 + $0x10] sm:$0xff]  ;;  %6764 = vmatpush.msrb.mxu3 %v6481_v49 }
 0x621   :  { %4751 = vmatmul.f32.gmra.mxu0 %v4361_v27  ;;  %v12616_v34 = vpop.permute.xlu2 %4097  ;;  %v3568_v63 = vld [vmem:[#allocation2 + $0x21a] sm:$0xff]  ;;  %v4720_v10 = vadd.f32 %v12519_v24, %v4719_v19  ;;  %6626 = vmatpush.msrb.mxu2 %v6466_v20  ;;  %v14674_v33 = vld [vmem:[#allocation50_spill] sm:$0xff] }
 0x622   :  { %4109 = vrot.lane.b32.xlu2 %v3568_v63, %s8463_s15  ;;  %v14673_v63 = vld [vmem:[#allocation49_spill] sm:$0xff]  ;;  %v584_v14 = vmul.f32 %v10240_v18, %v14674_v33  ;;  %v14675_v19 = vld [vmem:[#allocation108_spill] sm:$0xff] }
 0x623   :  { %v12626_v38 = vpop.f32.mrf.mxu3  ;;  %v4977_v11 = vadd.f32 %v4976_v46, %v4720_v10  ;;  %6627 = vmatpush.msrb.mxu2 %v6465_v62  ;;  %v6480_v46 = vld [vmem:[%s14109_s5 + $0xb0] sm:$0xff]  ;;  %v5428_v20 = vld [vmem:[#allocation3 + $0x5c] ss:$2 sm:$0xff] }
 0x624   :  { %7995 = vmatmul.msk.f32.gmra.mxu1 %vm4411_vm3, %v12616_v34  ;;  %8312 = vrot.lane.b32.xlu0 %v8311_v40, %s8462_s12  ;;  %v1145_v40 = vmul.f32 %v10234_v21, %v14675_v19  ;;  %v14676_v62 = vld [vmem:[#allocation122_spill] sm:$0xff] }
 0x625   :  { %v5132_v35 = vmax.f32 %v4977_v11, 0.0  ;;  %6628 = vmatpush.msrb.mxu2 %v6464_v56  ;;  %v5060_v48 = vpop.f32.mrf.mxu2  ;;  %v1227_v11 = vadd.f32 %v1147_v39, %v586_v36  ;;  %v1146_v43 = vmul.f32 %v10234_v21, %v14676_v62  ;;  %v4304_v56 = vsel %vm3346_vm1, %v3504_v32, %v8280_v30  ;;  %6765 = vmatpush.msrb.mxu3 %v6480_v46  ;;  %v14680_v39 = vld [vmem:[#allocation256_spill] sm:$0xff]  ;;  %v6477_v36 = vld [vmem:[%s14109_s5 + $0x98] sm:$0xff] }
 0x626   :  { %v2429_v30 = vmul.f32 %v10264_v26, %v14680_v39  ;;  %v1225_v49 = vadd.f32 %v1145_v40, %v584_v14 }
 0x627   :  { %5212 = vst.msk [vmem:[#allocation3 + $0x170] sm:$0xff] %vm3346_vm1, %v5132_v35  ;;  %6629 = vmatpush.msrb.mxu2 %v6463_v1  ;;  %6766 = vmatpush.msrb.mxu3 %v6479_v47 }
 0x628   :  { %v4979_v5 = vpop.f32.mrf.mxu1  ;;  %v4722_v9 = vpop.f32.mrf.mxu0 }
 0x629   :  { %v12652_v3 = vpop.permute.xlu2 %8287  ;;  %v4723_v61 = vadd.f32 %v12519_v24, %v4722_v9  ;;  %6630 = vmatpush.msrb.mxu2 %v6462_v51 }
 0x62a   :  { %8317 = vrot.lane.b32.xlu2 %v8316_v37, %s8462_s12  ;;  %v8289_v27 = vunpack.i.l.bf16 %v12652_v3  ;;  %v6459_v37 = vld [vmem:[%s14109_s5 + $0x8] sm:$0xff] }
 0x62b   :  { %v12662_v15 = vpop.permute.xlu1 %8282  ;;  %v4803_v58 = vpop.f32.mrf.mxu3  ;;  %v4980_v50 = vadd.f32 %v4979_v5, %v4723_v61  ;;  %6631 = vmatpush.msrb.mxu2 %v6461_v52  ;;  %v14677_v5 = vld [vmem:[#allocation196_spill] sm:$0xff]  ;;  %v5586_v61 = vld [vmem:[#allocation3 + $0x48] ss:$2 sm:$0xff] }
 0x62c   :  { %v8284_v57 = vunpack.i.l.bf16 %v12662_v15  ;;  %v4804_v29 = vadd.f32 %v12519_v24, %v4803_v58  ;;  %5865 = vrot.lane.b32.xlu0 %v5426_v4, %s8463_s15  ;;  %v1788_v1 = vmul.f32 %v10250_v42, %v14677_v5  ;;  %v3482_v58 = vld [vmem:[#allocation2 + $0x1e0] sm:$0xff]  ;;  %v14679_v52 = vld [vmem:[#allocation182_spill] sm:$0xff] }
 0x62d   :  { %v5133_v60 = vmax.f32 %v4980_v50, 0.0  ;;  %6632 = vmatpush.msrb.mxu2 %v6460_v41  ;;  %v14678_v4 = vld [vmem:[#allocation192_spill] sm:$0xff]  ;;  %v4282_v53 = vsel %vm3346_vm1, %v3482_v58, %v8289_v27  ;;  %v1787_v44 = vmul.f32 %v10250_v42, %v14679_v52  ;;  %v8285_v41 = vunpack.i.h.bf16 %v12662_v15  ;;  %v6476_v15 = vld [vmem:[%s14109_s5 + $0x90] sm:$0xff] }
 0x62e   :  { %v5061_v59 = vadd.f32 %v5060_v48, %v4804_v29  ;;  %v4281_v23 = vsel %vm3346_vm1, %v3481_v8, %v8284_v57  ;;  %v1786_v51 = vmul.f32 %v10250_v42, %v14678_v4  ;;  %v6458_v50 = vld [vmem:[%s14109_s5] sm:$0xff] }
 0x62f   :  { %v4362_v28 = vsel %vm4307_vm4, %v4281_v23, %v12588_v12  ;;  %v585_v12 = vmul.f32 %v10240_v18, %v14673_v63  ;;  %5213 = vst.msk [vmem:[#allocation3 + $0x178] sm:$0xff] %vm3346_vm1, %v5133_v60  ;;  %v6478_v8 = vld [vmem:[%s14109_s5 + $0xa0] sm:$0xff]  ;;  %6633 = vmatpush.msrb.mxu2 %v6459_v37  ;;  %v14681_v60 = vld [vmem:[#allocation267_spill] sm:$0xff]  ;;  %v4363_v63 = vsel %vm4307_vm4, %v4282_v53, %v12616_v34  ;;  %v3505_v34 = vld [vmem:[#allocation2 + $0x2a8] sm:$0xff]  ;;  %v8290_v53 = vunpack.i.h.bf16 %v12652_v3 }
 0x630   :  { %v5160_v55 = vmax.f32 %v5061_v59, 0.0  ;;  %4754 = vmatmul.f32.gmra.mxu0 %v4362_v28  ;;  %v4982_v7 = vpop.f32.mrf.mxu1  ;;  %v4725_v0 = vpop.f32.mrf.mxu0  ;;  %v2427_v28 = vmul.f32 %v10264_v26, %v14681_v60  ;;  %6767 = vmatpush.msrb.mxu3 %v6478_v8  ;;  %v1866_v33 = vadd.f32 %v1786_v51, %v1225_v49  ;;  %v6475_v37 = vld [vmem:[%s14109_s5 + $0x88] sm:$0xff]  ;;  %v3506_v60 = vld [vmem:[#allocation2 + $0x2b0] sm:$0xff] }
 0x631   :  { %v12701_v10 = vpop.permute.xlu2 %4145  ;;  %v4142_v35 = vpop.permute.xlu0 %4141  ;;  %v4726_v48 = vadd.f32 %v12519_v24, %v4725_v0  ;;  %v1226_v27 = vadd.f32 %v1146_v43, %v585_v12  ;;  %6634 = vmatpush.msrb.mxu2 %v6458_v50  ;;  %v5510_v49 = vld [vmem:[#allocation3 + $0x6e] ss:$2 sm:$0xff] }
 0x632   :  { %5240 = vst.msk [vmem:[#allocation3 + $0x268] sm:$0xff] %vm3346_vm1, %v5160_v55  ;;  %5867 = vrot.lane.b32.xlu2 %v5428_v20, %s8463_s15  ;;  %8017 = vmatmul.msk.f32.gmra.mxu2 %vm4411_vm3, %v4142_v35  ;;  %v4385_v6 = vsel %vm4307_vm4, %v4304_v56, %v4142_v35  ;;  %v5063_v59 = vpop.f32.mrf.mxu2  ;;  %v1868_v55 = vadd.f32 %v1788_v1, %v1227_v11  ;;  %v5588_v11 = vld [vmem:[#allocation3 + $0x60] ss:$2 sm:$0xff] }
 0x633   :  { %v4806_v9 = vpop.f32.mrf.mxu3  ;;  %4823 = vmatmul.f32.gmra.mxu3 %v4385_v6  ;;  %v4983_v23 = vadd.f32 %v4982_v7, %v4726_v48  ;;  %v1867_v19 = vadd.f32 %v1787_v44, %v1226_v27  ;;  %v14682_v7 = vld [vmem:[#allocation266_spill] sm:$0xff]  ;;  %v2507_v62 = vadd.f32 %v2427_v28, %v1866_v33  ;;  %v4305_v56 = vsel %vm3346_vm1, %v3505_v34, %v8285_v41  ;;  %v5508_v48 = vld [vmem:[#allocation3 + $0x5e] ss:$2 sm:$0xff] }
 0x634   :  { %v4807_v57 = vadd.f32 %v12519_v24, %v4806_v9  ;;  %6185 = vrot.lane.b32.xlu0 %v5586_v61, %s8465_s16  ;;  %v4144_v29 = vpop.permute.xlu1 %4143  ;;  %v2509_v40 = vadd.f32 %v2429_v30, %v1868_v55  ;;  %v2428_v20 = vmul.f32 %v10264_v26, %v14682_v7  ;;  %6768 = vmatpush.msrb.mxu3 %v6477_v36  ;;  %v6474_v61 = vld [vmem:[%s14109_s5 + $0x80] sm:$0xff]  ;;  %v14683_v28 = vld [vmem:[#allocation111_spill] sm:$0xff]  ;;  %v14686_v7 = vld [vmem:[#allocation270_spill] sm:$0xff]  ;;  %s8474_s5 = smov 112  }
 0x635   :  { %v5134_v46 = vmax.f32 %v4983_v23, 0.0  ;;  %v4386_v1 = vsel %vm4307_vm4, %v4305_v56, %v4144_v29  ;;  %v1148_v41 = vmul.f32 %v10234_v21, %v14683_v28  ;;  %v4306_v27 = vsel %vm3346_vm1, %v3506_v60, %v8290_v53 }
 0x636   :  { %v5064_v16 = vadd.f32 %v5063_v59, %v4807_v57  ;;  %6769 = vmatpush.msrb.mxu3 %v6476_v15  ;;  %v2508_v58 = vadd.f32 %v2428_v20, %v1867_v19  ;;  %v4387_v21 = vsel %vm4307_vm4, %v4306_v27, %v12701_v10  ;;  %v2430_v20 = vmul.f32 %v10264_v26, %v14686_v7 }
 0x637   :  { %5214 = vst.msk [vmem:[#allocation3 + $0x180] sm:$0xff] %vm3346_vm1, %v5134_v46 }
 0x638   :  { %v5161_v14 = vmax.f32 %v5064_v16, 0.0  ;;  %4757 = vmatmul.f32.gmra.mxu0 %v4363_v63  ;;  %v4985_v12 = vpop.f32.mrf.mxu1  ;;  %v4728_v0 = vpop.f32.mrf.mxu0  ;;  %6770 = vmatpush.msrb.mxu3 %v6475_v37  ;;  %v14684_v63 = vld [vmem:[#allocation53_spill] sm:$0xff] }
 0x639   :  { %v2932_v32 = vpop.permute.xlu2 %2931  ;;  %v2922_v35 = vpop.permute.xlu0 %2921  ;;  %v4729_v5 = vadd.f32 %v12519_v24, %v4728_v0  ;;  %v587_v33 = vmul.f32 %v10240_v18, %v14684_v63 }
 0x63a   :  { %5241 = vst.msk [vmem:[#allocation3 + $0x270] sm:$0xff] %vm3346_vm1, %v5161_v14  ;;  %v3070_v43 = vmul.f32 %v10281_v54, %v2932_v32  ;;  %6187 = vrot.lane.b32.xlu2 %v5588_v11, %s8465_s16  ;;  %v3068_v47 = vmul.f32 %v10281_v54, %v2922_v35  ;;  %8018 = vmatmul.msk.f32.gmra.mxu2 %vm4411_vm3, %v4144_v29  ;;  %v8430_v29 = vld [vmem:[%s14106_s2] ss:$0 sm:$0xff]  ;;  %v14685_v14 = vld [vmem:[#allocation195_spill] sm:$0xff]  ;;  %s8473_s2 = smov 32  }
 0x63b   :  { %4826 = vmatmul.f32.gmra.mxu3 %v4386_v1  ;;  %v4986_v51 = vadd.f32 %v4985_v12, %v4729_v5  ;;  %v1789_v15 = vmul.f32 %v10250_v42, %v14685_v14 }
 0x63c   :  { %v3150_v9 = vadd.f32 %v3070_v43, %v2509_v40  ;;  %6027 = vrot.lane.b32.xlu0 %v5508_v48, %s8464_s14  ;;  %v2927_v6 = vpop.permute.xlu1 %2926  ;;  %v3148_v4 = vadd.f32 %v3068_v47, %v2507_v62  ;;  %6771 = vmatpush.msrb.mxu3 %v6474_v61  ;;  %v1228_v40 = vadd.f32 %v1148_v41, %v587_v33  ;;  %v3483_v48 = vld [vmem:[#allocation2 + $0x1e8] sm:$0xff]  ;;  %v3484_v33 = vld [vmem:[#allocation2 + $0x1f0] sm:$0xff] }
 0x63d   :  { %v3069_v57 = vmul.f32 %v10281_v54, %v2927_v6  ;;  %v5135_v52 = vmax.f32 %v4986_v51, 0.0  ;;  %v5354_v41 = vld [vmem:[#allocation3 + $0x8a] ss:$2 sm:$0xff] }
 0x63e   :  { %v12768_v50 = vadd.f32 %v8430_v29, %v3150_v9  ;;  %v12770_v8 = vadd.f32 %v8430_v29, %v3148_v4  ;;  %v1869_v32 = vadd.f32 %v1789_v15, %v1228_v40 }
 0x63f   :  { %v3149_v44 = vadd.f32 %v3069_v57, %v2508_v58  ;;  %5215 = vst.msk [vmem:[#allocation3 + $0x188] sm:$0xff] %vm3346_vm1, %v5135_v52  ;;  %v5350_v52 = vld [vmem:[#allocation3 + $0x6a] ss:$2 sm:$0xff] }
 0x640   :  { %v3314_v39 = vmax.f32 %v12768_v50, 0.0  ;;  %v3312_v30 = vmax.f32 %v12770_v8, 0.0  ;;  %v4988_v3 = vpop.f32.mrf.mxu1  ;;  %v4731_v36 = vpop.f32.mrf.mxu0  ;;  %v2510_v34 = vadd.f32 %v2430_v20, %v1869_v32 }
 0x641   :  { %v12775_v59 = vadd.f32 %v8430_v29, %v3149_v44  ;;  %v12777_v23 = vpop.permute.xlu2 %8297  ;;  %v4100_v16 = vpop.permute.xlu0 %4099  ;;  %v4732_v46 = vadd.f32 %v12519_v24, %v4731_v36 }
 0x642   :  { %3412 = vst.msk [vmem:[#allocation2 + $0x239] sm:$0xff] %vm3346_vm1, %v3314_v39  ;;  %6029 = vrot.lane.b32.xlu2 %v5510_v49, %s8464_s14  ;;  %7996 = vmatmul.msk.f32.gmra.mxu1 %vm4411_vm3, %v4100_v16  ;;  %v8299_v44 = vunpack.i.l.bf16 %v12777_v23  ;;  %v5258_v49 = vld [vmem:[#allocation3] ss:$2 sm:$0xff] }
 0x643   :  { %3410 = vst.msk [vmem:[#allocation2 + $0x229] sm:$0xff] %vm3346_vm1, %v3312_v30  ;;  %v3313_v55 = vmax.f32 %v12775_v59, 0.0  ;;  %8019 = vmatmul.msk.f32.gmra.mxu2 %vm4411_vm3, %v12701_v10  ;;  %4829 = vmatmul.f32.gmra.mxu3 %v4387_v21  ;;  %v4989_v19 = vadd.f32 %v4988_v3, %v4732_v46 }
 0x644   :  { %v4284_v15 = vsel %vm3346_vm1, %v3484_v33, %v8299_v44 }
 0x645   :  { %3411 = vst.msk [vmem:[#allocation2 + $0x231] sm:$0xff] %vm3346_vm1, %v3313_v55  ;;  %v5136_v12 = vmax.f32 %v4989_v19, 0.0 }
 0x647   :  { %5216 = vst.msk [vmem:[#allocation3 + $0x190] sm:$0xff] %vm3346_vm1, %v5136_v12 }
 0x648   :  { %v4991_v11 = vpop.f32.mrf.mxu1  ;;  %v4734_v43 = vpop.f32.mrf.mxu0 }
 0x649   :  { %v2937_v10 = vpop.permute.xlu2 %2936  ;;  %v8293_v62 = vpop.permute.xlu0 %8292  ;;  %v4735_v0 = vadd.f32 %v12519_v24, %v4734_v43 }
 0x64a   :  { %v3071_v18 = vmul.f32 %v10281_v54, %v2937_v10  ;;  %v3569_v42 = vld [vmem:[#allocation2 + $0x222] sm:$0xff]  ;;  %v8294_v35 = vunpack.i.l.bf16 %v8293_v62  ;;  %v8295_v61 = vunpack.i.h.bf16 %v8293_v62  ;;  %v5430_v10 = vld [vmem:[#allocation3 + $0x6c] ss:$2 sm:$0xff] }
 0x64b   :  { %v5066_v56 = vpop.f32.mrf.mxu2  ;;  %4111 = vrot.lane.b32.xlu1 %v3569_v42, %s8463_s15  ;;  %v4809_v37 = vpop.f32.mrf.mxu3  ;;  %v4992_v9 = vadd.f32 %v4991_v11, %v4735_v0  ;;  %v5434_v42 = vld [vmem:[#allocation3 + $0x8c] ss:$2 sm:$0xff] }
 0x64c   :  { %v3151_v26 = vadd.f32 %v3071_v18, %v2510_v34  ;;  %v4810_v47 = vadd.f32 %v12519_v24, %v4809_v37  ;;  %v3571_v5 = vld [vmem:[#allocation2 + $0x232] sm:$0xff]  ;;  %v3570_v1 = vld [vmem:[#allocation2 + $0x22a] sm:$0xff]  ;;  %v4283_v54 = vsel %vm3346_vm1, %v3483_v48, %v8294_v35  ;;  %v6297_v28 = vsel %vm3346_vm1, %v5258_v49, %v8295_v61 }
 0x64d   :  { %4115 = vrot.lane.b32.xlu2 %v3571_v5, %s8463_s15  ;;  %4113 = vrot.lane.b32.xlu0 %v3570_v1, %s8463_s15  ;;  %v4364_v4 = vsel %vm4307_vm4, %v4283_v54, %v4100_v16  ;;  %v5137_v51 = vmax.f32 %v4992_v9, 0.0  ;;  %v5352_v16 = vld [vmem:[#allocation3 + $0x7a] ss:$2 sm:$0xff]  ;;  %v8300_v37 = vunpack.i.h.bf16 %v12777_v23 }
 0x64e   :  { %v12811_v6 = vadd.f32 %v8430_v29, %v3151_v26  ;;  %v5067_v58 = vadd.f32 %v5066_v56, %v4810_v47  ;;  %4760 = vmatmul.f32.gmra.mxu0 %v4364_v4  ;;  %v8321_v29 = vpack.i.bf16 %v5350_v52, %v3311_v31  ;;  %v8331_v31 = vpack.i.bf16 %v5354_v41, %v3313_v55  ;;  %v5432_v35 = vld [vmem:[#allocation3 + $0x7c] ss:$2 sm:$0xff] }
 0x64f   :  { %5217 = vst.msk [vmem:[#allocation3 + $0x198] sm:$0xff] %vm3346_vm1, %v5137_v51  ;;  %v8326_v27 = vpack.i.bf16 %v5352_v16, %v3312_v30  ;;  %v3485_v9 = vld [vmem:[#allocation2 + $0x1f8] sm:$0xff] }
 0x650   :  { %v3315_v57 = vmax.f32 %v12811_v6, 0.0  ;;  %v5162_v53 = vmax.f32 %v5067_v58, 0.0  ;;  %v4994_v59 = vpop.f32.mrf.mxu1  ;;  %v4737_v36 = vpop.f32.mrf.mxu0  ;;  %v5260_v4 = vld [vmem:[#allocation3 + $0x10] ss:$2 sm:$0xff] }
 0x651   :  { %v4102_v3 = vpop.permute.xlu1 %4101  ;;  %v4738_v46 = vadd.f32 %v12519_v24, %v4737_v36  ;;  %v12834_v19 = vpop.permute.xlu2 %8302  ;;  %v6298_v23 = vsel %vm3346_vm1, %v5260_v4, %v8300_v37  ;;  %v5594_v49 = vld [vmem:[#allocation3 + $0x90] ss:$2 sm:$0xff] }
 0x652   :  { %3413 = vst.msk [vmem:[#allocation2 + $0x241] sm:$0xff] %vm3346_vm1, %v3315_v57  ;;  %v5858_v60 = vpop.permute.xlu0 %5857  ;;  %7997 = vmatmul.msk.f32.gmra.mxu1 %vm4411_vm3, %v4102_v3  ;;  %v4365_v8 = vsel %vm4307_vm4, %v4284_v15, %v4102_v3  ;;  %v8304_v0 = vunpack.i.l.bf16 %v12834_v19 }
 0x653   :  { %5242 = vst.msk [vmem:[#allocation3 + $0x278] sm:$0xff] %vm3346_vm1, %v5162_v53  ;;  %8322 = vrot.lane.b32.xlu1 %v8321_v29, %s8462_s12  ;;  %v6337_v13 = vsel %vm4307_vm4, %v6297_v28, %v5858_v60  ;;  %v5069_v21 = vpop.f32.mrf.mxu2  ;;  %v4812_v63 = vpop.f32.mrf.mxu3  ;;  %v4995_v55 = vadd.f32 %v4994_v59, %v4738_v46  ;;  %v5590_v53 = vld [vmem:[#allocation3 + $0x70] ss:$2 sm:$0xff]  ;;  %v8305_v28 = vunpack.i.h.bf16 %v12834_v19 }
 0x654   :  { %6635 = vmatmul.f32.vlgmr.msrb.gmra.mxu2 %v6337_v13  ;;  %v4813_v14 = vadd.f32 %v12519_v24, %v4812_v63  ;;  %v4285_v58 = vsel %vm3346_vm1, %v3485_v9, %v8304_v0  ;;  %v5262_v13 = vld [vmem:[#allocation3 + $0x20] ss:$2 sm:$0xff] }
 0x655   :  { %8332 = vrot.lane.b32.xlu2 %v8331_v31, %s8462_s12  ;;  %8327 = vrot.lane.b32.xlu0 %v8326_v27, %s8462_s12  ;;  %v5138_v40 = vmax.f32 %v4995_v55, 0.0  ;;  %v6299_v63 = vsel %vm3346_vm1, %v5262_v13, %v8305_v28  ;;  %v5516_v55 = vld [vmem:[#allocation3 + $0x9e] ss:$2 sm:$0xff] }
 0x656   :  { %v5070_v30 = vadd.f32 %v5069_v21, %v4813_v14  ;;  %4763 = vmatmul.f32.gmra.mxu0 %v4365_v8  ;;  %v5512_v21 = vld [vmem:[#allocation3 + $0x7e] ss:$2 sm:$0xff]  ;;  %v5514_v8 = vld [vmem:[#allocation3 + $0x8e] ss:$2 sm:$0xff] }
 0x657   :  { %5218 = vst.msk [vmem:[#allocation3 + $0x1a0] sm:$0xff] %vm3346_vm1, %v5138_v40 }
 0x658   :  { %v5163_v7 = vmax.f32 %v5070_v30, 0.0  ;;  %v4997_v20 = vpop.f32.mrf.mxu1  ;;  %v4740_v18 = vpop.f32.mrf.mxu0 }
 0x659   :  { %v6018_v12 = vpop.permute.xlu1 %6017  ;;  %v4741_v62 = vadd.f32 %v12519_v24, %v4740_v18  ;;  %v5862_v1 = vpop.permute.xlu2 %5861  ;;  %v3574_v18 = vld [vmem:[#allocation2 + $0x24a] sm:$0xff] }
 0x65a   :  { %v6377_v32 = vsel %vm4411_vm3, %v5858_v60, %v6018_v12  ;;  %v6178_v11 = vpop.permute.xlu0 %6177  ;;  %5243 = vst.msk [vmem:[#allocation3 + $0x280] sm:$0xff] %vm3346_vm1, %v5163_v7  ;;  %v5592_v60 = vld [vmem:[#allocation3 + $0x80] ss:$2 sm:$0xff]  ;;  %v6339_v14 = vsel %vm4307_vm4, %v6299_v63, %v5862_v1 }
 0x65b   :  { %v6418_v34 = vsel %vm6417_vm6, %v6377_v32, %v6178_v11  ;;  %5869 = vrot.lane.b32.xlu1 %v5430_v10, %s8463_s15  ;;  %v4815_v43 = vpop.f32.mrf.mxu3  ;;  %v4998_v26 = vadd.f32 %v4997_v20, %v4741_v62  ;;  %v5072_v47 = vpop.f32.mrf.mxu2  ;;  %v3572_v32 = vld [vmem:[#allocation2 + $0x23a] sm:$0xff]  ;;  %v3573_v62 = vld [vmem:[#allocation2 + $0x242] sm:$0xff] }
 0x65c   :  { %8021 = vmatmul.msk.f32.vlgmr.msrb.gmra.mxu3 %vm6494_vm7, %v6418_v34  ;;  %v4816_v56 = vadd.f32 %v12519_v24, %v4815_v43  ;;  %v5356_v43 = vld [vmem:[#allocation3 + $0x9a] ss:$2 sm:$0xff] }
 0x65d   :  { %5873 = vrot.lane.b32.xlu2 %v5434_v42, %s8463_s15  ;;  %5871 = vrot.lane.b32.xlu0 %v5432_v35, %s8463_s15  ;;  %v5139_v48 = vmax.f32 %v4998_v26, 0.0  ;;  %v5360_v42 = vld [vmem:[#allocation3 + $0xc2] ss:$2 sm:$0xff]  ;;  %v8336_v0 = vpack.i.bf16 %v5356_v43, %v3314_v39  ;;  %v5358_v26 = vld [vmem:[#allocation3 + $0xb2] ss:$2 sm:$0xff] }
 0x65e   :  { %v5073_v5 = vadd.f32 %v5072_v47, %v4816_v56  ;;  %v8346_v37 = vpack.i.bf16 %v5360_v42, %v3316_v17  ;;  %v3486_v47 = vld [vmem:[#allocation2 + $0x200] sm:$0xff]  ;;  %v5264_v17 = vld [vmem:[#allocation3 + $0x30] ss:$2 sm:$0xff] }
 0x65f   :  { %5219 = vst.msk [vmem:[#allocation3 + $0x1a8] sm:$0xff] %vm3346_vm1, %v5139_v48  ;;  %v5266_v43 = vld [vmem:[#allocation3 + $0x40] ss:$2 sm:$0xff] }
 0x660   :  { %v5164_v54 = vmax.f32 %v5073_v5, 0.0  ;;  %v5000_v44 = vpop.f32.mrf.mxu1  ;;  %v4743_v59 = vpop.f32.mrf.mxu0 }
 0x661   :  { %v4104_v61 = vpop.permute.xlu1 %4103  ;;  %v4744_v29 = vadd.f32 %v12519_v24, %v4743_v59  ;;  %v6182_v31 = vpop.permute.xlu2 %6181 }
 0x662   :  { %v5860_v51 = vpop.permute.xlu0 %5859  ;;  %7998 = vmatmul.msk.f32.gmra.mxu1 %vm4411_vm3, %v4104_v61  ;;  %v4366_v52 = vsel %vm4307_vm4, %v4285_v58, %v4104_v61  ;;  %5244 = vst.msk [vmem:[#allocation3 + $0x288] sm:$0xff] %vm3346_vm1, %v5164_v54 }
 0x663   :  { %6189 = vrot.lane.b32.xlu1 %v5590_v53, %s8465_s16  ;;  %4766 = vmatmul.f32.gmra.mxu0 %v4366_v52  ;;  %v6338_v3 = vsel %vm4307_vm4, %v6298_v23, %v5860_v51  ;;  %v5001_v41 = vadd.f32 %v5000_v44, %v4744_v29  ;;  %v5520_v52 = vld [vmem:[#allocation3 + $0xc6] ss:$2 sm:$0xff] }
 0x664   :  { %6638 = vmatmul.f32.gmra.mxu2 %v6338_v3  ;;  %v5438_v23 = vld [vmem:[#allocation3 + $0xb4] ss:$2 sm:$0xff] }
 0x665   :  { %6193 = vrot.lane.b32.xlu2 %v5594_v49, %s8465_s16  ;;  %6191 = vrot.lane.b32.xlu0 %v5592_v60, %s8465_s16  ;;  %v5140_v16 = vmax.f32 %v5001_v41, 0.0  ;;  %v5596_v60 = vld [vmem:[#allocation3 + $0xa0] ss:$2 sm:$0xff] }
 0x667   :  { %5220 = vst.msk [vmem:[#allocation3 + $0x1b8] sm:$0xff] %vm3346_vm1, %v5140_v16 }
 0x668   :  { %v4746_v33 = vpop.f32.mrf.mxu0  ;;  %v5003_v30 = vpop.f32.mrf.mxu1 }
 0x669   :  { %v6020_v36 = vpop.permute.xlu1 %6019  ;;  %v4747_v19 = vadd.f32 %v12519_v24, %v4746_v33  ;;  %v6024_v10 = vpop.permute.xlu2 %6023  ;;  %v5518_v33 = vld [vmem:[#allocation3 + $0xb6] ss:$2 sm:$0xff] }
 0x66a   :  { %v6378_v27 = vsel %vm4411_vm3, %v5860_v51, %v6020_v36  ;;  %v6180_v46 = vpop.permute.xlu0 %6179  ;;  %v5442_v36 = vld [vmem:[#allocation3 + $0xd4] ss:$2 sm:$0xff] }
 0x66b   :  { %6031 = vrot.lane.b32.xlu1 %v5512_v21, %s8464_s14  ;;  %v6419_v15 = vsel %vm6417_vm6, %v6378_v27, %v6180_v46  ;;  %v5004_v40 = vadd.f32 %v5003_v30, %v4747_v19 }
 0x66c   :  { %6641 = vmatmul.f32.gmra.mxu2 %v6339_v14  ;;  %8022 = vmatmul.msk.f32.gmra.mxu3 %vm6494_vm7, %v6419_v15  ;;  %v5444_v15 = vld [vmem:[#allocation3 + $0xe4] ss:$2 sm:$0xff] }
 0x66d   :  { %6035 = vrot.lane.b32.xlu2 %v5516_v55, %s8464_s14  ;;  %6033 = vrot.lane.b32.xlu0 %v5514_v8, %s8464_s14  ;;  %v5141_v7 = vmax.f32 %v5004_v40, 0.0  ;;  %v5600_v8 = vld [vmem:[#allocation3 + $0xc8] ss:$2 sm:$0xff] }
 0x66f   :  { %5221 = vst.msk [vmem:[#allocation3 + $0x1c0] sm:$0xff] %vm3346_vm1, %v5141_v7  ;;  %v5368_v7 = vld [vmem:[#allocation3 + $0x10a] ss:$2 sm:$0xff] }
 0x670   :  { %v5006_v54 = vpop.f32.mrf.mxu1 }
 0x671   :  { %v4106_v20 = vpop.permute.xlu1 %4105 }
 0x672   :  { %v6022_v12 = vpop.permute.xlu0 %6021  ;;  %7999 = vmatmul.msk.f32.gmra.mxu1 %vm4411_vm3, %v4106_v20 }
 0x673   :  { %v6379_v11 = vsel %vm4411_vm3, %v5862_v1, %v6022_v12  ;;  %4117 = vrot.lane.b32.xlu1 %v3572_v32, %s8463_s15  ;;  %v8341_v1 = vpack.i.bf16 %v5358_v26, %v3315_v57  ;;  %v5436_v57 = vld [vmem:[#allocation3 + $0x9c] ss:$2 sm:$0xff] }
 0x674   :  { %v6420_v34 = vsel %vm6417_vm6, %v6379_v11, %v6182_v31  ;;  %v5598_v31 = vld [vmem:[#allocation3 + $0xb8] ss:$2 sm:$0xff] }
 0x675   :  { %8023 = vmatmul.msk.f32.gmra.mxu3 %vm6494_vm7, %v6420_v34  ;;  %4121 = vrot.lane.b32.xlu2 %v3574_v18, %s8463_s15  ;;  %v5440_v32 = vld [vmem:[#allocation3 + $0xc4] ss:$2 sm:$0xff] }
 0x676   :  { %4119 = vrot.lane.b32.xlu0 %v3573_v62, %s8463_s15  ;;  %v5522_v62 = vld [vmem:[#allocation3 + $0xd6] ss:$2 sm:$0xff] }
 0x679   :  { %v8308_v35 = vpop.permute.xlu1 %8307 }
 0x67a   :  { %v8309_v56 = vunpack.i.l.bf16 %v8308_v35  ;;  %v8310_v9 = vunpack.i.h.bf16 %v8308_v35 }
 0x67b   :  { %8337 = vrot.lane.b32.xlu1 %v8336_v0, %s8462_s12 }
 0x67c   :  { %v12884_v5 = vpop.permute.xlu2 %4109  ;;  %v4286_v48 = vsel %vm3346_vm1, %v3486_v47, %v8309_v56  ;;  %v6300_v58 = vsel %vm3346_vm1, %v5264_v17, %v8310_v9  ;;  %v5364_v56 = vld [vmem:[#allocation3 + $0xe2] ss:$2 sm:$0xff]  ;;  %v12933_v47 = vld [vmem:[%s14108_s4] ss:$0 sm:$0xff] }
 0x67d   :  { %8347 = vrot.lane.b32.xlu2 %v8346_v37, %s8462_s12  ;;  %v4367_v50 = vsel %vm4307_vm4, %v4286_v48, %v4106_v20  ;;  %v3488_v37 = vld [vmem:[#allocation2 + $0x218] sm:$0xff] }
 0x67e   :  { %8342 = vrot.lane.b32.xlu0 %v8341_v1, %s8462_s12  ;;  %4769 = vmatmul.f32.gmra.mxu0 %v4367_v50  ;;  %v5009_v50 = vpop.f32.mrf.mxu1 }
 0x67f   :  { %v4749_v39 = vpop.f32.mrf.mxu0 }
 0x680   :  { %v4750_v45 = vadd.f32 %v12519_v24, %v4749_v39  ;;  %v5362_v39 = vld [vmem:[#allocation3 + $0xd2] ss:$2 sm:$0xff] }
 0x681   :  { %v5864_v61 = vpop.permute.xlu1 %5863  ;;  %v8351_v17 = vpack.i.bf16 %v5364_v56, %v5362_v39  ;;  %v5610_v39 = vld [vmem:[#allocation3 + $0x120] ss:$2 sm:$0xff] }
 0x682   :  { %v5007_v6 = vadd.f32 %v5006_v54, %v4750_v45  ;;  %v6340_v4 = vsel %vm4307_vm4, %v6300_v58, %v5864_v61  ;;  %v6380_v3 = vsel %vm4411_vm3, %v5864_v61, %v6024_v10  ;;  %v5366_v10 = vld [vmem:[#allocation3 + $0xf2] ss:$2 sm:$0xff] }
 0x683   :  { %5875 = vrot.lane.b32.xlu1 %v5436_v57, %s8463_s15  ;;  %6644 = vmatmul.f32.gmra.mxu2 %v6340_v4  ;;  %v8356_v18 = vpack.i.bf16 %v5368_v7, %v5366_v10  ;;  %v5524_v4 = vld [vmem:[#allocation3 + $0xe6] ss:$2 sm:$0xff] }
 0x684   :  { %v5142_v51 = vmax.f32 %v5007_v6, 0.0  ;;  %v12896_v53 = vpop.permute.xlu2 %8317  ;;  %v5606_v6 = vld [vmem:[#allocation3 + $0xf8] ss:$2 sm:$0xff] }
 0x685   :  { %6039 = vrot.lane.b32.xlu2 %v5520_v52, %s8464_s14  ;;  %v8319_v34 = vunpack.i.l.bf16 %v12896_v53  ;;  %v8320_v54 = vunpack.i.h.bf16 %v12896_v53  ;;  %v5372_v7 = vld [vmem:[#allocation3 + $0x12a] ss:$2 sm:$0xff] }
 0x686   :  { %5222 = vst.msk [vmem:[#allocation3 + $0x1c8] sm:$0xff] %vm3346_vm1, %v5142_v51  ;;  %5877 = vrot.lane.b32.xlu0 %v5438_v23, %s8463_s15  ;;  %v5268_v51 = vld [vmem:[#allocation3 + $0x58] ss:$2 sm:$0xff] }
 0x687   :  { %v5075_v44 = vpop.f32.mrf.mxu2  ;;  %v4288_v9 = vsel %vm3346_vm1, %v3488_v37, %v8319_v34  ;;  %v6302_v23 = vsel %vm3346_vm1, %v5268_v51, %v8320_v54  ;;  %v5532_v34 = vld [vmem:[#allocation3 + $0x12e] ss:$2 sm:$0xff] }
 0x688   :  { %v4818_v59 = vpop.f32.mrf.mxu3  ;;  %v4369_v61 = vsel %vm4307_vm4, %v4288_v9, %v12884_v5  ;;  %v5454_v9 = vld [vmem:[#allocation3 + $0x13c] ss:$2 sm:$0xff] }
 0x689   :  { %v4819_v29 = vadd.f32 %v12519_v24, %v4818_v59  ;;  %v6184_v49 = vpop.permute.xlu1 %6183 }
 0x68a   :  { %v6421_v28 = vsel %vm6417_vm6, %v6380_v3, %v6184_v49  ;;  %v5602_v3 = vld [vmem:[#allocation3 + $0xd8] ss:$2 sm:$0xff] }
 0x68b   :  { %v5076_v41 = vadd.f32 %v5075_v44, %v4819_v29  ;;  %6195 = vrot.lane.b32.xlu1 %v5596_v60, %s8465_s16  ;;  %8024 = vmatmul.msk.f32.gmra.mxu3 %vm6494_vm7, %v6421_v28  ;;  %v5608_v49 = vld [vmem:[#allocation3 + $0x110] ss:$2 sm:$0xff] }
 0x68c   :  { %v12906_v16 = vpop.permute.xlu2 %5867  ;;  %v5446_v28 = vld [vmem:[#allocation3 + $0xf4] ss:$2 sm:$0xff] }
 0x68d   :  { %v5165_v13 = vmax.f32 %v5076_v41, 0.0  ;;  %5881 = vrot.lane.b32.xlu2 %v5442_v36, %s8463_s15  ;;  %v6342_v44 = vsel %vm4307_vm4, %v6302_v23, %v12906_v16 }
 0x68e   :  { %6197 = vrot.lane.b32.xlu0 %v5598_v31, %s8465_s16  ;;  %v4108_v27 = vpop.permute.xlu0 %4107 }
 0x68f   :  { %5245 = vst.msk [vmem:[#allocation3 + $0x290] sm:$0xff] %vm3346_vm1, %v5165_v13  ;;  %8000 = vmatmul.msk.f32.gmra.mxu1 %vm4411_vm3, %v4108_v27  ;;  %v5078_v63 = vpop.f32.mrf.mxu2 }
 0x690   :  { %v4821_v46 = vpop.f32.mrf.mxu3 }
 0x691   :  { %v4822_v21 = vadd.f32 %v12519_v24, %v4821_v46  ;;  %v3487_v24 = vld [vmem:[#allocation2 + $0x210] sm:$0xff]  ;;  %v6026_v57 = vpop.permute.xlu1 %6025 }
 0x693   :  { %v5079_v14 = vadd.f32 %v5078_v63, %v4822_v21  ;;  %6037 = vrot.lane.b32.xlu1 %v5518_v33, %s8464_s14  ;;  %v5604_v63 = vld [vmem:[#allocation3 + $0xe8] ss:$2 sm:$0xff] }
 0x694   :  { %v12914_v55 = vpop.permute.xlu2 %6187  ;;  %v5530_v33 = vld [vmem:[#allocation3 + $0x11e] ss:$2 sm:$0xff] }
 0x695   :  { %v5166_v19 = vmax.f32 %v5079_v14, 0.0  ;;  %5883 = vrot.lane.b32.xlu2 %v5444_v15, %s8463_s15  ;;  %v5448_v15 = vld [vmem:[#allocation3 + $0x10c] ss:$2 sm:$0xff] }
 0x696   :  { %6199 = vrot.lane.b32.xlu0 %v5600_v8, %s8465_s16  ;;  %v8313_v30 = vpop.permute.xlu0 %8312 }
 0x697   :  { %5246 = vst.msk [vmem:[#allocation3 + $0x298] sm:$0xff] %vm3346_vm1, %v5166_v19  ;;  %v8314_v40 = vunpack.i.l.bf16 %v8313_v30  ;;  %8001 = vmatmul.msk.f32.gmra.mxu1 %vm4411_vm3, %v12884_v5  ;;  %v8315_v12 = vunpack.i.h.bf16 %v8313_v30 }
 0x699   :  { %v4287_v20 = vsel %vm3346_vm1, %v3487_v24, %v8314_v40  ;;  %v6301_v0 = vsel %vm3346_vm1, %v5266_v43, %v8315_v12  ;;  %v5012_v29 = vpop.f32.mrf.mxu1 }
 0x69a   :  { %v4368_v11 = vsel %vm4307_vm4, %v4287_v20, %v4108_v27 }
 0x69b   :  { %5879 = vrot.lane.b32.xlu1 %v5440_v32, %s8463_s15  ;;  %4772 = vmatmul.f32.gmra.mxu0 %v4368_v11  ;;  %v5526_v32 = vld [vmem:[#allocation3 + $0xf6] ss:$2 sm:$0xff] }
 0x69c   :  { %v12928_v26 = vpop.permute.xlu2 %6029  ;;  %v5370_v11 = vld [vmem:[#allocation3 + $0x11a] ss:$2 sm:$0xff] }
 0x69d   :  { %8357 = vrot.lane.b32.xlu2 %v8356_v18, %s8462_s12  ;;  %v8361_v18 = vpack.i.bf16 %v5372_v7, %v5370_v11 }
 0x69e   :  { %v4752_v42 = vpop.f32.mrf.mxu0  ;;  %6041 = vrot.lane.b32.xlu0 %v5522_v62, %s8464_s14  ;;  %v5866_v35 = vpop.permute.xlu0 %5865 }
 0x69f   :  { %v4753_v1 = vadd.f32 %v12933_v47, %v4752_v42  ;;  %v6341_v48 = vsel %vm4307_vm4, %v6301_v0, %v5866_v35  ;;  %v6381_v52 = vsel %vm4411_vm3, %v5866_v35, %v6026_v57 }
 0x6a0   :  { %6647 = vmatmul.f32.gmra.mxu2 %v6341_v48 }
 0x6a1   :  { %v5010_v45 = vadd.f32 %v5009_v50, %v4753_v1  ;;  %v5528_v1 = vld [vmem:[#allocation3 + $0x10e] ss:$2 sm:$0xff] }
 0x6a3   :  { %v5143_v58 = vmax.f32 %v5010_v45, 0.0  ;;  %8352 = vrot.lane.b32.xlu1 %v8351_v17, %s8462_s12  ;;  %4775 = vmatmul.f32.gmra.mxu0 %v4369_v61  ;;  %v3489_v61 = vld [vmem:[#allocation2 + $0x220] sm:$0xff] }
 0x6a5   :  { %5223 = vst.msk [vmem:[#allocation3 + $0x1d0] sm:$0xff] %vm3346_vm1, %v5143_v58  ;;  %6205 = vrot.lane.b32.xlu2 %v5606_v6, %s8465_s16 }
 0x6a6   :  { %6043 = vrot.lane.b32.xlu0 %v5524_v4, %s8464_s14  ;;  %v6186_v53 = vpop.permute.xlu0 %6185 }
 0x6a7   :  { %v12947_v5 = vpop.permute.xlu2 %4115  ;;  %v6422_v59 = vsel %vm6417_vm6, %v6381_v52, %v6186_v53 }
 0x6a8   :  { %6650 = vmatmul.f32.gmra.mxu2 %v6342_v44  ;;  %8025 = vmatmul.msk.f32.gmra.mxu3 %vm6494_vm7, %v6422_v59  ;;  %v5450_v44 = vld [vmem:[#allocation3 + $0x11c] ss:$2 sm:$0xff] }
 0x6ab   :  { %6201 = vrot.lane.b32.xlu1 %v5602_v3, %s8465_s16 }
 0x6ad   :  { %v4755_v60 = vpop.f32.mrf.mxu0  ;;  %6207 = vrot.lane.b32.xlu2 %v5608_v49, %s8465_s16  ;;  %v5270_v49 = vld [vmem:[#allocation3 + $0x68] ss:$2 sm:$0xff] }
 0x6ae   :  { %v4756_v41 = vadd.f32 %v12933_v47, %v4755_v60  ;;  %5885 = vrot.lane.b32.xlu0 %v5446_v28, %s8463_s15  ;;  %v6028_v36 = vpop.permute.xlu0 %6027 }
 0x6af   :  { %v6382_v13 = vsel %vm4411_vm3, %v12906_v16, %v6028_v36  ;;  %v12959_v31 = vpop.permute.xlu2 %8332  ;;  %v5015_v16 = vpop.f32.mrf.mxu1 }
 0x6b0   :  { %v5013_v27 = vadd.f32 %v5012_v29, %v4756_v41  ;;  %v6423_v46 = vsel %vm6417_vm6, %v6382_v13, %v12914_v55  ;;  %v5456_v29 = vld [vmem:[#allocation3 + $0x14c] ss:$2 sm:$0xff] }
 0x6b1   :  { %8026 = vmatmul.msk.f32.gmra.mxu3 %vm6494_vm7, %v6423_v46  ;;  %v5612_v41 = vld [vmem:[#allocation3 + $0x130] ss:$2 sm:$0xff]  ;;  %v3490_v13 = vld [vmem:[#allocation2 + $0x228] sm:$0xff] }
 0x6b2   :  { %v5144_v21 = vmax.f32 %v5013_v27, 0.0 }
 0x6b3   :  { %6203 = vrot.lane.b32.xlu1 %v5604_v63, %s8465_s16 }
 0x6b4   :  { %5224 = vst.msk [vmem:[#allocation3 + $0x1d8] sm:$0xff] %vm3346_vm1, %v5144_v21 }
 0x6b5   :  { %v4758_v14 = vpop.f32.mrf.mxu0  ;;  %6049 = vrot.lane.b32.xlu2 %v5530_v33, %s8464_s14  ;;  %v5081_v8 = vpop.f32.mrf.mxu2 }
 0x6b6   :  { %v4759_v19 = vadd.f32 %v12933_v47, %v4758_v14  ;;  %5887 = vrot.lane.b32.xlu0 %v5448_v15, %s8463_s15  ;;  %v4824_v55 = vpop.f32.mrf.mxu3  ;;  %v5380_v15 = vld [vmem:[#allocation3 + $0x172] ss:$2 sm:$0xff] }
 0x6b7   :  { %v12969_v30 = vpop.permute.xlu2 %5873  ;;  %v4825_v24 = vadd.f32 %v12933_v47, %v4824_v55  ;;  %v8334_v55 = vunpack.i.l.bf16 %v12959_v31 }
 0x6b8   :  { %v5016_v40 = vadd.f32 %v5015_v16, %v4759_v19 }
 0x6b9   :  { %v5082_v12 = vadd.f32 %v5081_v8, %v4825_v24  ;;  %v5378_v24 = vld [vmem:[#allocation3 + $0x162] ss:$2 sm:$0xff] }
 0x6ba   :  { %v5145_v20 = vmax.f32 %v5016_v40, 0.0  ;;  %v5452_v40 = vld [vmem:[#allocation3 + $0x12c] ss:$2 sm:$0xff]  ;;  %v8371_v7 = vpack.i.bf16 %v5380_v15, %v5378_v24 }
 0x6bb   :  { %6045 = vrot.lane.b32.xlu1 %v5526_v32, %s8464_s14  ;;  %v5167_v10 = vmax.f32 %v5082_v12, 0.0  ;;  %v5272_v12 = vld [vmem:[#allocation3 + $0x78] ss:$2 sm:$0xff] }
 0x6bc   :  { %5225 = vst.msk [vmem:[#allocation3 + $0x1e0] sm:$0xff] %vm3346_vm1, %v5145_v20  ;;  %v5460_v24 = vld [vmem:[#allocation3 + $0x174] ss:$2 sm:$0xff] }
 0x6bd   :  { %v4112_v62 = vpop.permute.xlu1 %4111  ;;  %6051 = vrot.lane.b32.xlu2 %v5532_v34, %s8464_s14  ;;  %5247 = vst.msk [vmem:[#allocation3 + $0x2a0] sm:$0xff] %vm3346_vm1, %v5167_v10  ;;  %v5084_v43 = vpop.f32.mrf.mxu2  ;;  %v5534_v34 = vld [vmem:[#allocation3 + $0x13e] ss:$2 sm:$0xff] }
 0x6be   :  { %8002 = vmatmul.msk.f32.gmra.mxu1 %vm4411_vm3, %v4112_v62  ;;  %8362 = vrot.lane.b32.xlu0 %v8361_v18, %s8462_s12  ;;  %v4827_v42 = vpop.f32.mrf.mxu3 }
 0x6bf   :  { %v12978_v35 = vpop.permute.xlu2 %6193  ;;  %v4828_v0 = vadd.f32 %v12933_v47, %v4827_v42  ;;  %v4114_v56 = vpop.permute.xlu0 %4113 }
 0x6c0   :  { %v5018_v27 = vpop.f32.mrf.mxu1 }
 0x6c1   :  { %v5085_v37 = vadd.f32 %v5084_v43, %v4828_v0 }
 0x6c3   :  { %6047 = vrot.lane.b32.xlu1 %v5528_v1, %s8464_s14  ;;  %v5168_v48 = vmax.f32 %v5085_v37, 0.0  ;;  %v5376_v37 = vld [vmem:[#allocation3 + $0x14a] ss:$2 sm:$0xff] }
 0x6c5   :  { %v8323_v50 = vpop.permute.xlu1 %8322  ;;  %5893 = vrot.lane.b32.xlu2 %v5454_v9, %s8463_s15  ;;  %5248 = vst.msk [vmem:[#allocation3 + $0x2a8] sm:$0xff] %vm3346_vm1, %v5168_v48  ;;  %v5374_v48 = vld [vmem:[#allocation3 + $0x13a] ss:$2 sm:$0xff]  ;;  %v8335_v9 = vunpack.i.h.bf16 %v12959_v31 }
 0x6c6   :  { %v8324_v45 = vunpack.i.l.bf16 %v8323_v50  ;;  %8003 = vmatmul.msk.f32.gmra.mxu1 %vm4411_vm3, %v4114_v56  ;;  %6209 = vrot.lane.b32.xlu0 %v5610_v39, %s8465_s16  ;;  %v4830_v17 = vpop.f32.mrf.mxu3  ;;  %v8325_v4 = vunpack.i.h.bf16 %v8323_v50  ;;  %v5087_v51 = vpop.f32.mrf.mxu2  ;;  %v5274_v31 = vld [vmem:[#allocation3 + $0x88] ss:$2 sm:$0xff] }
 0x6c7   :  { %v12986_v54 = vpop.permute.xlu2 %6035  ;;  %v4831_v58 = vadd.f32 %v12933_v47, %v4830_v17  ;;  %v8328_v6 = vpop.permute.xlu0 %8327  ;;  %v8366_v17 = vpack.i.bf16 %v5376_v37, %v5374_v48  ;;  %v5276_v48 = vld [vmem:[#allocation3 + $0x98] ss:$2 sm:$0xff] }
 0x6c8   :  { %v4289_v57 = vsel %vm3346_vm1, %v3489_v61, %v8324_v45  ;;  %v8329_v23 = vunpack.i.l.bf16 %v8328_v6  ;;  %v6303_v36 = vsel %vm3346_vm1, %v5270_v49, %v8325_v4  ;;  %v8330_v16 = vunpack.i.h.bf16 %v8328_v6  ;;  %v13025_v61 = vld [vmem:[%s14110_s6] ss:$0 sm:$0xff]  ;;  %v5618_v6 = vld [vmem:[#allocation3 + $0x168] ss:$2 sm:$0xff] }
 0x6c9   :  { %v4370_v52 = vsel %vm4307_vm4, %v4289_v57, %v4112_v62  ;;  %v5088_v53 = vadd.f32 %v5087_v51, %v4831_v58  ;;  %v3491_v62 = vld [vmem:[#allocation2 + $0x230] sm:$0xff] }
 0x6ca   :  { %4778 = vmatmul.f32.gmra.mxu0 %v4370_v52  ;;  %v4290_v21 = vsel %vm3346_vm1, %v3490_v13, %v8329_v23  ;;  %v6304_v18 = vsel %vm3346_vm1, %v5272_v12, %v8330_v16  ;;  %v5536_v4 = vld [vmem:[#allocation3 + $0x14e] ss:$2 sm:$0xff] }
 0x6cb   :  { %5889 = vrot.lane.b32.xlu1 %v5450_v44, %s8463_s15  ;;  %v5169_v59 = vmax.f32 %v5088_v53, 0.0  ;;  %v4761_v3 = vpop.f32.mrf.mxu0  ;;  %v4371_v8 = vsel %vm4307_vm4, %v4290_v21, %v4114_v56  ;;  %v4291_v56 = vsel %vm3346_vm1, %v3491_v62, %v8334_v55  ;;  %v5384_v62 = vld [vmem:[#allocation3 + $0x192] ss:$2 sm:$0xff] }
 0x6cc   :  { %v4762_v60 = vadd.f32 %v12933_v47, %v4761_v3  ;;  %v4372_v45 = vsel %vm4307_vm4, %v4291_v56, %v12947_v5  ;;  %v5382_v56 = vld [vmem:[#allocation3 + $0x182] ss:$2 sm:$0xff] }
 0x6cd   :  { %v5870_v28 = vpop.permute.xlu1 %5869  ;;  %5895 = vrot.lane.b32.xlu2 %v5456_v29, %s8463_s15  ;;  %5249 = vst.msk [vmem:[#allocation3 + $0x2b0] sm:$0xff] %vm3346_vm1, %v5169_v59 }
 0x6ce   :  { %8004 = vmatmul.msk.f32.gmra.mxu1 %vm4411_vm3, %v12947_v5  ;;  %6211 = vrot.lane.b32.xlu0 %v5612_v41, %s8465_s16  ;;  %v6343_v46 = vsel %vm4307_vm4, %v6303_v36, %v5870_v28  ;;  %v5019_v63 = vadd.f32 %v5018_v27, %v4762_v60  ;;  %v6383_v32 = vsel %vm4411_vm3, %v5870_v28, %v12928_v26  ;;  %v5614_v28 = vld [vmem:[#allocation3 + $0x140] ss:$2 sm:$0xff] }
 0x6cf   :  { %6653 = vmatmul.f32.gmra.mxu2 %v6343_v46  ;;  %v13001_v33 = vpop.permute.xlu2 %4121  ;;  %v5872_v14 = vpop.permute.xlu0 %5871  ;;  %v6305_v5 = vsel %vm3346_vm1, %v5274_v31, %v8335_v9  ;;  %v5620_v46 = vld [vmem:[#allocation3 + $0x178] ss:$2 sm:$0xff] }
 0x6d0   :  { %v5146_v19 = vmax.f32 %v5019_v63, 0.0  ;;  %v5021_v43 = vpop.f32.mrf.mxu1  ;;  %v6344_v42 = vsel %vm4307_vm4, %v6304_v18, %v5872_v14  ;;  %v6345_v53 = vsel %vm4307_vm4, %v6305_v5, %v12969_v30  ;;  %v5458_v63 = vld [vmem:[#allocation3 + $0x164] ss:$2 sm:$0xff] }
 0x6d2   :  { %4781 = vmatmul.f32.gmra.mxu0 %v4371_v8  ;;  %5226 = vst.msk [vmem:[#allocation3 + $0x1e8] sm:$0xff] %vm3346_vm1, %v5146_v19  ;;  %v5616_v19 = vld [vmem:[#allocation3 + $0x150] ss:$2 sm:$0xff] }
 0x6d3   :  { %5891 = vrot.lane.b32.xlu1 %v5452_v40, %s8463_s15  ;;  %v4764_v20 = vpop.f32.mrf.mxu0  ;;  %v5542_v8 = vld [vmem:[#allocation3 + $0x186] ss:$2 sm:$0xff] }
 0x6d4   :  { %v4765_v11 = vadd.f32 %v12933_v47, %v4764_v20  ;;  %v3492_v20 = vld [vmem:[#allocation2 + $0x238] sm:$0xff] }
 0x6d5   :  { %v6190_v10 = vpop.permute.xlu1 %6189  ;;  %8372 = vrot.lane.b32.xlu2 %v8371_v7, %s8462_s12 }
 0x6d6   :  { %6053 = vrot.lane.b32.xlu0 %v5534_v34, %s8464_s14  ;;  %v6424_v0 = vsel %vm6417_vm6, %v6383_v32, %v6190_v10  ;;  %v5022_v26 = vadd.f32 %v5021_v43, %v4765_v11 }
 0x6d7   :  { %6656 = vmatmul.f32.gmra.mxu2 %v6344_v42  ;;  %8027 = vmatmul.msk.f32.gmra.mxu3 %vm6494_vm7, %v6424_v0  ;;  %v6192_v1 = vpop.permute.xlu0 %6191  ;;  %v13018_v39 = vpop.permute.xlu2 %8347  ;;  %v5538_v42 = vld [vmem:[#allocation3 + $0x166] ss:$2 sm:$0xff] }
 0x6d8   :  { %v5147_v50 = vmax.f32 %v5022_v26, 0.0  ;;  %v6636_v58 = vpop.f32.mrf.mxu2  ;;  %v5544_v26 = vld [vmem:[#allocation3 + $0x196] ss:$2 sm:$0xff] }
 0x6d9   :  { %v6637_v51 = vadd.f32 %v13025_v61, %v6636_v58 }
 0x6da   :  { %4784 = vmatmul.f32.gmra.mxu0 %v4372_v45  ;;  %5227 = vst.msk [vmem:[#allocation3 + $0x1f0] sm:$0xff] %vm3346_vm1, %v5147_v50  ;;  %v3493_v45 = vld [vmem:[#allocation2 + $0x240] sm:$0xff] }
 0x6db   :  { %8367 = vrot.lane.b32.xlu1 %v8366_v17, %s8462_s12 }
 0x6dd   :  { %v6032_v57 = vpop.permute.xlu1 %6031  ;;  %6217 = vrot.lane.b32.xlu2 %v5618_v6, %s8465_s16 }
 0x6de   :  { %v6384_v52 = vsel %vm4411_vm3, %v5872_v14, %v6032_v57  ;;  %6055 = vrot.lane.b32.xlu0 %v5536_v4, %s8464_s14  ;;  %v8349_v4 = vunpack.i.l.bf16 %v13018_v39 }
 0x6df   :  { %6659 = vmatmul.f32.gmra.mxu2 %v6345_v53  ;;  %v6773_v23 = vpop.f32.mrf.mxu3  ;;  %v6425_v44 = vsel %vm6417_vm6, %v6384_v52, %v6192_v1  ;;  %v6034_v3 = vpop.permute.xlu0 %6033  ;;  %v8376_v1 = vpack.i.bf16 %v5384_v62, %v5382_v56  ;;  %v5280_v62 = vld [vmem:[#allocation3 + $0xc0] ss:$2 sm:$0xff] }
 0x6e0   :  { %v6774_v59 = vadd.f32 %v6773_v23, %v6637_v51  ;;  %8028 = vmatmul.msk.f32.gmra.mxu3 %vm6494_vm7, %v6425_v44  ;;  %v4767_v29 = vpop.f32.mrf.mxu0  ;;  %v5024_v41 = vpop.f32.mrf.mxu1  ;;  %v6385_v13 = vsel %vm4411_vm3, %v12969_v30, %v6034_v3  ;;  %v5540_v23 = vld [vmem:[#allocation3 + $0x176] ss:$2 sm:$0xff] }
 0x6e1   :  { %v4768_v60 = vadd.f32 %v12933_v47, %v4767_v29  ;;  %v13039_v36 = vpop.permute.xlu2 %6039  ;;  %v6426_v15 = vsel %vm6417_vm6, %v6385_v13, %v12978_v35  ;;  %v5466_v29 = vld [vmem:[#allocation3 + $0x1a4] ss:$2 sm:$0xff] }
 0x6e2   :  { %v6893_v49 = vmax.f32 %v6774_v59, 0.0 }
 0x6e3   :  { %6213 = vrot.lane.b32.xlu1 %v5614_v28, %s8465_s16  ;;  %v5025_v27 = vadd.f32 %v5024_v41, %v4768_v60  ;;  %v3494_v60 = vld [vmem:[#allocation2 + $0x248] sm:$0xff] }
 0x6e4   :  { %6934 = vst.msk [vmem:[#allocation4] sm:$0xff] %vm6933_vm8, %v6893_v49  ;;  %v5278_v49 = vld [vmem:[#allocation3 + $0xb0] ss:$2 sm:$0xff] }
 0x6e5   :  { %v4118_v21 = vpop.permute.xlu1 %4117  ;;  %6219 = vrot.lane.b32.xlu2 %v5620_v46, %s8465_s16  ;;  %v5148_v14 = vmax.f32 %v5025_v27, 0.0  ;;  %v5622_v27 = vld [vmem:[#allocation3 + $0x188] ss:$2 sm:$0xff] }
 0x6e6   :  { %8005 = vmatmul.msk.f32.gmra.mxu1 %vm4411_vm3, %v4118_v21  ;;  %5897 = vrot.lane.b32.xlu0 %v5458_v63, %s8463_s15 }
 0x6e7   :  { %5228 = vst.msk [vmem:[#allocation3 + $0x1f8] sm:$0xff] %vm3346_vm1, %v5148_v14  ;;  %v6639_v30 = vpop.f32.mrf.mxu2 }
 0x6e8   :  { %8029 = vmatmul.msk.f32.gmra.mxu3 %vm6494_vm7, %v6426_v15  ;;  %v4120_v16 = vpop.permute.xlu0 %4119  ;;  %v6640_v35 = vadd.f32 %v13025_v61, %v6639_v30 }
 0x6e9   :  { %v13053_v55 = vpop.permute.xlu2 %5881 }
 0x6eb   :  { %6215 = vrot.lane.b32.xlu1 %v5616_v19, %s8465_s16 }
 0x6ed   :  { %v8338_v40 = vpop.permute.xlu1 %8337  ;;  %6061 = vrot.lane.b32.xlu2 %v5542_v8, %s8464_s14  ;;  %v5468_v8 = vld [vmem:[#allocation3 + $0x1bc] ss:$2 sm:$0xff] }
 0x6ee   :  { %v8339_v7 = vunpack.i.l.bf16 %v8338_v40  ;;  %8006 = vmatmul.msk.f32.gmra.mxu1 %vm4411_vm3, %v4120_v16  ;;  %5899 = vrot.lane.b32.xlu0 %v5460_v24, %s8463_s15  ;;  %v8340_v11 = vunpack.i.h.bf16 %v8338_v40  ;;  %v5624_v24 = vld [vmem:[#allocation3 + $0x198] ss:$2 sm:$0xff] }
 0x6ef   :  { %v6776_v12 = vpop.f32.mrf.mxu3  ;;  %v6642_v37 = vpop.f32.mrf.mxu2 }
 0x6f0   :  { %v4292_v32 = vsel %vm3346_vm1, %v3492_v20, %v8339_v7  ;;  %v6777_v10 = vadd.f32 %v6776_v12, %v6640_v35  ;;  %v8343_v34 = vpop.permute.xlu0 %8342  ;;  %v6306_v50 = vsel %vm3346_vm1, %v5276_v48, %v8340_v11  ;;  %v6643_v6 = vadd.f32 %v13025_v61, %v6642_v37  ;;  %v5027_v28 = vpop.f32.mrf.mxu1  ;;  %v5392_v35 = vld [vmem:[#allocation3 + $0x1da] ss:$2 sm:$0xff] }
 0x6f1   :  { %v4373_v18 = vsel %vm4307_vm4, %v4292_v32, %v4118_v21  ;;  %v8344_v43 = vunpack.i.l.bf16 %v8343_v34  ;;  %v13071_v31 = vpop.permute.xlu2 %5883  ;;  %v8345_v5 = vunpack.i.h.bf16 %v8343_v34  ;;  %v4294_v21 = vsel %vm3346_vm1, %v3494_v60, %v8349_v4  ;;  %v5464_v11 = vld [vmem:[#allocation3 + $0x194] ss:$2 sm:$0xff] }
 0x6f2   :  { %4787 = vmatmul.f32.gmra.mxu0 %v4373_v18  ;;  %v6894_v0 = vmax.f32 %v6777_v10, 0.0  ;;  %v4375_v19 = vsel %vm4307_vm4, %v4294_v21, %v13001_v33  ;;  %v8350_v20 = vunpack.i.h.bf16 %v13018_v39  ;;  %v5390_v10 = vld [vmem:[#allocation3 + $0x1ca] ss:$2 sm:$0xff] }
 0x6f3   :  { %6057 = vrot.lane.b32.xlu1 %v5538_v42, %s8464_s14  ;;  %v4293_v58 = vsel %vm3346_vm1, %v3493_v45, %v8344_v43  ;;  %v6307_v46 = vsel %vm3346_vm1, %v5278_v49, %v8345_v5  ;;  %v8386_v18 = vpack.i.bf16 %v5392_v35, %v5390_v10  ;;  %v5546_v42 = vld [vmem:[#allocation3 + $0x1a6] ss:$2 sm:$0xff] }
 0x6f4   :  { %6935 = vst.msk [vmem:[#allocation4 + $0x8] sm:$0xff] %vm6933_vm8, %v6894_v0  ;;  %v4374_v53 = vsel %vm4307_vm4, %v4293_v58, %v4120_v16  ;;  %v6308_v0 = vsel %vm3346_vm1, %v5280_v62, %v8350_v20  ;;  %v5282_v5 = vld [vmem:[#allocation3 + $0xd0] ss:$2 sm:$0xff]  ;;  %v5632_v60 = vld [vmem:[#allocation3 + $0x1e0] ss:$2 sm:$0xff] }
 0x6f5   :  { %v5876_v9 = vpop.permute.xlu1 %5875  ;;  %6063 = vrot.lane.b32.xlu2 %v5544_v26, %s8464_s14  ;;  %v5388_v26 = vld [vmem:[#allocation3 + $0x1ba] ss:$2 sm:$0xff] }
 0x6f6   :  { %8007 = vmatmul.msk.f32.gmra.mxu1 %vm4411_vm3, %v13001_v33  ;;  %8377 = vrot.lane.b32.xlu0 %v8376_v1, %s8462_s12  ;;  %v6346_v17 = vsel %vm4307_vm4, %v6306_v50, %v5876_v9  ;;  %v6386_v41 = vsel %vm4411_vm3, %v5876_v9, %v12986_v54  ;;  %v5386_v9 = vld [vmem:[#allocation3 + $0x1a2] ss:$2 sm:$0xff] }
 0x6f7   :  { %6662 = vmatmul.f32.gmra.mxu2 %v6346_v17  ;;  %v8381_v17 = vpack.i.bf16 %v5388_v26, %v5386_v9  ;;  %v5472_v20 = vld [vmem:[#allocation3 + $0x1dc] ss:$2 sm:$0xff] }
 0x6f8   :  { %v6779_v57 = vpop.f32.mrf.mxu3  ;;  %v5878_v52 = vpop.permute.xlu0 %5877 }
 0x6f9   :  { %v6780_v51 = vadd.f32 %v6779_v57, %v6643_v6  ;;  %v6347_v14 = vsel %vm4307_vm4, %v6307_v46, %v5878_v52  ;;  %v13089_v16 = vpop.permute.xlu2 %8357  ;;  %v5548_v57 = vld [vmem:[#allocation3 + $0x1be] ss:$2 sm:$0xff] }
 0x6fa   :  { %4790 = vmatmul.f32.gmra.mxu0 %v4374_v53  ;;  %v5284_v46 = vld [vmem:[#allocation3 + $0xe0] ss:$2 sm:$0xff] }
 0x6fb   :  { %v6895_v44 = vmax.f32 %v6780_v51, 0.0  ;;  %6059 = vrot.lane.b32.xlu1 %v5540_v23, %s8464_s14  ;;  %v4770_v59 = vpop.f32.mrf.mxu0 }
 0x6fc   :  { %v4771_v3 = vadd.f32 %v12933_v47, %v4770_v59 }
 0x6fd   :  { %6936 = vst.msk [vmem:[#allocation4 + $0x10] sm:$0xff] %vm6933_vm8, %v6895_v44  ;;  %v6196_v13 = vpop.permute.xlu1 %6195  ;;  %5905 = vrot.lane.b32.xlu2 %v5466_v29, %s8463_s15  ;;  %v5626_v29 = vld [vmem:[#allocation3 + $0x1a8] ss:$2 sm:$0xff] }
 0x6fe   :  { %v5028_v63 = vadd.f32 %v5027_v28, %v4771_v3  ;;  %8008 = vmatmul.msk.f32.gmra.mxu1 %vm4411_vm3, %v12185_v2  ;;  %6221 = vrot.lane.b32.xlu0 %v5622_v27, %s8465_s16  ;;  %v6427_v54 = vsel %vm6417_vm6, %v6386_v41, %v6196_v13  ;;  %v5462_v2 = vld [vmem:[#allocation3 + $0x184] ss:$2 sm:$0xff] }
 0x6ff   :  { %6665 = vmatmul.f32.gmra.mxu2 %v6347_v14  ;;  %8030 = vmatmul.msk.f32.gmra.mxu3 %vm6494_vm7, %v6427_v54  ;;  %v5470_v27 = vld [vmem:[#allocation3 + $0x1cc] ss:$2 sm:$0xff] }
 0x700   :  { %v5149_v15 = vmax.f32 %v5028_v63, 0.0  ;;  %v6198_v30 = vpop.permute.xlu0 %6197 }
 0x701   :  { %v13103_v34 = vpop.permute.xlu2 %6205 }
 0x702   :  { %5229 = vst.msk [vmem:[#allocation3 + $0x200] sm:$0xff] %vm3346_vm1, %v5149_v15  ;;  %4793 = vmatmul.f32.gmra.mxu0 %v4375_v19 }
 0x703   :  { %5901 = vrot.lane.b32.xlu1 %v5462_v2, %s8463_s15  ;;  %v5628_v2 = vld [vmem:[#allocation3 + $0x1c0] ss:$2 sm:$0xff] }
 0x705   :  { %v6038_v40 = vpop.permute.xlu1 %6037  ;;  %5907 = vrot.lane.b32.xlu2 %v5468_v8, %s8463_s15 }
 0x706   :  { %v6387_v7 = vsel %vm4411_vm3, %v5878_v52, %v6038_v40  ;;  %8009 = vmatmul.msk.f32.gmra.mxu1 %vm4411_vm3, %v12200_v25  ;;  %6223 = vrot.lane.b32.xlu0 %v5624_v24, %s8465_s16  ;;  %v6645_v32 = vpop.f32.mrf.mxu2  ;;  %v8359_v40 = vunpack.i.l.bf16 %v13089_v16  ;;  %v5554_v24 = vld [vmem:[#allocation3 + $0x1ee] ss:$2 sm:$0xff] }
 0x707   :  { %v6428_v33 = vsel %vm6417_vm6, %v6387_v7, %v6198_v30  ;;  %v6646_v25 = vadd.f32 %v13025_v61, %v6645_v32 }
 0x708   :  { %8031 = vmatmul.msk.f32.gmra.mxu3 %vm6494_vm7, %v6428_v33  ;;  %v6200_v12 = vpop.permute.xlu0 %6199 }
 0x709   :  { %v13117_v58 = vpop.permute.xlu2 %6207 }
 0x70b   :  { %5903 = vrot.lane.b32.xlu1 %v5464_v11, %s8463_s15  ;;  %v5286_v11 = vld [vmem:[#allocation3 + $0xf0] ss:$2 sm:$0xff] }
 0x70c   :  { %v5030_v51 = vpop.f32.mrf.mxu1  ;;  %v6311_v10 = vsel %vm3346_vm1, %v5286_v11, %v8359_v40 }
 0x70d   :  { %v5880_v43 = vpop.permute.xlu1 %5879  ;;  %8387 = vrot.lane.b32.xlu2 %v8386_v18, %s8462_s12 }
 0x70e   :  { %v6388_v39 = vsel %vm4411_vm3, %v5880_v43, %v13039_v36  ;;  %6065 = vrot.lane.b32.xlu0 %v5546_v42, %s8464_s14  ;;  %v6782_v56 = vpop.f32.mrf.mxu3  ;;  %v6348_v37 = vsel %vm4307_vm4, %v6308_v0, %v5880_v43  ;;  %v5630_v36 = vld [vmem:[#allocation3 + $0x1d0] ss:$2 sm:$0xff] }
 0x70f   :  { %v6783_v1 = vadd.f32 %v6782_v56, %v6646_v25  ;;  %6668 = vmatmul.f32.gmra.mxu2 %v6348_v37  ;;  %v6429_v48 = vsel %vm6417_vm6, %v6388_v39, %v6200_v12  ;;  %v5396_v25 = vld [vmem:[#allocation3 + $0x1fa] ss:$2 sm:$0xff]  ;;  %v5394_v39 = vld [vmem:[#allocation3 + $0x1ea] ss:$2 sm:$0xff]  ;;  %v8360_v56 = vunpack.i.h.bf16 %v13089_v16 }
 0x710   :  { %8032 = vmatmul.msk.f32.gmra.mxu3 %vm6494_vm7, %v6429_v48  ;;  %v6042_v45 = vpop.permute.xlu0 %6041  ;;  %v5550_v42 = vld [vmem:[#allocation3 + $0x1ce] ss:$2 sm:$0xff]  ;;  %v8391_v26 = vpack.i.bf16 %v5396_v25, %v5394_v39 }
 0x711   :  { %v6896_v50 = vmax.f32 %v6783_v1, 0.0  ;;  %v6389_v28 = vsel %vm4411_vm3, %v13053_v55, %v6042_v45  ;;  %v13132_v14 = vpop.permute.xlu2 %6049  ;;  %v5556_v1 = vld [vmem:[#allocation3 + $0x1fe] ss:$2 sm:$0xff] }
 0x713   :  { %6937 = vst.msk [vmem:[#allocation4 + $0x18] sm:$0xff] %vm6933_vm8, %v6896_v50  ;;  %8382 = vrot.lane.b32.xlu1 %v8381_v17, %s8462_s12  ;;  %v5288_v17 = vld [vmem:[#allocation3 + $0x108] ss:$2 sm:$0xff] }
 0x714   :  { %v5033_v19 = vpop.f32.mrf.mxu1  ;;  %v6312_v16 = vsel %vm3346_vm1, %v5288_v17, %v8360_v56  ;;  %v5296_v17 = vld [vmem:[#allocation3 + $0x148] ss:$2 sm:$0xff] }
 0x715   :  { %v8353_v6 = vpop.permute.xlu1 %8352  ;;  %6229 = vrot.lane.b32.xlu2 %v5630_v36, %s8465_s16 }
 0x716   :  { %v8354_v4 = vunpack.i.l.bf16 %v8353_v6  ;;  %6067 = vrot.lane.b32.xlu0 %v5548_v57, %s8464_s14  ;;  %v8355_v3 = vunpack.i.h.bf16 %v8353_v6 }
 0x718   :  { %v4773_v52 = vpop.f32.mrf.mxu0  ;;  %v6309_v53 = vsel %vm3346_vm1, %v5282_v5, %v8354_v4  ;;  %v6044_v23 = vpop.permute.xlu0 %6043  ;;  %v6310_v63 = vsel %vm3346_vm1, %v5284_v46, %v8355_v3  ;;  %v5552_v4 = vld [vmem:[#allocation3 + $0x1de] ss:$2 sm:$0xff] }
 0x719   :  { %v4774_v44 = vadd.f32 %v12933_v47, %v4773_v52  ;;  %v6349_v59 = vsel %vm4307_vm4, %v6309_v53, %v13053_v55  ;;  %v6350_v30 = vsel %vm4307_vm4, %v6310_v63, %v13071_v31  ;;  %v6390_v7 = vsel %vm4411_vm3, %v13071_v31, %v6044_v23  ;;  %v13149_v18 = vpop.permute.xlu2 %6051  ;;  %v5634_v23 = vld [vmem:[#allocation3 + $0x1f0] ss:$2 sm:$0xff] }
 0x71a   :  { %6671 = vmatmul.f32.gmra.mxu2 %v6349_v59 }
 0x71b   :  { %v5031_v49 = vadd.f32 %v5030_v51, %v4774_v44  ;;  %6225 = vrot.lane.b32.xlu1 %v5626_v29, %s8465_s16 }
 0x71d   :  { %v5150_v41 = vmax.f32 %v5031_v49, 0.0  ;;  %v6202_v13 = vpop.permute.xlu1 %6201  ;;  %6231 = vrot.lane.b32.xlu2 %v5632_v60, %s8465_s16  ;;  %v5474_v60 = vld [vmem:[#allocation3 + $0x1ec] ss:$2 sm:$0xff] }
 0x71e   :  { %v6430_v21 = vsel %vm6417_vm6, %v6389_v28, %v6202_v13  ;;  %5909 = vrot.lane.b32.xlu0 %v5470_v27, %s8463_s15  ;;  %v5290_v28 = vld [vmem:[#allocation3 + $0x118] ss:$2 sm:$0xff] }
 0x71f   :  { %5230 = vst.msk [vmem:[#allocation3 + $0x210] sm:$0xff] %vm3346_vm1, %v5150_v41  ;;  %8033 = vmatmul.msk.f32.gmra.mxu3 %vm6494_vm7, %v6430_v21  ;;  %v5636_v27 = vld [vmem:[#allocation3 + $0x200] ss:$2 sm:$0xff] }
 0x720   :  { %v4776_v54 = vpop.f32.mrf.mxu0  ;;  %v5886_v55 = vpop.permute.xlu0 %5885 }
 0x721   :  { %v4777_v15 = vadd.f32 %v12933_v47, %v4776_v54  ;;  %v6351_v62 = vsel %vm4307_vm4, %v6311_v10, %v5886_v55  ;;  %v13164_v5 = vpop.permute.xlu2 %5893 }
 0x722   :  { %6674 = vmatmul.f32.gmra.mxu2 %v6350_v30  ;;  %v5292_v30 = vld [vmem:[#allocation3 + $0x128] ss:$2 sm:$0xff] }
 0x723   :  { %v5034_v8 = vadd.f32 %v5033_v19, %v4777_v15  ;;  %6227 = vrot.lane.b32.xlu1 %v5628_v2, %s8465_s16  ;;  %v6648_v12 = vpop.f32.mrf.mxu2  ;;  %v5476_v15 = vld [vmem:[#allocation3 + $0x1fc] ss:$2 sm:$0xff] }
 0x724   :  { %v6649_v43 = vadd.f32 %v13025_v61, %v6648_v12 }
 0x725   :  { %v5151_v33 = vmax.f32 %v5034_v8, 0.0  ;;  %v6204_v35 = vpop.permute.xlu1 %6203  ;;  %6073 = vrot.lane.b32.xlu2 %v5554_v24, %s8464_s14 }
 0x726   :  { %v6431_v32 = vsel %vm6417_vm6, %v6390_v7, %v6204_v35  ;;  %5911 = vrot.lane.b32.xlu0 %v5472_v20, %s8463_s15 }
 0x727   :  { %5231 = vst.msk [vmem:[#allocation3 + $0x218] sm:$0xff] %vm3346_vm1, %v5151_v33  ;;  %8034 = vmatmul.msk.f32.gmra.mxu3 %vm6494_vm7, %v6431_v32 }
 0x728   :  { %v5888_v31 = vpop.permute.xlu0 %5887 }
 0x729   :  { %v6352_v57 = vsel %vm4307_vm4, %v6312_v16, %v5888_v31  ;;  %v13175_v41 = vpop.permute.xlu2 %5895 }
 0x72a   :  { %6677 = vmatmul.f32.gmra.mxu2 %v6351_v62  ;;  %v5294_v62 = vld [vmem:[#allocation3 + $0x138] ss:$2 sm:$0xff] }
 0x72b   :  { %6069 = vrot.lane.b32.xlu1 %v5550_v42, %s8464_s14  ;;  %v6785_v0 = vpop.f32.mrf.mxu3  ;;  %v6651_v36 = vpop.f32.mrf.mxu2 }
 0x72c   :  { %v6786_v37 = vadd.f32 %v6785_v0, %v6649_v43  ;;  %v6652_v51 = vadd.f32 %v13025_v61, %v6651_v36 }
 0x72d   :  { %v6046_v48 = vpop.permute.xlu1 %6045  ;;  %6075 = vrot.lane.b32.xlu2 %v5556_v1, %s8464_s14 }
 0x72e   :  { %v6897_v9 = vmax.f32 %v6786_v37, 0.0  ;;  %v6391_v50 = vsel %vm4411_vm3, %v5886_v55, %v6046_v48  ;;  %8392 = vrot.lane.b32.xlu0 %v8391_v26, %s8462_s12 }
 0x72f   :  { %v6432_v45 = vsel %vm6417_vm6, %v6391_v50, %v13103_v34 }
 0x730   :  { %6938 = vst.msk [vmem:[#allocation4 + $0x20] sm:$0xff] %vm6933_vm8, %v6897_v9  ;;  %8035 = vmatmul.msk.f32.gmra.mxu3 %vm6494_vm7, %v6432_v45  ;;  %v8363_v6 = vpop.permute.xlu0 %8362 }
 0x731   :  { %v8364_v29 = vunpack.i.l.bf16 %v8363_v6  ;;  %v8365_v54 = vunpack.i.h.bf16 %v8363_v6  ;;  %v13189_v24 = vpop.permute.xlu2 %8372 }
 0x732   :  { %6680 = vmatmul.f32.gmra.mxu2 %v6352_v57 }
 0x733   :  { %6071 = vrot.lane.b32.xlu1 %v5552_v4, %s8464_s14  ;;  %v6313_v46 = vsel %vm3346_vm1, %v5290_v28, %v8364_v29  ;;  %v6314_v8 = vsel %vm3346_vm1, %v5292_v30, %v8365_v54  ;;  %v8375_v54 = vunpack.i.h.bf16 %v13189_v24 }
 0x734   :  { %v6788_v34 = vpop.f32.mrf.mxu3 }
 0x735   :  { %v6048_v52 = vpop.permute.xlu1 %6047  ;;  %v6789_v53 = vadd.f32 %v6788_v34, %v6652_v51 }
 0x736   :  { %v6392_v44 = vsel %vm4411_vm3, %v5888_v31, %v6048_v52  ;;  %6233 = vrot.lane.b32.xlu0 %v5634_v23, %s8465_s16 }
 0x737   :  { %v6898_v59 = vmax.f32 %v6789_v53, 0.0  ;;  %v6433_v3 = vsel %vm6417_vm6, %v6392_v44, %v13117_v58 }
 0x738   :  { %8036 = vmatmul.msk.f32.gmra.mxu3 %vm6494_vm7, %v6433_v3  ;;  %v6210_v49 = vpop.permute.xlu0 %6209 }
 0x739   :  { %6939 = vst.msk [vmem:[#allocation4 + $0x28] sm:$0xff] %vm6933_vm8, %v6898_v59  ;;  %v13197_v42 = vpop.permute.xlu2 %6217  ;;  %v8374_v59 = vunpack.i.l.bf16 %v13189_v24  ;;  %v5300_v24 = vld [vmem:[#allocation3 + $0x170] ss:$2 sm:$0xff] }
 0x73b   :  { %5913 = vrot.lane.b32.xlu1 %v5474_v60, %s8463_s15  ;;  %v5036_v19 = vpop.f32.mrf.mxu1 }
 0x73d   :  { %v5890_v13 = vpop.permute.xlu1 %5889 }
 0x73e   :  { %v6393_v21 = vsel %vm4411_vm3, %v5890_v13, %v13132_v14  ;;  %6235 = vrot.lane.b32.xlu0 %v5636_v27, %s8465_s16  ;;  %v6353_v58 = vsel %vm4307_vm4, %v6313_v46, %v5890_v13  ;;  %v5298_v13 = vld [vmem:[#allocation3 + $0x160] ss:$2 sm:$0xff] }
 0x73f   :  { %6683 = vmatmul.f32.gmra.mxu2 %v6353_v58  ;;  %v6434_v63 = vsel %vm6417_vm6, %v6393_v21, %v6210_v49  ;;  %v6317_v27 = vsel %vm3346_vm1, %v5298_v13, %v8374_v59  ;;  %v7244_v59 = vld [vmem:[%s14111_s7 + $0x70] sm:$0xff] }
 0x740   :  { %8037 = vmatmul.msk.f32.gmra.mxu3 %vm6494_vm7, %v6434_v63  ;;  %v6212_v55 = vpop.permute.xlu0 %6211  ;;  %7299 = vmatpush.msra.mxu2 %v7244_v59 }
 0x741   :  { %v6220_v23 = vpop.permute.xlu2 %6219 }
 0x743   :  { %5915 = vrot.lane.b32.xlu1 %v5476_v15, %s8463_s15 }
 0x745   :  { %v5892_v2 = vpop.permute.xlu1 %5891 }
 0x746   :  { %v6394_v14 = vsel %vm4411_vm3, %v5892_v2, %v13149_v18  ;;  %v6354_v40 = vsel %vm4307_vm4, %v6314_v8, %v5892_v2  ;;  %v5039_v18 = vpop.f32.mrf.mxu1 }
 0x747   :  { %v4779_v7 = vpop.f32.mrf.mxu0  ;;  %6686 = vmatmul.f32.gmra.mxu2 %v6354_v40  ;;  %v6435_v33 = vsel %vm6417_vm6, %v6394_v14, %v6212_v55 }
 0x748   :  { %v4780_v35 = vadd.f32 %v12933_v47, %v4779_v7  ;;  %8038 = vmatmul.msk.f32.gmra.mxu3 %vm6494_vm7, %v6435_v33  ;;  %v6054_v20 = vpop.permute.xlu0 %6053 }
 0x749   :  { %v6395_v48 = vsel %vm4411_vm3, %v13164_v5, %v6054_v20  ;;  %v6062_v30 = vpop.permute.xlu2 %6061 }
 0x74a   :  { %v5037_v12 = vadd.f32 %v5036_v19, %v4780_v35 }
 0x74c   :  { %v5152_v32 = vmax.f32 %v5037_v12, 0.0  ;;  %v6318_v12 = vsel %vm3346_vm1, %v5300_v24, %v8375_v54 }
 0x74d   :  { %v8368_v11 = vpop.permute.xlu1 %8367 }
 0x74e   :  { %5232 = vst.msk [vmem:[#allocation3 + $0x220] sm:$0xff] %vm3346_vm1, %v5152_v32  ;;  %v8369_v10 = vunpack.i.l.bf16 %v8368_v11  ;;  %v8370_v56 = vunpack.i.h.bf16 %v8368_v11  ;;  %v5042_v4 = vpop.f32.mrf.mxu1 }
 0x74f   :  { %v4782_v31 = vpop.f32.mrf.mxu0 }
 0x750   :  { %v4783_v25 = vadd.f32 %v12933_v47, %v4782_v31  ;;  %v6315_v43 = vsel %vm3346_vm1, %v5294_v62, %v8369_v10  ;;  %v6056_v0 = vpop.permute.xlu0 %6055  ;;  %v6316_v16 = vsel %vm3346_vm1, %v5296_v17, %v8370_v56 }
 0x751   :  { %v6355_v39 = vsel %vm4307_vm4, %v6315_v43, %v13164_v5  ;;  %v6356_v34 = vsel %vm4307_vm4, %v6316_v16, %v13175_v41  ;;  %v6396_v29 = vsel %vm4411_vm3, %v13175_v41, %v6056_v0  ;;  %v6064_v0 = vpop.permute.xlu2 %6063 }
 0x752   :  { %v5040_v37 = vadd.f32 %v5039_v18, %v4783_v25  ;;  %6689 = vmatmul.f32.gmra.mxu2 %v6355_v39  ;;  %v6654_v26 = vpop.f32.mrf.mxu2 }
 0x753   :  { %v6655_v5 = vadd.f32 %v13025_v61, %v6654_v26  ;;  %v8432_v26 = vld [vmem:[%s14108_s4] ss:$0 sm:$0xff] }
 0x754   :  { %v5153_v1 = vmax.f32 %v5040_v37, 0.0 }
 0x755   :  { %v6214_v9 = vpop.permute.xlu1 %6213  ;;  %v5558_v50 = vld [vmem:[#allocation3 + $0x216] ss:$2 sm:$0xff] }
 0x756   :  { %v5478_v45 = vld [vmem:[#allocation3 + $0x214] ss:$2 sm:$0xff]  ;;  %5233 = vst.msk [vmem:[#allocation3 + $0x228] sm:$0xff] %vm3346_vm1, %v5153_v1  ;;  %v6436_v36 = vsel %vm6417_vm6, %v6395_v48, %v6214_v9  ;;  %6077 = vrot.lane.b32.xlu0 %v5558_v50, %s8464_s14 }
 0x757   :  { %5917 = vrot.lane.b32.xlu2 %v5478_v45, %s8463_s15  ;;  %v4785_v6 = vpop.f32.mrf.mxu0  ;;  %8039 = vmatmul.msk.f32.gmra.mxu3 %vm6494_vm7, %v6436_v36  ;;  %v5398_v15 = vld [vmem:[#allocation3 + $0x212] ss:$2 sm:$0xff] }
 0x758   :  { %v4786_v57 = vadd.f32 %v12933_v47, %v4785_v6  ;;  %v5898_v51 = vpop.permute.xlu0 %5897  ;;  %v5638_v37 = vld [vmem:[#allocation3 + $0x218] ss:$2 sm:$0xff] }
 0x759   :  { %v6357_v21 = vsel %vm4307_vm4, %v6317_v27, %v5898_v51  ;;  %v5302_v36 = vld [vmem:[#allocation3 + $0x180] ss:$2 sm:$0xff] }
 0x75a   :  { %v5043_v52 = vadd.f32 %v5042_v4, %v4786_v57  ;;  %6692 = vmatmul.f32.gmra.mxu2 %v6356_v34  ;;  %v6791_v53 = vpop.f32.mrf.mxu3  ;;  %v6657_v49 = vpop.f32.mrf.mxu2 }
 0x75b   :  { %v6792_v44 = vadd.f32 %v6791_v53, %v6655_v5  ;;  %v6658_v58 = vadd.f32 %v13025_v61, %v6657_v49  ;;  %v5906_v53 = vpop.permute.xlu2 %5905 }
 0x75c   :  { %v5154_v3 = vmax.f32 %v5043_v52, 0.0 }
 0x75d   :  { %v6899_v47 = vmax.f32 %v6792_v44, 0.0  ;;  %v6216_v60 = vpop.permute.xlu1 %6215 }
 0x75e   :  { %5234 = vst.msk [vmem:[#allocation3 + $0x230] sm:$0xff] %vm3346_vm1, %v5154_v3  ;;  %v6437_v28 = vsel %vm6417_vm6, %v6396_v29, %v6216_v60  ;;  %v4798_v3 = vadd.f32 %v8432_v26, %v12586_v22 }
 0x75f   :  { %6940 = vst.msk [vmem:[#allocation4 + $0x30] sm:$0xff] %vm6933_vm8, %v6899_v47  ;;  %8040 = vmatmul.msk.f32.gmra.mxu3 %vm6494_vm7, %v6437_v28  ;;  %v5304_v28 = vld [vmem:[#allocation3 + $0x190] ss:$2 sm:$0xff] }
 0x760   :  { %v5900_v46 = vpop.permute.xlu0 %5899 }
 0x761   :  { %v6358_v11 = vsel %vm4307_vm4, %v6318_v12, %v5900_v46 }
 0x762   :  { %6695 = vmatmul.f32.gmra.mxu2 %v6357_v21  ;;  %v6660_v35 = vpop.f32.mrf.mxu2 }
 0x763   :  { %v5045_v41 = vpop.f32.mrf.mxu1  ;;  %v6794_v63 = vpop.f32.mrf.mxu3  ;;  %v6661_v10 = vadd.f32 %v13025_v61, %v6660_v35 }
 0x764   :  { %v6795_v55 = vadd.f32 %v6794_v63, %v6658_v58 }
 0x765   :  { %v6058_v19 = vpop.permute.xlu1 %6057  ;;  %v5560_v2 = vld [vmem:[#allocation3 + $0x226] ss:$2 sm:$0xff] }
 0x766   :  { %v5480_v8 = vld [vmem:[#allocation3 + $0x224] ss:$2 sm:$0xff]  ;;  %v6900_v40 = vmax.f32 %v6795_v55, 0.0  ;;  %v6397_v7 = vsel %vm4411_vm3, %v5898_v51, %v6058_v19  ;;  %6079 = vrot.lane.b32.xlu0 %v5560_v2, %s8464_s14 }
 0x767   :  { %v5400_v14 = vld [vmem:[#allocation3 + $0x222] ss:$2 sm:$0xff]  ;;  %5919 = vrot.lane.b32.xlu2 %v5480_v8, %s8463_s15  ;;  %v6438_v20 = vsel %vm6417_vm6, %v6397_v7, %v13197_v42  ;;  %v5908_v8 = vpop.permute.xlu2 %5907 }
 0x768   :  { %v8396_v33 = vpack.i.bf16 %v5400_v14, %v5398_v15  ;;  %6941 = vst.msk [vmem:[#allocation4 + $0x38] sm:$0xff] %vm6933_vm8, %v6900_v40  ;;  %8041 = vmatmul.msk.f32.gmra.mxu3 %vm6494_vm7, %v6438_v20  ;;  %v8378_v32 = vpop.permute.xlu0 %8377  ;;  %v5640_v34 = vld [vmem:[#allocation3 + $0x228] ss:$2 sm:$0xff] }
 0x769   :  { %v8379_v48 = vunpack.i.l.bf16 %v8378_v32 }
 0x76a   :  { %8397 = vrot.lane.b32.xlu1 %v8396_v33, %s8462_s12  ;;  %6698 = vmatmul.f32.gmra.mxu2 %v6358_v11 }
 0x76b   :  { %v5048_v18 = vpop.f32.mrf.mxu1  ;;  %v6797_v31 = vpop.f32.mrf.mxu3  ;;  %v6319_v6 = vsel %vm3346_vm1, %v5302_v36, %v8379_v48 }
 0x76c   :  { %v6798_v62 = vadd.f32 %v6797_v31, %v6661_v10  ;;  %v5306_v10 = vld [vmem:[#allocation3 + $0x1a0] ss:$2 sm:$0xff] }
 0x76d   :  { %v6060_v25 = vpop.permute.xlu1 %6059 }
 0x76e   :  { %v6901_v43 = vmax.f32 %v6798_v62, 0.0  ;;  %v6398_v42 = vsel %vm4411_vm3, %v5900_v46, %v6060_v25 }
 0x76f   :  { %v4788_v39 = vpop.f32.mrf.mxu0  ;;  %v6439_v56 = vsel %vm6417_vm6, %v6398_v42, %v6220_v23  ;;  %v8380_v23 = vunpack.i.h.bf16 %v8378_v32 }
 0x770   :  { %6942 = vst.msk [vmem:[#allocation4 + $0x40] sm:$0xff] %vm6933_vm8, %v6901_v43  ;;  %v4789_v1 = vadd.f32 %v8432_v26, %v4788_v39  ;;  %8042 = vmatmul.msk.f32.gmra.mxu3 %vm6494_vm7, %v6439_v56  ;;  %v6222_v9 = vpop.permute.xlu0 %6221  ;;  %v5308_v56 = vld [vmem:[#allocation3 + $0x1b8] ss:$2 sm:$0xff] }
 0x771   :  { %v6320_v46 = vsel %vm3346_vm1, %v5304_v28, %v8380_v23 }
 0x772   :  { %6237 = vrot.lane.b32.xlu1 %v5638_v37, %s8465_s16  ;;  %v5046_v50 = vadd.f32 %v5045_v41, %v4789_v1  ;;  %v8388_v37 = vpop.permute.xlu2 %8387 }
 0x773   :  { %v5051_v45 = vpop.f32.mrf.mxu1  ;;  %v8389_v23 = vunpack.i.l.bf16 %v8388_v37 }
 0x774   :  { %v5155_v17 = vmax.f32 %v5046_v50, 0.0 }
 0x775   :  { %v5902_v16 = vpop.permute.xlu1 %5901 }
 0x776   :  { %5235 = vst.msk [vmem:[#allocation3 + $0x238] sm:$0xff] %vm3346_vm1, %v5155_v17  ;;  %v6399_v57 = vsel %vm4411_vm3, %v5902_v16, %v6062_v30  ;;  %v6359_v4 = vsel %vm4307_vm4, %v6319_v6, %v5902_v16  ;;  %v4801_v30 = vadd.f32 %v8432_v26, %v12626_v38  ;;  %v7243_v6 = vld [vmem:[%s14111_s7 + $0x68] sm:$0xff] }
 0x777   :  { %v4791_v5 = vpop.f32.mrf.mxu0  ;;  %6701 = vmatmul.f32.gmra.mxu2 %v6359_v4  ;;  %v6440_v51 = vsel %vm6417_vm6, %v6399_v57, %v6222_v9 }
 0x778   :  { %v4792_v52 = vadd.f32 %v8432_v26, %v4791_v5  ;;  %8043 = vmatmul.msk.f32.gmra.mxu3 %vm6494_vm7, %v6440_v51  ;;  %v6224_v44 = vpop.permute.xlu0 %6223  ;;  %7300 = vmatpush.msra.mxu2 %v7243_v6 }
 0x77a   :  { %6239 = vrot.lane.b32.xlu1 %v5640_v34, %s8465_s16  ;;  %v5049_v29 = vadd.f32 %v5048_v18, %v4792_v52  ;;  %v6663_v13 = vpop.f32.mrf.mxu2 }
 0x77b   :  { %v5054_v49 = vpop.f32.mrf.mxu1  ;;  %v6664_v55 = vadd.f32 %v13025_v61, %v6663_v13  ;;  %v5310_v13 = vld [vmem:[#allocation3 + $0x1c8] ss:$2 sm:$0xff] }
 0x77c   :  { %v5156_v47 = vmax.f32 %v5049_v29, 0.0  ;;  %v5055_v60 = vadd.f32 %v5054_v49, %v4798_v3 }
 0x77d   :  { %v5904_v27 = vpop.permute.xlu1 %5903 }
 0x77e   :  { %5236 = vst.msk [vmem:[#allocation3 + $0x240] sm:$0xff] %vm3346_vm1, %v5156_v47  ;;  %v5158_v21 = vmax.f32 %v5055_v60, 0.0  ;;  %v6400_v58 = vsel %vm4411_vm3, %v5904_v27, %v6064_v0  ;;  %v6360_v41 = vsel %vm4307_vm4, %v6320_v46, %v5904_v27  ;;  %v6230_v60 = vpop.permute.xlu2 %6229  ;;  %v6323_v27 = vsel %vm3346_vm1, %v5310_v13, %v8389_v23 }
 0x77f   :  { %v4794_v63 = vpop.f32.mrf.mxu0  ;;  %6704 = vmatmul.f32.gmra.mxu2 %v6360_v41  ;;  %v6441_v22 = vsel %vm6417_vm6, %v6400_v58, %v6224_v44  ;;  %v8390_v58 = vunpack.i.h.bf16 %v8388_v37 }
 0x780   :  { %5238 = vst.msk [vmem:[#allocation3 + $0x250] sm:$0xff] %vm3346_vm1, %v5158_v21  ;;  %v4795_v54 = vadd.f32 %v8432_v26, %v4794_v63  ;;  %8044 = vmatmul.msk.f32.gmra.mxu3 %vm6494_vm7, %v6441_v22  ;;  %v6066_v15 = vpop.permute.xlu0 %6065  ;;  %v5488_v22 = vld [vmem:[#allocation3 + $0x26c] ss:$2 sm:$0xff] }
 0x781   :  { %v6401_v26 = vsel %vm4411_vm3, %v5906_v53, %v6066_v15 }
 0x782   :  { %v5052_v19 = vadd.f32 %v5051_v45, %v4795_v54  ;;  %v6800_v2 = vpop.f32.mrf.mxu3  ;;  %v6666_v38 = vpop.f32.mrf.mxu2 }
 0x783   :  { %v6801_v14 = vadd.f32 %v6800_v2, %v6664_v55  ;;  %v5057_v40 = vpop.f32.mrf.mxu1  ;;  %v6667_v25 = vadd.f32 %v13025_v61, %v6666_v38 }
 0x784   :  { %v5157_v7 = vmax.f32 %v5052_v19, 0.0  ;;  %v5058_v33 = vadd.f32 %v5057_v40, %v4801_v30  ;;  %v5312_v19 = vld [vmem:[#allocation3 + $0x1d8] ss:$2 sm:$0xff] }
 0x785   :  { %v6902_v35 = vmax.f32 %v6801_v14, 0.0  ;;  %v8383_v20 = vpop.permute.xlu1 %8382  ;;  %v5562_v24 = vld [vmem:[#allocation3 + $0x236] ss:$2 sm:$0xff]  ;;  %v6324_v2 = vsel %vm3346_vm1, %v5312_v19, %v8390_v58 }
 0x786   :  { %v5482_v12 = vld [vmem:[#allocation3 + $0x234] ss:$2 sm:$0xff]  ;;  %5237 = vst.msk [vmem:[#allocation3 + $0x248] sm:$0xff] %vm3346_vm1, %v5157_v7  ;;  %v5159_v32 = vmax.f32 %v5058_v33, 0.0  ;;  %v8384_v11 = vunpack.i.l.bf16 %v8383_v20  ;;  %6081 = vrot.lane.b32.xlu1 %v5562_v24, %s8464_s14  ;;  %v8385_v43 = vunpack.i.h.bf16 %v8383_v20 }
 0x787   :  { %5921 = vrot.lane.b32.xlu0 %v5482_v12, %s8463_s15  ;;  %6943 = vst.msk [vmem:[#allocation4 + $0x48] sm:$0xff] %vm6933_vm8, %v6902_v35  ;;  %v5402_v39 = vld [vmem:[#allocation3 + $0x232] ss:$2 sm:$0xff] }
 0x788   :  { %5239 = vst.msk [vmem:[#allocation3 + $0x258] sm:$0xff] %vm3346_vm1, %v5159_v32  ;;  %v6321_v18 = vsel %vm3346_vm1, %v5306_v10, %v8384_v11  ;;  %v6068_v31 = vpop.permute.xlu0 %6067  ;;  %v6322_v16 = vsel %vm3346_vm1, %v5308_v56, %v8385_v43  ;;  %v13303_v14 = vld [vmem:[%s14110_s6] ss:$0 sm:$0xff]  ;;  %v5412_v33 = vld [vmem:[#allocation3 + $0x28a] ss:$2 sm:$0xff] }
 0x789   :  { %v6361_v62 = vsel %vm4307_vm4, %v6321_v18, %v5906_v53  ;;  %v6362_v4 = vsel %vm4307_vm4, %v6322_v16, %v5908_v8  ;;  %v5408_v53 = vld [vmem:[#allocation3 + $0x26a] ss:$2 sm:$0xff]  ;;  %v6402_v59 = vsel %vm4411_vm3, %v5908_v8, %v6068_v31  ;;  %v6232_v8 = vpop.permute.xlu2 %6231  ;;  %v5410_v12 = vld [vmem:[#allocation3 + $0x27a] ss:$2 sm:$0xff] }
 0x78a   :  { %6707 = vmatmul.f32.gmra.mxu2 %v6361_v62  ;;  %v8411_v32 = vpack.i.bf16 %v5412_v33, %v5410_v12  ;;  %v5648_v18 = vld [vmem:[#allocation3 + $0x270] ss:$2 sm:$0xff] }
 0x78b   :  { %v6803_v42 = vpop.f32.mrf.mxu3  ;;  %v5414_v33 = vld [vmem:[#allocation3 + $0x29a] ss:$2 sm:$0xff] }
 0x78c   :  { %v6804_v0 = vadd.f32 %v6803_v42, %v6667_v25 }
 0x78d   :  { %v6226_v1 = vpop.permute.xlu1 %6225  ;;  %v5564_v48 = vld [vmem:[#allocation3 + $0x246] ss:$2 sm:$0xff] }
 0x78e   :  { %v5484_v9 = vld [vmem:[#allocation3 + $0x244] ss:$2 sm:$0xff]  ;;  %v6903_v45 = vmax.f32 %v6804_v0, 0.0  ;;  %v6442_v17 = vsel %vm6417_vm6, %v6401_v26, %v6226_v1  ;;  %6083 = vrot.lane.b32.xlu1 %v5564_v48, %s8464_s14 }
 0x78f   :  { %v5404_v50 = vld [vmem:[#allocation3 + $0x242] ss:$2 sm:$0xff]  ;;  %5923 = vrot.lane.b32.xlu0 %v5484_v9, %s8463_s15  ;;  %8045 = vmatmul.msk.f32.gmra.mxu3 %vm6494_vm7, %v6442_v17  ;;  %v5406_v5 = vld [vmem:[#allocation3 + $0x252] ss:$2 sm:$0xff] }
 0x790   :  { %v8401_v36 = vpack.i.bf16 %v5404_v50, %v5402_v39  ;;  %6944 = vst.msk [vmem:[#allocation4 + $0x50] sm:$0xff] %vm6933_vm8, %v6903_v45  ;;  %v5910_v57 = vpop.permute.xlu0 %5909  ;;  %v8406_v44 = vpack.i.bf16 %v5408_v53, %v5406_v5  ;;  %v5486_v49 = vld [vmem:[#allocation3 + $0x254] ss:$2 sm:$0xff] }
 0x791   :  { %v6363_v21 = vsel %vm4307_vm4, %v6323_v27, %v5910_v57  ;;  %v5646_v54 = vld [vmem:[#allocation3 + $0x258] ss:$2 sm:$0xff]  ;;  %v5644_v15 = vld [vmem:[#allocation3 + $0x248] ss:$2 sm:$0xff]  ;;  %v6074_v56 = vpop.permute.xlu2 %6073 }
 0x792   :  { %8402 = vrot.lane.b32.xlu2 %v8401_v36, %s8462_s12  ;;  %v6669_v51 = vpop.f32.mrf.mxu2  ;;  %6710 = vmatmul.f32.gmra.mxu2 %v6362_v4  ;;  %v5566_v62 = vld [vmem:[#allocation3 + $0x256] ss:$2 sm:$0xff] }
 0x793   :  { %v6670_v34 = vadd.f32 %v13025_v61, %v6669_v51  ;;  %v6806_v52 = vpop.f32.mrf.mxu3  ;;  %v5642_v61 = vld [vmem:[#allocation3 + $0x238] ss:$2 sm:$0xff]  ;;  %v5314_v1 = vld [vmem:[#allocation3 + $0x1e8] ss:$2 sm:$0xff] }
 0x794   :  { %v7242_v0 = vld [vmem:[%s14111_s7 + $0x60] sm:$0xff] }
 0x795   :  { %v6807_v3 = vadd.f32 %v6806_v52, %v6670_v34  ;;  %v6228_v29 = vpop.permute.xlu1 %6227  ;;  %7301 = vmatpush.msra.mxu2 %v7242_v0  ;;  %v5650_v45 = vld [vmem:[#allocation3 + $0x280] ss:$2 sm:$0xff]  ;;  %v5656_v0 = vld [vmem:[#allocation3 + $0x2b0] ss:$2 sm:$0xff] }
 0x796   :  { %v6443_v47 = vsel %vm6417_vm6, %v6402_v59, %v6228_v29  ;;  %5925 = vrot.lane.b32.xlu1 %v5486_v49, %s8463_s15  ;;  %v5570_v17 = vld [vmem:[#allocation3 + $0x27e] ss:$2 sm:$0xff] }
 0x797   :  { %8407 = vrot.lane.b32.xlu0 %v8406_v44, %s8462_s12  ;;  %v6904_v28 = vmax.f32 %v6807_v3, 0.0  ;;  %8046 = vmatmul.msk.f32.gmra.mxu3 %vm6494_vm7, %v6443_v47  ;;  %v5316_v53 = vld [vmem:[#allocation3 + $0x1f8] ss:$2 sm:$0xff] }
 0x798   :  { %v5912_v46 = vpop.permute.xlu0 %5911  ;;  %v5652_v59 = vld [vmem:[#allocation3 + $0x290] ss:$2 sm:$0xff] }
 0x799   :  { %6945 = vst.msk [vmem:[#allocation4 + $0x58] sm:$0xff] %vm6933_vm8, %v6904_v28  ;;  %v6364_v7 = vsel %vm4307_vm4, %v6324_v2, %v5912_v46  ;;  %v6076_v23 = vpop.permute.xlu2 %6075  ;;  %v5572_v3 = vld [vmem:[#allocation3 + $0x28e] ss:$2 sm:$0xff] }
 0x79a   :  { %6241 = vrot.lane.b32.xlu2 %v5642_v61, %s8465_s16  ;;  %6713 = vmatmul.f32.gmra.mxu2 %v6363_v21  ;;  %v7241_v61 = vld [vmem:[%s14111_s7 + $0x58] sm:$0xff] }
 0x79b   :  { %v5490_v27 = vld [vmem:[#allocation3 + $0x27c] ss:$2 sm:$0xff]  ;;  %7302 = vmatpush.msra.mxu2 %v7241_v61 }
 0x79c   :  { %v5416_v2 = vld [vmem:[#allocation3 + $0x2aa] ss:$2 sm:$0xff] }
 0x79d   :  { %v6070_v41 = vpop.permute.xlu1 %6069  ;;  %v6672_v63 = vpop.f32.mrf.mxu2 }
 0x79e   :  { %v6403_v55 = vsel %vm4411_vm3, %v5910_v57, %v6070_v41  ;;  %5927 = vrot.lane.b32.xlu1 %v5488_v22, %s8463_s15  ;;  %v6673_v40 = vadd.f32 %v13303_v14, %v6672_v63  ;;  %v5568_v57 = vld [vmem:[#allocation3 + $0x26e] ss:$2 sm:$0xff]  ;;  %v5574_v63 = vld [vmem:[#allocation3 + $0x29e] ss:$2 sm:$0xff] }
 0x79f   :  { %6245 = vrot.lane.b32.xlu0 %v5646_v54, %s8465_s16  ;;  %v6444_v30 = vsel %vm6417_vm6, %v6403_v55, %v6230_v60  ;;  %v5494_v22 = vld [vmem:[#allocation3 + $0x29c] ss:$2 sm:$0xff]  ;;  %v5492_v55 = vld [vmem:[#allocation3 + $0x28c] ss:$2 sm:$0xff] }
 0x7a0   :  { %8047 = vmatmul.msk.f32.gmra.mxu3 %vm6494_vm7, %v6444_v30  ;;  %v8393_v35 = vpop.permute.xlu0 %8392 }
 0x7a1   :  { %v8394_v43 = vunpack.i.l.bf16 %v8393_v35  ;;  %v8395_v5 = vunpack.i.h.bf16 %v8393_v35  ;;  %v8416_v35 = vpack.i.bf16 %v5416_v2, %v5414_v33 }
 0x7a2   :  { %6243 = vrot.lane.b32.xlu2 %v5644_v15, %s8465_s16  ;;  %6716 = vmatmul.f32.gmra.mxu2 %v6364_v7  ;;  %v6809_v20 = vpop.f32.mrf.mxu3  ;;  %v5496_v7 = vld [vmem:[#allocation3 + $0x2ac] ss:$2 sm:$0xff] }
 0x7a3   :  { %v6810_v24 = vadd.f32 %v6809_v20, %v6673_v40  ;;  %v6325_v36 = vsel %vm3346_vm1, %v5314_v1, %v8394_v43  ;;  %v6326_v29 = vsel %vm3346_vm1, %v5316_v53, %v8395_v5  ;;  %v5576_v40 = vld [vmem:[#allocation3 + $0x2ae] ss:$2 sm:$0xff] }
 0x7a4   :  { %v7010_v43 = vld [vmem:[#allocation4 + $0x2a] ss:$2 sm:$0xff] }
 0x7a5   :  { %v6905_v11 = vmax.f32 %v6810_v24, 0.0  ;;  %v6072_v38 = vpop.permute.xlu1 %6071  ;;  %v6675_v10 = vpop.f32.mrf.mxu2  ;;  %v7008_v5 = vld [vmem:[#allocation4 + $0x12] ss:$2 sm:$0xff] }
 0x7a6   :  { %v6404_v31 = vsel %vm4411_vm3, %v5912_v46, %v6072_v38  ;;  %8412 = vrot.lane.b32.xlu1 %v8411_v32, %s8462_s12  ;;  %v6676_v42 = vadd.f32 %v13303_v14, %v6675_v10  ;;  %v7038_v38 = vld [vmem:[#allocation4 + $0x4] ss:$2 sm:$0xff] }
 0x7a7   :  { %6247 = vrot.lane.b32.xlu0 %v5648_v18, %s8465_s16  ;;  %6946 = vst.msk [vmem:[#allocation4 + $0x60] sm:$0xff] %vm6933_vm8, %v6905_v11  ;;  %v6445_v25 = vsel %vm6417_vm6, %v6404_v31, %v6232_v8  ;;  %v7006_v10 = vld [vmem:[#allocation4 + $0x2] ss:$2 sm:$0xff] }
 0x7a8   :  { %8048 = vmatmul.msk.f32.gmra.mxu3 %vm6494_vm7, %v6445_v25  ;;  %v6234_v26 = vpop.permute.xlu0 %6233  ;;  %v5654_v31 = vld [vmem:[#allocation3 + $0x2a0] ss:$2 sm:$0xff] }
 0x7aa   :  { %6085 = vrot.lane.b32.xlu2 %v5566_v62, %s8464_s14  ;;  %v6812_v39 = vpop.f32.mrf.mxu3  ;;  %v7240_v62 = vld [vmem:[%s14111_s7 + $0x50] sm:$0xff] }
 0x7ab   :  { %v6813_v37 = vadd.f32 %v6812_v39, %v6676_v42  ;;  %7303 = vmatpush.msra.mxu2 %v7240_v62  ;;  %v7040_v42 = vld [vmem:[#allocation4 + $0x14] ss:$2 sm:$0xff] }
 0x7ad   :  { %v6906_v48 = vmax.f32 %v6813_v37, 0.0  ;;  %v5914_v9 = vpop.permute.xlu1 %5913  ;;  %v6678_v50 = vpop.f32.mrf.mxu2 }
 0x7ae   :  { %v6405_v16 = vsel %vm4411_vm3, %v5914_v9, %v6074_v56  ;;  %6249 = vrot.lane.b32.xlu1 %v5650_v45, %s8465_s16  ;;  %v6365_v6 = vsel %vm4307_vm4, %v6325_v36, %v5914_v9  ;;  %v6679_v51 = vadd.f32 %v13303_v14, %v6678_v50  ;;  %v5318_v9 = vld [vmem:[#allocation3 + $0x210] ss:$2 sm:$0xff] }
 0x7af   :  { %6089 = vrot.lane.b32.xlu0 %v5570_v17, %s8464_s14  ;;  %6947 = vst.msk [vmem:[#allocation4 + $0x68] sm:$0xff] %vm6933_vm8, %v6906_v48  ;;  %6719 = vmatmul.f32.gmra.mxu2 %v6365_v6  ;;  %v6446_v4 = vsel %vm6417_vm6, %v6405_v16, %v6234_v26  ;;  %v7044_v17 = vld [vmem:[#allocation4 + $0x3c] ss:$2 sm:$0xff] }
 0x7b0   :  { %8049 = vmatmul.msk.f32.gmra.mxu3 %vm6494_vm7, %v6446_v4  ;;  %v6236_v49 = vpop.permute.xlu0 %6235  ;;  %v7012_v36 = vld [vmem:[#allocation4 + $0x3a] ss:$2 sm:$0xff] }
 0x7b1   :  { %v5918_v39 = vpop.permute.xlu2 %5917 }
 0x7b2   :  { %6087 = vrot.lane.b32.xlu2 %v5568_v57, %s8464_s14 }
 0x7b3   :  { %v6815_v34 = vpop.f32.mrf.mxu3 }
 0x7b4   :  { %v6816_v52 = vadd.f32 %v6815_v34, %v6679_v51 }
 0x7b5   :  { %v5916_v44 = vpop.permute.xlu1 %5915  ;;  %v6681_v13 = vpop.f32.mrf.mxu2 }
 0x7b6   :  { %v6907_v47 = vmax.f32 %v6816_v52, 0.0  ;;  %v6406_v60 = vsel %vm4411_vm3, %v5916_v44, %v6076_v23  ;;  %6251 = vrot.lane.b32.xlu1 %v5652_v59, %s8465_s16  ;;  %v6366_v28 = vsel %vm4307_vm4, %v6326_v29, %v5916_v44  ;;  %v6682_v21 = vadd.f32 %v13303_v14, %v6681_v13  ;;  %v5320_v44 = vld [vmem:[#allocation3 + $0x220] ss:$2 sm:$0xff] }
 0x7b7   :  { %6091 = vrot.lane.b32.xlu0 %v5572_v3, %s8464_s14  ;;  %6722 = vmatmul.f32.gmra.mxu2 %v6366_v28  ;;  %v6447_v46 = vsel %vm6417_vm6, %v6406_v60, %v6236_v49  ;;  %v7046_v28 = vld [vmem:[#allocation4 + $0x54] ss:$2 sm:$0xff] }
 0x7b8   :  { %6948 = vst.msk [vmem:[#allocation4 + $0x70] sm:$0xff] %vm6933_vm8, %v6907_v47  ;;  %8050 = vmatmul.msk.f32.gmra.mxu3 %vm6494_vm7, %v6447_v46  ;;  %v7239_v46 = vld [vmem:[%s14111_s7 + $0x48] sm:$0xff] }
 0x7b9   :  { %7304 = vmatpush.msra.mxu2 %v7239_v46 }
 0x7ba   :  { %5929 = vrot.lane.b32.xlu2 %v5490_v27, %s8463_s15  ;;  %v7042_v27 = vld [vmem:[#allocation4 + $0x2c] ss:$2 sm:$0xff] }
 0x7bb   :  { %v6818_v58 = vpop.f32.mrf.mxu3 }
 0x7bc   :  { %v6819_v41 = vadd.f32 %v6818_v58, %v6682_v21 }
 0x7be   :  { %v6908_v54 = vmax.f32 %v6819_v41, 0.0  ;;  %6093 = vrot.lane.b32.xlu1 %v5574_v63, %s8464_s14 }
 0x7bf   :  { %5933 = vrot.lane.b32.xlu0 %v5494_v22, %s8463_s15  ;;  %v7016_v60 = vld [vmem:[#allocation4 + $0x62] ss:$2 sm:$0xff] }
 0x7c0   :  { %6949 = vst.msk [vmem:[#allocation4 + $0x78] sm:$0xff] %vm6933_vm8, %v6908_v54 }
 0x7c1   :  { %v5920_v51 = vpop.permute.xlu2 %5919 }
 0x7c2   :  { %5931 = vrot.lane.b32.xlu2 %v5492_v55, %s8463_s15  ;;  %v6684_v15 = vpop.f32.mrf.mxu2 }
 0x7c3   :  { %v6685_v30 = vadd.f32 %v13303_v14, %v6684_v15  ;;  %v6821_v19 = vpop.f32.mrf.mxu3 }
 0x7c5   :  { %v6822_v8 = vadd.f32 %v6821_v19, %v6685_v30 }
 0x7c6   :  { %6095 = vrot.lane.b32.xlu1 %v5576_v40, %s8464_s14 }
 0x7c7   :  { %5935 = vrot.lane.b32.xlu0 %v5496_v7, %s8463_s15  ;;  %v6909_v20 = vmax.f32 %v6822_v8, 0.0  ;;  %v7014_v8 = vld [vmem:[#allocation4 + $0x52] ss:$2 sm:$0xff] }
 0x7c8   :  { %v6078_v57 = vpop.permute.xlu0 %6077 }
 0x7c9   :  { %6950 = vst.msk [vmem:[#allocation4 + $0x80] sm:$0xff] %vm6933_vm8, %v6909_v20  ;;  %v6407_v52 = vsel %vm4411_vm3, %v5918_v39, %v6078_v57 }
 0x7ca   :  { %8417 = vrot.lane.b32.xlu2 %v8416_v35, %s8462_s12  ;;  %v6687_v24 = vpop.f32.mrf.mxu2 }
 0x7cb   :  { %v6688_v12 = vadd.f32 %v13303_v14, %v6687_v24  ;;  %v6824_v32 = vpop.f32.mrf.mxu3 }
 0x7cd   :  { %v6825_v11 = vadd.f32 %v6824_v32, %v6688_v12  ;;  %v7048_v32 = vld [vmem:[#allocation4 + $0x64] ss:$2 sm:$0xff] }
 0x7ce   :  { %7149 = vrot.lane.b32.xlu1 %v7038_v38, %s8466_s25  ;;  %v7238_v38 = vld [vmem:[%s14111_s7 + $0x40] sm:$0xff] }
 0x7cf   :  { %7085 = vrot.lane.b32.xlu0 %v7006_v10, %s8467_s26  ;;  %v6910_v18 = vmax.f32 %v6825_v11, 0.0  ;;  %v5322_v11 = vld [vmem:[#allocation3 + $0x230] ss:$2 sm:$0xff]  ;;  %7305 = vmatpush.msra.mxu2 %v7238_v38 }
 0x7d1   :  { %6951 = vst.msk [vmem:[#allocation4 + $0x88] sm:$0xff] %vm6933_vm8, %v6910_v18 }
 0x7d2   :  { %6253 = vrot.lane.b32.xlu2 %v5654_v31, %s8465_s16 }
 0x7d5   :  { %v6690_v25 = vpop.f32.mrf.mxu2 }
 0x7d6   :  { %7089 = vrot.lane.b32.xlu1 %v7010_v43, %s8467_s26  ;;  %v6691_v56 = vadd.f32 %v13303_v14, %v6690_v25 }
 0x7d7   :  { %7151 = vrot.lane.b32.xlu0 %v7040_v42, %s8466_s25 }
 0x7d8   :  { %v6080_v13 = vpop.permute.xlu0 %6079  ;;  %v7050_v15 = vld [vmem:[#allocation4 + $0x7c] ss:$2 sm:$0xff] }
 0x7d9   :  { %v6408_v21 = vsel %vm4411_vm3, %v5920_v51, %v6080_v13  ;;  %v7018_v30 = vld [vmem:[#allocation4 + $0x7a] ss:$2 sm:$0xff] }
 0x7da   :  { %6255 = vrot.lane.b32.xlu2 %v5656_v0, %s8465_s16  ;;  %v6827_v37 = vpop.f32.mrf.mxu3 }
 0x7db   :  { %v6828_v1 = vadd.f32 %v6827_v37, %v6691_v56 }
 0x7dc   :  { %v8398_v26 = vpop.permute.xlu1 %8397 }
 0x7dd   :  { %v8399_v48 = vunpack.i.l.bf16 %v8398_v26  ;;  %v6911_v50 = vmax.f32 %v6828_v1, 0.0  ;;  %v6693_v45 = vpop.f32.mrf.mxu2  ;;  %v8400_v4 = vunpack.i.h.bf16 %v8398_v26 }
 0x7de   :  { %7155 = vrot.lane.b32.xlu1 %v7044_v17, %s8466_s25  ;;  %v6694_v34 = vadd.f32 %v13303_v14, %v6693_v45 }
 0x7df   :  { %v6327_v16 = vsel %vm3346_vm1, %v5318_v9, %v8399_v48  ;;  %7091 = vrot.lane.b32.xlu0 %v7012_v36, %s8467_s26  ;;  %6952 = vst.msk [vmem:[#allocation4 + $0x90] sm:$0xff] %vm6933_vm8, %v6911_v50  ;;  %v6328_v29 = vsel %vm3346_vm1, %v5320_v44, %v8400_v4  ;;  %v5324_v9 = vld [vmem:[#allocation3 + $0x240] ss:$2 sm:$0xff] }
 0x7e0   :  { %v6367_v6 = vsel %vm4307_vm4, %v6327_v16, %v5918_v39  ;;  %v6368_v61 = vsel %vm4307_vm4, %v6328_v29, %v5920_v51 }
 0x7e1   :  { %6725 = vmatmul.f32.gmra.mxu2 %v6367_v6 }
 0x7e2   :  { %7087 = vrot.lane.b32.xlu2 %v7008_v5, %s8467_s26  ;;  %v6830_v53 = vpop.f32.mrf.mxu3 }
 0x7e3   :  { %v6831_v59 = vadd.f32 %v6830_v53, %v6694_v34 }
 0x7e4   :  { %v6238_v23 = vpop.permute.xlu1 %6237 }
 0x7e5   :  { %v6448_v3 = vsel %vm6417_vm6, %v6407_v52, %v6238_v23  ;;  %v6912_v49 = vmax.f32 %v6831_v59, 0.0  ;;  %v6696_v47 = vpop.f32.mrf.mxu2 }
 0x7e6   :  { %8051 = vmatmul.msk.f32.gmra.mxu3 %vm6494_vm7, %v6448_v3  ;;  %7095 = vrot.lane.b32.xlu1 %v7016_v60, %s8467_s26  ;;  %v6697_v58 = vadd.f32 %v13303_v14, %v6696_v47 }
 0x7e7   :  { %7157 = vrot.lane.b32.xlu0 %v7046_v28, %s8466_s25  ;;  %6953 = vst.msk [vmem:[#allocation4 + $0x98] sm:$0xff] %vm6933_vm8, %v6912_v49  ;;  %v5326_v49 = vld [vmem:[#allocation3 + $0x250] ss:$2 sm:$0xff] }
 0x7e9   :  { %6728 = vmatmul.f32.gmra.mxu2 %v6368_v61 }
 0x7ea   :  { %7153 = vrot.lane.b32.xlu2 %v7042_v27, %s8466_s25 }
 0x7eb   :  { %v6833_v54 = vpop.f32.mrf.mxu3 }
 0x7ec   :  { %v6240_v41 = vpop.permute.xlu1 %6239  ;;  %v8403_v63 = vpop.permute.xlu2 %8402  ;;  %v6834_v55 = vadd.f32 %v6833_v54, %v6697_v58  ;;  %v5328_v54 = vld [vmem:[#allocation3 + $0x268] ss:$2 sm:$0xff] }
 0x7ed   :  { %v6449_v22 = vsel %vm6417_vm6, %v6408_v21, %v6240_v41  ;;  %v6699_v2 = vpop.f32.mrf.mxu2  ;;  %v8404_v35 = vunpack.i.l.bf16 %v8403_v63  ;;  %v8405_v37 = vunpack.i.h.bf16 %v8403_v63  ;;  %v7237_v21 = vld [vmem:[%s14111_s7 + $0x38] sm:$0xff] }
 0x7ee   :  { %8052 = vmatmul.msk.f32.gmra.mxu3 %vm6494_vm7, %v6449_v22  ;;  %v6913_v19 = vmax.f32 %v6834_v55, 0.0  ;;  %7161 = vrot.lane.b32.xlu1 %v7050_v15, %s8466_s25  ;;  %v6700_v40 = vadd.f32 %v13303_v14, %v6699_v2  ;;  %v7052_v24 = vld [vmem:[#allocation4 + $0x8c] ss:$2 sm:$0xff] }
 0x7ef   :  { %7097 = vrot.lane.b32.xlu0 %v7018_v30, %s8467_s26  ;;  %v6329_v31 = vsel %vm3346_vm1, %v5322_v11, %v8404_v35  ;;  %v7020_v48 = vld [vmem:[#allocation4 + $0x8a] ss:$2 sm:$0xff]  ;;  %v6330_v17 = vsel %vm3346_vm1, %v5324_v9, %v8405_v37  ;;  %7306 = vmatpush.msra.mxu2 %v7237_v21 }
 0x7f0   :  { %6954 = vst.msk [vmem:[#allocation4 + $0xa0] sm:$0xff] %vm6933_vm8, %v6913_v19  ;;  %v5330_v11 = vld [vmem:[#allocation3 + $0x278] ss:$2 sm:$0xff] }
 0x7f2   :  { %7093 = vrot.lane.b32.xlu2 %v7014_v8, %s8467_s26 }
 0x7f3   :  { %v6836_v33 = vpop.f32.mrf.mxu3 }
 0x7f4   :  { %v6242_v7 = vpop.permute.xlu2 %6241  ;;  %v6837_v20 = vadd.f32 %v6836_v33, %v6700_v40 }
 0x7f6   :  { %v6914_v12 = vmax.f32 %v6837_v20, 0.0 }
 0x7f7   :  { %7163 = vrot.lane.b32.xlu0 %v7052_v24, %s8466_s25  ;;  %v7236_v24 = vld [vmem:[%s14111_s7 + $0x30] sm:$0xff] }
 0x7f8   :  { %6955 = vst.msk [vmem:[#allocation4 + $0xa8] sm:$0xff] %vm6933_vm8, %v6914_v12  ;;  %v6082_v10 = vpop.permute.xlu1 %6081  ;;  %v7235_v12 = vld [vmem:[%s14111_s7 + $0x28] sm:$0xff]  ;;  %7307 = vmatpush.msra.mxu2 %v7236_v24 }
 0x7f9   :  { %v5922_v18 = vpop.permute.xlu0 %5921 }
 0x7fa   :  { %7159 = vrot.lane.b32.xlu2 %v7048_v32, %s8466_s25  ;;  %v6409_v62 = vsel %vm4411_vm3, %v5922_v18, %v6082_v10  ;;  %v6369_v25 = vsel %vm4307_vm4, %v6329_v31, %v5922_v18  ;;  %v6702_v42 = vpop.f32.mrf.mxu2  ;;  %v7234_v31 = vld [vmem:[%s14111_s7 + $0x20] sm:$0xff]  ;;  %7308 = vmatpush.msra.mxu2 %v7235_v12 }
 0x7fb   :  { %6731 = vmatmul.f32.gmra.mxu2 %v6369_v25  ;;  %v6450_v0 = vsel %vm6417_vm6, %v6409_v62, %v6242_v7  ;;  %v6703_v39 = vadd.f32 %v13303_v14, %v6702_v42  ;;  %v6839_v56 = vpop.f32.mrf.mxu3 }
 0x7fc   :  { %v6244_v43 = vpop.permute.xlu2 %6243  ;;  %8053 = vmatmul.msk.f32.gmra.mxu3 %vm6494_vm7, %v6450_v0  ;;  %7309 = vmatpush.msra.mxu2 %v7234_v31 }
 0x7fd   :  { %v6840_v26 = vadd.f32 %v6839_v56, %v6703_v39  ;;  %v7233_v56 = vld [vmem:[%s14111_s7 + $0x18] sm:$0xff] }
 0x7fe   :  { %7310 = vmatpush.msra.mxu2 %v7233_v56 }
 0x7ff   :  { %v6915_v1 = vmax.f32 %v6840_v26, 0.0 }
 0x800   :  { %v6084_v50 = vpop.permute.xlu1 %6083 }
 0x801   :  { %v5924_v45 = vpop.permute.xlu0 %5923  ;;  %6956 = vst.msk [vmem:[#allocation4 + $0xb0] sm:$0xff] %vm6933_vm8, %v6915_v1  ;;  %v5332_v1 = vld [vmem:[#allocation3 + $0x288] ss:$2 sm:$0xff] }
 0x802   :  { %7099 = vrot.lane.b32.xlu2 %v7020_v48, %s8467_s26  ;;  %v6410_v36 = vsel %vm4411_vm3, %v5924_v45, %v6084_v50  ;;  %v6370_v16 = vsel %vm4307_vm4, %v6330_v17, %v5924_v45  ;;  %v6705_v57 = vpop.f32.mrf.mxu2  ;;  %v7232_v50 = vld [vmem:[%s14111_s7 + $0x10] sm:$0xff]  ;;  %v7231_v45 = vld [vmem:[%s14111_s7 + $0x8] sm:$0xff] }
 0x803   :  { %6734 = vmatmul.f32.gmra.mxu2 %v6370_v16  ;;  %v6451_v4 = vsel %vm6417_vm6, %v6410_v36, %v6244_v43  ;;  %v6706_v5 = vadd.f32 %v13303_v14, %v6705_v57  ;;  %v6842_v51 = vpop.f32.mrf.mxu3 }
 0x804   :  { %v6086_v6 = vpop.permute.xlu2 %6085  ;;  %8054 = vmatmul.msk.f32.gmra.mxu3 %vm6494_vm7, %v6451_v4  ;;  %7311 = vmatpush.msra.mxu2 %v7232_v50 }
 0x805   :  { %v6843_v34 = vadd.f32 %v6842_v51, %v6706_v5 }
 0x806   :  { %7312 = vmatpush.msra.mxu2 %v7231_v45 }
 0x807   :  { %v6916_v52 = vmax.f32 %v6843_v34, 0.0 }
 0x808   :  { %v5926_v53 = vpop.permute.xlu1 %5925  ;;  %v7054_v44 = vld [vmem:[#allocation4 + $0xa4] ss:$2 sm:$0xff] }
 0x809   :  { %v8408_v23 = vpop.permute.xlu0 %8407  ;;  %v7022_v59 = vld [vmem:[#allocation4 + $0xa2] ss:$2 sm:$0xff]  ;;  %6957 = vst.msk [vmem:[#allocation4 + $0xb8] sm:$0xff] %vm6933_vm8, %v6916_v52  ;;  %v6411_v13 = vsel %vm4411_vm3, %v5926_v53, %v6086_v6 }
 0x80a   :  { %v8409_v3 = vunpack.i.l.bf16 %v8408_v23  ;;  %7165 = vrot.lane.b32.xlu2 %v7054_v44, %s8466_s25  ;;  %7101 = vrot.lane.b32.xlu1 %v7022_v59, %s8467_s26  ;;  %v8410_v61 = vunpack.i.h.bf16 %v8408_v23  ;;  %v7230_v6 = vld [vmem:[%s14111_s7] sm:$0xff] }
 0x80b   :  { %7313 = vmatpush.msra.mxu2 %v7230_v6 }
 0x80c   :  { %v6088_v29 = vpop.permute.xlu2 %6087  ;;  %v6331_v47 = vsel %vm3346_vm1, %v5326_v49, %v8409_v3  ;;  %v6332_v15 = vsel %vm3346_vm1, %v5328_v54, %v8410_v61 }
 0x80d   :  { %v6371_v60 = vsel %vm4307_vm4, %v6331_v47, %v5926_v53  ;;  %v6708_v28 = vpop.f32.mrf.mxu2 }
 0x80e   :  { %6737 = vmatmul.f32.gmra.mxu2 %v6371_v60  ;;  %v6709_v58 = vadd.f32 %v13303_v14, %v6708_v28  ;;  %v5334_v28 = vld [vmem:[#allocation3 + $0x298] ss:$2 sm:$0xff] }
 0x810   :  { %v5928_v27 = vpop.permute.xlu1 %5927 }
 0x811   :  { %v6246_v46 = vpop.permute.xlu0 %6245  ;;  %v6372_v30 = vsel %vm4307_vm4, %v6332_v15, %v5928_v27  ;;  %v6412_v8 = vsel %vm4411_vm3, %v5928_v27, %v6088_v29  ;;  %v5336_v15 = vld [vmem:[#allocation3 + $0x2a8] ss:$2 sm:$0xff] }
 0x812   :  { %v6452_v41 = vsel %vm6417_vm6, %v6411_v13, %v6246_v46  ;;  %v6845_v63 = vpop.f32.mrf.mxu3 }
 0x813   :  { %8055 = vmatmul.msk.f32.gmra.mxu3 %vm6494_vm7, %v6452_v41  ;;  %v6846_v55 = vadd.f32 %v6845_v63, %v6709_v58 }
 0x814   :  { %v5930_v22 = vpop.permute.xlu2 %5929 }
 0x815   :  { %v6917_v19 = vmax.f32 %v6846_v55, 0.0  ;;  %v6711_v2 = vpop.f32.mrf.mxu2 }
 0x816   :  { %6740 = vmatmul.f32.gmra.mxu2 %v6372_v30  ;;  %v6712_v33 = vadd.f32 %v13303_v14, %v6711_v2 }
 0x817   :  { %6958 = vst.msk [vmem:[#allocation4 + $0xc0] sm:$0xff] %vm6933_vm8, %v6917_v19 }
 0x818   :  { %v8413_v40 = vpop.permute.xlu1 %8412 }
 0x819   :  { %v6248_v7 = vpop.permute.xlu0 %6247  ;;  %v8414_v35 = vunpack.i.l.bf16 %v8413_v40  ;;  %v8415_v25 = vunpack.i.h.bf16 %v8413_v40 }
 0x81a   :  { %v6453_v20 = vsel %vm6417_vm6, %v6412_v8, %v6248_v7  ;;  %v6848_v32 = vpop.f32.mrf.mxu3 }
 0x81b   :  { %8056 = vmatmul.msk.f32.gmra.mxu3 %vm6494_vm7, %v6453_v20  ;;  %v6849_v38 = vadd.f32 %v6848_v32, %v6712_v33  ;;  %v6333_v18 = vsel %vm3346_vm1, %v5330_v11, %v8414_v35  ;;  %v6334_v9 = vsel %vm3346_vm1, %v5332_v1, %v8415_v25 }
 0x81c   :  { %v5932_v10 = vpop.permute.xlu2 %5931  ;;  %v6373_v62 = vsel %vm4307_vm4, %v6333_v18, %v5930_v22 }
 0x81d   :  { %v6918_v43 = vmax.f32 %v6849_v38, 0.0  ;;  %v6714_v42 = vpop.f32.mrf.mxu2  ;;  %v6374_v4 = vsel %vm4307_vm4, %v6334_v9, %v5932_v10  ;;  %v6978_v9 = vld [vmem:[#allocation4 + $0x28] ss:$2 sm:$0xff] }
 0x81e   :  { %6743 = vmatmul.f32.gmra.mxu2 %v6373_v62  ;;  %v7056_v0 = vld [vmem:[#allocation4 + $0xb4] ss:$2 sm:$0xff]  ;;  %v6715_v17 = vadd.f32 %v13303_v14, %v6714_v42 }
 0x81f   :  { %v7024_v39 = vld [vmem:[#allocation4 + $0xb2] ss:$2 sm:$0xff]  ;;  %6959 = vst.msk [vmem:[#allocation4 + $0xc8] sm:$0xff] %vm6933_vm8, %v6918_v43  ;;  %7167 = vrot.lane.b32.xlu1 %v7056_v0, %s8466_s25 }
 0x820   :  { %7103 = vrot.lane.b32.xlu0 %v7024_v39, %s8467_s26  ;;  %v6250_v37 = vpop.permute.xlu1 %6249  ;;  %v6974_v62 = vld [vmem:[#allocation4] ss:$2 sm:$0xff]  ;;  %v6976_v0 = vld [vmem:[#allocation4 + $0x10] ss:$2 sm:$0xff] }
 0x821   :  { %v6090_v26 = vpop.permute.xlu0 %6089 }
 0x822   :  { %v6413_v48 = vsel %vm4411_vm3, %v5930_v22, %v6090_v26 }
 0x823   :  { %v6454_v36 = vsel %vm6417_vm6, %v6413_v48, %v6250_v37  ;;  %v6851_v16 = vpop.f32.mrf.mxu3 }
 0x824   :  { %8057 = vmatmul.msk.f32.gmra.mxu3 %vm6494_vm7, %v6454_v36  ;;  %v6852_v57 = vadd.f32 %v6851_v16, %v6715_v17  ;;  %v8418_v5 = vpop.permute.xlu2 %8417  ;;  %v6980_v16 = vld [vmem:[#allocation4 + $0x38] ss:$2 sm:$0xff] }
 0x825   :  { %v6717_v34 = vpop.f32.mrf.mxu2  ;;  %v8419_v29 = vunpack.i.l.bf16 %v8418_v5  ;;  %v8420_v54 = vunpack.i.h.bf16 %v8418_v5 }
 0x826   :  { %6746 = vmatmul.f32.gmra.mxu2 %v6374_v4  ;;  %v6919_v51 = vmax.f32 %v6852_v57, 0.0  ;;  %v6718_v44 = vadd.f32 %v13303_v14, %v6717_v34  ;;  %v6982_v34 = vld [vmem:[#allocation4 + $0x50] ss:$2 sm:$0xff] }
 0x827   :  { %v6335_v27 = vsel %vm3346_vm1, %v5334_v28, %v8419_v29  ;;  %v6336_v7 = vsel %vm3346_vm1, %v5336_v15, %v8420_v54  ;;  %vm7406_vm1 = vcmask 1047559  }
 0x828   :  { %6960 = vst.msk [vmem:[#allocation4 + $0xd0] sm:$0xff] %vm6933_vm8, %v6919_v51  ;;  %v6252_v52 = vpop.permute.xlu1 %6251 }
 0x829   :  { %v6092_v53 = vpop.permute.xlu0 %6091 }
 0x82a   :  { %v6414_v23 = vsel %vm4411_vm3, %v5932_v10, %v6092_v53 }
 0x82b   :  { %v6455_v59 = vsel %vm6417_vm6, %v6414_v23, %v6252_v52  ;;  %v6854_v3 = vpop.f32.mrf.mxu3 }
 0x82c   :  { %8058 = vmatmul.msk.f32.gmra.mxu3 %vm6494_vm7, %v6455_v59  ;;  %v6855_v49 = vadd.f32 %v6854_v3, %v6718_v44  ;;  %v6254_v60 = vpop.permute.xlu2 %6253  ;;  %v6984_v59 = vld [vmem:[#allocation4 + $0x60] ss:$2 sm:$0xff] }
 0x82e   :  { %v6920_v47 = vmax.f32 %v6855_v49, 0.0 }
 0x830   :  { %6961 = vst.msk [vmem:[#allocation4 + $0xd8] sm:$0xff] %vm6933_vm8, %v6920_v47  ;;  %v6094_v61 = vpop.permute.xlu1 %6093 }
 0x831   :  { %v5934_v13 = vpop.permute.xlu0 %5933 }
 0x832   :  { %v6415_v46 = vsel %vm4411_vm3, %v5934_v13, %v6094_v61  ;;  %v6375_v21 = vsel %vm4307_vm4, %v6335_v27, %v5934_v13  ;;  %v6720_v58 = vpop.f32.mrf.mxu2 }
 0x833   :  { %6749 = vmatmul.f32.gmra.mxu2 %v6375_v21  ;;  %v6456_v41 = vsel %vm6417_vm6, %v6415_v46, %v6254_v60  ;;  %v6721_v63 = vadd.f32 %v13303_v14, %v6720_v58  ;;  %v6857_v22 = vpop.f32.mrf.mxu3  ;;  %v6986_v46 = vld [vmem:[#allocation4 + $0x78] ss:$2 sm:$0xff] }
 0x834   :  { %8059 = vmatmul.msk.f32.gmra.mxu3 %vm6494_vm7, %v6456_v41  ;;  %v6256_v33 = vpop.permute.xlu2 %6255 }
 0x835   :  { %v6858_v55 = vadd.f32 %v6857_v22, %v6721_v63 }
 0x837   :  { %v6921_v30 = vmax.f32 %v6858_v55, 0.0  ;;  %v7026_v19 = vld [vmem:[#allocation4 + $0xca] ss:$2 sm:$0xff] }
 0x838   :  { %v7058_v2 = vld [vmem:[#allocation4 + $0xcc] ss:$2 sm:$0xff]  ;;  %v6096_v8 = vpop.permute.xlu1 %6095  ;;  %7105 = vrot.lane.b32.xlu2 %v7026_v19, %s8467_s26 }
 0x839   :  { %v5936_v40 = vpop.permute.xlu0 %5935  ;;  %7169 = vrot.lane.b32.xlu0 %v7058_v2, %s8466_s25  ;;  %6962 = vst.msk [vmem:[#allocation4 + $0xe0] sm:$0xff] %vm6933_vm8, %v6921_v30  ;;  %v6988_v19 = vld [vmem:[#allocation4 + $0x88] ss:$2 sm:$0xff] }
 0x83a   :  { %v6416_v35 = vsel %vm4411_vm3, %v5936_v40, %v6096_v8  ;;  %v6376_v20 = vsel %vm4307_vm4, %v6336_v7, %v5936_v40  ;;  %v6723_v24 = vpop.f32.mrf.mxu2  ;;  %vm7428_vm3 = vcmask 326816   ;;  %vm7447_vm4 = vcmask 490816  }
 0x83b   :  { %6752 = vmatmul.f32.gmra.mxu2 %v6376_v20  ;;  %v6457_v12 = vsel %vm6417_vm6, %v6416_v35, %v6256_v33  ;;  %v6724_v32 = vadd.f32 %v13303_v14, %v6723_v24  ;;  %v6860_v11 = vpop.f32.mrf.mxu3  ;;  %v6990_v33 = vld [vmem:[#allocation4 + $0xa0] ss:$2 sm:$0xff] }
 0x83c   :  { %8060 = vmatmul.msk.f32.gmra.mxu3 %vm6494_vm7, %v6457_v12  ;;  %v7088_v42 = vpop.permute.xlu2 %7087  ;;  %vm7485_vm7 = vcmask 818816  }
 0x83d   :  { %v6861_v38 = vadd.f32 %v6860_v11, %v6724_v32  ;;  %v7198_v39 = vsel %vm6933_vm8, %v6976_v0, %v7088_v42 }
 0x83f   :  { %v6922_v10 = vmax.f32 %v6861_v38, 0.0 }
 0x840   :  { %v7150_v18 = vpop.permute.xlu1 %7149 }
 0x841   :  { %v7086_v31 = vpop.permute.xlu0 %7085  ;;  %6963 = vst.msk [vmem:[#allocation4 + $0xe8] sm:$0xff] %vm6933_vm8, %v6922_v10 }
 0x842   :  { %v7197_v25 = vsel %vm6933_vm8, %v6974_v62, %v7086_v31 }
 0x843   :  { %v7214_v43 = vsel %vm7213_vm9, %v7197_v25, %v7150_v18 }
 0x844   :  { %8061 = vmatmul.msk.f32.vlgmr.msra.gmra.mxu2 %vm7249_vm10, %v7214_v43  ;;  %v7154_v45 = vpop.permute.xlu2 %7153 }
 0x848   :  { %v7060_v37 = vld [vmem:[#allocation4 + $0xdc] ss:$2 sm:$0xff]  ;;  %v7090_v48 = vpop.permute.xlu1 %7089 }
 0x849   :  { %v7152_v56 = vpop.permute.xlu0 %7151  ;;  %v7028_v26 = vld [vmem:[#allocation4 + $0xda] ss:$2 sm:$0xff]  ;;  %7171 = vrot.lane.b32.xlu2 %v7060_v37, %s8466_s25  ;;  %v7199_v50 = vsel %vm6933_vm8, %v6978_v9, %v7090_v48 }
 0x84a   :  { %v7215_v1 = vsel %vm7213_vm9, %v7198_v39, %v7152_v56  ;;  %7107 = vrot.lane.b32.xlu1 %v7028_v26, %s8467_s26  ;;  %v7216_v17 = vsel %vm7213_vm9, %v7199_v50, %v7154_v45  ;;  %v6992_v56 = vld [vmem:[#allocation4 + $0xb0] ss:$2 sm:$0xff] }
 0x84c   :  { %8062 = vmatmul.msk.f32.gmra.mxu2 %vm7249_vm10, %v7215_v1  ;;  %v7094_v5 = vpop.permute.xlu2 %7093 }
 0x84d   :  { %v7201_v52 = vsel %vm6933_vm8, %v6982_v34, %v7094_v5 }
 0x850   :  { %v7156_v6 = vpop.permute.xlu1 %7155 }
 0x851   :  { %v7092_v36 = vpop.permute.xlu0 %7091 }
 0x852   :  { %v7200_v57 = vsel %vm6933_vm8, %v6980_v16, %v7092_v36 }
 0x853   :  { %v7217_v4 = vsel %vm7213_vm9, %v7200_v57, %v7156_v6 }
 0x854   :  { %8063 = vmatmul.msk.f32.gmra.mxu2 %vm7249_vm10, %v7216_v17  ;;  %v7160_v60 = vpop.permute.xlu2 %7159 }
 0x858   :  { %v7096_v44 = vpop.permute.xlu1 %7095 }
 0x859   :  { %v7158_v51 = vpop.permute.xlu0 %7157  ;;  %v7202_v29 = vsel %vm6933_vm8, %v6984_v59, %v7096_v44  ;;  %v6994_v44 = vld [vmem:[#allocation4 + $0xc8] ss:$2 sm:$0xff] }
 0x85a   :  { %v7218_v53 = vsel %vm7213_vm9, %v7201_v52, %v7158_v51  ;;  %v7219_v61 = vsel %vm7213_vm9, %v7202_v29, %v7160_v60 }
 0x85c   :  { %8064 = vmatmul.msk.f32.gmra.mxu2 %vm7249_vm10, %v7217_v4  ;;  %v7100_v15 = vpop.permute.xlu2 %7099 }
 0x85d   :  { %v7204_v2 = vsel %vm6933_vm8, %v6988_v19, %v7100_v15 }
 0x860   :  { %v7162_v58 = vpop.permute.xlu1 %7161 }
 0x861   :  { %v7098_v27 = vpop.permute.xlu0 %7097 }
 0x862   :  { %v7203_v41 = vsel %vm6933_vm8, %v6986_v46, %v7098_v27 }
 0x863   :  { %v7220_v55 = vsel %vm7213_vm9, %v7203_v41, %v7162_v58 }
 0x864   :  { %v6726_v23 = vpop.f32.mrf.mxu2  ;;  %8065 = vmatmul.msk.f32.gmra.mxu2 %vm7249_vm10, %v7218_v53  ;;  %v7166_v32 = vpop.permute.xlu2 %7165 }
 0x865   :  { %v6727_v3 = vadd.f32 %v13303_v14, %v6726_v23 }
 0x869   :  { %v6863_v49 = vpop.f32.mrf.mxu3  ;;  %v7164_v30 = vpop.permute.xlu0 %7163 }
 0x86a   :  { %v6864_v47 = vadd.f32 %v6863_v49, %v6727_v3  ;;  %v7221_v8 = vsel %vm7213_vm9, %v7204_v2, %v7164_v30 }
 0x86c   :  { %v6923_v28 = vmax.f32 %v6864_v47, 0.0  ;;  %v6729_v13 = vpop.f32.mrf.mxu2  ;;  %8066 = vmatmul.msk.f32.gmra.mxu2 %vm7249_vm10, %v7219_v61 }
 0x86d   :  { %v6730_v21 = vadd.f32 %v13303_v14, %v6729_v13 }
 0x86e   :  { %6964 = vst.msk [vmem:[#allocation4 + $0xf0] sm:$0xff] %vm6933_vm8, %v6923_v28 }
 0x871   :  { %v6866_v63 = vpop.f32.mrf.mxu3 }
 0x872   :  { %v6867_v22 = vadd.f32 %v6866_v63, %v6730_v21 }
 0x874   :  { %v6924_v54 = vmax.f32 %v6867_v22, 0.0  ;;  %8067 = vmatmul.msk.f32.gmra.mxu2 %vm7249_vm10, %v7220_v55 }
 0x876   :  { %6965 = vst.msk [vmem:[#allocation4 + $0xf8] sm:$0xff] %vm6933_vm8, %v6924_v54  ;;  %v6996_v54 = vld [vmem:[#allocation4 + $0xd8] ss:$2 sm:$0xff] }
 0x87c   :  { %8068 = vmatmul.msk.f32.gmra.mxu2 %vm7249_vm10, %v7221_v8  ;;  %v7102_v40 = vpop.permute.xlu1 %7101 }
 0x87d   :  { %v7205_v24 = vsel %vm6933_vm8, %v6990_v33, %v7102_v40 }
 0x87e   :  { %v6732_v7 = vpop.f32.mrf.mxu2  ;;  %v7222_v38 = vsel %vm7213_vm9, %v7205_v24, %v7166_v32 }
 0x87f   :  { %v6733_v35 = vadd.f32 %v13303_v14, %v6732_v7  ;;  %v6869_v20 = vpop.f32.mrf.mxu3 }
 0x881   :  { %v6870_v12 = vadd.f32 %v6869_v20, %v6733_v35 }
 0x883   :  { %v6925_v11 = vmax.f32 %v6870_v12, 0.0  ;;  %v13550_v12 = vld [vmem:[%s14112_s8] ss:$0 sm:$0xff] }
 0x884   :  { %8069 = vmatmul.msk.f32.gmra.mxu2 %vm7249_vm10, %v7222_v38 }
 0x885   :  { %6966 = vst.msk [vmem:[#allocation4 + $0x100] sm:$0xff] %vm6933_vm8, %v6925_v11 }
 0x886   :  { %v6735_v10 = vpop.f32.mrf.mxu2 }
 0x887   :  { %v6736_v18 = vadd.f32 %v13303_v14, %v6735_v10  ;;  %v6872_v31 = vpop.f32.mrf.mxu3 }
 0x889   :  { %v6873_v62 = vadd.f32 %v6872_v31, %v6736_v18 }
 0x88b   :  { %v6926_v25 = vmax.f32 %v6873_v62, 0.0 }
 0x88c   :  { %v7062_v43 = vld [vmem:[#allocation4 + $0xf4] ss:$2 sm:$0xff] }
 0x88d   :  { %v7030_v42 = vld [vmem:[#allocation4 + $0xf2] ss:$2 sm:$0xff]  ;;  %6967 = vst.msk [vmem:[#allocation4 + $0x108] sm:$0xff] %vm6933_vm8, %v6926_v25  ;;  %7173 = vrot.lane.b32.xlu1 %v7062_v43, %s8466_s25 }
 0x88e   :  { %7109 = vrot.lane.b32.xlu0 %v7030_v42, %s8467_s26 }
 0x891   :  { %v6738_v0 = vpop.f32.mrf.mxu2  ;;  %v7168_v39 = vpop.permute.xlu1 %7167 }
 0x892   :  { %v7104_v37 = vpop.permute.xlu0 %7103  ;;  %v6739_v48 = vadd.f32 %v13303_v14, %v6738_v0  ;;  %v7106_v53 = vpop.permute.xlu2 %7105 }
 0x893   :  { %v7206_v26 = vsel %vm6933_vm8, %v6992_v56, %v7104_v37  ;;  %v7207_v3 = vsel %vm6933_vm8, %v6994_v44, %v7106_v53 }
 0x894   :  { %v7223_v1 = vsel %vm7213_vm9, %v7206_v26, %v7168_v39 }
 0x895   :  { %8070 = vmatmul.msk.f32.gmra.mxu2 %vm7249_vm10, %v7223_v1 }
 0x896   :  { %v6875_v9 = vpop.f32.mrf.mxu3 }
 0x897   :  { %v6876_v50 = vadd.f32 %v6875_v9, %v6739_v48 }
 0x899   :  { %v6927_v45 = vmax.f32 %v6876_v50, 0.0  ;;  %v6741_v17 = vpop.f32.mrf.mxu2 }
 0x89a   :  { %v6742_v36 = vadd.f32 %v13303_v14, %v6741_v17 }
 0x89b   :  { %6968 = vst.msk [vmem:[#allocation4 + $0x110] sm:$0xff] %vm6933_vm8, %v6927_v45 }
 0x89e   :  { %v6878_v16 = vpop.f32.mrf.mxu3 }
 0x89f   :  { %v6879_v6 = vadd.f32 %v6878_v16, %v6742_v36 }
 0x8a1   :  { %v6928_v57 = vmax.f32 %v6879_v6, 0.0  ;;  %v6744_v4 = vpop.f32.mrf.mxu2 }
 0x8a2   :  { %v7032_v5 = vld [vmem:[#allocation4 + $0x102] ss:$2 sm:$0xff]  ;;  %v6745_v34 = vadd.f32 %v13303_v14, %v6744_v4 }
 0x8a3   :  { %v7064_v51 = vld [vmem:[#allocation4 + $0x104] ss:$2 sm:$0xff]  ;;  %6969 = vst.msk [vmem:[#allocation4 + $0x118] sm:$0xff] %vm6933_vm8, %v6928_v57  ;;  %7111 = vrot.lane.b32.xlu2 %v7032_v5, %s8467_s26  ;;  %v7172_v15 = vpop.permute.xlu2 %7171 }
 0x8a4   :  { %7175 = vrot.lane.b32.xlu0 %v7064_v51, %s8466_s25 }
 0x8a7   :  { %v6881_v52 = vpop.f32.mrf.mxu3 }
 0x8a8   :  { %v6882_v23 = vadd.f32 %v6881_v52, %v6745_v34 }
 0x8a9   :  { %v6747_v29 = vpop.f32.mrf.mxu2 }
 0x8aa   :  { %v6929_v59 = vmax.f32 %v6882_v23, 0.0  ;;  %v6748_v60 = vadd.f32 %v13303_v14, %v6747_v29 }
 0x8ab   :  { %v7170_v49 = vpop.permute.xlu0 %7169 }
 0x8ac   :  { %6970 = vst.msk [vmem:[#allocation4 + $0x120] sm:$0xff] %vm6933_vm8, %v6929_v59  ;;  %v7224_v47 = vsel %vm7213_vm9, %v7207_v3, %v7170_v49 }
 0x8ad   :  { %8071 = vmatmul.msk.f32.gmra.mxu2 %vm7249_vm10, %v7224_v47 }
 0x8af   :  { %v6884_v28 = vpop.f32.mrf.mxu3 }
 0x8b0   :  { %v6885_v61 = vadd.f32 %v6884_v28, %v6748_v60 }
 0x8b2   :  { %v6930_v13 = vmax.f32 %v6885_v61, 0.0 }
 0x8b4   :  { %6971 = vst.msk [vmem:[#allocation4 + $0x128] sm:$0xff] %vm6933_vm8, %v6930_v13 }
 0x8b6   :  { %v6750_v27 = vpop.f32.mrf.mxu2 }
 0x8b7   :  { %v6751_v46 = vadd.f32 %v13303_v14, %v6750_v27  ;;  %v6887_v21 = vpop.f32.mrf.mxu3 }
 0x8b9   :  { %v6888_v58 = vadd.f32 %v6887_v21, %v6751_v46 }
 0x8bb   :  { %v6931_v41 = vmax.f32 %v6888_v58, 0.0  ;;  %v7066_v63 = vld [vmem:[#allocation4 + $0x11c] ss:$2 sm:$0xff] }
 0x8bc   :  { %v7034_v22 = vld [vmem:[#allocation4 + $0x11a] ss:$2 sm:$0xff]  ;;  %7177 = vrot.lane.b32.xlu2 %v7066_v63, %s8466_s25  ;;  %v7108_v55 = vpop.permute.xlu1 %7107 }
 0x8bd   :  { %7113 = vrot.lane.b32.xlu1 %v7034_v22, %s8467_s26  ;;  %6972 = vst.msk [vmem:[#allocation4 + $0x130] sm:$0xff] %vm6933_vm8, %v6931_v41  ;;  %v7208_v30 = vsel %vm6933_vm8, %v6996_v54, %v7108_v55 }
 0x8be   :  { %v6753_v19 = vpop.f32.mrf.mxu2  ;;  %v7225_v2 = vsel %vm7213_vm9, %v7208_v30, %v7172_v15 }
 0x8bf   :  { %v6754_v8 = vadd.f32 %v13303_v14, %v6753_v19  ;;  %v6890_v40 = vpop.f32.mrf.mxu3  ;;  %8072 = vmatmul.msk.f32.gmra.mxu2 %vm7249_vm10, %v7225_v2 }
 0x8c1   :  { %v6891_v7 = vadd.f32 %v6890_v40, %v6754_v8 }
 0x8c3   :  { %v6932_v33 = vmax.f32 %v6891_v7, 0.0 }
 0x8c5   :  { %6973 = vst.msk [vmem:[#allocation4 + $0x138] sm:$0xff] %vm6933_vm8, %v6932_v33 }
 0x8c7   :  { %v7315_v35 = vpop.f32.mrf.mxu2 }
 0x8c8   :  { %v7316_v32 = vadd.f32 %v13550_v12, %v7315_v35 }
 0x8ca   :  { %v7363_v11 = vmax.f32 %v7316_v32, 0.0 }
 0x8cc   :  { %v7068_v20 = vld [vmem:[#allocation4 + $0x12c] ss:$2 sm:$0xff]  ;;  %v7449_v18 = vrot.slane %v7363_v11, 3  ;;  %v7430_v25 = vrot.slane %v7363_v11, 2  ;;  %v7411_v43 = vrot.slane %v7363_v11, 1  ;;  %v7506_v42 = vrot.slane %v7363_v11, 6 }
 0x8cd   :  { %v7036_v24 = vld [vmem:[#allocation4 + $0x12a] ss:$2 sm:$0xff]  ;;  %7179 = vrot.lane.b32.xlu1 %v7068_v20, %s8466_s25  ;;  %v7487_v0 = vrot.slane %v7363_v11, 5  ;;  %v7468_v39 = vrot.slane %v7363_v11, 4  ;;  %v7527_v56 = vrot.slane %v7363_v11, 7 }
 0x8ce   :  { %7115 = vrot.lane.b32.xlu0 %v7036_v24, %s8467_s26 }
 0x8cf   :  { %v7318_v14 = vpop.f32.mrf.mxu2 }
 0x8d0   :  { %v7319_v31 = vadd.f32 %v13550_v12, %v7318_v14 }
 0x8d2   :  { %v7364_v36 = vmax.f32 %v7319_v31, 0.0 }
 0x8d4   :  { %v7573_v44 = vrot.slane %v7364_v36, 1  ;;  %v7592_v59 = vrot.slane %v7364_v36, 2  ;;  %v7630_v3 = vrot.slane %v7364_v36, 4  ;;  %v7611_v29 = vrot.slane %v7364_v36, 3 }
 0x8d5   :  { %v7651_v49 = vrot.slane %v7364_v36, 5  ;;  %v7689_v47 = vrot.slane %v7364_v36, 7  ;;  %v7670_v60 = vrot.slane %v7364_v36, 6 }
 0x8d7   :  { %v7321_v38 = vpop.f32.mrf.mxu2 }
 0x8d8   :  { %v7322_v10 = vadd.f32 %v13550_v12, %v7321_v38 }
 0x8da   :  { %v7365_v62 = vmax.f32 %v7322_v10, 0.0 }
 0x8dc   :  { %v7450_v37 = vrot.slane %v7365_v62, 2  ;;  %v7431_v26 = vrot.slane %v7365_v62, 1  ;;  %v7412_v1 = vsel %vm7388_vm11, %v7365_v62, %v7411_v43  ;;  %v7507_v48 = vrot.slane %v7365_v62, 5 }
 0x8dd   :  { %v7488_v9 = vrot.slane %v7365_v62, 4  ;;  %v7469_v50 = vrot.slane %v7365_v62, 3  ;;  %v7528_v45 = vrot.slane %v7365_v62, 6  ;;  %v7387_v17 = vrot.slane %v7365_v62, 7 }
 0x8de   :  { %v7451_v16 = vsel %vm7388_vm11, %v7450_v37, %v7449_v18  ;;  %v7432_v6 = vsel %vm7388_vm11, %v7431_v26, %v7430_v25  ;;  %v7508_v57 = vsel %vm7388_vm11, %v7507_v48, %v7506_v42 }
 0x8df   :  { %v7324_v4 = vpop.f32.mrf.mxu2  ;;  %v7489_v5 = vsel %vm7388_vm11, %v7488_v9, %v7487_v0  ;;  %v7470_v51 = vsel %vm7388_vm11, %v7469_v50, %v7468_v39  ;;  %v7529_v34 = vsel %vm7388_vm11, %v7528_v45, %v7527_v56  ;;  %v7389_v53 = vsel %vm7388_vm11, %v7387_v17, %v7363_v11 }
 0x8e0   :  { %v7325_v52 = vadd.f32 %v13550_v12, %v7324_v4 }
 0x8e2   :  { %v7366_v23 = vmax.f32 %v7325_v52, 0.0 }
 0x8e4   :  { %v7574_v28 = vsel %vm7388_vm11, %v7366_v23, %v7573_v44  ;;  %v7554_v61 = vrot.slane %v7366_v23, 7  ;;  %v7593_v13 = vrot.slane %v7366_v23, 1  ;;  %v7631_v27 = vrot.slane %v7366_v23, 3 }
 0x8e5   :  { %v7612_v46 = vrot.slane %v7366_v23, 2  ;;  %v7652_v21 = vrot.slane %v7366_v23, 4  ;;  %v7690_v58 = vrot.slane %v7366_v23, 6  ;;  %v7671_v41 = vrot.slane %v7366_v23, 5 }
 0x8e6   :  { %v7555_v63 = vsel %vm7388_vm11, %v7554_v61, %v7364_v36  ;;  %v7594_v22 = vsel %vm7388_vm11, %v7593_v13, %v7592_v59  ;;  %v7632_v54 = vsel %vm7388_vm11, %v7631_v27, %v7630_v3 }
 0x8e7   :  { %v7327_v55 = vpop.f32.mrf.mxu2  ;;  %v7613_v15 = vsel %vm7388_vm11, %v7612_v46, %v7611_v29  ;;  %v7653_v30 = vsel %vm7388_vm11, %v7652_v21, %v7651_v49  ;;  %v7691_v19 = vsel %vm7388_vm11, %v7690_v58, %v7689_v47  ;;  %v7672_v2 = vsel %vm7388_vm11, %v7671_v41, %v7670_v60 }
 0x8e8   :  { %v7328_v8 = vadd.f32 %v13550_v12, %v7327_v55  ;;  %vm7544_vm11 = vcmask 261216  }
 0x8ea   :  { %v7367_v40 = vmax.f32 %v7328_v8, 0.0 }
 0x8ec   :  { %v7452_v7 = vrot.slane %v7367_v40, 1  ;;  %v13576_v33 = vsel %vm7391_vm12, %v7367_v40, %v7432_v6  ;;  %v7413_v35 = vrot.slane %v7367_v40, 7  ;;  %v7509_v20 = vrot.slane %v7367_v40, 4 }
 0x8ed   :  { %v7490_v24 = vrot.slane %v7367_v40, 3  ;;  %v7471_v14 = vrot.slane %v7367_v40, 2  ;;  %v7530_v32 = vrot.slane %v7367_v40, 5  ;;  %v7390_v11 = vrot.slane %v7367_v40, 6 }
 0x8ee   :  { %v13579_v38 = vsel %vm7391_vm12, %v7452_v7, %v7451_v16  ;;  %v13582_v10 = vsel %vm7391_vm12, %v7413_v35, %v7412_v1  ;;  %v13585_v18 = vsel %vm7391_vm12, %v7509_v20, %v7508_v57  ;;  %v7737_v35 = vld [vmem:[%s14113_s9 + $0xd0] sm:$0xff]  ;;  %v7735_v20 = vld [vmem:[%s14113_s9 + $0xc0] sm:$0xff] }
 0x8ef   :  { %v7330_v31 = vpop.f32.mrf.mxu2  ;;  %v13588_v62 = vsel %vm7391_vm12, %v7490_v24, %v7489_v5  ;;  %v13591_v25 = vsel %vm7391_vm12, %v7471_v14, %v7470_v51  ;;  %v13594_v43 = vsel %vm7391_vm12, %v7530_v32, %v7529_v34  ;;  %v13598_v0 = vsel %vm7391_vm12, %v7390_v11, %v7389_v53  ;;  %v7741_v34 = vld [vmem:[%s14113_s9 + $0xf0] sm:$0xff]  ;;  %v7731_v14 = vld [vmem:[%s14113_s9 + $0xa0] sm:$0xff] }
 0x8f0   :  { %v7331_v42 = vadd.f32 %v13550_v12, %v7330_v31  ;;  %7801 = vmatpush.msra.mxu3 %v7741_v34  ;;  %v6998_v53 = vld [vmem:[#allocation4 + $0xf0] ss:$2 sm:$0xff] }
 0x8f1   :  { %v7733_v24 = vld [vmem:[%s14113_s9 + $0xb0] sm:$0xff]  ;;  %v7002_v32 = vld [vmem:[#allocation4 + $0x118] ss:$2 sm:$0xff] }
 0x8f2   :  { %v7368_v39 = vmax.f32 %v7331_v42, 0.0 }
 0x8f4   :  { %v7575_v56 = vrot.slane %v7368_v39, 7  ;;  %v7556_v37 = vrot.slane %v7368_v39, 6  ;;  %v7595_v26 = vsel %vm7391_vm12, %v7368_v39, %v7594_v22  ;;  %v7633_v1 = vrot.slane %v7368_v39, 2 }
 0x8f5   :  { %v7614_v48 = vrot.slane %v7368_v39, 1  ;;  %v7654_v9 = vrot.slane %v7368_v39, 3  ;;  %v7692_v50 = vrot.slane %v7368_v39, 5  ;;  %v7673_v45 = vrot.slane %v7368_v39, 4 }
 0x8f6   :  { %v7576_v17 = vsel %vm7391_vm12, %v7575_v56, %v7574_v28  ;;  %v7557_v36 = vsel %vm7391_vm12, %v7556_v37, %v7555_v63  ;;  %v7634_v16 = vsel %vm7391_vm12, %v7633_v1, %v7632_v54  ;;  %v7004_v37 = vld [vmem:[#allocation4 + $0x128] ss:$2 sm:$0xff] }
 0x8f7   :  { %v13604_v6 = vpop.f32.mrf.mxu2  ;;  %v7615_v57 = vsel %vm7391_vm12, %v7614_v48, %v7613_v15  ;;  %v7655_v4 = vsel %vm7391_vm12, %v7654_v9, %v7653_v30  ;;  %v7693_v5 = vsel %vm7391_vm12, %v7692_v50, %v7691_v19  ;;  %v7674_v51 = vsel %vm7391_vm12, %v7673_v45, %v7672_v2  ;;  %v7739_v19 = vld [vmem:[%s14113_s9 + $0xe0] sm:$0xff]  ;;  %v7729_v9 = vld [vmem:[%s14113_s9 + $0x90] sm:$0xff] }
 0x8f8   :  { %v7000_v2 = vld [vmem:[#allocation4 + $0x100] ss:$2 sm:$0xff]  ;;  %7802 = vmatpush.msra.mxu3 %v7739_v19  ;;  %vm7571_vm12 = vcmask 425216  }
 0x8f9   :  { %v7727_v50 = vld [vmem:[%s14113_s9 + $0x80] sm:$0xff] }
 0x8fa   :  { %7803 = vmatpush.msra.mxu3 %v7737_v35 }
 0x8fc   :  { %7804 = vmatpush.msra.mxu3 %v7735_v20 }
 0x8fd   :  { %v7112_v30 = vpop.permute.xlu2 %7111 }
 0x8fe   :  { %v7210_v8 = vsel %vm6933_vm8, %v7000_v2, %v7112_v30  ;;  %7805 = vmatpush.msra.mxu3 %v7733_v24 }
 0x8ff   :  { %v7174_v52 = vpop.permute.xlu1 %7173  ;;  %v7336_v59 = vpop.f32.mrf.mxu2 }
 0x900   :  { %v7110_v23 = vpop.permute.xlu0 %7109  ;;  %v7337_v3 = vadd.f32 %v13550_v12, %v7336_v59  ;;  %7806 = vmatpush.msra.mxu3 %v7731_v14  ;;  %v7723_v59 = vld [vmem:[%s14113_s9 + $0x60] sm:$0xff] }
 0x901   :  { %v7209_v44 = vsel %vm6933_vm8, %v6998_v53, %v7110_v23 }
 0x902   :  { %v7226_v29 = vsel %vm7213_vm9, %v7209_v44, %v7174_v52  ;;  %v7370_v49 = vmax.f32 %v7337_v3, 0.0  ;;  %7807 = vmatpush.msra.mxu3 %v7729_v9 }
 0x903   :  { %8073 = vmatmul.msk.f32.gmra.mxu2 %vm7249_vm10, %v7226_v29 }
 0x904   :  { %v7577_v47 = vrot.slane %v7370_v49, 6  ;;  %v7558_v60 = vrot.slane %v7370_v49, 5  ;;  %v7596_v28 = vrot.slane %v7370_v49, 7  ;;  %v7635_v61 = vrot.slane %v7370_v49, 1  ;;  %7808 = vmatpush.msra.mxu3 %v7727_v50 }
 0x905   :  { %v13618_v13 = vsel %vm7394_vm13, %v7370_v49, %v7615_v57  ;;  %v7656_v27 = vrot.slane %v7370_v49, 2  ;;  %v7694_v46 = vrot.slane %v7370_v49, 4  ;;  %v7675_v21 = vrot.slane %v7370_v49, 3  ;;  %v7725_v57 = vld [vmem:[%s14113_s9 + $0x70] sm:$0xff] }
 0x906   :  { %v13621_v58 = vsel %vm7394_vm13, %v7577_v47, %v7576_v17  ;;  %v13624_v41 = vsel %vm7394_vm13, %v7558_v60, %v7557_v36  ;;  %v13627_v63 = vsel %vm7394_vm13, %v7596_v28, %v7595_v26  ;;  %v13630_v22 = vsel %vm7394_vm13, %v7635_v61, %v7634_v16  ;;  %7809 = vmatpush.msra.mxu3 %v7725_v57 }
 0x907   :  { %v13633_v54 = vsel %vm7394_vm13, %v7656_v27, %v7655_v4  ;;  %v13636_v55 = vsel %vm7394_vm13, %v7694_v46, %v7693_v5  ;;  %v13639_v15 = vsel %vm7394_vm13, %v7675_v21, %v7674_v51  ;;  %v7339_v45 = vpop.f32.mrf.mxu2  ;;  %v7334_v5 = vadd.f32 %v13550_v12, %v13604_v6 }
 0x908   :  { %v7340_v51 = vadd.f32 %v13550_v12, %v7339_v45  ;;  %7810 = vmatpush.msra.mxu3 %v7723_v59 }
 0x909   :  { %v13681_v34 = vmax.f32 %v7334_v5, 0.0 }
 0x90a   :  { %v13687_v44 = vmax.f32 %v7340_v51, 0.0 }
 0x90b   :  { %v7434_v6 = vrot.slane %v13681_v34, 7  ;;  %v7415_v29 = vrot.slane %v13681_v34, 6  ;;  %v7393_v49 = vrot.slane %v13681_v34, 5  ;;  %v7454_v60 = vsel %vm7394_vm13, %v13681_v34, %v13579_v38 }
 0x90c   :  { %v7455_v28 = vrot.slane %v13687_v44, 7  ;;  %v7436_v61 = vrot.slane %v13687_v44, 6  ;;  %v7417_v27 = vrot.slane %v13687_v44, 5  ;;  %v7511_v46 = vrot.slane %v13681_v34, 3 }
 0x90d   :  { %v7492_v21 = vrot.slane %v13681_v34, 2  ;;  %v7396_v30 = vrot.slane %v13687_v44, 4  ;;  %v7435_v2 = vsel %vm7394_vm13, %v7434_v6, %v13576_v33  ;;  %v7416_v38 = vsel %vm7394_vm13, %v7415_v29, %v13582_v10 }
 0x90e   :  { %v7437_v33 = vsel %vm7397_vm14, %v7436_v61, %v7435_v2  ;;  %v7513_v59 = vrot.slane %v13687_v44, 2  ;;  %v7494_v6 = vrot.slane %v13687_v44, 1  ;;  %v7473_v29 = vrot.slane %v13681_v34, 1 }
 0x916   :  { %v7176_v40 = vpop.permute.xlu0 %7175  ;;  %v7178_v31 = vpop.permute.xlu2 %7177 }
 0x917   :  { %v7227_v7 = vsel %vm7213_vm9, %v7210_v8, %v7176_v40  ;;  %v7395_v8 = vsel %vm7394_vm13, %v7393_v49, %v13598_v0  ;;  %v7418_v0 = vsel %vm7397_vm14, %v7417_v27, %v7416_v38  ;;  %v7532_v27 = vrot.slane %v13681_v34, 4  ;;  %v7719_v34 = vld [vmem:[%s14113_s9 + $0x40] sm:$0xff] }
 0x918   :  { %8074 = vmatmul.msk.f32.gmra.mxu2 %vm7249_vm10, %v7227_v7  ;;  %v13671_v17 = vpop.f32.mrf.mxu2 }
 0x92f   :  { %v7114_v11 = vpop.permute.xlu1 %7113 }
 0x930   :  { %v7211_v42 = vsel %vm6933_vm8, %v7002_v32, %v7114_v11  ;;  %v7345_v36 = vpop.f32.mrf.mxu2  ;;  %v7456_v32 = vsel %vm7397_vm14, %v7455_v28, %v7454_v60  ;;  %v7343_v60 = vadd.f32 %v13550_v12, %v13671_v17  ;;  %v7512_v28 = vsel %vm7394_vm13, %v7511_v46, %v13585_v18  ;;  %v7721_v18 = vld [vmem:[%s14113_s9 + $0x50] sm:$0xff] }
 0x931   :  { %v7228_v39 = vsel %vm7213_vm9, %v7211_v42, %v7178_v31  ;;  %v7346_v52 = vadd.f32 %v13550_v12, %v7345_v36  ;;  %v7398_v31 = vsel %vm7397_vm14, %v7396_v30, %v7395_v8  ;;  %7811 = vmatpush.msra.mxu3 %v7721_v18  ;;  %v7514_v8 = vsel %vm7397_vm14, %v7513_v59, %v7512_v28 }
 0x932   :  { %8075 = vmatmul.msk.f32.gmra.mxu2 %vm7249_vm10, %v7228_v39 }
 0x933   :  { %v13692_v3 = vmax.f32 %v7346_v52, 0.0  ;;  %7812 = vmatpush.msra.mxu3 %v7719_v34 }
 0x935   :  { %v7457_v19 = vrot.slane %v13692_v3, 6  ;;  %v7438_v35 = vrot.slane %v13692_v3, 5  ;;  %v7419_v20 = vrot.slane %v13692_v3, 4  ;;  %v7399_v24 = vrot.slane %v13692_v3, 3 }
 0x936   :  { %v7515_v61 = vrot.slane %v13692_v3, 1  ;;  %v7476_v17 = vrot.slane %v13692_v3, 7 }
 0x937   :  { %v7458_v39 = vsel %vm7400_vm15, %v7457_v19, %v7456_v32  ;;  %v7493_v19 = vsel %vm7394_vm13, %v7492_v21, %v13588_v62  ;;  %v7790_v21 = vld [vmem:[%s14113_s9 + $0x278] sm:$0xff] }
 0x938   :  { %7909 = vmatpush.msrb.mxu2 %v7790_v21 }
 0x93f   :  { %v7180_v56 = vpop.permute.xlu1 %7179 }
 0x940   :  { %v7116_v26 = vpop.permute.xlu0 %7115 }
 0x941   :  { %v7212_v1 = vsel %vm6933_vm8, %v7004_v37, %v7116_v26  ;;  %v7439_v26 = vsel %vm7400_vm15, %v7438_v35, %v7437_v33  ;;  %v7717_v35 = vld [vmem:[%s14113_s9 + $0x30] sm:$0xff]  ;;  %vm7525_vm8 = vcmask 97280  }
 0x942   :  { %v7229_v48 = vsel %vm7213_vm9, %v7212_v1, %v7180_v56  ;;  %v13673_v16 = vpop.f32.mrf.mxu2  ;;  %v7420_v1 = vsel %vm7400_vm15, %v7419_v20, %v7418_v0  ;;  %v13784_v20 = vmax.f32 %v7343_v60, 0.0  ;;  %7813 = vmatpush.msra.mxu3 %v7717_v35  ;;  %vm7504_vm9 = vcmask 982816  }
 0x943   :  { %8076 = vmatmul.msk.f32.gmra.mxu2 %vm7249_vm10, %v7229_v48  ;;  %v7401_v48 = vsel %vm7400_vm15, %v7399_v24, %v7398_v31  ;;  %v7349_v30 = vadd.f32 %v13550_v12, %v13673_v16  ;;  %v7516_v24 = vsel %vm7400_vm15, %v7515_v61, %v7514_v8  ;;  %vm7523_vm10 = vcmask 1048512  }
 0x945   :  { %v13791_v33 = vmax.f32 %v7349_v30, 0.0 }
 0x947   :  { %v7600_v30 = vrot.slane %v13791_v33, 5  ;;  %v7619_v18 = vrot.slane %v13791_v33, 6 }
 0x986   :  { %v7351_v4 = vpop.f32.mrf.mxu2 }
 0x987   :  { %v7352_v53 = vadd.f32 %v13550_v12, %v7351_v4 }
 0x989   :  { %v13697_v47 = vmax.f32 %v7352_v53, 0.0 }
 0x98b   :  { %v7459_v7 = vrot.slane %v13697_v47, 5  ;;  %v7440_v10 = vrot.slane %v13697_v47, 4  ;;  %v7421_v11 = vrot.slane %v13697_v47, 3  ;;  %v7402_v56 = vrot.slane %v13697_v47, 2 }
 0x98c   :  { %v7497_v2 = vrot.slane %v13697_v47, 7  ;;  %v7478_v62 = vrot.slane %v13697_v47, 6 }
 0x98d   :  { %v7460_v37 = vsel %vm7403_vm0, %v7459_v7, %v7458_v39  ;;  %v7441_v50 = vsel %vm7403_vm0, %v7440_v10, %v7439_v26  ;;  %v7422_v57 = vsel %vm7403_vm0, %v7421_v11, %v7420_v1  ;;  %v7404_v53 = vsel %vm7403_vm0, %v7402_v56, %v7401_v48 }
 0x98e   :  { %v7474_v7 = vsel %vm7394_vm13, %v7473_v29, %v13591_v25  ;;  %v7517_v25 = vsel %vm7403_vm0, %v13697_v47, %v7516_v24  ;;  %v7534_v26 = vrot.slane %v13687_v44, 3  ;;  %v7536_v48 = vrot.slane %v13692_v3, 2 }
 0x98f   :  { %v7475_v32 = vsel %vm7397_vm14, %v13687_v44, %v7474_v7  ;;  %v7538_v44 = vrot.slane %v13697_v47, 1 }
 0x990   :  { %v7477_v0 = vsel %vm7400_vm15, %v7476_v17, %v7475_v32 }
 0x991   :  { %v7479_v56 = vsel %vm7403_vm0, %v7478_v62, %v7477_v0  ;;  %v7637_v62 = vsel %vm7397_vm14, %v13784_v20, %v13630_v22  ;;  %v7677_v0 = vrot.slane %v13784_v20, 2 }
 0x99b   :  { %v13685_v23 = vpop.f32.mrf.mxu2 }
 0x99c   :  { %v7355_v46 = vadd.f32 %v13550_v12, %v13685_v23 }
 0x99e   :  { %v13797_v11 = vmax.f32 %v7355_v46, 0.0 }
 0x9a0   :  { %v7640_v17 = vrot.slane %v13797_v11, 6 }
 0x9b5   :  { %v7357_v40 = vpop.f32.mrf.mxu2 }
 0x9b6   :  { %v7358_v14 = vadd.f32 %v13550_v12, %v7357_v40  ;;  %v7495_v40 = vsel %vm7397_vm14, %v7494_v6, %v7493_v19  ;;  %v7638_v19 = vrot.slane %v13791_v33, 7 }
 0x9b8   :  { %v13726_v42 = vmax.f32 %v7358_v14, 0.0  ;;  %v7496_v14 = vsel %vm7400_vm15, %v13692_v3, %v7495_v40  ;;  %v7639_v40 = vsel %vm7400_vm15, %v7638_v19, %v7637_v62  ;;  %v7784_v19 = vld [vmem:[%s14113_s9 + $0x248] sm:$0xff]  ;;  %v7778_v62 = vld [vmem:[%s14113_s9 + $0x218] sm:$0xff] }
 0x9b9   :  { %v7498_v10 = vsel %vm7403_vm0, %v7497_v2, %v7496_v14  ;;  %v7617_v2 = vrot.slane %v13784_v20, 7  ;;  %v7641_v35 = vsel %vm7403_vm0, %v7640_v17, %v7639_v40  ;;  %v7789_v40 = vld [vmem:[%s14113_s9 + $0x270] sm:$0xff] }
 0x9ba   :  { %v7461_v9 = vrot.slane %v13726_v42, 4  ;;  %v7442_v45 = vrot.slane %v13726_v42, 3  ;;  %v7423_v36 = vrot.slane %v13726_v42, 2  ;;  %v7405_v4 = vrot.slane %v13726_v42, 1 }
 0x9bb   :  { %v7518_v16 = vrot.slane %v13726_v42, 7  ;;  %v7499_v38 = vrot.slane %v13726_v42, 6  ;;  %v7480_v23 = vrot.slane %v13726_v42, 5  ;;  %v7618_v7 = vsel %vm7397_vm14, %v7617_v2, %v13618_v13 }
 0x9bc   :  { %v7462_v5 = vsel %vm7406_vm1, %v7461_v9, %v7460_v37  ;;  %v7443_v51 = vsel %vm7406_vm1, %v7442_v45, %v7441_v50  ;;  %v7424_v52 = vsel %vm7406_vm1, %v7423_v36, %v7422_v57  ;;  %v7407_v49 = vsel %vm7406_vm1, %v7405_v4, %v7404_v53 }
 0x9bd   :  { %7463 = vrot.lane.b32.xlu1 %v7462_v5, %s8468_s23  ;;  %7444 = vrot.lane.b32.xlu0 %v7443_v51, %s8467_s26  ;;  %7410 = vst.msk [vmem:[#allocation5] sm:$0xff] %vm7409_vm2, %v7407_v49  ;;  %v7519_v31 = vsel %vm7406_vm1, %v7518_v16, %v7517_v25  ;;  %v7500_v39 = vsel %vm7406_vm1, %v7499_v38, %v7498_v10  ;;  %v7579_v9 = vrot.slane %v13784_v20, 5  ;;  %v7560_v50 = vrot.slane %v13784_v20, 4 }
 0x9be   :  { %7425 = vrot.lane.b32.xlu2 %v7424_v52, %s8469_s24  ;;  %v7481_v37 = vsel %vm7406_vm1, %v7480_v23, %v7479_v56  ;;  %v7581_v36 = vrot.slane %v13791_v33, 4  ;;  %v7562_v57 = vrot.slane %v13791_v33, 3  ;;  %v7533_v4 = vsel %vm7394_vm13, %v7532_v27, %v13594_v43 }
 0x9bf   :  { %v7583_v5 = vrot.slane %v13797_v11, 3  ;;  %v7564_v51 = vrot.slane %v13797_v11, 2  ;;  %v7535_v52 = vsel %vm7397_vm14, %v7534_v26, %v7533_v4  ;;  %v7561_v59 = vsel %vm7397_vm14, %v7560_v50, %v13624_v41 }
 0x9c0   :  { %v7537_v53 = vsel %vm7400_vm15, %v7536_v48, %v7535_v52  ;;  %v7563_v6 = vsel %vm7400_vm15, %v7562_v57, %v7561_v59  ;;  %v7598_v27 = vrot.slane %v13784_v20, 6  ;;  %v7621_v16 = vrot.slane %v13797_v11, 5  ;;  %v7769_v52 = vld [vmem:[%s14113_s9 + $0x1d0] sm:$0xff]  ;;  %v7763_v59 = vld [vmem:[%s14113_s9 + $0x1a0] sm:$0xff] }
 0x9c1   :  { %v7539_v49 = vsel %vm7403_vm0, %v7538_v44, %v7537_v53  ;;  %v7565_v28 = vsel %vm7403_vm0, %v7564_v51, %v7563_v6  ;;  %v7620_v24 = vsel %vm7400_vm15, %v7619_v18, %v7618_v7  ;;  %v7658_v13 = vrot.slane %v13784_v20, 1  ;;  %v7713_v44 = vld [vmem:[%s14113_s9 + $0x10] sm:$0xff]  ;;  %v7767_v53 = vld [vmem:[%s14113_s9 + $0x1c0] sm:$0xff]  ;;  %v7786_v6 = vld [vmem:[%s14113_s9 + $0x258] sm:$0xff] }
 0x9c2   :  { %v7599_v38 = vsel %vm7397_vm14, %v7598_v27, %v13627_v63  ;;  %v7622_v22 = vsel %vm7403_vm0, %v7621_v16, %v7620_v24  ;;  %v7696_v25 = vrot.slane %v13784_v20, 3  ;;  %v7698_v10 = vrot.slane %v13791_v33, 2  ;;  %v7773_v51 = vld [vmem:[%s14113_s9 + $0x1f0] sm:$0xff]  ;;  %v7782_v18 = vld [vmem:[%s14113_s9 + $0x238] sm:$0xff]  ;;  %v7787_v24 = vld [vmem:[%s14113_s9 + $0x260] sm:$0xff] }
 0x9c3   :  { %v7601_v8 = vsel %vm7400_vm15, %v7600_v30, %v7599_v38  ;;  %v7679_v56 = vrot.slane %v13791_v33, 1  ;;  %v7659_v26 = vsel %vm7397_vm14, %v7658_v13, %v13633_v54  ;;  %v7678_v50 = vsel %vm7397_vm14, %v7677_v0, %v13639_v15  ;;  %v7745_v27 = vld [vmem:[%s14113_s9 + $0x110] sm:$0xff]  ;;  %v7743_v30 = vld [vmem:[%s14113_s9 + $0x100] sm:$0xff] }
 0x9c4   :  { %vm7590_vm13 = vcmask 589216   ;;  %vm7668_vm2 = vcmask 195616   ;;  %v7777_v0 = vld [vmem:[%s14113_s9 + $0x210] sm:$0xff] }
 0x9c5   :  { %7520 = vrot.lane.b32.xlu1 %v7519_v31, %s8470_s30  ;;  %7501 = vrot.lane.b32.xlu0 %v7500_v39, %s8463_s15  ;;  %s8471_s15 = smov 12   ;;  %v7661_v31 = vrot.slane %v13797_v11, 7  ;;  %v7700_v39 = vrot.slane %v13797_v11, 1  ;;  %v7680_v57 = vsel %vm7400_vm15, %v7679_v56, %v7678_v50 }
 0x9c6   :  { %7482 = vrot.lane.b32.xlu2 %v7481_v37, %s8466_s25  ;;  %v7360_v1 = vpop.f32.mrf.mxu2  ;;  %s8472_s25 = smov 52   ;;  %v7681_v4 = vsel %vm7403_vm0, %v13797_v11, %v7680_v57  ;;  %v7728_v57 = vld [vmem:[%s14113_s9 + $0x88] sm:$0xff] }
 0x9c7   :  { %v7361_v45 = vadd.f32 %v13550_v12, %v7360_v1  ;;  %v7580_v12 = vsel %vm7397_vm14, %v7579_v9, %v13621_v58  ;;  %v7540_v58 = vsel %vm7406_vm1, %v13726_v42, %v7539_v49  ;;  %v7602_v42 = vrot.slane %v13797_v11, 4  ;;  %v7788_v11 = vld [vmem:[%s14113_s9 + $0x268] sm:$0xff]  ;;  %v7755_v49 = vld [vmem:[%s14113_s9 + $0x160] sm:$0xff] }
 0x9c8   :  { %v7582_v43 = vsel %vm7400_vm15, %v7581_v36, %v7580_v12  ;;  %v7697_v1 = vsel %vm7397_vm14, %v7696_v25, %v13636_v55  ;;  %v7660_v9 = vsel %vm7400_vm15, %v13791_v33, %v7659_v26  ;;  %v7715_v33 = vld [vmem:[%s14113_s9 + $0x20] sm:$0xff]  ;;  %7910 = vmatpush.msrb.mxu2 %v7788_v11  ;;  %v7765_v12 = vld [vmem:[%s14113_s9 + $0x1b0] sm:$0xff]  ;;  %vm7609_vm14 = vcmask 753216   ;;  %v7714_v11 = vld [vmem:[%s14113_s9 + $0x18] sm:$0xff] }
 0x9c9   :  { %v13817_v3 = vmax.f32 %v7361_v45, 0.0  ;;  %v7584_v60 = vsel %vm7403_vm0, %v7583_v5, %v7582_v43  ;;  %v7603_v23 = vsel %vm7403_vm0, %v7602_v42, %v7601_v8  ;;  %v7699_v20 = vsel %vm7400_vm15, %v7698_v10, %v7697_v1  ;;  %7814 = vmatpush.msra.mxu3 %v7715_v33  ;;  %v7711_v5 = vld [vmem:[%s14113_s9] sm:$0xff]  ;;  %v7761_v43 = vld [vmem:[%s14113_s9 + $0x190] sm:$0xff]  ;;  %v7740_v1 = vld [vmem:[%s14113_s9 + $0xe8] sm:$0xff] }
 0x9ca   :  { %v7662_v45 = vsel %vm7403_vm0, %v7661_v31, %v7660_v9  ;;  %v7701_v36 = vsel %vm7403_vm0, %v7700_v39, %v7699_v20  ;;  %7911 = vmatpush.msrb.mxu2 %v7786_v6  ;;  %vm7649_vm15 = vcmask 31744   ;;  %vm7628_vm0 = vcmask 917216   ;;  %v7779_v25 = vld [vmem:[%s14113_s9 + $0x220] sm:$0xff]  ;;  %v7736_v9 = vld [vmem:[%s14113_s9 + $0xc8] sm:$0xff]  ;;  %v7734_v20 = vld [vmem:[%s14113_s9 + $0xb8] sm:$0xff] }
 0x9cb   :  { %v7585_v47 = vrot.slane %v13817_v3, 2  ;;  %v7566_v29 = vrot.slane %v13817_v3, 1  ;;  %v7604_v34 = vrot.slane %v13817_v3, 3  ;;  %v7642_v46 = vrot.slane %v13817_v3, 5  ;;  %7815 = vmatpush.msra.mxu3 %v7713_v44  ;;  %v7775_v31 = vld [vmem:[%s14113_s9 + $0x200] sm:$0xff]  ;;  %v7718_v33 = vld [vmem:[%s14113_s9 + $0x38] sm:$0xff] }
 0x9cc   :  { %v7623_v21 = vrot.slane %v13817_v3, 4  ;;  %v7663_v37 = vrot.slane %v13817_v3, 6  ;;  %v7682_v48 = vrot.slane %v13817_v3, 7  ;;  %v7702_v55 = vsel %vm7406_vm1, %v13817_v3, %v7701_v36  ;;  %v7771_v3 = vld [vmem:[%s14113_s9 + $0x1e0] sm:$0xff]  ;;  %7912 = vmatpush.msrb.mxu2 %v7784_v19  ;;  %v7730_v36 = vld [vmem:[%s14113_s9 + $0x98] sm:$0xff]  ;;  %v7716_v44 = vld [vmem:[%s14113_s9 + $0x28] sm:$0xff] }
 0x9cd   :  { %v7586_v61 = vsel %vm7406_vm1, %v7585_v47, %v7584_v60  ;;  %v7567_v41 = vsel %vm7406_vm1, %v7566_v29, %v7565_v28  ;;  %v7605_v63 = vsel %vm7406_vm1, %v7604_v34, %v7603_v23  ;;  %v7643_v14 = vsel %vm7406_vm1, %v7642_v46, %v7641_v35  ;;  %7816 = vmatpush.msra.mxu3 %v7711_v5  ;;  %v7759_v47 = vld [vmem:[%s14113_s9 + $0x180] sm:$0xff]  ;;  %v7757_v29 = vld [vmem:[%s14113_s9 + $0x170] sm:$0xff]  ;;  %v7780_v46 = vld [vmem:[%s14113_s9 + $0x228] sm:$0xff] }
 0x9ce   :  { %7541 = vrot.lane.b32.xlu2 %v7540_v58, %s8471_s15  ;;  %7587 = vrot.lane.b32.xlu1 %v7586_v61, %s8472_s25  ;;  %v7624_v32 = vsel %vm7406_vm1, %v7623_v21, %v7622_v22  ;;  %v7664_v54 = vsel %vm7406_vm1, %v7663_v37, %v7662_v45  ;;  %v7683_v15 = vsel %vm7406_vm1, %v7682_v48, %v7681_v4  ;;  %v7753_v28 = vld [vmem:[%s14113_s9 + $0x150] sm:$0xff]  ;;  %v7751_v58 = vld [vmem:[%s14113_s9 + $0x140] sm:$0xff]  ;;  %vm7647_vm1 = vcmask 1048448  }
 0x9cf   :  { %7568 = vrot.lane.b32.xlu0 %v7567_v41, %s8473_s2  ;;  %7821 = vmatpush.msrb.mxu3 %v7773_v51  ;;  %v7749_v61 = vld [vmem:[%s14113_s9 + $0x130] sm:$0xff]  ;;  %v7747_v41 = vld [vmem:[%s14113_s9 + $0x120] sm:$0xff]  ;;  %v7776_v21 = vld [vmem:[%s14113_s9 + $0x208] sm:$0xff] }
 0x9d0   :  { %7913 = vmatpush.msrb.mxu2 %v7782_v18  ;;  %v7742_v37 = vld [vmem:[%s14113_s9 + $0xf8] sm:$0xff]  ;;  %v7732_v45 = vld [vmem:[%s14113_s9 + $0xa8] sm:$0xff] }
 0x9d1   :  { %7822 = vmatpush.msrb.mxu3 %v7771_v3  ;;  %v7738_v48 = vld [vmem:[%s14113_s9 + $0xd8] sm:$0xff]  ;;  %v7712_v5 = vld [vmem:[%s14113_s9 + $0x8] sm:$0xff] }
 0x9d2   :  { %7914 = vmatpush.msrb.mxu2 %v7780_v46  ;;  %v7722_v4 = vld [vmem:[%s14113_s9 + $0x58] sm:$0xff]  ;;  %v7772_v3 = vld [vmem:[%s14113_s9 + $0x1e8] sm:$0xff] }
 0x9d3   :  { %7823 = vmatpush.msrb.mxu3 %v7769_v52  ;;  %v7774_v51 = vld [vmem:[%s14113_s9 + $0x1f8] sm:$0xff] }
 0x9d4   :  { %7915 = vmatpush.msrb.mxu2 %v7778_v62  ;;  %v7770_v52 = vld [vmem:[%s14113_s9 + $0x1d8] sm:$0xff] }
 0x9d5   :  { %7824 = vmatpush.msrb.mxu3 %v7767_v53  ;;  %v7768_v53 = vld [vmem:[%s14113_s9 + $0x1c8] sm:$0xff]  ;;  %v7758_v6 = vld [vmem:[%s14113_s9 + $0x178] sm:$0xff] }
 0x9d6   :  { %7606 = vrot.lane.b32.xlu2 %v7605_v63, %s8465_s16  ;;  %7644 = vrot.lane.b32.xlu1 %v7643_v14, %s8474_s5  ;;  %s8476_s16 = smov 4   ;;  %v7785_v63 = vld [vmem:[%s14113_s9 + $0x250] sm:$0xff]  ;;  %v7783_v14 = vld [vmem:[%s14113_s9 + $0x240] sm:$0xff] }
 0x9d7   :  { %7625 = vrot.lane.b32.xlu0 %v7624_v32, %s8475_s3  ;;  %7825 = vmatpush.msrb.mxu3 %v7765_v12  ;;  %v7781_v32 = vld [vmem:[%s14113_s9 + $0x230] sm:$0xff]  ;;  %v7766_v12 = vld [vmem:[%s14113_s9 + $0x1b8] sm:$0xff] }
 0x9d8   :  { %7916 = vmatpush.msrb.mxu2 %v7776_v21 }
 0x9d9   :  { %7826 = vmatpush.msrb.mxu3 %v7763_v59  ;;  %v7764_v59 = vld [vmem:[%s14113_s9 + $0x1a8] sm:$0xff] }
 0x9db   :  { %7827 = vmatpush.msrb.mxu3 %v7761_v43  ;;  %v7762_v43 = vld [vmem:[%s14113_s9 + $0x198] sm:$0xff] }
 0x9dd   :  { %7828 = vmatpush.msrb.mxu3 %v7759_v47  ;;  %v7760_v47 = vld [vmem:[%s14113_s9 + $0x188] sm:$0xff] }
 0x9de   :  { %7665 = vrot.lane.b32.xlu2 %v7664_v54, %s8476_s16  ;;  %7703 = vrot.lane.b32.xlu1 %v7702_v55, %s8477_s13  ;;  %v7726_v54 = vld [vmem:[%s14113_s9 + $0x78] sm:$0xff]  ;;  %v7724_v55 = vld [vmem:[%s14113_s9 + $0x68] sm:$0xff]  ;;  %s7930_s16 = sshll.u32 %s14115_s11, 4  ;;  %s7931_s16 = int_to_ptr.hbm [resolvable:$true] %s7930_s16 }
 0x9df   :  { %7684 = vrot.lane.b32.xlu0 %v7683_v15, %s8478_s17  ;;  %7829 = vmatpush.msrb.mxu3 %v7757_v29  ;;  %v7720_v15 = vld [vmem:[%s14113_s9 + $0x48] sm:$0xff] }
 0x9e0   :  { %v7756_v29 = vld [vmem:[%s14113_s9 + $0x168] sm:$0xff] }
 0x9e1   :  { %7830 = vmatpush.msrb.mxu3 %v7755_v49  ;;  %v7754_v49 = vld [vmem:[%s14113_s9 + $0x158] sm:$0xff] }
 0x9e3   :  { %7831 = vmatpush.msrb.mxu3 %v7753_v28  ;;  %v7750_v28 = vld [vmem:[%s14113_s9 + $0x138] sm:$0xff] }
 0x9e5   :  { %7832 = vmatpush.msrb.mxu3 %v7751_v58  ;;  %v7748_v58 = vld [vmem:[%s14113_s9 + $0x128] sm:$0xff] }
 0x9e7   :  { %7833 = vmatpush.msrb.mxu3 %v7749_v61  ;;  %v7746_v61 = vld [vmem:[%s14113_s9 + $0x118] sm:$0xff] }
 0x9e9   :  { %7834 = vmatpush.msrb.mxu3 %v7747_v41  ;;  %v7744_v41 = vld [vmem:[%s14113_s9 + $0x108] sm:$0xff] }
 0x9eb   :  { %7835 = vmatpush.msrb.mxu3 %v7745_v27 }
 0x9ed   :  { %7836 = vmatpush.msrb.mxu3 %v7743_v30  ;;  %v7791_v30 = vld [vmem:[%s14114_s10] sm:$0x3] }
 0xa18   :  { %v7426_v60 = vpop.permute.xlu2 %7425 }
 0xa19   :  { %7429 = vst.msk [vmem:[#allocation5] sm:$0xff] %vm7428_vm3, %v7426_v60  ;;  %vm7687_vm3 = vcmask 359616   ;;  %v7752_v60 = vld [vmem:[%s14113_s9 + $0x148] sm:$0xff]  ;;  %s8479_s9 = smov [#allocation6]  }
 0xa1a   :  { %s7928_s2 = sshll.u32 %s8479_s9, 4  ;;  %s7929_s2 = int_to_ptr.vmem [resolvable:$true] %s7928_s2 }
 0xa20   :  { %v7483_v2 = vpop.permute.xlu2 %7482 }
 0xa28   :  { %v7542_v34 = vpop.permute.xlu2 %7541 }
 0xa2f   :  { %v7464_v42 = vpop.permute.xlu1 %7463  ;;  %v7445_v17 = vpop.permute.xlu0 %7444 }
 0xa30   :  { %7448 = vst.msk [vmem:[#allocation5] sm:$0xff] %vm7447_vm4, %v7445_v17  ;;  %v7607_v7 = vpop.permute.xlu2 %7606  ;;  %vm7706_vm4 = vcmask 523616  }
 0xa31   :  { %7467 = vst.msk [vmem:[#allocation5] sm:$0xff] %vm7466_vm5, %v7464_v42  ;;  %vm7797_vm5 = vcmask 523264  }
 0xa32   :  { %7486 = vst.msk [vmem:[#allocation5] sm:$0xff] %vm7485_vm7, %v7483_v2  ;;  %v7793_v2 = vperm.slane %v7791_v30, 0 }
 0xa37   :  { %v7521_v16 = vpop.permute.xlu1 %7520  ;;  %v7502_v38 = vpop.permute.xlu0 %7501 }
 0xa38   :  { %7526 = vst.msk [vmem:[#allocation5 + $0x8] sm:$0xff] %vm7525_vm8, %v7521_v16  ;;  %v7666_v10 = vpop.permute.xlu2 %7665 }
 0xa39   :  { %7505 = vst.msk [vmem:[#allocation5] sm:$0xff] %vm7504_vm9, %v7502_v38 }
 0xa3a   :  { %7524 = vst.msk [vmem:[#allocation5] sm:$0xff] %vm7523_vm10, %v7521_v16  ;;  %v7794_v16 = vperm.slane %v7791_v30, 1 }
 0xa3b   :  { %7545 = vst.msk [vmem:[#allocation5 + $0x8] sm:$0xff] %vm7544_vm11, %v7542_v34 }
 0xa40   :  { %v7588_v8 = vpop.permute.xlu1 %7587 }
 0xa41   :  { %v7569_v23 = vpop.permute.xlu0 %7568  ;;  %v13972_v35 = vld [vmem:[#allocation5] sm:$0xff] }
 0xa42   :  { %7572 = vst.msk [vmem:[#allocation5 + $0x8] sm:$0xff] %vm7571_vm12, %v7569_v23  ;;  %7817 = vmatmul.f32.vlgmr.msra.gmra.mxu3 %v13972_v35 }
 0xa43   :  { %7591 = vst.msk [vmem:[#allocation5 + $0x8] sm:$0xff] %vm7590_vm13, %v7588_v8  ;;  %7849 = vmatpush.msra.mxu3 %v7789_v40 }
 0xa44   :  { %7610 = vst.msk [vmem:[#allocation5 + $0x8] sm:$0xff] %vm7609_vm14, %v7607_v7 }
 0xa45   :  { %7850 = vmatpush.msra.mxu3 %v7787_v24 }
 0xa47   :  { %7851 = vmatpush.msra.mxu3 %v7785_v63 }
 0xa48   :  { %v7645_v22 = vpop.permute.xlu1 %7644 }
 0xa49   :  { %7650 = vst.msk [vmem:[#allocation5 + $0x10] sm:$0xff] %vm7649_vm15, %v7645_v22  ;;  %v7626_v13 = vpop.permute.xlu0 %7625  ;;  %7852 = vmatpush.msra.mxu3 %v7783_v14 }
 0xa4a   :  { %7629 = vst.msk [vmem:[#allocation5 + $0x8] sm:$0xff] %vm7628_vm0, %v7626_v13 }
 0xa4b   :  { %7648 = vst.msk [vmem:[#allocation5 + $0x8] sm:$0xff] %vm7647_vm1, %v7645_v22  ;;  %7853 = vmatpush.msra.mxu3 %v7781_v32 }
 0xa4c   :  { %7669 = vst.msk [vmem:[#allocation5 + $0x10] sm:$0xff] %vm7668_vm2, %v7666_v10 }
 0xa4d   :  { %7854 = vmatpush.msra.mxu3 %v7779_v25 }
 0xa4f   :  { %7855 = vmatpush.msra.mxu3 %v7777_v0 }
 0xa50   :  { %v7704_v39 = vpop.permute.xlu1 %7703 }
 0xa51   :  { %v7685_v56 = vpop.permute.xlu0 %7684  ;;  %7856 = vmatpush.msra.mxu3 %v7775_v31 }
 0xa52   :  { %7688 = vst.msk [vmem:[#allocation5 + $0x10] sm:$0xff] %vm7687_vm3, %v7685_v56  ;;  %v13999_v26 = vld [vmem:[#allocation5 + $0x8] sm:$0xff] }
 0xa53   :  { %7707 = vst.msk [vmem:[#allocation5 + $0x10] sm:$0xff] %vm7706_vm4, %v7704_v39  ;;  %7837 = vmatmul.f32.vlgmr.msrb.gmra.mxu3 %v13999_v26 }
 0xa54   :  { %7861 = vmatpush.msrb.mxu3 %v7742_v37 }
 0xa56   :  { %7862 = vmatpush.msrb.mxu3 %v7740_v1 }
 0xa58   :  { %7863 = vmatpush.msrb.mxu3 %v7738_v48 }
 0xa5a   :  { %7864 = vmatpush.msrb.mxu3 %v7736_v9  ;;  %v7710_v50 = vld [vmem:[#allocation5 + $0x10] sm:$0xff] }
 0xa5b   :  { %8077 = vmatmul.msk.f32.vlgmr.msra.gmra.mxu3 %vm7797_vm5, %v7710_v50  ;;  %8078 = vmatmul.msk.f32.vlgmr.msrb.gmra.mxu2 %vm7797_vm5, %v7710_v50 }
 0xa5c   :  { %7865 = vmatpush.msrb.mxu3 %v7734_v20 }
 0xa5e   :  { %7866 = vmatpush.msrb.mxu3 %v7732_v45 }
 0xa60   :  { %7867 = vmatpush.msrb.mxu3 %v7730_v36 }
 0xa62   :  { %7868 = vmatpush.msrb.mxu3 %v7728_v57 }
 0xa64   :  { %7869 = vmatpush.msrb.mxu3 %v7726_v54 }
 0xa66   :  { %7870 = vmatpush.msrb.mxu3 %v7724_v55 }
 0xa68   :  { %7871 = vmatpush.msrb.mxu3 %v7722_v4 }
 0xa6a   :  { %7872 = vmatpush.msrb.mxu3 %v7720_v15 }
 0xa6c   :  { %7873 = vmatpush.msrb.mxu3 %v7718_v33 }
 0xa6e   :  { %7874 = vmatpush.msrb.mxu3 %v7716_v44 }
 0xa70   :  { %7875 = vmatpush.msrb.mxu3 %v7714_v11 }
 0xa72   :  { %7876 = vmatpush.msrb.mxu3 %v7712_v5 }
 0xa73   :  { %7877 = vmatmul.f32.vlgmr.msrb.gmra.mxu3 %v13972_v35 }
 0xa74   :  { %7881 = vmatpush.msra.mxu3 %v7774_v51 }
 0xa76   :  { %7882 = vmatpush.msra.mxu3 %v7772_v3 }
 0xa78   :  { %7883 = vmatpush.msra.mxu3 %v7770_v52 }
 0xa7a   :  { %7884 = vmatpush.msra.mxu3 %v7768_v53 }
 0xa7c   :  { %7885 = vmatpush.msra.mxu3 %v7766_v12 }
 0xa7e   :  { %7886 = vmatpush.msra.mxu3 %v7764_v59 }
 0xa80   :  { %7887 = vmatpush.msra.mxu3 %v7762_v43 }
 0xa82   :  { %7888 = vmatpush.msra.mxu3 %v7760_v47 }
 0xa84   :  { %7889 = vmatpush.msra.mxu3 %v7758_v6 }
 0xa86   :  { %7890 = vmatpush.msra.mxu3 %v7756_v29 }
 0xa88   :  { %7891 = vmatpush.msra.mxu3 %v7754_v49 }
 0xa8a   :  { %7892 = vmatpush.msra.mxu3 %v7752_v60 }
 0xa8c   :  { %7893 = vmatpush.msra.mxu3 %v7750_v28 }
 0xa8e   :  { %7894 = vmatpush.msra.mxu3 %v7748_v58 }
 0xa90   :  { %7895 = vmatpush.msra.mxu3 %v7746_v61 }
 0xa92   :  { %7896 = vmatpush.msra.mxu3 %v7744_v41 }
 0xa93   :  { %7897 = vmatmul.f32.vlgmr.msra.gmra.mxu3 %v13999_v26 }
 0xac5   :  { %v7818_v27 = vpop.f32.mrf.mxu3 }
 0xac6   :  { %v7819_v42 = vadd.f32 %v7818_v27, %v7793_v2 }
 0xad6   :  { %v7838_v19 = vpop.f32.mrf.mxu3 }
 0xad7   :  { %v7839_v17 = vadd.f32 %v7838_v19, %v7819_v42 }
 0xade   :  { %v7858_v18 = vpop.f32.mrf.mxu3  ;;  %v7918_v8 = vpop.f32.mrf.mxu2 }
 0xadf   :  { %v7859_v34 = vadd.f32 %v7858_v18, %v7839_v17 }
 0xae1   :  { %7921 = vst [vmem:[#allocation6] sm:$0xff] %v7859_v34 }
 0xaf6   :  { %v7878_v46 = vpop.f32.mrf.mxu3 }
 0xaf7   :  { %v7879_v38 = vadd.f32 %v7878_v46, %v7794_v16 }
 0xb16   :  { %v7898_v62 = vpop.f32.mrf.mxu3 }
 0xb17   :  { %v7899_v21 = vadd.f32 %v7898_v62, %v7879_v38 }
 0xb19   :  { %v7919_v40 = vadd.f32 %v7918_v8, %v7899_v21 }
 0xb1b   :  { %7922 = vst.msk [vmem:[#allocation6 + $0x8] sm:$0xff] %vm6417_vm6, %v7919_v40 }
 0xb1c   :  { %7933 = dma.vmem_to_hbm [thread:$0]  %s7929_s2, 256, %s7931_s16, [#allocation7]  }
 0xb1d   :  { %8458 = dma.done.wait [#allocation7], 256  }
 0xb1e   :  { %8459 = vsyncadd [#allocation7], 4294967040 }
 0xb1f   :  { %7938 = vsyncpa [#allocation7], 1 }

</bundles_post_ra>
